<compile_context>
chip_gen: v5e
topology: v5e:2x2
jax: 0.10.0
libtpu: 0.0.40
codegen_flags: <defaults>
</compile_context>

<pallas_src>
import functools
import math

import jax
import jax.numpy as jnp
import numpy as np
from jax import lax
from jax.experimental import pallas as pl
from jax.experimental.pallas import tpu as pltpu

HIDDEN = 10
NUM_LAYERS = 19
IN_CHANNELS = 64
BATCH = 2
SPATIAL = 16
BN_EPS = 1e-5


# ------------------------------ kernel helpers ------------------------------ #

def _relu(x):
    return jnp.maximum(x, 0.0)


def _softplus(x):
    # numerically stable softplus built only from exp / log / abs / max
    return jnp.maximum(x, 0.0) + jnp.log(1.0 + jnp.exp(-jnp.abs(x)))


def _dw_pw_block(src_e, src_o, dw_ref, dwb_ref, pw_ref, pwb_ref, hin, win, nb):
    """One conv_dw block: depthwise 3x3 / stride 2 (+folded BN + ReLU), then 1x1 (+BN+ReLU).

    src_e / src_o: zero-padded input split by *padded column* parity, layout
      (Hin+2, ((Win+2)//2)*nb, Cin), dim1 index = j*nb + n  <-> padded column 2j (even)
      or 2j+1 (odd).  Every stride-2 tap is then a contiguous slice of one buffer.
    Returns hin//2 output rows, each a (Wout*nb, Cout) f32 value.
    """
    ho, wo = hin // 2, win // 2
    cin = dw_ref.shape[1]
    taps = [dw_ref[t:t + 1, :] for t in range(9)]      # 9 x (1, Cin), hoisted
    dwb = dwb_ref[0:1, :]
    pw_mat = pw_ref[...]
    pwb = pwb_ref[0:1, :]
    rows = []
    for oh in range(ho):
        acc = jnp.zeros((wo * nb, cin), jnp.float32)
        for ky in range(3):
            row = 2 * oh + ky                          # padded input row
            for kx in range(3):
                buf = src_e if kx % 2 == 0 else src_o  # padded column parity == kx & 1
                c0 = (kx // 2) * nb
                acc = acc + buf[row, c0:c0 + wo * nb, :] * taps[3 * ky + kx]
        y = _relu(acc + dwb)                           # folded BN bias + ReLU
        z = jnp.dot(y, pw_mat, preferred_element_type=jnp.float32,
                    precision=lax.Precision.HIGHEST)   # 1x1 conv as 2D MXU matmul
        rows.append(_relu(z + pwb))
    return rows


def _store_rows(zb_ref, rows):
    for oh, z in enumerate(rows):
        zb_ref[oh] = z


def _scatter_padded(zb_ref, dst_e, dst_o, ho, wo, nb):
    """Write a block output (zb: (ho, wo*nb, C)) into the next block's zero-padded,
    column-parity-split input buffers (interior only; the borders stay zero)."""
    for ow in range(wo):
        pc = ow + 1                                    # padded column index
        dst = dst_e if pc % 2 == 0 else dst_o
        j = pc // 2
        dst[1:ho + 1, j * nb:(j + 1) * nb, :] = zb_ref[:, ow * nb:(ow + 1) * nb, :]


# ------------------------------ fused kernel -------------------------------- #

def _policy_fused_kernel(*refs, batch, height, width):
    (x_we, x_wo,
     dw1, db1, pw1, pb1,
     dw2, db2, pw2, pb2,
     dw3, db3, pw3, pb3,
     dw4, db4, pw4, pb4,
     w1f, b1f, w2g, b2g, eps_a, eps_w,
     bits_a_o, bits_w_o, logp_a_o, logp_w_o,
     p1e, p1o, p2e, p2o, p3e, p3o, p4e, p4o, zb1, zb2, zb3) = refs

    nb = batch
    hs = [height, height // 2, height // 4, height // 8, height // 16]
    ws = [width, width // 2, width // 4, width // 8, width // 16]

    # ---- in-kernel zero padding: clear padded buffers, then fill interiors ----
    for buf in (p1e, p1o, p2e, p2o, p3e, p3o, p4e, p4o):
        buf[...] = jnp.zeros(buf.shape, jnp.float32)

    # The wrapper split the input by *original* column parity; original column w
    # maps to padded column w + 1, which flips the parity.
    p1o[1:hs[0] + 1, 0:(ws[0] // 2) * nb, :] = x_we[...]
    p1e[1:hs[0] + 1, nb:nb + (ws[0] // 2) * nb, :] = x_wo[...]

    # ---- conv_dw blocks 1..3: compute rows, stash, scatter into next padded bufs ----
    for (pe, po, dw, db, pw, pb, zb, ne, no, lvl) in (
            (p1e, p1o, dw1, db1, pw1, pb1, zb1, p2e, p2o, 0),
            (p2e, p2o, dw2, db2, pw2, pb2, zb2, p3e, p3o, 1),
            (p3e, p3o, dw3, db3, pw3, pb3, zb3, p4e, p4o, 2)):
        rows = _dw_pw_block(pe, po, dw, db, pw, pb, hs[lvl], ws[lvl], nb)
        _store_rows(zb, rows)
        _scatter_padded(zb, ne, no, hs[lvl + 1], ws[lvl + 1], nb)

    # ---- block 4 + AdaptiveAvgPool2d((1,1)) (spatial mean of remaining positions) ----
    rows = _dw_pw_block(p4e, p4o, dw4, db4, pw4, pb4, hs[3], ws[3], nb)
    pooled = jnp.zeros((nb, pw4.shape[1]), jnp.float32)
    for z in rows:
        for ow in range(ws[4]):
            pooled = pooled + z[ow * nb:(ow + 1) * nb, :]
    feat = pooled * (1.0 / float(hs[4] * ws[4]))                     # (N, HIDDEN)

    # ---- classifier: Linear(+folded BN1d) + ReLU + Linear split into 4 head groups ----
    hid = _relu(jnp.dot(feat, w1f[...], preferred_element_type=jnp.float32,
                        precision=lax.Precision.HIGHEST) + b1f[0:1, :])

    def group(g):      # weights pre-split per head group -> no lane slicing in-kernel
        return jnp.dot(hid, w2g[g], preferred_element_type=jnp.float32,
                       precision=lax.Precision.HIGHEST) + b2g[g]

    mu_a = _relu(group(0) + 1.0)
    mu_w = _relu(group(1) + 1.0)
    var_a = _softplus(group(2))
    var_w = _softplus(group(3))

    # ---- continuous Gaussian head (eps supplied by the wrapper) ----
    def head(mu, var, eps, bits_o, logp_o):
        action = mu + jnp.sqrt(var) * eps
        prob = jnp.exp(-(action - mu) ** 2 / (2.0 * var)) / jnp.sqrt(2.0 * var * math.pi)
        logp_o[...] = jnp.log(prob)
        # discretize: clamp to [0,7] then floor (truncation == floor for x >= 0), +2
        bits_o[...] = jnp.clip(action, 0.0, 7.0).astype(jnp.int32) + 2

    head(mu_a, var_a, eps_a[...], bits_a_o, logp_a_o)
    head(mu_w, var_w, eps_w[...], bits_w_o, logp_w_o)


# ------------------------------ wrapper -------------------------------------- #

def _vmem_spec():
    return pl.BlockSpec(memory_space=pltpu.MemorySpace.VMEM)


def policy_forward_pallas(folded, x_nchw, eps_a, eps_w):
    n, c, h, w = x_nchw.shape
    # one-time layout plumbing (NCHW -> (H, W*N, C), split by original column parity)
    xt = jnp.transpose(x_nchw.astype(jnp.float32), (2, 3, 0, 1))       # (H, W, N, C)
    x_we = xt[:, 0::2].reshape(h, (w // 2) * n, c)                     # even original cols
    x_wo = xt[:, 1::2].reshape(h, (w // 2) * n, c)                     # odd original cols

    inputs = [x_we, x_wo]
    for blk in folded["blocks"]:
        inputs += [blk["dw"], blk["dwb"], blk["pw"], blk["pwb"]]
    cls = folded["cls"]
    inputs += [cls["w1"], cls["b1"], cls["w2g"], cls["b2g"], eps_a, eps_w]

    # padded, column-parity-split VMEM buffers per block + per-block row stash
    def _pads(hin, win, cin):
        shp = (hin + 2, ((win + 2) // 2) * n, cin)
        return [pltpu.VMEM(shp, jnp.float32), pltpu.VMEM(shp, jnp.float32)]

    chans = [IN_CHANNELS, HIDDEN, HIDDEN, HIDDEN]
    scratch, zbufs = [], []
    hh, ww = h, w
    for i, cin in enumerate(chans):
        scratch += _pads(hh, ww, cin)
        hh, ww = hh // 2, ww // 2
        if i < 3:
            zbufs.append(pltpu.VMEM((hh, ww * n, HIDDEN), jnp.float32))
    scratch += zbufs

    out_shape = (
        jax.ShapeDtypeStruct((n, NUM_LAYERS), jnp.int32),
        jax.ShapeDtypeStruct((n, NUM_LAYERS), jnp.int32),
        jax.ShapeDtypeStruct((n, NUM_LAYERS), jnp.float32),
        jax.ShapeDtypeStruct((n, NUM_LAYERS), jnp.float32),
    )

    kern = functools.partial(_policy_fused_kernel, batch=n, height=h, width=w)
    bits_a, bits_w, logp_a, logp_w = pl.pallas_call(
        kern,
        out_shape=out_shape,
        in_specs=[_vmem_spec() for _ in inputs],
        out_specs=tuple(_vmem_spec() for _ in range(4)),
        scratch_shapes=scratch,
    )(*inputs)
    return (bits_a, bits_w), (logp_a, logp_w)


# ------------------------------ parameters ----------------------------------- #

def init_raw_params(key):
    """PyTorch-layout parameters + synthetic (eval-mode) BatchNorm running stats."""
    def bn_stats(k, ch):
        k1, k2, k3, k4 = jax.random.split(k, 4)
        gamma = 1.0 + 0.1 * jax.random.normal(k1, (ch,), jnp.float32)
        beta = 0.1 * jax.random.normal(k2, (ch,), jnp.float32)
        mean = 0.1 * jax.random.normal(k3, (ch,), jnp.float32)
        var = jax.random.uniform(k4, (ch,), jnp.float32, 0.5, 1.5)
        return gamma, beta, mean, var

    blocks = []
    chans = [(IN_CHANNELS, HIDDEN)] + [(HIDDEN, HIDDEN)] * 3
    for cin, cout in chans:
        key, kdw, kb1, kpw, kb2 = jax.random.split(key, 5)
        blocks.append(dict(
            dw_w=0.3 * jax.random.normal(kdw, (cin, 1, 3, 3), jnp.float32),
            bn1=bn_stats(kb1, cin),
            pw_w=0.3 * jax.random.normal(kpw, (cout, cin, 1, 1), jnp.float32),
            bn2=bn_stats(kb2, cout),
        ))

    key, kw1, kb1, kbn, kw2, kb2 = jax.random.split(key, 6)
    cls = dict(
        w1=0.3 * jax.random.normal(kw1, (HIDDEN, HIDDEN), jnp.float32),
        b1=0.1 * jax.random.normal(kb1, (HIDDEN,), jnp.float32),
        bn=bn_stats(kbn, HIDDEN),
        w2=0.3 * jax.random.normal(kw2, (4 * NUM_LAYERS, HIDDEN), jnp.float32),
        b2=0.1 * jax.random.normal(kb2, (4 * NUM_LAYERS,), jnp.float32),
    )
    return dict(blocks=blocks, cls=cls)


def fold_params(params):
    """Fold eval-mode BatchNorm into conv / linear weights; produce kernel layouts."""
    blocks = []
    for blk in params["blocks"]:
        g1, be1, m1, v1 = blk["bn1"]
        s1 = g1 / jnp.sqrt(v1 + BN_EPS)
        dw = blk["dw_w"][:, 0]                                         # (Cin, 3, 3)
        dw_taps = jnp.transpose(dw, (1, 2, 0)).reshape(9, -1) * s1[None, :]   # (9, Cin)
        dw_bias = (be1 - m1 * s1).reshape(1, -1)
        g2, be2, m2, v2 = blk["bn2"]
        s2 = g2 / jnp.sqrt(v2 + BN_EPS)
        pw = blk["pw_w"][:, :, 0, 0]                                   # (Cout, Cin)
        pw_k = pw.T * s2[None, :]                                      # (Cin, Cout)
        pw_bias = (be2 - m2 * s2).reshape(1, -1)
        blocks.append(dict(dw=dw_taps, dwb=dw_bias, pw=pw_k, pwb=pw_bias))

    cls = params["cls"]
    g, be, m, v = cls["bn"]
    s = g / jnp.sqrt(v + BN_EPS)
    w1f = cls["w1"].T * s[None, :]                                     # (HIDDEN, HIDDEN)
    b1f = ((cls["b1"] - m) * s + be).reshape(1, -1)
    w2g = cls["w2"].reshape(4, NUM_LAYERS, HIDDEN).transpose(0, 2, 1)  # (4, HIDDEN, 19)
    b2g = cls["b2"].reshape(4, 1, NUM_LAYERS)
    return dict(blocks=blocks, cls=dict(w1=w1f, b1=b1f, w2g=w2g, b2g=b2g))


# ------------------------------ pure-JAX reference --------------------------- #

def reference_forward(params, x, eps_a, eps_w):
    """Pure-JAX mirror of the PyTorch module (eval-mode BatchNorm) for verification."""
    def bn2d(y, bn):
        g, b, m, v = bn
        inv = (g / jnp.sqrt(v + BN_EPS))[None, :, None, None]
        return (y - m[None, :, None, None]) * inv + b[None, :, None, None]

    h = x.astype(jnp.float32)
    for blk in params["blocks"]:
        h = lax.conv_general_dilated(
            h, blk["dw_w"], window_strides=(2, 2), padding=((1, 1), (1, 1)),
            feature_group_count=h.shape[1],
            dimension_numbers=("NCHW", "OIHW", "NCHW"),
            precision=lax.Precision.HIGHEST)
        h = jnp.maximum(bn2d(h, blk["bn1"]), 0.0)
        h = lax.conv_general_dilated(
            h, blk["pw_w"], window_strides=(1, 1), padding=((0, 0), (0, 0)),
            dimension_numbers=("NCHW", "OIHW", "NCHW"),
            precision=lax.Precision.HIGHEST)
        h = jnp.maximum(bn2d(h, blk["bn2"]), 0.0)
    feat = jnp.mean(h, axis=(2, 3))                    # AdaptiveAvgPool2d((1,1)) + flatten

    cls = params["cls"]
    z = jnp.dot(feat, cls["w1"].T, precision=lax.Precision.HIGHEST) + cls["b1"]
    g, b, m, v = cls["bn"]
    z = (z - m) * (g / jnp.sqrt(v + BN_EPS)) + b
    z = jnp.maximum(z, 0.0)
    z = jnp.dot(z, cls["w2"].T, precision=lax.Precision.HIGHEST) + cls["b2"]
    z = z.reshape(-1, 4, NUM_LAYERS)

    mu = jnp.maximum(z[:, 0:2] + 1.0, 0.0)
    var = jax.nn.softplus(z[:, 2:4])
    mu_a, mu_w = mu[:, 0], mu[:, 1]
    var_a, var_w = var[:, 0], var[:, 1]
    act_a = mu_a + jnp.sqrt(var_a) * eps_a
    act_w = mu_w + jnp.sqrt(var_w) * eps_w

    def pdf(a, mean, s2):
        return jnp.exp(-(a - mean) ** 2 / (2.0 * s2)) / jnp.sqrt(2.0 * s2 * math.pi)

    lp_a, lp_w = jnp.log(pdf(act_a, mu_a, var_a)), jnp.log(pdf(act_w, mu_w, var_w))
    bit_a = jnp.floor(jnp.clip(act_a, 0.0, 7.0)).astype(jnp.int32) + 2
    bit_w = jnp.floor(jnp.clip(act_w, 0.0, 7.0)).astype(jnp.int32) + 2
    return (bit_a, bit_w), (lp_a, lp_w), (act_a, act_w)


# ------------------------------ main ------------------------------------------ #

if __name__ == "__main__":
    key = jax.random.PRNGKey(0)
    kparam, kx, keps = jax.random.split(key, 3)

    params = init_raw_params(kparam)                     # PyTorch-layout params + BN stats
    folded = fold_params(params)                         # BN folded, kernel layouts
    x = jax.random.normal(kx, (BATCH, IN_CHANNELS, SPATIAL, SPATIAL), jnp.float32)
    ka, kw = jax.random.split(keps)
    # distributional stand-in for the torch.randn draws inside the module's forward
    eps_a = jax.random.normal(ka, (BATCH, NUM_LAYERS), jnp.float32)
    eps_w = jax.random.normal(kw, (BATCH, NUM_LAYERS), jnp.float32)

    fwd = jax.jit(policy_forward_pallas)
    (bits_a, bits_w), (logp_a, logp_w) = fwd(folded, x, eps_a, eps_w)
    jax.block_until_ready((bits_a, bits_w, logp_a, logp_w))

    # verify against a pure-JAX mirror of the PyTorch module
    (rba, rbw), (rla, rlw), (ract_a, ract_w) = reference_forward(params, x, eps_a, eps_w)
    np.testing.assert_allclose(np.asarray(logp_a), np.asarray(rla), rtol=1e-2, atol=1e-2)
    np.testing.assert_allclose(np.asarray(logp_w), np.asarray(rlw), rtol=1e-2, atol=1e-2)
    for got, want, act in ((bits_a, rba, ract_a), (bits_w, rbw, ract_w)):
        near_boundary = np.abs(np.asarray(act) - np.round(np.asarray(act))) < 2e-2
        assert np.all((np.asarray(got) == np.asarray(want)) | near_boundary)

    assert bits_a.shape == (BATCH, NUM_LAYERS) and bits_a.dtype == jnp.int32
    assert logp_a.shape == (BATCH, NUM_LAYERS) and logp_a.dtype == jnp.float32
    print("KERNEL_OK")
</pallas_src>

<mosaic_0001>
module attributes {stable_mosaic.version = 11 : i64} {
  func.func @_policy_fused_kernel(%arg0: memref<16x16x64xf32, #tpu.memory_space<vmem>>, %arg1: memref<16x16x64xf32, #tpu.memory_space<vmem>>, %arg2: memref<9x64xf32, #tpu.memory_space<vmem>>, %arg3: memref<1x64xf32, #tpu.memory_space<vmem>>, %arg4: memref<64x10xf32, #tpu.memory_space<vmem>>, %arg5: memref<1x10xf32, #tpu.memory_space<vmem>>, %arg6: memref<9x10xf32, #tpu.memory_space<vmem>>, %arg7: memref<1x10xf32, #tpu.memory_space<vmem>>, %arg8: memref<10x10xf32, #tpu.memory_space<vmem>>, %arg9: memref<1x10xf32, #tpu.memory_space<vmem>>, %arg10: memref<9x10xf32, #tpu.memory_space<vmem>>, %arg11: memref<1x10xf32, #tpu.memory_space<vmem>>, %arg12: memref<10x10xf32, #tpu.memory_space<vmem>>, %arg13: memref<1x10xf32, #tpu.memory_space<vmem>>, %arg14: memref<9x10xf32, #tpu.memory_space<vmem>>, %arg15: memref<1x10xf32, #tpu.memory_space<vmem>>, %arg16: memref<10x10xf32, #tpu.memory_space<vmem>>, %arg17: memref<1x10xf32, #tpu.memory_space<vmem>>, %arg18: memref<10x10xf32, #tpu.memory_space<vmem>>, %arg19: memref<1x10xf32, #tpu.memory_space<vmem>>, %arg20: memref<4x10x19xf32, #tpu.memory_space<vmem>>, %arg21: memref<4x1x19xf32, #tpu.memory_space<vmem>>, %arg22: memref<2x19xf32, #tpu.memory_space<vmem>>, %arg23: memref<2x19xf32, #tpu.memory_space<vmem>>, %arg24: memref<2x19xi32, #tpu.memory_space<vmem>>, %arg25: memref<2x19xi32, #tpu.memory_space<vmem>>, %arg26: memref<2x19xf32, #tpu.memory_space<vmem>>, %arg27: memref<2x19xf32, #tpu.memory_space<vmem>>, %arg28: memref<18x18x64xf32, #tpu.memory_space<vmem>>, %arg29: memref<18x18x64xf32, #tpu.memory_space<vmem>>, %arg30: memref<10x10x10xf32, #tpu.memory_space<vmem>>, %arg31: memref<10x10x10xf32, #tpu.memory_space<vmem>>, %arg32: memref<6x6x10xf32, #tpu.memory_space<vmem>>, %arg33: memref<6x6x10xf32, #tpu.memory_space<vmem>>, %arg34: memref<4x4x10xf32, #tpu.memory_space<vmem>>, %arg35: memref<4x4x10xf32, #tpu.memory_space<vmem>>, %arg36: memref<8x16x10xf32, #tpu.memory_space<vmem>>, %arg37: memref<4x8x10xf32, #tpu.memory_space<vmem>>, %arg38: memref<2x4x10xf32, #tpu.memory_space<vmem>>) attributes {dimension_semantics = [], scalar_prefetch = 0 : i64, scratch_operands = 11 : i64, tpu.core_type = #tpu.core_type<tc>} {
    %cst = arith.constant 0.000000e+00 : f32
    %0 = vector.broadcast %cst : f32 to vector<18x18x64xf32>
    %c0 = arith.constant 0 : index
    %c0_0 = arith.constant 0 : index
    %c0_1 = arith.constant 0 : index
    %1 = vector.load %arg28[%c0, %c0_0, %c0_1] : memref<18x18x64xf32, #tpu.memory_space<vmem>>, vector<18x18x64xf32>
    tpu.vector_store %arg28[%c0, %c0_0, %c0_1], %0 {strides = array<i32>} : memref<18x18x64xf32, #tpu.memory_space<vmem>>, vector<18x18x64xf32>,
    %cst_2 = arith.constant 0.000000e+00 : f32
    %2 = vector.broadcast %cst_2 : f32 to vector<18x18x64xf32>
    %c0_3 = arith.constant 0 : index
    %c0_4 = arith.constant 0 : index
    %c0_5 = arith.constant 0 : index
    %3 = vector.load %arg29[%c0_3, %c0_4, %c0_5] : memref<18x18x64xf32, #tpu.memory_space<vmem>>, vector<18x18x64xf32>
    tpu.vector_store %arg29[%c0_3, %c0_4, %c0_5], %2 {strides = array<i32>} : memref<18x18x64xf32, #tpu.memory_space<vmem>>, vector<18x18x64xf32>,
    %cst_6 = arith.constant 0.000000e+00 : f32
    %4 = vector.broadcast %cst_6 : f32 to vector<10x10x10xf32>
    %c0_7 = arith.constant 0 : index
    %c0_8 = arith.constant 0 : index
    %c0_9 = arith.constant 0 : index
    %5 = vector.load %arg30[%c0_7, %c0_8, %c0_9] : memref<10x10x10xf32, #tpu.memory_space<vmem>>, vector<10x10x10xf32>
    tpu.vector_store %arg30[%c0_7, %c0_8, %c0_9], %4 {strides = array<i32>} : memref<10x10x10xf32, #tpu.memory_space<vmem>>, vector<10x10x10xf32>,
    %cst_10 = arith.constant 0.000000e+00 : f32
    %6 = vector.broadcast %cst_10 : f32 to vector<10x10x10xf32>
    %c0_11 = arith.constant 0 : index
    %c0_12 = arith.constant 0 : index
    %c0_13 = arith.constant 0 : index
    %7 = vector.load %arg31[%c0_11, %c0_12, %c0_13] : memref<10x10x10xf32, #tpu.memory_space<vmem>>, vector<10x10x10xf32>
    tpu.vector_store %arg31[%c0_11, %c0_12, %c0_13], %6 {strides = array<i32>} : memref<10x10x10xf32, #tpu.memory_space<vmem>>, vector<10x10x10xf32>,
    %cst_14 = arith.constant 0.000000e+00 : f32
    %8 = vector.broadcast %cst_14 : f32 to vector<6x6x10xf32>
    %c0_15 = arith.constant 0 : index
    %c0_16 = arith.constant 0 : index
    %c0_17 = arith.constant 0 : index
    %9 = vector.load %arg32[%c0_15, %c0_16, %c0_17] : memref<6x6x10xf32, #tpu.memory_space<vmem>>, vector<6x6x10xf32>
    tpu.vector_store %arg32[%c0_15, %c0_16, %c0_17], %8 {strides = array<i32>} : memref<6x6x10xf32, #tpu.memory_space<vmem>>, vector<6x6x10xf32>,
    %cst_18 = arith.constant 0.000000e+00 : f32
    %10 = vector.broadcast %cst_18 : f32 to vector<6x6x10xf32>
    %c0_19 = arith.constant 0 : index
    %c0_20 = arith.constant 0 : index
    %c0_21 = arith.constant 0 : index
    %11 = vector.load %arg33[%c0_19, %c0_20, %c0_21] : memref<6x6x10xf32, #tpu.memory_space<vmem>>, vector<6x6x10xf32>
    tpu.vector_store %arg33[%c0_19, %c0_20, %c0_21], %10 {strides = array<i32>} : memref<6x6x10xf32, #tpu.memory_space<vmem>>, vector<6x6x10xf32>,
    %cst_22 = arith.constant 0.000000e+00 : f32
    %12 = vector.broadcast %cst_22 : f32 to vector<4x4x10xf32>
    %c0_23 = arith.constant 0 : index
    %c0_24 = arith.constant 0 : index
    %c0_25 = arith.constant 0 : index
    %13 = vector.load %arg34[%c0_23, %c0_24, %c0_25] : memref<4x4x10xf32, #tpu.memory_space<vmem>>, vector<4x4x10xf32>
    tpu.vector_store %arg34[%c0_23, %c0_24, %c0_25], %12 {strides = array<i32>} : memref<4x4x10xf32, #tpu.memory_space<vmem>>, vector<4x4x10xf32>,
    %cst_26 = arith.constant 0.000000e+00 : f32
    %14 = vector.broadcast %cst_26 : f32 to vector<4x4x10xf32>
    %c0_27 = arith.constant 0 : index
    %c0_28 = arith.constant 0 : index
    %c0_29 = arith.constant 0 : index
    %15 = vector.load %arg35[%c0_27, %c0_28, %c0_29] : memref<4x4x10xf32, #tpu.memory_space<vmem>>, vector<4x4x10xf32>
    tpu.vector_store %arg35[%c0_27, %c0_28, %c0_29], %14 {strides = array<i32>} : memref<4x4x10xf32, #tpu.memory_space<vmem>>, vector<4x4x10xf32>,
    %c0_30 = arith.constant 0 : index
    %c0_31 = arith.constant 0 : index
    %c0_32 = arith.constant 0 : index
    %16 = vector.load %arg0[%c0_30, %c0_31, %c0_32] : memref<16x16x64xf32, #tpu.memory_space<vmem>>, vector<16x16x64xf32>
    %c1 = arith.constant 1 : index
    %c0_33 = arith.constant 0 : index
    %c0_34 = arith.constant 0 : index
    %17 = vector.load %arg29[%c1, %c0_33, %c0_34] : memref<18x18x64xf32, #tpu.memory_space<vmem>>, vector<16x16x64xf32>
    tpu.vector_store %arg29[%c1, %c0_33, %c0_34], %16 {strides = array<i32>} : memref<18x18x64xf32, #tpu.memory_space<vmem>>, vector<16x16x64xf32>,
    %c0_35 = arith.constant 0 : index
    %c0_36 = arith.constant 0 : index
    %c0_37 = arith.constant 0 : index
    %18 = vector.load %arg1[%c0_35, %c0_36, %c0_37] : memref<16x16x64xf32, #tpu.memory_space<vmem>>, vector<16x16x64xf32>
    %c1_38 = arith.constant 1 : index
    %c2 = arith.constant 2 : index
    %c0_39 = arith.constant 0 : index
    %19 = vector.load %arg28[%c1_38, %c2, %c0_39] : memref<18x18x64xf32, #tpu.memory_space<vmem>>, vector<16x16x64xf32>
    tpu.vector_store %arg28[%c1_38, %c2, %c0_39], %18 {strides = array<i32>} : memref<18x18x64xf32, #tpu.memory_space<vmem>>, vector<16x16x64xf32>,
    %c0_40 = arith.constant 0 : index
    %c0_41 = arith.constant 0 : index
    %20 = vector.load %arg2[%c0_40, %c0_41] : memref<9x64xf32, #tpu.memory_space<vmem>>, vector<1x64xf32>
    %c1_42 = arith.constant 1 : index
    %c0_43 = arith.constant 0 : index
    %21 = vector.load %arg2[%c1_42, %c0_43] : memref<9x64xf32, #tpu.memory_space<vmem>>, vector<1x64xf32>
    %c2_44 = arith.constant 2 : index
    %c0_45 = arith.constant 0 : index
    %22 = vector.load %arg2[%c2_44, %c0_45] : memref<9x64xf32, #tpu.memory_space<vmem>>, vector<1x64xf32>
    %c3 = arith.constant 3 : index
    %c0_46 = arith.constant 0 : index
    %23 = vector.load %arg2[%c3, %c0_46] : memref<9x64xf32, #tpu.memory_space<vmem>>, vector<1x64xf32>
    %c4 = arith.constant 4 : index
    %c0_47 = arith.constant 0 : index
    %24 = vector.load %arg2[%c4, %c0_47] : memref<9x64xf32, #tpu.memory_space<vmem>>, vector<1x64xf32>
    %c5 = arith.constant 5 : index
    %c0_48 = arith.constant 0 : index
    %25 = vector.load %arg2[%c5, %c0_48] : memref<9x64xf32, #tpu.memory_space<vmem>>, vector<1x64xf32>
    %c6 = arith.constant 6 : index
    %c0_49 = arith.constant 0 : index
    %26 = vector.load %arg2[%c6, %c0_49] : memref<9x64xf32, #tpu.memory_space<vmem>>, vector<1x64xf32>
    %c7 = arith.constant 7 : index
    %c0_50 = arith.constant 0 : index
    %27 = vector.load %arg2[%c7, %c0_50] : memref<9x64xf32, #tpu.memory_space<vmem>>, vector<1x64xf32>
    %c8 = arith.constant 8 : index
    %c0_51 = arith.constant 0 : index
    %28 = vector.load %arg2[%c8, %c0_51] : memref<9x64xf32, #tpu.memory_space<vmem>>, vector<1x64xf32>
    %c0_52 = arith.constant 0 : index
    %c0_53 = arith.constant 0 : index
    %29 = vector.load %arg3[%c0_52, %c0_53] : memref<1x64xf32, #tpu.memory_space<vmem>>, vector<1x64xf32>
    %c0_54 = arith.constant 0 : index
    %c0_55 = arith.constant 0 : index
    %30 = vector.load %arg4[%c0_54, %c0_55] : memref<64x10xf32, #tpu.memory_space<vmem>>, vector<64x10xf32>
    %c0_56 = arith.constant 0 : index
    %c0_57 = arith.constant 0 : index
    %31 = vector.load %arg5[%c0_56, %c0_57] : memref<1x10xf32, #tpu.memory_space<vmem>>, vector<1x10xf32>
    %cst_58 = arith.constant 0.000000e+00 : f32
    %32 = vector.broadcast %cst_58 : f32 to vector<16x64xf32>
    %c0_59 = arith.constant 0 : index
    %c0_60 = arith.constant 0 : index
    %c0_61 = arith.constant 0 : index
    %33 = vector.load %arg28[%c0_59, %c0_60, %c0_61] : memref<18x18x64xf32, #tpu.memory_space<vmem>>, vector<1x16x64xf32>
    %34 = vector.shape_cast %33 : vector<1x16x64xf32> to vector<16x64xf32>
    %35 = vector.broadcast %20 : vector<1x64xf32> to vector<16x64xf32>
    %36 = arith.mulf %34, %35 : vector<16x64xf32>
    %37 = arith.addf %32, %36 : vector<16x64xf32>
    %c0_62 = arith.constant 0 : index
    %c0_63 = arith.constant 0 : index
    %c0_64 = arith.constant 0 : index
    %38 = vector.load %arg29[%c0_62, %c0_63, %c0_64] : memref<18x18x64xf32, #tpu.memory_space<vmem>>, vector<1x16x64xf32>
    %39 = vector.shape_cast %38 : vector<1x16x64xf32> to vector<16x64xf32>
    %40 = vector.broadcast %21 : vector<1x64xf32> to vector<16x64xf32>
    %41 = arith.mulf %39, %40 : vector<16x64xf32>
    %42 = arith.addf %37, %41 : vector<16x64xf32>
    %c0_65 = arith.constant 0 : index
    %c2_66 = arith.constant 2 : index
    %c0_67 = arith.constant 0 : index
    %43 = vector.load %arg28[%c0_65, %c2_66, %c0_67] : memref<18x18x64xf32, #tpu.memory_space<vmem>>, vector<1x16x64xf32>
    %44 = vector.shape_cast %43 : vector<1x16x64xf32> to vector<16x64xf32>
    %45 = vector.broadcast %22 : vector<1x64xf32> to vector<16x64xf32>
    %46 = arith.mulf %44, %45 : vector<16x64xf32>
    %47 = arith.addf %42, %46 : vector<16x64xf32>
    %c1_68 = arith.constant 1 : index
    %c0_69 = arith.constant 0 : index
    %c0_70 = arith.constant 0 : index
    %48 = vector.load %arg28[%c1_68, %c0_69, %c0_70] : memref<18x18x64xf32, #tpu.memory_space<vmem>>, vector<1x16x64xf32>
    %49 = vector.shape_cast %48 : vector<1x16x64xf32> to vector<16x64xf32>
    %50 = vector.broadcast %23 : vector<1x64xf32> to vector<16x64xf32>
    %51 = arith.mulf %49, %50 : vector<16x64xf32>
    %52 = arith.addf %47, %51 : vector<16x64xf32>
    %c1_71 = arith.constant 1 : index
    %c0_72 = arith.constant 0 : index
    %c0_73 = arith.constant 0 : index
    %53 = vector.load %arg29[%c1_71, %c0_72, %c0_73] : memref<18x18x64xf32, #tpu.memory_space<vmem>>, vector<1x16x64xf32>
    %54 = vector.shape_cast %53 : vector<1x16x64xf32> to vector<16x64xf32>
    %55 = vector.broadcast %24 : vector<1x64xf32> to vector<16x64xf32>
    %56 = arith.mulf %54, %55 : vector<16x64xf32>
    %57 = arith.addf %52, %56 : vector<16x64xf32>
    %c1_74 = arith.constant 1 : index
    %c2_75 = arith.constant 2 : index
    %c0_76 = arith.constant 0 : index
    %58 = vector.load %arg28[%c1_74, %c2_75, %c0_76] : memref<18x18x64xf32, #tpu.memory_space<vmem>>, vector<1x16x64xf32>
    %59 = vector.shape_cast %58 : vector<1x16x64xf32> to vector<16x64xf32>
    %60 = vector.broadcast %25 : vector<1x64xf32> to vector<16x64xf32>
    %61 = arith.mulf %59, %60 : vector<16x64xf32>
    %62 = arith.addf %57, %61 : vector<16x64xf32>
    %c2_77 = arith.constant 2 : index
    %c0_78 = arith.constant 0 : index
    %c0_79 = arith.constant 0 : index
    %63 = vector.load %arg28[%c2_77, %c0_78, %c0_79] : memref<18x18x64xf32, #tpu.memory_space<vmem>>, vector<1x16x64xf32>
    %64 = vector.shape_cast %63 : vector<1x16x64xf32> to vector<16x64xf32>
    %65 = vector.broadcast %26 : vector<1x64xf32> to vector<16x64xf32>
    %66 = arith.mulf %64, %65 : vector<16x64xf32>
    %67 = arith.addf %62, %66 : vector<16x64xf32>
    %c2_80 = arith.constant 2 : index
    %c0_81 = arith.constant 0 : index
    %c0_82 = arith.constant 0 : index
    %68 = vector.load %arg29[%c2_80, %c0_81, %c0_82] : memref<18x18x64xf32, #tpu.memory_space<vmem>>, vector<1x16x64xf32>
    %69 = vector.shape_cast %68 : vector<1x16x64xf32> to vector<16x64xf32>
    %70 = vector.broadcast %27 : vector<1x64xf32> to vector<16x64xf32>
    %71 = arith.mulf %69, %70 : vector<16x64xf32>
    %72 = arith.addf %67, %71 : vector<16x64xf32>
    %c2_83 = arith.constant 2 : index
    %c2_84 = arith.constant 2 : index
    %c0_85 = arith.constant 0 : index
    %73 = vector.load %arg28[%c2_83, %c2_84, %c0_85] : memref<18x18x64xf32, #tpu.memory_space<vmem>>, vector<1x16x64xf32>
    %74 = vector.shape_cast %73 : vector<1x16x64xf32> to vector<16x64xf32>
    %75 = vector.broadcast %28 : vector<1x64xf32> to vector<16x64xf32>
    %76 = arith.mulf %74, %75 : vector<16x64xf32>
    %77 = arith.addf %72, %76 : vector<16x64xf32>
    %78 = vector.broadcast %29 : vector<1x64xf32> to vector<16x64xf32>
    %79 = arith.addf %77, %78 : vector<16x64xf32>
    %cst_86 = arith.constant 0.000000e+00 : f32
    %80 = vector.broadcast %cst_86 : f32 to vector<16x64xf32>
    %81 = arith.maximumf %79, %80 : vector<16x64xf32>
    %cst_87 = arith.constant dense<0.000000e+00> : vector<16x10xf32>
    %82 = tpu.matmul %81, %30, %cst_87 {dimension_numbers = #tpu.dot_dimension_numbers<[1], [0], [0], [1], [0, 0, 1, 1], [], []>, precision = #tpu.contract_precision<fp32>} : vector<16x64xf32>, vector<64x10xf32>, vector<16x10xf32> -> vector<16x10xf32>
    %83 = vector.broadcast %31 : vector<1x10xf32> to vector<16x10xf32>
    %84 = arith.addf %82, %83 : vector<16x10xf32>
    %cst_88 = arith.constant 0.000000e+00 : f32
    %85 = vector.broadcast %cst_88 : f32 to vector<16x10xf32>
    %86 = arith.maximumf %84, %85 : vector<16x10xf32>
    %cst_89 = arith.constant 0.000000e+00 : f32
    %87 = vector.broadcast %cst_89 : f32 to vector<16x64xf32>
    %c2_90 = arith.constant 2 : index
    %c0_91 = arith.constant 0 : index
    %c0_92 = arith.constant 0 : index
    %88 = vector.load %arg28[%c2_90, %c0_91, %c0_92] : memref<18x18x64xf32, #tpu.memory_space<vmem>>, vector<1x16x64xf32>
    %89 = vector.shape_cast %88 : vector<1x16x64xf32> to vector<16x64xf32>
    %90 = vector.broadcast %20 : vector<1x64xf32> to vector<16x64xf32>
    %91 = arith.mulf %89, %90 : vector<16x64xf32>
    %92 = arith.addf %87, %91 : vector<16x64xf32>
    %c2_93 = arith.constant 2 : index
    %c0_94 = arith.constant 0 : index
    %c0_95 = arith.constant 0 : index
    %93 = vector.load %arg29[%c2_93, %c0_94, %c0_95] : memref<18x18x64xf32, #tpu.memory_space<vmem>>, vector<1x16x64xf32>
    %94 = vector.shape_cast %93 : vector<1x16x64xf32> to vector<16x64xf32>
    %95 = vector.broadcast %21 : vector<1x64xf32> to vector<16x64xf32>
    %96 = arith.mulf %94, %95 : vector<16x64xf32>
    %97 = arith.addf %92, %96 : vector<16x64xf32>
    %c2_96 = arith.constant 2 : index
    %c2_97 = arith.constant 2 : index
    %c0_98 = arith.constant 0 : index
    %98 = vector.load %arg28[%c2_96, %c2_97, %c0_98] : memref<18x18x64xf32, #tpu.memory_space<vmem>>, vector<1x16x64xf32>
    %99 = vector.shape_cast %98 : vector<1x16x64xf32> to vector<16x64xf32>
    %100 = vector.broadcast %22 : vector<1x64xf32> to vector<16x64xf32>
    %101 = arith.mulf %99, %100 : vector<16x64xf32>
    %102 = arith.addf %97, %101 : vector<16x64xf32>
    %c3_99 = arith.constant 3 : index
    %c0_100 = arith.constant 0 : index
    %c0_101 = arith.constant 0 : index
    %103 = vector.load %arg28[%c3_99, %c0_100, %c0_101] : memref<18x18x64xf32, #tpu.memory_space<vmem>>, vector<1x16x64xf32>
    %104 = vector.shape_cast %103 : vector<1x16x64xf32> to vector<16x64xf32>
    %105 = vector.broadcast %23 : vector<1x64xf32> to vector<16x64xf32>
    %106 = arith.mulf %104, %105 : vector<16x64xf32>
    %107 = arith.addf %102, %106 : vector<16x64xf32>
    %c3_102 = arith.constant 3 : index
    %c0_103 = arith.constant 0 : index
    %c0_104 = arith.constant 0 : index
    %108 = vector.load %arg29[%c3_102, %c0_103, %c0_104] : memref<18x18x64xf32, #tpu.memory_space<vmem>>, vector<1x16x64xf32>
    %109 = vector.shape_cast %108 : vector<1x16x64xf32> to vector<16x64xf32>
    %110 = vector.broadcast %24 : vector<1x64xf32> to vector<16x64xf32>
    %111 = arith.mulf %109, %110 : vector<16x64xf32>
    %112 = arith.addf %107, %111 : vector<16x64xf32>
    %c3_105 = arith.constant 3 : index
    %c2_106 = arith.constant 2 : index
    %c0_107 = arith.constant 0 : index
    %113 = vector.load %arg28[%c3_105, %c2_106, %c0_107] : memref<18x18x64xf32, #tpu.memory_space<vmem>>, vector<1x16x64xf32>
    %114 = vector.shape_cast %113 : vector<1x16x64xf32> to vector<16x64xf32>
    %115 = vector.broadcast %25 : vector<1x64xf32> to vector<16x64xf32>
    %116 = arith.mulf %114, %115 : vector<16x64xf32>
    %117 = arith.addf %112, %116 : vector<16x64xf32>
    %c4_108 = arith.constant 4 : index
    %c0_109 = arith.constant 0 : index
    %c0_110 = arith.constant 0 : index
    %118 = vector.load %arg28[%c4_108, %c0_109, %c0_110] : memref<18x18x64xf32, #tpu.memory_space<vmem>>, vector<1x16x64xf32>
    %119 = vector.shape_cast %118 : vector<1x16x64xf32> to vector<16x64xf32>
    %120 = vector.broadcast %26 : vector<1x64xf32> to vector<16x64xf32>
    %121 = arith.mulf %119, %120 : vector<16x64xf32>
    %122 = arith.addf %117, %121 : vector<16x64xf32>
    %c4_111 = arith.constant 4 : index
    %c0_112 = arith.constant 0 : index
    %c0_113 = arith.constant 0 : index
    %123 = vector.load %arg29[%c4_111, %c0_112, %c0_113] : memref<18x18x64xf32, #tpu.memory_space<vmem>>, vector<1x16x64xf32>
    %124 = vector.shape_cast %123 : vector<1x16x64xf32> to vector<16x64xf32>
    %125 = vector.broadcast %27 : vector<1x64xf32> to vector<16x64xf32>
    %126 = arith.mulf %124, %125 : vector<16x64xf32>
    %127 = arith.addf %122, %126 : vector<16x64xf32>
    %c4_114 = arith.constant 4 : index
    %c2_115 = arith.constant 2 : index
    %c0_116 = arith.constant 0 : index
    %128 = vector.load %arg28[%c4_114, %c2_115, %c0_116] : memref<18x18x64xf32, #tpu.memory_space<vmem>>, vector<1x16x64xf32>
    %129 = vector.shape_cast %128 : vector<1x16x64xf32> to vector<16x64xf32>
    %130 = vector.broadcast %28 : vector<1x64xf32> to vector<16x64xf32>
    %131 = arith.mulf %129, %130 : vector<16x64xf32>
    %132 = arith.addf %127, %131 : vector<16x64xf32>
    %133 = vector.broadcast %29 : vector<1x64xf32> to vector<16x64xf32>
    %134 = arith.addf %132, %133 : vector<16x64xf32>
    %cst_117 = arith.constant 0.000000e+00 : f32
    %135 = vector.broadcast %cst_117 : f32 to vector<16x64xf32>
    %136 = arith.maximumf %134, %135 : vector<16x64xf32>
    %cst_118 = arith.constant dense<0.000000e+00> : vector<16x10xf32>
    %137 = tpu.matmul %136, %30, %cst_118 {dimension_numbers = #tpu.dot_dimension_numbers<[1], [0], [0], [1], [0, 0, 1, 1], [], []>, precision = #tpu.contract_precision<fp32>} : vector<16x64xf32>, vector<64x10xf32>, vector<16x10xf32> -> vector<16x10xf32>
    %138 = vector.broadcast %31 : vector<1x10xf32> to vector<16x10xf32>
    %139 = arith.addf %137, %138 : vector<16x10xf32>
    %cst_119 = arith.constant 0.000000e+00 : f32
    %140 = vector.broadcast %cst_119 : f32 to vector<16x10xf32>
    %141 = arith.maximumf %139, %140 : vector<16x10xf32>
    %cst_120 = arith.constant 0.000000e+00 : f32
    %142 = vector.broadcast %cst_120 : f32 to vector<16x64xf32>
    %c4_121 = arith.constant 4 : index
    %c0_122 = arith.constant 0 : index
    %c0_123 = arith.constant 0 : index
    %143 = vector.load %arg28[%c4_121, %c0_122, %c0_123] : memref<18x18x64xf32, #tpu.memory_space<vmem>>, vector<1x16x64xf32>
    %144 = vector.shape_cast %143 : vector<1x16x64xf32> to vector<16x64xf32>
    %145 = vector.broadcast %20 : vector<1x64xf32> to vector<16x64xf32>
    %146 = arith.mulf %144, %145 : vector<16x64xf32>
    %147 = arith.addf %142, %146 : vector<16x64xf32>
    %c4_124 = arith.constant 4 : index
    %c0_125 = arith.constant 0 : index
    %c0_126 = arith.constant 0 : index
    %148 = vector.load %arg29[%c4_124, %c0_125, %c0_126] : memref<18x18x64xf32, #tpu.memory_space<vmem>>, vector<1x16x64xf32>
    %149 = vector.shape_cast %148 : vector<1x16x64xf32> to vector<16x64xf32>
    %150 = vector.broadcast %21 : vector<1x64xf32> to vector<16x64xf32>
    %151 = arith.mulf %149, %150 : vector<16x64xf32>
    %152 = arith.addf %147, %151 : vector<16x64xf32>
    %c4_127 = arith.constant 4 : index
    %c2_128 = arith.constant 2 : index
    %c0_129 = arith.constant 0 : index
    %153 = vector.load %arg28[%c4_127, %c2_128, %c0_129] : memref<18x18x64xf32, #tpu.memory_space<vmem>>, vector<1x16x64xf32>
    %154 = vector.shape_cast %153 : vector<1x16x64xf32> to vector<16x64xf32>
    %155 = vector.broadcast %22 : vector<1x64xf32> to vector<16x64xf32>
    %156 = arith.mulf %154, %155 : vector<16x64xf32>
    %157 = arith.addf %152, %156 : vector<16x64xf32>
    %c5_130 = arith.constant 5 : index
    %c0_131 = arith.constant 0 : index
    %c0_132 = arith.constant 0 : index
    %158 = vector.load %arg28[%c5_130, %c0_131, %c0_132] : memref<18x18x64xf32, #tpu.memory_space<vmem>>, vector<1x16x64xf32>
    %159 = vector.shape_cast %158 : vector<1x16x64xf32> to vector<16x64xf32>
    %160 = vector.broadcast %23 : vector<1x64xf32> to vector<16x64xf32>
    %161 = arith.mulf %159, %160 : vector<16x64xf32>
    %162 = arith.addf %157, %161 : vector<16x64xf32>
    %c5_133 = arith.constant 5 : index
    %c0_134 = arith.constant 0 : index
    %c0_135 = arith.constant 0 : index
    %163 = vector.load %arg29[%c5_133, %c0_134, %c0_135] : memref<18x18x64xf32, #tpu.memory_space<vmem>>, vector<1x16x64xf32>
    %164 = vector.shape_cast %163 : vector<1x16x64xf32> to vector<16x64xf32>
    %165 = vector.broadcast %24 : vector<1x64xf32> to vector<16x64xf32>
    %166 = arith.mulf %164, %165 : vector<16x64xf32>
    %167 = arith.addf %162, %166 : vector<16x64xf32>
    %c5_136 = arith.constant 5 : index
    %c2_137 = arith.constant 2 : index
    %c0_138 = arith.constant 0 : index
    %168 = vector.load %arg28[%c5_136, %c2_137, %c0_138] : memref<18x18x64xf32, #tpu.memory_space<vmem>>, vector<1x16x64xf32>
    %169 = vector.shape_cast %168 : vector<1x16x64xf32> to vector<16x64xf32>
    %170 = vector.broadcast %25 : vector<1x64xf32> to vector<16x64xf32>
    %171 = arith.mulf %169, %170 : vector<16x64xf32>
    %172 = arith.addf %167, %171 : vector<16x64xf32>
    %c6_139 = arith.constant 6 : index
    %c0_140 = arith.constant 0 : index
    %c0_141 = arith.constant 0 : index
    %173 = vector.load %arg28[%c6_139, %c0_140, %c0_141] : memref<18x18x64xf32, #tpu.memory_space<vmem>>, vector<1x16x64xf32>
    %174 = vector.shape_cast %173 : vector<1x16x64xf32> to vector<16x64xf32>
    %175 = vector.broadcast %26 : vector<1x64xf32> to vector<16x64xf32>
    %176 = arith.mulf %174, %175 : vector<16x64xf32>
    %177 = arith.addf %172, %176 : vector<16x64xf32>
    %c6_142 = arith.constant 6 : index
    %c0_143 = arith.constant 0 : index
    %c0_144 = arith.constant 0 : index
    %178 = vector.load %arg29[%c6_142, %c0_143, %c0_144] : memref<18x18x64xf32, #tpu.memory_space<vmem>>, vector<1x16x64xf32>
    %179 = vector.shape_cast %178 : vector<1x16x64xf32> to vector<16x64xf32>
    %180 = vector.broadcast %27 : vector<1x64xf32> to vector<16x64xf32>
    %181 = arith.mulf %179, %180 : vector<16x64xf32>
    %182 = arith.addf %177, %181 : vector<16x64xf32>
    %c6_145 = arith.constant 6 : index
    %c2_146 = arith.constant 2 : index
    %c0_147 = arith.constant 0 : index
    %183 = vector.load %arg28[%c6_145, %c2_146, %c0_147] : memref<18x18x64xf32, #tpu.memory_space<vmem>>, vector<1x16x64xf32>
    %184 = vector.shape_cast %183 : vector<1x16x64xf32> to vector<16x64xf32>
    %185 = vector.broadcast %28 : vector<1x64xf32> to vector<16x64xf32>
    %186 = arith.mulf %184, %185 : vector<16x64xf32>
    %187 = arith.addf %182, %186 : vector<16x64xf32>
    %188 = vector.broadcast %29 : vector<1x64xf32> to vector<16x64xf32>
    %189 = arith.addf %187, %188 : vector<16x64xf32>
    %cst_148 = arith.constant 0.000000e+00 : f32
    %190 = vector.broadcast %cst_148 : f32 to vector<16x64xf32>
    %191 = arith.maximumf %189, %190 : vector<16x64xf32>
    %cst_149 = arith.constant dense<0.000000e+00> : vector<16x10xf32>
    %192 = tpu.matmul %191, %30, %cst_149 {dimension_numbers = #tpu.dot_dimension_numbers<[1], [0], [0], [1], [0, 0, 1, 1], [], []>, precision = #tpu.contract_precision<fp32>} : vector<16x64xf32>, vector<64x10xf32>, vector<16x10xf32> -> vector<16x10xf32>
    %193 = vector.broadcast %31 : vector<1x10xf32> to vector<16x10xf32>
    %194 = arith.addf %192, %193 : vector<16x10xf32>
    %cst_150 = arith.constant 0.000000e+00 : f32
    %195 = vector.broadcast %cst_150 : f32 to vector<16x10xf32>
    %196 = arith.maximumf %194, %195 : vector<16x10xf32>
    %cst_151 = arith.constant 0.000000e+00 : f32
    %197 = vector.broadcast %cst_151 : f32 to vector<16x64xf32>
    %c6_152 = arith.constant 6 : index
    %c0_153 = arith.constant 0 : index
    %c0_154 = arith.constant 0 : index
    %198 = vector.load %arg28[%c6_152, %c0_153, %c0_154] : memref<18x18x64xf32, #tpu.memory_space<vmem>>, vector<1x16x64xf32>
    %199 = vector.shape_cast %198 : vector<1x16x64xf32> to vector<16x64xf32>
    %200 = vector.broadcast %20 : vector<1x64xf32> to vector<16x64xf32>
    %201 = arith.mulf %199, %200 : vector<16x64xf32>
    %202 = arith.addf %197, %201 : vector<16x64xf32>
    %c6_155 = arith.constant 6 : index
    %c0_156 = arith.constant 0 : index
    %c0_157 = arith.constant 0 : index
    %203 = vector.load %arg29[%c6_155, %c0_156, %c0_157] : memref<18x18x64xf32, #tpu.memory_space<vmem>>, vector<1x16x64xf32>
    %204 = vector.shape_cast %203 : vector<1x16x64xf32> to vector<16x64xf32>
    %205 = vector.broadcast %21 : vector<1x64xf32> to vector<16x64xf32>
    %206 = arith.mulf %204, %205 : vector<16x64xf32>
    %207 = arith.addf %202, %206 : vector<16x64xf32>
    %c6_158 = arith.constant 6 : index
    %c2_159 = arith.constant 2 : index
    %c0_160 = arith.constant 0 : index
    %208 = vector.load %arg28[%c6_158, %c2_159, %c0_160] : memref<18x18x64xf32, #tpu.memory_space<vmem>>, vector<1x16x64xf32>
    %209 = vector.shape_cast %208 : vector<1x16x64xf32> to vector<16x64xf32>
    %210 = vector.broadcast %22 : vector<1x64xf32> to vector<16x64xf32>
    %211 = arith.mulf %209, %210 : vector<16x64xf32>
    %212 = arith.addf %207, %211 : vector<16x64xf32>
    %c7_161 = arith.constant 7 : index
    %c0_162 = arith.constant 0 : index
    %c0_163 = arith.constant 0 : index
    %213 = vector.load %arg28[%c7_161, %c0_162, %c0_163] : memref<18x18x64xf32, #tpu.memory_space<vmem>>, vector<1x16x64xf32>
    %214 = vector.shape_cast %213 : vector<1x16x64xf32> to vector<16x64xf32>
    %215 = vector.broadcast %23 : vector<1x64xf32> to vector<16x64xf32>
    %216 = arith.mulf %214, %215 : vector<16x64xf32>
    %217 = arith.addf %212, %216 : vector<16x64xf32>
    %c7_164 = arith.constant 7 : index
    %c0_165 = arith.constant 0 : index
    %c0_166 = arith.constant 0 : index
    %218 = vector.load %arg29[%c7_164, %c0_165, %c0_166] : memref<18x18x64xf32, #tpu.memory_space<vmem>>, vector<1x16x64xf32>
    %219 = vector.shape_cast %218 : vector<1x16x64xf32> to vector<16x64xf32>
    %220 = vector.broadcast %24 : vector<1x64xf32> to vector<16x64xf32>
    %221 = arith.mulf %219, %220 : vector<16x64xf32>
    %222 = arith.addf %217, %221 : vector<16x64xf32>
    %c7_167 = arith.constant 7 : index
    %c2_168 = arith.constant 2 : index
    %c0_169 = arith.constant 0 : index
    %223 = vector.load %arg28[%c7_167, %c2_168, %c0_169] : memref<18x18x64xf32, #tpu.memory_space<vmem>>, vector<1x16x64xf32>
    %224 = vector.shape_cast %223 : vector<1x16x64xf32> to vector<16x64xf32>
    %225 = vector.broadcast %25 : vector<1x64xf32> to vector<16x64xf32>
    %226 = arith.mulf %224, %225 : vector<16x64xf32>
    %227 = arith.addf %222, %226 : vector<16x64xf32>
    %c8_170 = arith.constant 8 : index
    %c0_171 = arith.constant 0 : index
    %c0_172 = arith.constant 0 : index
    %228 = vector.load %arg28[%c8_170, %c0_171, %c0_172] : memref<18x18x64xf32, #tpu.memory_space<vmem>>, vector<1x16x64xf32>
    %229 = vector.shape_cast %228 : vector<1x16x64xf32> to vector<16x64xf32>
    %230 = vector.broadcast %26 : vector<1x64xf32> to vector<16x64xf32>
    %231 = arith.mulf %229, %230 : vector<16x64xf32>
    %232 = arith.addf %227, %231 : vector<16x64xf32>
    %c8_173 = arith.constant 8 : index
    %c0_174 = arith.constant 0 : index
    %c0_175 = arith.constant 0 : index
    %233 = vector.load %arg29[%c8_173, %c0_174, %c0_175] : memref<18x18x64xf32, #tpu.memory_space<vmem>>, vector<1x16x64xf32>
    %234 = vector.shape_cast %233 : vector<1x16x64xf32> to vector<16x64xf32>
    %235 = vector.broadcast %27 : vector<1x64xf32> to vector<16x64xf32>
    %236 = arith.mulf %234, %235 : vector<16x64xf32>
    %237 = arith.addf %232, %236 : vector<16x64xf32>
    %c8_176 = arith.constant 8 : index
    %c2_177 = arith.constant 2 : index
    %c0_178 = arith.constant 0 : index
    %238 = vector.load %arg28[%c8_176, %c2_177, %c0_178] : memref<18x18x64xf32, #tpu.memory_space<vmem>>, vector<1x16x64xf32>
    %239 = vector.shape_cast %238 : vector<1x16x64xf32> to vector<16x64xf32>
    %240 = vector.broadcast %28 : vector<1x64xf32> to vector<16x64xf32>
    %241 = arith.mulf %239, %240 : vector<16x64xf32>
    %242 = arith.addf %237, %241 : vector<16x64xf32>
    %243 = vector.broadcast %29 : vector<1x64xf32> to vector<16x64xf32>
    %244 = arith.addf %242, %243 : vector<16x64xf32>
    %cst_179 = arith.constant 0.000000e+00 : f32
    %245 = vector.broadcast %cst_179 : f32 to vector<16x64xf32>
    %246 = arith.maximumf %244, %245 : vector<16x64xf32>
    %cst_180 = arith.constant dense<0.000000e+00> : vector<16x10xf32>
    %247 = tpu.matmul %246, %30, %cst_180 {dimension_numbers = #tpu.dot_dimension_numbers<[1], [0], [0], [1], [0, 0, 1, 1], [], []>, precision = #tpu.contract_precision<fp32>} : vector<16x64xf32>, vector<64x10xf32>, vector<16x10xf32> -> vector<16x10xf32>
    %248 = vector.broadcast %31 : vector<1x10xf32> to vector<16x10xf32>
    %249 = arith.addf %247, %248 : vector<16x10xf32>
    %cst_181 = arith.constant 0.000000e+00 : f32
    %250 = vector.broadcast %cst_181 : f32 to vector<16x10xf32>
    %251 = arith.maximumf %249, %250 : vector<16x10xf32>
    %cst_182 = arith.constant 0.000000e+00 : f32
    %252 = vector.broadcast %cst_182 : f32 to vector<16x64xf32>
    %c8_183 = arith.constant 8 : index
    %c0_184 = arith.constant 0 : index
    %c0_185 = arith.constant 0 : index
    %253 = vector.load %arg28[%c8_183, %c0_184, %c0_185] : memref<18x18x64xf32, #tpu.memory_space<vmem>>, vector<1x16x64xf32>
    %254 = vector.shape_cast %253 : vector<1x16x64xf32> to vector<16x64xf32>
    %255 = vector.broadcast %20 : vector<1x64xf32> to vector<16x64xf32>
    %256 = arith.mulf %254, %255 : vector<16x64xf32>
    %257 = arith.addf %252, %256 : vector<16x64xf32>
    %c8_186 = arith.constant 8 : index
    %c0_187 = arith.constant 0 : index
    %c0_188 = arith.constant 0 : index
    %258 = vector.load %arg29[%c8_186, %c0_187, %c0_188] : memref<18x18x64xf32, #tpu.memory_space<vmem>>, vector<1x16x64xf32>
    %259 = vector.shape_cast %258 : vector<1x16x64xf32> to vector<16x64xf32>
    %260 = vector.broadcast %21 : vector<1x64xf32> to vector<16x64xf32>
    %261 = arith.mulf %259, %260 : vector<16x64xf32>
    %262 = arith.addf %257, %261 : vector<16x64xf32>
    %c8_189 = arith.constant 8 : index
    %c2_190 = arith.constant 2 : index
    %c0_191 = arith.constant 0 : index
    %263 = vector.load %arg28[%c8_189, %c2_190, %c0_191] : memref<18x18x64xf32, #tpu.memory_space<vmem>>, vector<1x16x64xf32>
    %264 = vector.shape_cast %263 : vector<1x16x64xf32> to vector<16x64xf32>
    %265 = vector.broadcast %22 : vector<1x64xf32> to vector<16x64xf32>
    %266 = arith.mulf %264, %265 : vector<16x64xf32>
    %267 = arith.addf %262, %266 : vector<16x64xf32>
    %c9 = arith.constant 9 : index
    %c0_192 = arith.constant 0 : index
    %c0_193 = arith.constant 0 : index
    %268 = vector.load %arg28[%c9, %c0_192, %c0_193] : memref<18x18x64xf32, #tpu.memory_space<vmem>>, vector<1x16x64xf32>
    %269 = vector.shape_cast %268 : vector<1x16x64xf32> to vector<16x64xf32>
    %270 = vector.broadcast %23 : vector<1x64xf32> to vector<16x64xf32>
    %271 = arith.mulf %269, %270 : vector<16x64xf32>
    %272 = arith.addf %267, %271 : vector<16x64xf32>
    %c9_194 = arith.constant 9 : index
    %c0_195 = arith.constant 0 : index
    %c0_196 = arith.constant 0 : index
    %273 = vector.load %arg29[%c9_194, %c0_195, %c0_196] : memref<18x18x64xf32, #tpu.memory_space<vmem>>, vector<1x16x64xf32>
    %274 = vector.shape_cast %273 : vector<1x16x64xf32> to vector<16x64xf32>
    %275 = vector.broadcast %24 : vector<1x64xf32> to vector<16x64xf32>
    %276 = arith.mulf %274, %275 : vector<16x64xf32>
    %277 = arith.addf %272, %276 : vector<16x64xf32>
    %c9_197 = arith.constant 9 : index
    %c2_198 = arith.constant 2 : index
    %c0_199 = arith.constant 0 : index
    %278 = vector.load %arg28[%c9_197, %c2_198, %c0_199] : memref<18x18x64xf32, #tpu.memory_space<vmem>>, vector<1x16x64xf32>
    %279 = vector.shape_cast %278 : vector<1x16x64xf32> to vector<16x64xf32>
    %280 = vector.broadcast %25 : vector<1x64xf32> to vector<16x64xf32>
    %281 = arith.mulf %279, %280 : vector<16x64xf32>
    %282 = arith.addf %277, %281 : vector<16x64xf32>
    %c10 = arith.constant 10 : index
    %c0_200 = arith.constant 0 : index
    %c0_201 = arith.constant 0 : index
    %283 = vector.load %arg28[%c10, %c0_200, %c0_201] : memref<18x18x64xf32, #tpu.memory_space<vmem>>, vector<1x16x64xf32>
    %284 = vector.shape_cast %283 : vector<1x16x64xf32> to vector<16x64xf32>
    %285 = vector.broadcast %26 : vector<1x64xf32> to vector<16x64xf32>
    %286 = arith.mulf %284, %285 : vector<16x64xf32>
    %287 = arith.addf %282, %286 : vector<16x64xf32>
    %c10_202 = arith.constant 10 : index
    %c0_203 = arith.constant 0 : index
    %c0_204 = arith.constant 0 : index
    %288 = vector.load %arg29[%c10_202, %c0_203, %c0_204] : memref<18x18x64xf32, #tpu.memory_space<vmem>>, vector<1x16x64xf32>
    %289 = vector.shape_cast %288 : vector<1x16x64xf32> to vector<16x64xf32>
    %290 = vector.broadcast %27 : vector<1x64xf32> to vector<16x64xf32>
    %291 = arith.mulf %289, %290 : vector<16x64xf32>
    %292 = arith.addf %287, %291 : vector<16x64xf32>
    %c10_205 = arith.constant 10 : index
    %c2_206 = arith.constant 2 : index
    %c0_207 = arith.constant 0 : index
    %293 = vector.load %arg28[%c10_205, %c2_206, %c0_207] : memref<18x18x64xf32, #tpu.memory_space<vmem>>, vector<1x16x64xf32>
    %294 = vector.shape_cast %293 : vector<1x16x64xf32> to vector<16x64xf32>
    %295 = vector.broadcast %28 : vector<1x64xf32> to vector<16x64xf32>
    %296 = arith.mulf %294, %295 : vector<16x64xf32>
    %297 = arith.addf %292, %296 : vector<16x64xf32>
    %298 = vector.broadcast %29 : vector<1x64xf32> to vector<16x64xf32>
    %299 = arith.addf %297, %298 : vector<16x64xf32>
    %cst_208 = arith.constant 0.000000e+00 : f32
    %300 = vector.broadcast %cst_208 : f32 to vector<16x64xf32>
    %301 = arith.maximumf %299, %300 : vector<16x64xf32>
    %cst_209 = arith.constant dense<0.000000e+00> : vector<16x10xf32>
    %302 = tpu.matmul %301, %30, %cst_209 {dimension_numbers = #tpu.dot_dimension_numbers<[1], [0], [0], [1], [0, 0, 1, 1], [], []>, precision = #tpu.contract_precision<fp32>} : vector<16x64xf32>, vector<64x10xf32>, vector<16x10xf32> -> vector<16x10xf32>
    %303 = vector.broadcast %31 : vector<1x10xf32> to vector<16x10xf32>
    %304 = arith.addf %302, %303 : vector<16x10xf32>
    %cst_210 = arith.constant 0.000000e+00 : f32
    %305 = vector.broadcast %cst_210 : f32 to vector<16x10xf32>
    %306 = arith.maximumf %304, %305 : vector<16x10xf32>
    %cst_211 = arith.constant 0.000000e+00 : f32
    %307 = vector.broadcast %cst_211 : f32 to vector<16x64xf32>
    %c10_212 = arith.constant 10 : index
    %c0_213 = arith.constant 0 : index
    %c0_214 = arith.constant 0 : index
    %308 = vector.load %arg28[%c10_212, %c0_213, %c0_214] : memref<18x18x64xf32, #tpu.memory_space<vmem>>, vector<1x16x64xf32>
    %309 = vector.shape_cast %308 : vector<1x16x64xf32> to vector<16x64xf32>
    %310 = vector.broadcast %20 : vector<1x64xf32> to vector<16x64xf32>
    %311 = arith.mulf %309, %310 : vector<16x64xf32>
    %312 = arith.addf %307, %311 : vector<16x64xf32>
    %c10_215 = arith.constant 10 : index
    %c0_216 = arith.constant 0 : index
    %c0_217 = arith.constant 0 : index
    %313 = vector.load %arg29[%c10_215, %c0_216, %c0_217] : memref<18x18x64xf32, #tpu.memory_space<vmem>>, vector<1x16x64xf32>
    %314 = vector.shape_cast %313 : vector<1x16x64xf32> to vector<16x64xf32>
    %315 = vector.broadcast %21 : vector<1x64xf32> to vector<16x64xf32>
    %316 = arith.mulf %314, %315 : vector<16x64xf32>
    %317 = arith.addf %312, %316 : vector<16x64xf32>
    %c10_218 = arith.constant 10 : index
    %c2_219 = arith.constant 2 : index
    %c0_220 = arith.constant 0 : index
    %318 = vector.load %arg28[%c10_218, %c2_219, %c0_220] : memref<18x18x64xf32, #tpu.memory_space<vmem>>, vector<1x16x64xf32>
    %319 = vector.shape_cast %318 : vector<1x16x64xf32> to vector<16x64xf32>
    %320 = vector.broadcast %22 : vector<1x64xf32> to vector<16x64xf32>
    %321 = arith.mulf %319, %320 : vector<16x64xf32>
    %322 = arith.addf %317, %321 : vector<16x64xf32>
    %c11 = arith.constant 11 : index
    %c0_221 = arith.constant 0 : index
    %c0_222 = arith.constant 0 : index
    %323 = vector.load %arg28[%c11, %c0_221, %c0_222] : memref<18x18x64xf32, #tpu.memory_space<vmem>>, vector<1x16x64xf32>
    %324 = vector.shape_cast %323 : vector<1x16x64xf32> to vector<16x64xf32>
    %325 = vector.broadcast %23 : vector<1x64xf32> to vector<16x64xf32>
    %326 = arith.mulf %324, %325 : vector<16x64xf32>
    %327 = arith.addf %322, %326 : vector<16x64xf32>
    %c11_223 = arith.constant 11 : index
    %c0_224 = arith.constant 0 : index
    %c0_225 = arith.constant 0 : index
    %328 = vector.load %arg29[%c11_223, %c0_224, %c0_225] : memref<18x18x64xf32, #tpu.memory_space<vmem>>, vector<1x16x64xf32>
    %329 = vector.shape_cast %328 : vector<1x16x64xf32> to vector<16x64xf32>
    %330 = vector.broadcast %24 : vector<1x64xf32> to vector<16x64xf32>
    %331 = arith.mulf %329, %330 : vector<16x64xf32>
    %332 = arith.addf %327, %331 : vector<16x64xf32>
    %c11_226 = arith.constant 11 : index
    %c2_227 = arith.constant 2 : index
    %c0_228 = arith.constant 0 : index
    %333 = vector.load %arg28[%c11_226, %c2_227, %c0_228] : memref<18x18x64xf32, #tpu.memory_space<vmem>>, vector<1x16x64xf32>
    %334 = vector.shape_cast %333 : vector<1x16x64xf32> to vector<16x64xf32>
    %335 = vector.broadcast %25 : vector<1x64xf32> to vector<16x64xf32>
    %336 = arith.mulf %334, %335 : vector<16x64xf32>
    %337 = arith.addf %332, %336 : vector<16x64xf32>
    %c12 = arith.constant 12 : index
    %c0_229 = arith.constant 0 : index
    %c0_230 = arith.constant 0 : index
    %338 = vector.load %arg28[%c12, %c0_229, %c0_230] : memref<18x18x64xf32, #tpu.memory_space<vmem>>, vector<1x16x64xf32>
    %339 = vector.shape_cast %338 : vector<1x16x64xf32> to vector<16x64xf32>
    %340 = vector.broadcast %26 : vector<1x64xf32> to vector<16x64xf32>
    %341 = arith.mulf %339, %340 : vector<16x64xf32>
    %342 = arith.addf %337, %341 : vector<16x64xf32>
    %c12_231 = arith.constant 12 : index
    %c0_232 = arith.constant 0 : index
    %c0_233 = arith.constant 0 : index
    %343 = vector.load %arg29[%c12_231, %c0_232, %c0_233] : memref<18x18x64xf32, #tpu.memory_space<vmem>>, vector<1x16x64xf32>
    %344 = vector.shape_cast %343 : vector<1x16x64xf32> to vector<16x64xf32>
    %345 = vector.broadcast %27 : vector<1x64xf32> to vector<16x64xf32>
    %346 = arith.mulf %344, %345 : vector<16x64xf32>
    %347 = arith.addf %342, %346 : vector<16x64xf32>
    %c12_234 = arith.constant 12 : index
    %c2_235 = arith.constant 2 : index
    %c0_236 = arith.constant 0 : index
    %348 = vector.load %arg28[%c12_234, %c2_235, %c0_236] : memref<18x18x64xf32, #tpu.memory_space<vmem>>, vector<1x16x64xf32>
    %349 = vector.shape_cast %348 : vector<1x16x64xf32> to vector<16x64xf32>
    %350 = vector.broadcast %28 : vector<1x64xf32> to vector<16x64xf32>
    %351 = arith.mulf %349, %350 : vector<16x64xf32>
    %352 = arith.addf %347, %351 : vector<16x64xf32>
    %353 = vector.broadcast %29 : vector<1x64xf32> to vector<16x64xf32>
    %354 = arith.addf %352, %353 : vector<16x64xf32>
    %cst_237 = arith.constant 0.000000e+00 : f32
    %355 = vector.broadcast %cst_237 : f32 to vector<16x64xf32>
    %356 = arith.maximumf %354, %355 : vector<16x64xf32>
    %cst_238 = arith.constant dense<0.000000e+00> : vector<16x10xf32>
    %357 = tpu.matmul %356, %30, %cst_238 {dimension_numbers = #tpu.dot_dimension_numbers<[1], [0], [0], [1], [0, 0, 1, 1], [], []>, precision = #tpu.contract_precision<fp32>} : vector<16x64xf32>, vector<64x10xf32>, vector<16x10xf32> -> vector<16x10xf32>
    %358 = vector.broadcast %31 : vector<1x10xf32> to vector<16x10xf32>
    %359 = arith.addf %357, %358 : vector<16x10xf32>
    %cst_239 = arith.constant 0.000000e+00 : f32
    %360 = vector.broadcast %cst_239 : f32 to vector<16x10xf32>
    %361 = arith.maximumf %359, %360 : vector<16x10xf32>
    %cst_240 = arith.constant 0.000000e+00 : f32
    %362 = vector.broadcast %cst_240 : f32 to vector<16x64xf32>
    %c12_241 = arith.constant 12 : index
    %c0_242 = arith.constant 0 : index
    %c0_243 = arith.constant 0 : index
    %363 = vector.load %arg28[%c12_241, %c0_242, %c0_243] : memref<18x18x64xf32, #tpu.memory_space<vmem>>, vector<1x16x64xf32>
    %364 = vector.shape_cast %363 : vector<1x16x64xf32> to vector<16x64xf32>
    %365 = vector.broadcast %20 : vector<1x64xf32> to vector<16x64xf32>
    %366 = arith.mulf %364, %365 : vector<16x64xf32>
    %367 = arith.addf %362, %366 : vector<16x64xf32>
    %c12_244 = arith.constant 12 : index
    %c0_245 = arith.constant 0 : index
    %c0_246 = arith.constant 0 : index
    %368 = vector.load %arg29[%c12_244, %c0_245, %c0_246] : memref<18x18x64xf32, #tpu.memory_space<vmem>>, vector<1x16x64xf32>
    %369 = vector.shape_cast %368 : vector<1x16x64xf32> to vector<16x64xf32>
    %370 = vector.broadcast %21 : vector<1x64xf32> to vector<16x64xf32>
    %371 = arith.mulf %369, %370 : vector<16x64xf32>
    %372 = arith.addf %367, %371 : vector<16x64xf32>
    %c12_247 = arith.constant 12 : index
    %c2_248 = arith.constant 2 : index
    %c0_249 = arith.constant 0 : index
    %373 = vector.load %arg28[%c12_247, %c2_248, %c0_249] : memref<18x18x64xf32, #tpu.memory_space<vmem>>, vector<1x16x64xf32>
    %374 = vector.shape_cast %373 : vector<1x16x64xf32> to vector<16x64xf32>
    %375 = vector.broadcast %22 : vector<1x64xf32> to vector<16x64xf32>
    %376 = arith.mulf %374, %375 : vector<16x64xf32>
    %377 = arith.addf %372, %376 : vector<16x64xf32>
    %c13 = arith.constant 13 : index
    %c0_250 = arith.constant 0 : index
    %c0_251 = arith.constant 0 : index
    %378 = vector.load %arg28[%c13, %c0_250, %c0_251] : memref<18x18x64xf32, #tpu.memory_space<vmem>>, vector<1x16x64xf32>
    %379 = vector.shape_cast %378 : vector<1x16x64xf32> to vector<16x64xf32>
    %380 = vector.broadcast %23 : vector<1x64xf32> to vector<16x64xf32>
    %381 = arith.mulf %379, %380 : vector<16x64xf32>
    %382 = arith.addf %377, %381 : vector<16x64xf32>
    %c13_252 = arith.constant 13 : index
    %c0_253 = arith.constant 0 : index
    %c0_254 = arith.constant 0 : index
    %383 = vector.load %arg29[%c13_252, %c0_253, %c0_254] : memref<18x18x64xf32, #tpu.memory_space<vmem>>, vector<1x16x64xf32>
    %384 = vector.shape_cast %383 : vector<1x16x64xf32> to vector<16x64xf32>
    %385 = vector.broadcast %24 : vector<1x64xf32> to vector<16x64xf32>
    %386 = arith.mulf %384, %385 : vector<16x64xf32>
    %387 = arith.addf %382, %386 : vector<16x64xf32>
    %c13_255 = arith.constant 13 : index
    %c2_256 = arith.constant 2 : index
    %c0_257 = arith.constant 0 : index
    %388 = vector.load %arg28[%c13_255, %c2_256, %c0_257] : memref<18x18x64xf32, #tpu.memory_space<vmem>>, vector<1x16x64xf32>
    %389 = vector.shape_cast %388 : vector<1x16x64xf32> to vector<16x64xf32>
    %390 = vector.broadcast %25 : vector<1x64xf32> to vector<16x64xf32>
    %391 = arith.mulf %389, %390 : vector<16x64xf32>
    %392 = arith.addf %387, %391 : vector<16x64xf32>
    %c14 = arith.constant 14 : index
    %c0_258 = arith.constant 0 : index
    %c0_259 = arith.constant 0 : index
    %393 = vector.load %arg28[%c14, %c0_258, %c0_259] : memref<18x18x64xf32, #tpu.memory_space<vmem>>, vector<1x16x64xf32>
    %394 = vector.shape_cast %393 : vector<1x16x64xf32> to vector<16x64xf32>
    %395 = vector.broadcast %26 : vector<1x64xf32> to vector<16x64xf32>
    %396 = arith.mulf %394, %395 : vector<16x64xf32>
    %397 = arith.addf %392, %396 : vector<16x64xf32>
    %c14_260 = arith.constant 14 : index
    %c0_261 = arith.constant 0 : index
    %c0_262 = arith.constant 0 : index
    %398 = vector.load %arg29[%c14_260, %c0_261, %c0_262] : memref<18x18x64xf32, #tpu.memory_space<vmem>>, vector<1x16x64xf32>
    %399 = vector.shape_cast %398 : vector<1x16x64xf32> to vector<16x64xf32>
    %400 = vector.broadcast %27 : vector<1x64xf32> to vector<16x64xf32>
    %401 = arith.mulf %399, %400 : vector<16x64xf32>
    %402 = arith.addf %397, %401 : vector<16x64xf32>
    %c14_263 = arith.constant 14 : index
    %c2_264 = arith.constant 2 : index
    %c0_265 = arith.constant 0 : index
    %403 = vector.load %arg28[%c14_263, %c2_264, %c0_265] : memref<18x18x64xf32, #tpu.memory_space<vmem>>, vector<1x16x64xf32>
    %404 = vector.shape_cast %403 : vector<1x16x64xf32> to vector<16x64xf32>
    %405 = vector.broadcast %28 : vector<1x64xf32> to vector<16x64xf32>
    %406 = arith.mulf %404, %405 : vector<16x64xf32>
    %407 = arith.addf %402, %406 : vector<16x64xf32>
    %408 = vector.broadcast %29 : vector<1x64xf32> to vector<16x64xf32>
    %409 = arith.addf %407, %408 : vector<16x64xf32>
    %cst_266 = arith.constant 0.000000e+00 : f32
    %410 = vector.broadcast %cst_266 : f32 to vector<16x64xf32>
    %411 = arith.maximumf %409, %410 : vector<16x64xf32>
    %cst_267 = arith.constant dense<0.000000e+00> : vector<16x10xf32>
    %412 = tpu.matmul %411, %30, %cst_267 {dimension_numbers = #tpu.dot_dimension_numbers<[1], [0], [0], [1], [0, 0, 1, 1], [], []>, precision = #tpu.contract_precision<fp32>} : vector<16x64xf32>, vector<64x10xf32>, vector<16x10xf32> -> vector<16x10xf32>
    %413 = vector.broadcast %31 : vector<1x10xf32> to vector<16x10xf32>
    %414 = arith.addf %412, %413 : vector<16x10xf32>
    %cst_268 = arith.constant 0.000000e+00 : f32
    %415 = vector.broadcast %cst_268 : f32 to vector<16x10xf32>
    %416 = arith.maximumf %414, %415 : vector<16x10xf32>
    %cst_269 = arith.constant 0.000000e+00 : f32
    %417 = vector.broadcast %cst_269 : f32 to vector<16x64xf32>
    %c14_270 = arith.constant 14 : index
    %c0_271 = arith.constant 0 : index
    %c0_272 = arith.constant 0 : index
    %418 = vector.load %arg28[%c14_270, %c0_271, %c0_272] : memref<18x18x64xf32, #tpu.memory_space<vmem>>, vector<1x16x64xf32>
    %419 = vector.shape_cast %418 : vector<1x16x64xf32> to vector<16x64xf32>
    %420 = vector.broadcast %20 : vector<1x64xf32> to vector<16x64xf32>
    %421 = arith.mulf %419, %420 : vector<16x64xf32>
    %422 = arith.addf %417, %421 : vector<16x64xf32>
    %c14_273 = arith.constant 14 : index
    %c0_274 = arith.constant 0 : index
    %c0_275 = arith.constant 0 : index
    %423 = vector.load %arg29[%c14_273, %c0_274, %c0_275] : memref<18x18x64xf32, #tpu.memory_space<vmem>>, vector<1x16x64xf32>
    %424 = vector.shape_cast %423 : vector<1x16x64xf32> to vector<16x64xf32>
    %425 = vector.broadcast %21 : vector<1x64xf32> to vector<16x64xf32>
    %426 = arith.mulf %424, %425 : vector<16x64xf32>
    %427 = arith.addf %422, %426 : vector<16x64xf32>
    %c14_276 = arith.constant 14 : index
    %c2_277 = arith.constant 2 : index
    %c0_278 = arith.constant 0 : index
    %428 = vector.load %arg28[%c14_276, %c2_277, %c0_278] : memref<18x18x64xf32, #tpu.memory_space<vmem>>, vector<1x16x64xf32>
    %429 = vector.shape_cast %428 : vector<1x16x64xf32> to vector<16x64xf32>
    %430 = vector.broadcast %22 : vector<1x64xf32> to vector<16x64xf32>
    %431 = arith.mulf %429, %430 : vector<16x64xf32>
    %432 = arith.addf %427, %431 : vector<16x64xf32>
    %c15 = arith.constant 15 : index
    %c0_279 = arith.constant 0 : index
    %c0_280 = arith.constant 0 : index
    %433 = vector.load %arg28[%c15, %c0_279, %c0_280] : memref<18x18x64xf32, #tpu.memory_space<vmem>>, vector<1x16x64xf32>
    %434 = vector.shape_cast %433 : vector<1x16x64xf32> to vector<16x64xf32>
    %435 = vector.broadcast %23 : vector<1x64xf32> to vector<16x64xf32>
    %436 = arith.mulf %434, %435 : vector<16x64xf32>
    %437 = arith.addf %432, %436 : vector<16x64xf32>
    %c15_281 = arith.constant 15 : index
    %c0_282 = arith.constant 0 : index
    %c0_283 = arith.constant 0 : index
    %438 = vector.load %arg29[%c15_281, %c0_282, %c0_283] : memref<18x18x64xf32, #tpu.memory_space<vmem>>, vector<1x16x64xf32>
    %439 = vector.shape_cast %438 : vector<1x16x64xf32> to vector<16x64xf32>
    %440 = vector.broadcast %24 : vector<1x64xf32> to vector<16x64xf32>
    %441 = arith.mulf %439, %440 : vector<16x64xf32>
    %442 = arith.addf %437, %441 : vector<16x64xf32>
    %c15_284 = arith.constant 15 : index
    %c2_285 = arith.constant 2 : index
    %c0_286 = arith.constant 0 : index
    %443 = vector.load %arg28[%c15_284, %c2_285, %c0_286] : memref<18x18x64xf32, #tpu.memory_space<vmem>>, vector<1x16x64xf32>
    %444 = vector.shape_cast %443 : vector<1x16x64xf32> to vector<16x64xf32>
    %445 = vector.broadcast %25 : vector<1x64xf32> to vector<16x64xf32>
    %446 = arith.mulf %444, %445 : vector<16x64xf32>
    %447 = arith.addf %442, %446 : vector<16x64xf32>
    %c16 = arith.constant 16 : index
    %c0_287 = arith.constant 0 : index
    %c0_288 = arith.constant 0 : index
    %448 = vector.load %arg28[%c16, %c0_287, %c0_288] : memref<18x18x64xf32, #tpu.memory_space<vmem>>, vector<1x16x64xf32>
    %449 = vector.shape_cast %448 : vector<1x16x64xf32> to vector<16x64xf32>
    %450 = vector.broadcast %26 : vector<1x64xf32> to vector<16x64xf32>
    %451 = arith.mulf %449, %450 : vector<16x64xf32>
    %452 = arith.addf %447, %451 : vector<16x64xf32>
    %c16_289 = arith.constant 16 : index
    %c0_290 = arith.constant 0 : index
    %c0_291 = arith.constant 0 : index
    %453 = vector.load %arg29[%c16_289, %c0_290, %c0_291] : memref<18x18x64xf32, #tpu.memory_space<vmem>>, vector<1x16x64xf32>
    %454 = vector.shape_cast %453 : vector<1x16x64xf32> to vector<16x64xf32>
    %455 = vector.broadcast %27 : vector<1x64xf32> to vector<16x64xf32>
    %456 = arith.mulf %454, %455 : vector<16x64xf32>
    %457 = arith.addf %452, %456 : vector<16x64xf32>
    %c16_292 = arith.constant 16 : index
    %c2_293 = arith.constant 2 : index
    %c0_294 = arith.constant 0 : index
    %458 = vector.load %arg28[%c16_292, %c2_293, %c0_294] : memref<18x18x64xf32, #tpu.memory_space<vmem>>, vector<1x16x64xf32>
    %459 = vector.shape_cast %458 : vector<1x16x64xf32> to vector<16x64xf32>
    %460 = vector.broadcast %28 : vector<1x64xf32> to vector<16x64xf32>
    %461 = arith.mulf %459, %460 : vector<16x64xf32>
    %462 = arith.addf %457, %461 : vector<16x64xf32>
    %463 = vector.broadcast %29 : vector<1x64xf32> to vector<16x64xf32>
    %464 = arith.addf %462, %463 : vector<16x64xf32>
    %cst_295 = arith.constant 0.000000e+00 : f32
    %465 = vector.broadcast %cst_295 : f32 to vector<16x64xf32>
    %466 = arith.maximumf %464, %465 : vector<16x64xf32>
    %cst_296 = arith.constant dense<0.000000e+00> : vector<16x10xf32>
    %467 = tpu.matmul %466, %30, %cst_296 {dimension_numbers = #tpu.dot_dimension_numbers<[1], [0], [0], [1], [0, 0, 1, 1], [], []>, precision = #tpu.contract_precision<fp32>} : vector<16x64xf32>, vector<64x10xf32>, vector<16x10xf32> -> vector<16x10xf32>
    %468 = vector.broadcast %31 : vector<1x10xf32> to vector<16x10xf32>
    %469 = arith.addf %467, %468 : vector<16x10xf32>
    %cst_297 = arith.constant 0.000000e+00 : f32
    %470 = vector.broadcast %cst_297 : f32 to vector<16x10xf32>
    %471 = arith.maximumf %469, %470 : vector<16x10xf32>
    %c0_298 = arith.constant 0 : index
    %c0_299 = arith.constant 0 : index
    %c0_300 = arith.constant 0 : index
    %472 = vector.load %arg36[%c0_298, %c0_299, %c0_300] : memref<8x16x10xf32, #tpu.memory_space<vmem>>, vector<1x16x10xf32>
    %473 = vector.shape_cast %472 : vector<1x16x10xf32> to vector<16x10xf32>
    %474 = vector.shape_cast %86 : vector<16x10xf32> to vector<1x16x10xf32>
    tpu.vector_store %arg36[%c0_298, %c0_299, %c0_300], %474 {strides = array<i32>} : memref<8x16x10xf32, #tpu.memory_space<vmem>>, vector<1x16x10xf32>,
    %c1_301 = arith.constant 1 : index
    %c0_302 = arith.constant 0 : index
    %c0_303 = arith.constant 0 : index
    %475 = vector.load %arg36[%c1_301, %c0_302, %c0_303] : memref<8x16x10xf32, #tpu.memory_space<vmem>>, vector<1x16x10xf32>
    %476 = vector.shape_cast %475 : vector<1x16x10xf32> to vector<16x10xf32>
    %477 = vector.shape_cast %141 : vector<16x10xf32> to vector<1x16x10xf32>
    tpu.vector_store %arg36[%c1_301, %c0_302, %c0_303], %477 {strides = array<i32>} : memref<8x16x10xf32, #tpu.memory_space<vmem>>, vector<1x16x10xf32>,
    %c2_304 = arith.constant 2 : index
    %c0_305 = arith.constant 0 : index
    %c0_306 = arith.constant 0 : index
    %478 = vector.load %arg36[%c2_304, %c0_305, %c0_306] : memref<8x16x10xf32, #tpu.memory_space<vmem>>, vector<1x16x10xf32>
    %479 = vector.shape_cast %478 : vector<1x16x10xf32> to vector<16x10xf32>
    %480 = vector.shape_cast %196 : vector<16x10xf32> to vector<1x16x10xf32>
    tpu.vector_store %arg36[%c2_304, %c0_305, %c0_306], %480 {strides = array<i32>} : memref<8x16x10xf32, #tpu.memory_space<vmem>>, vector<1x16x10xf32>,
    %c3_307 = arith.constant 3 : index
    %c0_308 = arith.constant 0 : index
    %c0_309 = arith.constant 0 : index
    %481 = vector.load %arg36[%c3_307, %c0_308, %c0_309] : memref<8x16x10xf32, #tpu.memory_space<vmem>>, vector<1x16x10xf32>
    %482 = vector.shape_cast %481 : vector<1x16x10xf32> to vector<16x10xf32>
    %483 = vector.shape_cast %251 : vector<16x10xf32> to vector<1x16x10xf32>
    tpu.vector_store %arg36[%c3_307, %c0_308, %c0_309], %483 {strides = array<i32>} : memref<8x16x10xf32, #tpu.memory_space<vmem>>, vector<1x16x10xf32>,
    %c4_310 = arith.constant 4 : index
    %c0_311 = arith.constant 0 : index
    %c0_312 = arith.constant 0 : index
    %484 = vector.load %arg36[%c4_310, %c0_311, %c0_312] : memref<8x16x10xf32, #tpu.memory_space<vmem>>, vector<1x16x10xf32>
    %485 = vector.shape_cast %484 : vector<1x16x10xf32> to vector<16x10xf32>
    %486 = vector.shape_cast %306 : vector<16x10xf32> to vector<1x16x10xf32>
    tpu.vector_store %arg36[%c4_310, %c0_311, %c0_312], %486 {strides = array<i32>} : memref<8x16x10xf32, #tpu.memory_space<vmem>>, vector<1x16x10xf32>,
    %c5_313 = arith.constant 5 : index
    %c0_314 = arith.constant 0 : index
    %c0_315 = arith.constant 0 : index
    %487 = vector.load %arg36[%c5_313, %c0_314, %c0_315] : memref<8x16x10xf32, #tpu.memory_space<vmem>>, vector<1x16x10xf32>
    %488 = vector.shape_cast %487 : vector<1x16x10xf32> to vector<16x10xf32>
    %489 = vector.shape_cast %361 : vector<16x10xf32> to vector<1x16x10xf32>
    tpu.vector_store %arg36[%c5_313, %c0_314, %c0_315], %489 {strides = array<i32>} : memref<8x16x10xf32, #tpu.memory_space<vmem>>, vector<1x16x10xf32>,
    %c6_316 = arith.constant 6 : index
    %c0_317 = arith.constant 0 : index
    %c0_318 = arith.constant 0 : index
    %490 = vector.load %arg36[%c6_316, %c0_317, %c0_318] : memref<8x16x10xf32, #tpu.memory_space<vmem>>, vector<1x16x10xf32>
    %491 = vector.shape_cast %490 : vector<1x16x10xf32> to vector<16x10xf32>
    %492 = vector.shape_cast %416 : vector<16x10xf32> to vector<1x16x10xf32>
    tpu.vector_store %arg36[%c6_316, %c0_317, %c0_318], %492 {strides = array<i32>} : memref<8x16x10xf32, #tpu.memory_space<vmem>>, vector<1x16x10xf32>,
    %c7_319 = arith.constant 7 : index
    %c0_320 = arith.constant 0 : index
    %c0_321 = arith.constant 0 : index
    %493 = vector.load %arg36[%c7_319, %c0_320, %c0_321] : memref<8x16x10xf32, #tpu.memory_space<vmem>>, vector<1x16x10xf32>
    %494 = vector.shape_cast %493 : vector<1x16x10xf32> to vector<16x10xf32>
    %495 = vector.shape_cast %471 : vector<16x10xf32> to vector<1x16x10xf32>
    tpu.vector_store %arg36[%c7_319, %c0_320, %c0_321], %495 {strides = array<i32>} : memref<8x16x10xf32, #tpu.memory_space<vmem>>, vector<1x16x10xf32>,
    %c0_322 = arith.constant 0 : index
    %c0_323 = arith.constant 0 : index
    %c0_324 = arith.constant 0 : index
    %496 = vector.load %arg36[%c0_322, %c0_323, %c0_324] : memref<8x16x10xf32, #tpu.memory_space<vmem>>, vector<8x2x10xf32>
    %c1_325 = arith.constant 1 : index
    %c0_326 = arith.constant 0 : index
    %c0_327 = arith.constant 0 : index
    %497 = vector.load %arg31[%c1_325, %c0_326, %c0_327] : memref<10x10x10xf32, #tpu.memory_space<vmem>>, vector<8x2x10xf32>
    tpu.vector_store %arg31[%c1_325, %c0_326, %c0_327], %496 {strides = array<i32>} : memref<10x10x10xf32, #tpu.memory_space<vmem>>, vector<8x2x10xf32>,
    %c0_328 = arith.constant 0 : index
    %c2_329 = arith.constant 2 : index
    %c0_330 = arith.constant 0 : index
    %498 = vector.load %arg36[%c0_328, %c2_329, %c0_330] : memref<8x16x10xf32, #tpu.memory_space<vmem>>, vector<8x2x10xf32>
    %c1_331 = arith.constant 1 : index
    %c2_332 = arith.constant 2 : index
    %c0_333 = arith.constant 0 : index
    %499 = vector.load %arg30[%c1_331, %c2_332, %c0_333] : memref<10x10x10xf32, #tpu.memory_space<vmem>>, vector<8x2x10xf32>
    tpu.vector_store %arg30[%c1_331, %c2_332, %c0_333], %498 {strides = array<i32>} : memref<10x10x10xf32, #tpu.memory_space<vmem>>, vector<8x2x10xf32>,
    %c0_334 = arith.constant 0 : index
    %c4_335 = arith.constant 4 : index
    %c0_336 = arith.constant 0 : index
    %500 = vector.load %arg36[%c0_334, %c4_335, %c0_336] : memref<8x16x10xf32, #tpu.memory_space<vmem>>, vector<8x2x10xf32>
    %c1_337 = arith.constant 1 : index
    %c2_338 = arith.constant 2 : index
    %c0_339 = arith.constant 0 : index
    %501 = vector.load %arg31[%c1_337, %c2_338, %c0_339] : memref<10x10x10xf32, #tpu.memory_space<vmem>>, vector<8x2x10xf32>
    tpu.vector_store %arg31[%c1_337, %c2_338, %c0_339], %500 {strides = array<i32>} : memref<10x10x10xf32, #tpu.memory_space<vmem>>, vector<8x2x10xf32>,
    %c0_340 = arith.constant 0 : index
    %c6_341 = arith.constant 6 : index
    %c0_342 = arith.constant 0 : index
    %502 = vector.load %arg36[%c0_340, %c6_341, %c0_342] : memref<8x16x10xf32, #tpu.memory_space<vmem>>, vector<8x2x10xf32>
    %c1_343 = arith.constant 1 : index
    %c4_344 = arith.constant 4 : index
    %c0_345 = arith.constant 0 : index
    %503 = vector.load %arg30[%c1_343, %c4_344, %c0_345] : memref<10x10x10xf32, #tpu.memory_space<vmem>>, vector<8x2x10xf32>
    tpu.vector_store %arg30[%c1_343, %c4_344, %c0_345], %502 {strides = array<i32>} : memref<10x10x10xf32, #tpu.memory_space<vmem>>, vector<8x2x10xf32>,
    %c0_346 = arith.constant 0 : index
    %c8_347 = arith.constant 8 : index
    %c0_348 = arith.constant 0 : index
    %504 = vector.load %arg36[%c0_346, %c8_347, %c0_348] : memref<8x16x10xf32, #tpu.memory_space<vmem>>, vector<8x2x10xf32>
    %c1_349 = arith.constant 1 : index
    %c4_350 = arith.constant 4 : index
    %c0_351 = arith.constant 0 : index
    %505 = vector.load %arg31[%c1_349, %c4_350, %c0_351] : memref<10x10x10xf32, #tpu.memory_space<vmem>>, vector<8x2x10xf32>
    tpu.vector_store %arg31[%c1_349, %c4_350, %c0_351], %504 {strides = array<i32>} : memref<10x10x10xf32, #tpu.memory_space<vmem>>, vector<8x2x10xf32>,
    %c0_352 = arith.constant 0 : index
    %c10_353 = arith.constant 10 : index
    %c0_354 = arith.constant 0 : index
    %506 = vector.load %arg36[%c0_352, %c10_353, %c0_354] : memref<8x16x10xf32, #tpu.memory_space<vmem>>, vector<8x2x10xf32>
    %c1_355 = arith.constant 1 : index
    %c6_356 = arith.constant 6 : index
    %c0_357 = arith.constant 0 : index
    %507 = vector.load %arg30[%c1_355, %c6_356, %c0_357] : memref<10x10x10xf32, #tpu.memory_space<vmem>>, vector<8x2x10xf32>
    tpu.vector_store %arg30[%c1_355, %c6_356, %c0_357], %506 {strides = array<i32>} : memref<10x10x10xf32, #tpu.memory_space<vmem>>, vector<8x2x10xf32>,
    %c0_358 = arith.constant 0 : index
    %c12_359 = arith.constant 12 : index
    %c0_360 = arith.constant 0 : index
    %508 = vector.load %arg36[%c0_358, %c12_359, %c0_360] : memref<8x16x10xf32, #tpu.memory_space<vmem>>, vector<8x2x10xf32>
    %c1_361 = arith.constant 1 : index
    %c6_362 = arith.constant 6 : index
    %c0_363 = arith.constant 0 : index
    %509 = vector.load %arg31[%c1_361, %c6_362, %c0_363] : memref<10x10x10xf32, #tpu.memory_space<vmem>>, vector<8x2x10xf32>
    tpu.vector_store %arg31[%c1_361, %c6_362, %c0_363], %508 {strides = array<i32>} : memref<10x10x10xf32, #tpu.memory_space<vmem>>, vector<8x2x10xf32>,
    %c0_364 = arith.constant 0 : index
    %c14_365 = arith.constant 14 : index
    %c0_366 = arith.constant 0 : index
    %510 = vector.load %arg36[%c0_364, %c14_365, %c0_366] : memref<8x16x10xf32, #tpu.memory_space<vmem>>, vector<8x2x10xf32>
    %c1_367 = arith.constant 1 : index
    %c8_368 = arith.constant 8 : index
    %c0_369 = arith.constant 0 : index
    %511 = vector.load %arg30[%c1_367, %c8_368, %c0_369] : memref<10x10x10xf32, #tpu.memory_space<vmem>>, vector<8x2x10xf32>
    tpu.vector_store %arg30[%c1_367, %c8_368, %c0_369], %510 {strides = array<i32>} : memref<10x10x10xf32, #tpu.memory_space<vmem>>, vector<8x2x10xf32>,
    %c0_370 = arith.constant 0 : index
    %c0_371 = arith.constant 0 : index
    %512 = vector.load %arg6[%c0_370, %c0_371] : memref<9x10xf32, #tpu.memory_space<vmem>>, vector<1x10xf32>
    %c1_372 = arith.constant 1 : index
    %c0_373 = arith.constant 0 : index
    %513 = vector.load %arg6[%c1_372, %c0_373] : memref<9x10xf32, #tpu.memory_space<vmem>>, vector<1x10xf32>
    %c2_374 = arith.constant 2 : index
    %c0_375 = arith.constant 0 : index
    %514 = vector.load %arg6[%c2_374, %c0_375] : memref<9x10xf32, #tpu.memory_space<vmem>>, vector<1x10xf32>
    %c3_376 = arith.constant 3 : index
    %c0_377 = arith.constant 0 : index
    %515 = vector.load %arg6[%c3_376, %c0_377] : memref<9x10xf32, #tpu.memory_space<vmem>>, vector<1x10xf32>
    %c4_378 = arith.constant 4 : index
    %c0_379 = arith.constant 0 : index
    %516 = vector.load %arg6[%c4_378, %c0_379] : memref<9x10xf32, #tpu.memory_space<vmem>>, vector<1x10xf32>
    %c5_380 = arith.constant 5 : index
    %c0_381 = arith.constant 0 : index
    %517 = vector.load %arg6[%c5_380, %c0_381] : memref<9x10xf32, #tpu.memory_space<vmem>>, vector<1x10xf32>
    %c6_382 = arith.constant 6 : index
    %c0_383 = arith.constant 0 : index
    %518 = vector.load %arg6[%c6_382, %c0_383] : memref<9x10xf32, #tpu.memory_space<vmem>>, vector<1x10xf32>
    %c7_384 = arith.constant 7 : index
    %c0_385 = arith.constant 0 : index
    %519 = vector.load %arg6[%c7_384, %c0_385] : memref<9x10xf32, #tpu.memory_space<vmem>>, vector<1x10xf32>
    %c8_386 = arith.constant 8 : index
    %c0_387 = arith.constant 0 : index
    %520 = vector.load %arg6[%c8_386, %c0_387] : memref<9x10xf32, #tpu.memory_space<vmem>>, vector<1x10xf32>
    %c0_388 = arith.constant 0 : index
    %c0_389 = arith.constant 0 : index
    %521 = vector.load %arg7[%c0_388, %c0_389] : memref<1x10xf32, #tpu.memory_space<vmem>>, vector<1x10xf32>
    %c0_390 = arith.constant 0 : index
    %c0_391 = arith.constant 0 : index
    %522 = vector.load %arg8[%c0_390, %c0_391] : memref<10x10xf32, #tpu.memory_space<vmem>>, vector<10x10xf32>
    %c0_392 = arith.constant 0 : index
    %c0_393 = arith.constant 0 : index
    %523 = vector.load %arg9[%c0_392, %c0_393] : memref<1x10xf32, #tpu.memory_space<vmem>>, vector<1x10xf32>
    %cst_394 = arith.constant 0.000000e+00 : f32
    %524 = vector.broadcast %cst_394 : f32 to vector<8x10xf32>
    %c0_395 = arith.constant 0 : index
    %c0_396 = arith.constant 0 : index
    %c0_397 = arith.constant 0 : index
    %525 = vector.load %arg30[%c0_395, %c0_396, %c0_397] : memref<10x10x10xf32, #tpu.memory_space<vmem>>, vector<1x8x10xf32>
    %526 = vector.shape_cast %525 : vector<1x8x10xf32> to vector<8x10xf32>
    %527 = vector.broadcast %512 : vector<1x10xf32> to vector<8x10xf32>
    %528 = arith.mulf %526, %527 : vector<8x10xf32>
    %529 = arith.addf %524, %528 : vector<8x10xf32>
    %c0_398 = arith.constant 0 : index
    %c0_399 = arith.constant 0 : index
    %c0_400 = arith.constant 0 : index
    %530 = vector.load %arg31[%c0_398, %c0_399, %c0_400] : memref<10x10x10xf32, #tpu.memory_space<vmem>>, vector<1x8x10xf32>
    %531 = vector.shape_cast %530 : vector<1x8x10xf32> to vector<8x10xf32>
    %532 = vector.broadcast %513 : vector<1x10xf32> to vector<8x10xf32>
    %533 = arith.mulf %531, %532 : vector<8x10xf32>
    %534 = arith.addf %529, %533 : vector<8x10xf32>
    %c0_401 = arith.constant 0 : index
    %c2_402 = arith.constant 2 : index
    %c0_403 = arith.constant 0 : index
    %535 = vector.load %arg30[%c0_401, %c2_402, %c0_403] : memref<10x10x10xf32, #tpu.memory_space<vmem>>, vector<1x8x10xf32>
    %536 = vector.shape_cast %535 : vector<1x8x10xf32> to vector<8x10xf32>
    %537 = vector.broadcast %514 : vector<1x10xf32> to vector<8x10xf32>
    %538 = arith.mulf %536, %537 : vector<8x10xf32>
    %539 = arith.addf %534, %538 : vector<8x10xf32>
    %c1_404 = arith.constant 1 : index
    %c0_405 = arith.constant 0 : index
    %c0_406 = arith.constant 0 : index
    %540 = vector.load %arg30[%c1_404, %c0_405, %c0_406] : memref<10x10x10xf32, #tpu.memory_space<vmem>>, vector<1x8x10xf32>
    %541 = vector.shape_cast %540 : vector<1x8x10xf32> to vector<8x10xf32>
    %542 = vector.broadcast %515 : vector<1x10xf32> to vector<8x10xf32>
    %543 = arith.mulf %541, %542 : vector<8x10xf32>
    %544 = arith.addf %539, %543 : vector<8x10xf32>
    %c1_407 = arith.constant 1 : index
    %c0_408 = arith.constant 0 : index
    %c0_409 = arith.constant 0 : index
    %545 = vector.load %arg31[%c1_407, %c0_408, %c0_409] : memref<10x10x10xf32, #tpu.memory_space<vmem>>, vector<1x8x10xf32>
    %546 = vector.shape_cast %545 : vector<1x8x10xf32> to vector<8x10xf32>
    %547 = vector.broadcast %516 : vector<1x10xf32> to vector<8x10xf32>
    %548 = arith.mulf %546, %547 : vector<8x10xf32>
    %549 = arith.addf %544, %548 : vector<8x10xf32>
    %c1_410 = arith.constant 1 : index
    %c2_411 = arith.constant 2 : index
    %c0_412 = arith.constant 0 : index
    %550 = vector.load %arg30[%c1_410, %c2_411, %c0_412] : memref<10x10x10xf32, #tpu.memory_space<vmem>>, vector<1x8x10xf32>
    %551 = vector.shape_cast %550 : vector<1x8x10xf32> to vector<8x10xf32>
    %552 = vector.broadcast %517 : vector<1x10xf32> to vector<8x10xf32>
    %553 = arith.mulf %551, %552 : vector<8x10xf32>
    %554 = arith.addf %549, %553 : vector<8x10xf32>
    %c2_413 = arith.constant 2 : index
    %c0_414 = arith.constant 0 : index
    %c0_415 = arith.constant 0 : index
    %555 = vector.load %arg30[%c2_413, %c0_414, %c0_415] : memref<10x10x10xf32, #tpu.memory_space<vmem>>, vector<1x8x10xf32>
    %556 = vector.shape_cast %555 : vector<1x8x10xf32> to vector<8x10xf32>
    %557 = vector.broadcast %518 : vector<1x10xf32> to vector<8x10xf32>
    %558 = arith.mulf %556, %557 : vector<8x10xf32>
    %559 = arith.addf %554, %558 : vector<8x10xf32>
    %c2_416 = arith.constant 2 : index
    %c0_417 = arith.constant 0 : index
    %c0_418 = arith.constant 0 : index
    %560 = vector.load %arg31[%c2_416, %c0_417, %c0_418] : memref<10x10x10xf32, #tpu.memory_space<vmem>>, vector<1x8x10xf32>
    %561 = vector.shape_cast %560 : vector<1x8x10xf32> to vector<8x10xf32>
    %562 = vector.broadcast %519 : vector<1x10xf32> to vector<8x10xf32>
    %563 = arith.mulf %561, %562 : vector<8x10xf32>
    %564 = arith.addf %559, %563 : vector<8x10xf32>
    %c2_419 = arith.constant 2 : index
    %c2_420 = arith.constant 2 : index
    %c0_421 = arith.constant 0 : index
    %565 = vector.load %arg30[%c2_419, %c2_420, %c0_421] : memref<10x10x10xf32, #tpu.memory_space<vmem>>, vector<1x8x10xf32>
    %566 = vector.shape_cast %565 : vector<1x8x10xf32> to vector<8x10xf32>
    %567 = vector.broadcast %520 : vector<1x10xf32> to vector<8x10xf32>
    %568 = arith.mulf %566, %567 : vector<8x10xf32>
    %569 = arith.addf %564, %568 : vector<8x10xf32>
    %570 = vector.broadcast %521 : vector<1x10xf32> to vector<8x10xf32>
    %571 = arith.addf %569, %570 : vector<8x10xf32>
    %cst_422 = arith.constant 0.000000e+00 : f32
    %572 = vector.broadcast %cst_422 : f32 to vector<8x10xf32>
    %573 = arith.maximumf %571, %572 : vector<8x10xf32>
    %cst_423 = arith.constant dense<0.000000e+00> : vector<8x10xf32>
    %574 = tpu.matmul %573, %522, %cst_423 {dimension_numbers = #tpu.dot_dimension_numbers<[1], [0], [0], [1], [0, 0, 1, 1], [], []>, precision = #tpu.contract_precision<fp32>} : vector<8x10xf32>, vector<10x10xf32>, vector<8x10xf32> -> vector<8x10xf32>
    %575 = vector.broadcast %523 : vector<1x10xf32> to vector<8x10xf32>
    %576 = arith.addf %574, %575 : vector<8x10xf32>
    %cst_424 = arith.constant 0.000000e+00 : f32
    %577 = vector.broadcast %cst_424 : f32 to vector<8x10xf32>
    %578 = arith.maximumf %576, %577 : vector<8x10xf32>
    %cst_425 = arith.constant 0.000000e+00 : f32
    %579 = vector.broadcast %cst_425 : f32 to vector<8x10xf32>
    %c2_426 = arith.constant 2 : index
    %c0_427 = arith.constant 0 : index
    %c0_428 = arith.constant 0 : index
    %580 = vector.load %arg30[%c2_426, %c0_427, %c0_428] : memref<10x10x10xf32, #tpu.memory_space<vmem>>, vector<1x8x10xf32>
    %581 = vector.shape_cast %580 : vector<1x8x10xf32> to vector<8x10xf32>
    %582 = vector.broadcast %512 : vector<1x10xf32> to vector<8x10xf32>
    %583 = arith.mulf %581, %582 : vector<8x10xf32>
    %584 = arith.addf %579, %583 : vector<8x10xf32>
    %c2_429 = arith.constant 2 : index
    %c0_430 = arith.constant 0 : index
    %c0_431 = arith.constant 0 : index
    %585 = vector.load %arg31[%c2_429, %c0_430, %c0_431] : memref<10x10x10xf32, #tpu.memory_space<vmem>>, vector<1x8x10xf32>
    %586 = vector.shape_cast %585 : vector<1x8x10xf32> to vector<8x10xf32>
    %587 = vector.broadcast %513 : vector<1x10xf32> to vector<8x10xf32>
    %588 = arith.mulf %586, %587 : vector<8x10xf32>
    %589 = arith.addf %584, %588 : vector<8x10xf32>
    %c2_432 = arith.constant 2 : index
    %c2_433 = arith.constant 2 : index
    %c0_434 = arith.constant 0 : index
    %590 = vector.load %arg30[%c2_432, %c2_433, %c0_434] : memref<10x10x10xf32, #tpu.memory_space<vmem>>, vector<1x8x10xf32>
    %591 = vector.shape_cast %590 : vector<1x8x10xf32> to vector<8x10xf32>
    %592 = vector.broadcast %514 : vector<1x10xf32> to vector<8x10xf32>
    %593 = arith.mulf %591, %592 : vector<8x10xf32>
    %594 = arith.addf %589, %593 : vector<8x10xf32>
    %c3_435 = arith.constant 3 : index
    %c0_436 = arith.constant 0 : index
    %c0_437 = arith.constant 0 : index
    %595 = vector.load %arg30[%c3_435, %c0_436, %c0_437] : memref<10x10x10xf32, #tpu.memory_space<vmem>>, vector<1x8x10xf32>
    %596 = vector.shape_cast %595 : vector<1x8x10xf32> to vector<8x10xf32>
    %597 = vector.broadcast %515 : vector<1x10xf32> to vector<8x10xf32>
    %598 = arith.mulf %596, %597 : vector<8x10xf32>
    %599 = arith.addf %594, %598 : vector<8x10xf32>
    %c3_438 = arith.constant 3 : index
    %c0_439 = arith.constant 0 : index
    %c0_440 = arith.constant 0 : index
    %600 = vector.load %arg31[%c3_438, %c0_439, %c0_440] : memref<10x10x10xf32, #tpu.memory_space<vmem>>, vector<1x8x10xf32>
    %601 = vector.shape_cast %600 : vector<1x8x10xf32> to vector<8x10xf32>
    %602 = vector.broadcast %516 : vector<1x10xf32> to vector<8x10xf32>
    %603 = arith.mulf %601, %602 : vector<8x10xf32>
    %604 = arith.addf %599, %603 : vector<8x10xf32>
    %c3_441 = arith.constant 3 : index
    %c2_442 = arith.constant 2 : index
    %c0_443 = arith.constant 0 : index
    %605 = vector.load %arg30[%c3_441, %c2_442, %c0_443] : memref<10x10x10xf32, #tpu.memory_space<vmem>>, vector<1x8x10xf32>
    %606 = vector.shape_cast %605 : vector<1x8x10xf32> to vector<8x10xf32>
    %607 = vector.broadcast %517 : vector<1x10xf32> to vector<8x10xf32>
    %608 = arith.mulf %606, %607 : vector<8x10xf32>
    %609 = arith.addf %604, %608 : vector<8x10xf32>
    %c4_444 = arith.constant 4 : index
    %c0_445 = arith.constant 0 : index
    %c0_446 = arith.constant 0 : index
    %610 = vector.load %arg30[%c4_444, %c0_445, %c0_446] : memref<10x10x10xf32, #tpu.memory_space<vmem>>, vector<1x8x10xf32>
    %611 = vector.shape_cast %610 : vector<1x8x10xf32> to vector<8x10xf32>
    %612 = vector.broadcast %518 : vector<1x10xf32> to vector<8x10xf32>
    %613 = arith.mulf %611, %612 : vector<8x10xf32>
    %614 = arith.addf %609, %613 : vector<8x10xf32>
    %c4_447 = arith.constant 4 : index
    %c0_448 = arith.constant 0 : index
    %c0_449 = arith.constant 0 : index
    %615 = vector.load %arg31[%c4_447, %c0_448, %c0_449] : memref<10x10x10xf32, #tpu.memory_space<vmem>>, vector<1x8x10xf32>
    %616 = vector.shape_cast %615 : vector<1x8x10xf32> to vector<8x10xf32>
    %617 = vector.broadcast %519 : vector<1x10xf32> to vector<8x10xf32>
    %618 = arith.mulf %616, %617 : vector<8x10xf32>
    %619 = arith.addf %614, %618 : vector<8x10xf32>
    %c4_450 = arith.constant 4 : index
    %c2_451 = arith.constant 2 : index
    %c0_452 = arith.constant 0 : index
    %620 = vector.load %arg30[%c4_450, %c2_451, %c0_452] : memref<10x10x10xf32, #tpu.memory_space<vmem>>, vector<1x8x10xf32>
    %621 = vector.shape_cast %620 : vector<1x8x10xf32> to vector<8x10xf32>
    %622 = vector.broadcast %520 : vector<1x10xf32> to vector<8x10xf32>
    %623 = arith.mulf %621, %622 : vector<8x10xf32>
    %624 = arith.addf %619, %623 : vector<8x10xf32>
    %625 = vector.broadcast %521 : vector<1x10xf32> to vector<8x10xf32>
    %626 = arith.addf %624, %625 : vector<8x10xf32>
    %cst_453 = arith.constant 0.000000e+00 : f32
    %627 = vector.broadcast %cst_453 : f32 to vector<8x10xf32>
    %628 = arith.maximumf %626, %627 : vector<8x10xf32>
    %cst_454 = arith.constant dense<0.000000e+00> : vector<8x10xf32>
    %629 = tpu.matmul %628, %522, %cst_454 {dimension_numbers = #tpu.dot_dimension_numbers<[1], [0], [0], [1], [0, 0, 1, 1], [], []>, precision = #tpu.contract_precision<fp32>} : vector<8x10xf32>, vector<10x10xf32>, vector<8x10xf32> -> vector<8x10xf32>
    %630 = vector.broadcast %523 : vector<1x10xf32> to vector<8x10xf32>
    %631 = arith.addf %629, %630 : vector<8x10xf32>
    %cst_455 = arith.constant 0.000000e+00 : f32
    %632 = vector.broadcast %cst_455 : f32 to vector<8x10xf32>
    %633 = arith.maximumf %631, %632 : vector<8x10xf32>
    %cst_456 = arith.constant 0.000000e+00 : f32
    %634 = vector.broadcast %cst_456 : f32 to vector<8x10xf32>
    %c4_457 = arith.constant 4 : index
    %c0_458 = arith.constant 0 : index
    %c0_459 = arith.constant 0 : index
    %635 = vector.load %arg30[%c4_457, %c0_458, %c0_459] : memref<10x10x10xf32, #tpu.memory_space<vmem>>, vector<1x8x10xf32>
    %636 = vector.shape_cast %635 : vector<1x8x10xf32> to vector<8x10xf32>
    %637 = vector.broadcast %512 : vector<1x10xf32> to vector<8x10xf32>
    %638 = arith.mulf %636, %637 : vector<8x10xf32>
    %639 = arith.addf %634, %638 : vector<8x10xf32>
    %c4_460 = arith.constant 4 : index
    %c0_461 = arith.constant 0 : index
    %c0_462 = arith.constant 0 : index
    %640 = vector.load %arg31[%c4_460, %c0_461, %c0_462] : memref<10x10x10xf32, #tpu.memory_space<vmem>>, vector<1x8x10xf32>
    %641 = vector.shape_cast %640 : vector<1x8x10xf32> to vector<8x10xf32>
    %642 = vector.broadcast %513 : vector<1x10xf32> to vector<8x10xf32>
    %643 = arith.mulf %641, %642 : vector<8x10xf32>
    %644 = arith.addf %639, %643 : vector<8x10xf32>
    %c4_463 = arith.constant 4 : index
    %c2_464 = arith.constant 2 : index
    %c0_465 = arith.constant 0 : index
    %645 = vector.load %arg30[%c4_463, %c2_464, %c0_465] : memref<10x10x10xf32, #tpu.memory_space<vmem>>, vector<1x8x10xf32>
    %646 = vector.shape_cast %645 : vector<1x8x10xf32> to vector<8x10xf32>
    %647 = vector.broadcast %514 : vector<1x10xf32> to vector<8x10xf32>
    %648 = arith.mulf %646, %647 : vector<8x10xf32>
    %649 = arith.addf %644, %648 : vector<8x10xf32>
    %c5_466 = arith.constant 5 : index
    %c0_467 = arith.constant 0 : index
    %c0_468 = arith.constant 0 : index
    %650 = vector.load %arg30[%c5_466, %c0_467, %c0_468] : memref<10x10x10xf32, #tpu.memory_space<vmem>>, vector<1x8x10xf32>
    %651 = vector.shape_cast %650 : vector<1x8x10xf32> to vector<8x10xf32>
    %652 = vector.broadcast %515 : vector<1x10xf32> to vector<8x10xf32>
    %653 = arith.mulf %651, %652 : vector<8x10xf32>
    %654 = arith.addf %649, %653 : vector<8x10xf32>
    %c5_469 = arith.constant 5 : index
    %c0_470 = arith.constant 0 : index
    %c0_471 = arith.constant 0 : index
    %655 = vector.load %arg31[%c5_469, %c0_470, %c0_471] : memref<10x10x10xf32, #tpu.memory_space<vmem>>, vector<1x8x10xf32>
    %656 = vector.shape_cast %655 : vector<1x8x10xf32> to vector<8x10xf32>
    %657 = vector.broadcast %516 : vector<1x10xf32> to vector<8x10xf32>
    %658 = arith.mulf %656, %657 : vector<8x10xf32>
    %659 = arith.addf %654, %658 : vector<8x10xf32>
    %c5_472 = arith.constant 5 : index
    %c2_473 = arith.constant 2 : index
    %c0_474 = arith.constant 0 : index
    %660 = vector.load %arg30[%c5_472, %c2_473, %c0_474] : memref<10x10x10xf32, #tpu.memory_space<vmem>>, vector<1x8x10xf32>
    %661 = vector.shape_cast %660 : vector<1x8x10xf32> to vector<8x10xf32>
    %662 = vector.broadcast %517 : vector<1x10xf32> to vector<8x10xf32>
    %663 = arith.mulf %661, %662 : vector<8x10xf32>
    %664 = arith.addf %659, %663 : vector<8x10xf32>
    %c6_475 = arith.constant 6 : index
    %c0_476 = arith.constant 0 : index
    %c0_477 = arith.constant 0 : index
    %665 = vector.load %arg30[%c6_475, %c0_476, %c0_477] : memref<10x10x10xf32, #tpu.memory_space<vmem>>, vector<1x8x10xf32>
    %666 = vector.shape_cast %665 : vector<1x8x10xf32> to vector<8x10xf32>
    %667 = vector.broadcast %518 : vector<1x10xf32> to vector<8x10xf32>
    %668 = arith.mulf %666, %667 : vector<8x10xf32>
    %669 = arith.addf %664, %668 : vector<8x10xf32>
    %c6_478 = arith.constant 6 : index
    %c0_479 = arith.constant 0 : index
    %c0_480 = arith.constant 0 : index
    %670 = vector.load %arg31[%c6_478, %c0_479, %c0_480] : memref<10x10x10xf32, #tpu.memory_space<vmem>>, vector<1x8x10xf32>
    %671 = vector.shape_cast %670 : vector<1x8x10xf32> to vector<8x10xf32>
    %672 = vector.broadcast %519 : vector<1x10xf32> to vector<8x10xf32>
    %673 = arith.mulf %671, %672 : vector<8x10xf32>
    %674 = arith.addf %669, %673 : vector<8x10xf32>
    %c6_481 = arith.constant 6 : index
    %c2_482 = arith.constant 2 : index
    %c0_483 = arith.constant 0 : index
    %675 = vector.load %arg30[%c6_481, %c2_482, %c0_483] : memref<10x10x10xf32, #tpu.memory_space<vmem>>, vector<1x8x10xf32>
    %676 = vector.shape_cast %675 : vector<1x8x10xf32> to vector<8x10xf32>
    %677 = vector.broadcast %520 : vector<1x10xf32> to vector<8x10xf32>
    %678 = arith.mulf %676, %677 : vector<8x10xf32>
    %679 = arith.addf %674, %678 : vector<8x10xf32>
    %680 = vector.broadcast %521 : vector<1x10xf32> to vector<8x10xf32>
    %681 = arith.addf %679, %680 : vector<8x10xf32>
    %cst_484 = arith.constant 0.000000e+00 : f32
    %682 = vector.broadcast %cst_484 : f32 to vector<8x10xf32>
    %683 = arith.maximumf %681, %682 : vector<8x10xf32>
    %cst_485 = arith.constant dense<0.000000e+00> : vector<8x10xf32>
    %684 = tpu.matmul %683, %522, %cst_485 {dimension_numbers = #tpu.dot_dimension_numbers<[1], [0], [0], [1], [0, 0, 1, 1], [], []>, precision = #tpu.contract_precision<fp32>} : vector<8x10xf32>, vector<10x10xf32>, vector<8x10xf32> -> vector<8x10xf32>
    %685 = vector.broadcast %523 : vector<1x10xf32> to vector<8x10xf32>
    %686 = arith.addf %684, %685 : vector<8x10xf32>
    %cst_486 = arith.constant 0.000000e+00 : f32
    %687 = vector.broadcast %cst_486 : f32 to vector<8x10xf32>
    %688 = arith.maximumf %686, %687 : vector<8x10xf32>
    %cst_487 = arith.constant 0.000000e+00 : f32
    %689 = vector.broadcast %cst_487 : f32 to vector<8x10xf32>
    %c6_488 = arith.constant 6 : index
    %c0_489 = arith.constant 0 : index
    %c0_490 = arith.constant 0 : index
    %690 = vector.load %arg30[%c6_488, %c0_489, %c0_490] : memref<10x10x10xf32, #tpu.memory_space<vmem>>, vector<1x8x10xf32>
    %691 = vector.shape_cast %690 : vector<1x8x10xf32> to vector<8x10xf32>
    %692 = vector.broadcast %512 : vector<1x10xf32> to vector<8x10xf32>
    %693 = arith.mulf %691, %692 : vector<8x10xf32>
    %694 = arith.addf %689, %693 : vector<8x10xf32>
    %c6_491 = arith.constant 6 : index
    %c0_492 = arith.constant 0 : index
    %c0_493 = arith.constant 0 : index
    %695 = vector.load %arg31[%c6_491, %c0_492, %c0_493] : memref<10x10x10xf32, #tpu.memory_space<vmem>>, vector<1x8x10xf32>
    %696 = vector.shape_cast %695 : vector<1x8x10xf32> to vector<8x10xf32>
    %697 = vector.broadcast %513 : vector<1x10xf32> to vector<8x10xf32>
    %698 = arith.mulf %696, %697 : vector<8x10xf32>
    %699 = arith.addf %694, %698 : vector<8x10xf32>
    %c6_494 = arith.constant 6 : index
    %c2_495 = arith.constant 2 : index
    %c0_496 = arith.constant 0 : index
    %700 = vector.load %arg30[%c6_494, %c2_495, %c0_496] : memref<10x10x10xf32, #tpu.memory_space<vmem>>, vector<1x8x10xf32>
    %701 = vector.shape_cast %700 : vector<1x8x10xf32> to vector<8x10xf32>
    %702 = vector.broadcast %514 : vector<1x10xf32> to vector<8x10xf32>
    %703 = arith.mulf %701, %702 : vector<8x10xf32>
    %704 = arith.addf %699, %703 : vector<8x10xf32>
    %c7_497 = arith.constant 7 : index
    %c0_498 = arith.constant 0 : index
    %c0_499 = arith.constant 0 : index
    %705 = vector.load %arg30[%c7_497, %c0_498, %c0_499] : memref<10x10x10xf32, #tpu.memory_space<vmem>>, vector<1x8x10xf32>
    %706 = vector.shape_cast %705 : vector<1x8x10xf32> to vector<8x10xf32>
    %707 = vector.broadcast %515 : vector<1x10xf32> to vector<8x10xf32>
    %708 = arith.mulf %706, %707 : vector<8x10xf32>
    %709 = arith.addf %704, %708 : vector<8x10xf32>
    %c7_500 = arith.constant 7 : index
    %c0_501 = arith.constant 0 : index
    %c0_502 = arith.constant 0 : index
    %710 = vector.load %arg31[%c7_500, %c0_501, %c0_502] : memref<10x10x10xf32, #tpu.memory_space<vmem>>, vector<1x8x10xf32>
    %711 = vector.shape_cast %710 : vector<1x8x10xf32> to vector<8x10xf32>
    %712 = vector.broadcast %516 : vector<1x10xf32> to vector<8x10xf32>
    %713 = arith.mulf %711, %712 : vector<8x10xf32>
    %714 = arith.addf %709, %713 : vector<8x10xf32>
    %c7_503 = arith.constant 7 : index
    %c2_504 = arith.constant 2 : index
    %c0_505 = arith.constant 0 : index
    %715 = vector.load %arg30[%c7_503, %c2_504, %c0_505] : memref<10x10x10xf32, #tpu.memory_space<vmem>>, vector<1x8x10xf32>
    %716 = vector.shape_cast %715 : vector<1x8x10xf32> to vector<8x10xf32>
    %717 = vector.broadcast %517 : vector<1x10xf32> to vector<8x10xf32>
    %718 = arith.mulf %716, %717 : vector<8x10xf32>
    %719 = arith.addf %714, %718 : vector<8x10xf32>
    %c8_506 = arith.constant 8 : index
    %c0_507 = arith.constant 0 : index
    %c0_508 = arith.constant 0 : index
    %720 = vector.load %arg30[%c8_506, %c0_507, %c0_508] : memref<10x10x10xf32, #tpu.memory_space<vmem>>, vector<1x8x10xf32>
    %721 = vector.shape_cast %720 : vector<1x8x10xf32> to vector<8x10xf32>
    %722 = vector.broadcast %518 : vector<1x10xf32> to vector<8x10xf32>
    %723 = arith.mulf %721, %722 : vector<8x10xf32>
    %724 = arith.addf %719, %723 : vector<8x10xf32>
    %c8_509 = arith.constant 8 : index
    %c0_510 = arith.constant 0 : index
    %c0_511 = arith.constant 0 : index
    %725 = vector.load %arg31[%c8_509, %c0_510, %c0_511] : memref<10x10x10xf32, #tpu.memory_space<vmem>>, vector<1x8x10xf32>
    %726 = vector.shape_cast %725 : vector<1x8x10xf32> to vector<8x10xf32>
    %727 = vector.broadcast %519 : vector<1x10xf32> to vector<8x10xf32>
    %728 = arith.mulf %726, %727 : vector<8x10xf32>
    %729 = arith.addf %724, %728 : vector<8x10xf32>
    %c8_512 = arith.constant 8 : index
    %c2_513 = arith.constant 2 : index
    %c0_514 = arith.constant 0 : index
    %730 = vector.load %arg30[%c8_512, %c2_513, %c0_514] : memref<10x10x10xf32, #tpu.memory_space<vmem>>, vector<1x8x10xf32>
    %731 = vector.shape_cast %730 : vector<1x8x10xf32> to vector<8x10xf32>
    %732 = vector.broadcast %520 : vector<1x10xf32> to vector<8x10xf32>
    %733 = arith.mulf %731, %732 : vector<8x10xf32>
    %734 = arith.addf %729, %733 : vector<8x10xf32>
    %735 = vector.broadcast %521 : vector<1x10xf32> to vector<8x10xf32>
    %736 = arith.addf %734, %735 : vector<8x10xf32>
    %cst_515 = arith.constant 0.000000e+00 : f32
    %737 = vector.broadcast %cst_515 : f32 to vector<8x10xf32>
    %738 = arith.maximumf %736, %737 : vector<8x10xf32>
    %cst_516 = arith.constant dense<0.000000e+00> : vector<8x10xf32>
    %739 = tpu.matmul %738, %522, %cst_516 {dimension_numbers = #tpu.dot_dimension_numbers<[1], [0], [0], [1], [0, 0, 1, 1], [], []>, precision = #tpu.contract_precision<fp32>} : vector<8x10xf32>, vector<10x10xf32>, vector<8x10xf32> -> vector<8x10xf32>
    %740 = vector.broadcast %523 : vector<1x10xf32> to vector<8x10xf32>
    %741 = arith.addf %739, %740 : vector<8x10xf32>
    %cst_517 = arith.constant 0.000000e+00 : f32
    %742 = vector.broadcast %cst_517 : f32 to vector<8x10xf32>
    %743 = arith.maximumf %741, %742 : vector<8x10xf32>
    %c0_518 = arith.constant 0 : index
    %c0_519 = arith.constant 0 : index
    %c0_520 = arith.constant 0 : index
    %744 = vector.load %arg37[%c0_518, %c0_519, %c0_520] : memref<4x8x10xf32, #tpu.memory_space<vmem>>, vector<1x8x10xf32>
    %745 = vector.shape_cast %744 : vector<1x8x10xf32> to vector<8x10xf32>
    %746 = vector.shape_cast %578 : vector<8x10xf32> to vector<1x8x10xf32>
    tpu.vector_store %arg37[%c0_518, %c0_519, %c0_520], %746 {strides = array<i32>} : memref<4x8x10xf32, #tpu.memory_space<vmem>>, vector<1x8x10xf32>,
    %c1_521 = arith.constant 1 : index
    %c0_522 = arith.constant 0 : index
    %c0_523 = arith.constant 0 : index
    %747 = vector.load %arg37[%c1_521, %c0_522, %c0_523] : memref<4x8x10xf32, #tpu.memory_space<vmem>>, vector<1x8x10xf32>
    %748 = vector.shape_cast %747 : vector<1x8x10xf32> to vector<8x10xf32>
    %749 = vector.shape_cast %633 : vector<8x10xf32> to vector<1x8x10xf32>
    tpu.vector_store %arg37[%c1_521, %c0_522, %c0_523], %749 {strides = array<i32>} : memref<4x8x10xf32, #tpu.memory_space<vmem>>, vector<1x8x10xf32>,
    %c2_524 = arith.constant 2 : index
    %c0_525 = arith.constant 0 : index
    %c0_526 = arith.constant 0 : index
    %750 = vector.load %arg37[%c2_524, %c0_525, %c0_526] : memref<4x8x10xf32, #tpu.memory_space<vmem>>, vector<1x8x10xf32>
    %751 = vector.shape_cast %750 : vector<1x8x10xf32> to vector<8x10xf32>
    %752 = vector.shape_cast %688 : vector<8x10xf32> to vector<1x8x10xf32>
    tpu.vector_store %arg37[%c2_524, %c0_525, %c0_526], %752 {strides = array<i32>} : memref<4x8x10xf32, #tpu.memory_space<vmem>>, vector<1x8x10xf32>,
    %c3_527 = arith.constant 3 : index
    %c0_528 = arith.constant 0 : index
    %c0_529 = arith.constant 0 : index
    %753 = vector.load %arg37[%c3_527, %c0_528, %c0_529] : memref<4x8x10xf32, #tpu.memory_space<vmem>>, vector<1x8x10xf32>
    %754 = vector.shape_cast %753 : vector<1x8x10xf32> to vector<8x10xf32>
    %755 = vector.shape_cast %743 : vector<8x10xf32> to vector<1x8x10xf32>
    tpu.vector_store %arg37[%c3_527, %c0_528, %c0_529], %755 {strides = array<i32>} : memref<4x8x10xf32, #tpu.memory_space<vmem>>, vector<1x8x10xf32>,
    %c0_530 = arith.constant 0 : index
    %c0_531 = arith.constant 0 : index
    %c0_532 = arith.constant 0 : index
    %756 = vector.load %arg37[%c0_530, %c0_531, %c0_532] : memref<4x8x10xf32, #tpu.memory_space<vmem>>, vector<4x2x10xf32>
    %c1_533 = arith.constant 1 : index
    %c0_534 = arith.constant 0 : index
    %c0_535 = arith.constant 0 : index
    %757 = vector.load %arg33[%c1_533, %c0_534, %c0_535] : memref<6x6x10xf32, #tpu.memory_space<vmem>>, vector<4x2x10xf32>
    tpu.vector_store %arg33[%c1_533, %c0_534, %c0_535], %756 {strides = array<i32>} : memref<6x6x10xf32, #tpu.memory_space<vmem>>, vector<4x2x10xf32>,
    %c0_536 = arith.constant 0 : index
    %c2_537 = arith.constant 2 : index
    %c0_538 = arith.constant 0 : index
    %758 = vector.load %arg37[%c0_536, %c2_537, %c0_538] : memref<4x8x10xf32, #tpu.memory_space<vmem>>, vector<4x2x10xf32>
    %c1_539 = arith.constant 1 : index
    %c2_540 = arith.constant 2 : index
    %c0_541 = arith.constant 0 : index
    %759 = vector.load %arg32[%c1_539, %c2_540, %c0_541] : memref<6x6x10xf32, #tpu.memory_space<vmem>>, vector<4x2x10xf32>
    tpu.vector_store %arg32[%c1_539, %c2_540, %c0_541], %758 {strides = array<i32>} : memref<6x6x10xf32, #tpu.memory_space<vmem>>, vector<4x2x10xf32>,
    %c0_542 = arith.constant 0 : index
    %c4_543 = arith.constant 4 : index
    %c0_544 = arith.constant 0 : index
    %760 = vector.load %arg37[%c0_542, %c4_543, %c0_544] : memref<4x8x10xf32, #tpu.memory_space<vmem>>, vector<4x2x10xf32>
    %c1_545 = arith.constant 1 : index
    %c2_546 = arith.constant 2 : index
    %c0_547 = arith.constant 0 : index
    %761 = vector.load %arg33[%c1_545, %c2_546, %c0_547] : memref<6x6x10xf32, #tpu.memory_space<vmem>>, vector<4x2x10xf32>
    tpu.vector_store %arg33[%c1_545, %c2_546, %c0_547], %760 {strides = array<i32>} : memref<6x6x10xf32, #tpu.memory_space<vmem>>, vector<4x2x10xf32>,
    %c0_548 = arith.constant 0 : index
    %c6_549 = arith.constant 6 : index
    %c0_550 = arith.constant 0 : index
    %762 = vector.load %arg37[%c0_548, %c6_549, %c0_550] : memref<4x8x10xf32, #tpu.memory_space<vmem>>, vector<4x2x10xf32>
    %c1_551 = arith.constant 1 : index
    %c4_552 = arith.constant 4 : index
    %c0_553 = arith.constant 0 : index
    %763 = vector.load %arg32[%c1_551, %c4_552, %c0_553] : memref<6x6x10xf32, #tpu.memory_space<vmem>>, vector<4x2x10xf32>
    tpu.vector_store %arg32[%c1_551, %c4_552, %c0_553], %762 {strides = array<i32>} : memref<6x6x10xf32, #tpu.memory_space<vmem>>, vector<4x2x10xf32>,
    %c0_554 = arith.constant 0 : index
    %c0_555 = arith.constant 0 : index
    %764 = vector.load %arg10[%c0_554, %c0_555] : memref<9x10xf32, #tpu.memory_space<vmem>>, vector<1x10xf32>
    %c1_556 = arith.constant 1 : index
    %c0_557 = arith.constant 0 : index
    %765 = vector.load %arg10[%c1_556, %c0_557] : memref<9x10xf32, #tpu.memory_space<vmem>>, vector<1x10xf32>
    %c2_558 = arith.constant 2 : index
    %c0_559 = arith.constant 0 : index
    %766 = vector.load %arg10[%c2_558, %c0_559] : memref<9x10xf32, #tpu.memory_space<vmem>>, vector<1x10xf32>
    %c3_560 = arith.constant 3 : index
    %c0_561 = arith.constant 0 : index
    %767 = vector.load %arg10[%c3_560, %c0_561] : memref<9x10xf32, #tpu.memory_space<vmem>>, vector<1x10xf32>
    %c4_562 = arith.constant 4 : index
    %c0_563 = arith.constant 0 : index
    %768 = vector.load %arg10[%c4_562, %c0_563] : memref<9x10xf32, #tpu.memory_space<vmem>>, vector<1x10xf32>
    %c5_564 = arith.constant 5 : index
    %c0_565 = arith.constant 0 : index
    %769 = vector.load %arg10[%c5_564, %c0_565] : memref<9x10xf32, #tpu.memory_space<vmem>>, vector<1x10xf32>
    %c6_566 = arith.constant 6 : index
    %c0_567 = arith.constant 0 : index
    %770 = vector.load %arg10[%c6_566, %c0_567] : memref<9x10xf32, #tpu.memory_space<vmem>>, vector<1x10xf32>
    %c7_568 = arith.constant 7 : index
    %c0_569 = arith.constant 0 : index
    %771 = vector.load %arg10[%c7_568, %c0_569] : memref<9x10xf32, #tpu.memory_space<vmem>>, vector<1x10xf32>
    %c8_570 = arith.constant 8 : index
    %c0_571 = arith.constant 0 : index
    %772 = vector.load %arg10[%c8_570, %c0_571] : memref<9x10xf32, #tpu.memory_space<vmem>>, vector<1x10xf32>
    %c0_572 = arith.constant 0 : index
    %c0_573 = arith.constant 0 : index
    %773 = vector.load %arg11[%c0_572, %c0_573] : memref<1x10xf32, #tpu.memory_space<vmem>>, vector<1x10xf32>
    %c0_574 = arith.constant 0 : index
    %c0_575 = arith.constant 0 : index
    %774 = vector.load %arg12[%c0_574, %c0_575] : memref<10x10xf32, #tpu.memory_space<vmem>>, vector<10x10xf32>
    %c0_576 = arith.constant 0 : index
    %c0_577 = arith.constant 0 : index
    %775 = vector.load %arg13[%c0_576, %c0_577] : memref<1x10xf32, #tpu.memory_space<vmem>>, vector<1x10xf32>
    %cst_578 = arith.constant 0.000000e+00 : f32
    %776 = vector.broadcast %cst_578 : f32 to vector<4x10xf32>
    %c0_579 = arith.constant 0 : index
    %c0_580 = arith.constant 0 : index
    %c0_581 = arith.constant 0 : index
    %777 = vector.load %arg32[%c0_579, %c0_580, %c0_581] : memref<6x6x10xf32, #tpu.memory_space<vmem>>, vector<1x4x10xf32>
    %778 = vector.shape_cast %777 : vector<1x4x10xf32> to vector<4x10xf32>
    %779 = vector.broadcast %764 : vector<1x10xf32> to vector<4x10xf32>
    %780 = arith.mulf %778, %779 : vector<4x10xf32>
    %781 = arith.addf %776, %780 : vector<4x10xf32>
    %c0_582 = arith.constant 0 : index
    %c0_583 = arith.constant 0 : index
    %c0_584 = arith.constant 0 : index
    %782 = vector.load %arg33[%c0_582, %c0_583, %c0_584] : memref<6x6x10xf32, #tpu.memory_space<vmem>>, vector<1x4x10xf32>
    %783 = vector.shape_cast %782 : vector<1x4x10xf32> to vector<4x10xf32>
    %784 = vector.broadcast %765 : vector<1x10xf32> to vector<4x10xf32>
    %785 = arith.mulf %783, %784 : vector<4x10xf32>
    %786 = arith.addf %781, %785 : vector<4x10xf32>
    %c0_585 = arith.constant 0 : index
    %c2_586 = arith.constant 2 : index
    %c0_587 = arith.constant 0 : index
    %787 = vector.load %arg32[%c0_585, %c2_586, %c0_587] : memref<6x6x10xf32, #tpu.memory_space<vmem>>, vector<1x4x10xf32>
    %788 = vector.shape_cast %787 : vector<1x4x10xf32> to vector<4x10xf32>
    %789 = vector.broadcast %766 : vector<1x10xf32> to vector<4x10xf32>
    %790 = arith.mulf %788, %789 : vector<4x10xf32>
    %791 = arith.addf %786, %790 : vector<4x10xf32>
    %c1_588 = arith.constant 1 : index
    %c0_589 = arith.constant 0 : index
    %c0_590 = arith.constant 0 : index
    %792 = vector.load %arg32[%c1_588, %c0_589, %c0_590] : memref<6x6x10xf32, #tpu.memory_space<vmem>>, vector<1x4x10xf32>
    %793 = vector.shape_cast %792 : vector<1x4x10xf32> to vector<4x10xf32>
    %794 = vector.broadcast %767 : vector<1x10xf32> to vector<4x10xf32>
    %795 = arith.mulf %793, %794 : vector<4x10xf32>
    %796 = arith.addf %791, %795 : vector<4x10xf32>
    %c1_591 = arith.constant 1 : index
    %c0_592 = arith.constant 0 : index
    %c0_593 = arith.constant 0 : index
    %797 = vector.load %arg33[%c1_591, %c0_592, %c0_593] : memref<6x6x10xf32, #tpu.memory_space<vmem>>, vector<1x4x10xf32>
    %798 = vector.shape_cast %797 : vector<1x4x10xf32> to vector<4x10xf32>
    %799 = vector.broadcast %768 : vector<1x10xf32> to vector<4x10xf32>
    %800 = arith.mulf %798, %799 : vector<4x10xf32>
    %801 = arith.addf %796, %800 : vector<4x10xf32>
    %c1_594 = arith.constant 1 : index
    %c2_595 = arith.constant 2 : index
    %c0_596 = arith.constant 0 : index
    %802 = vector.load %arg32[%c1_594, %c2_595, %c0_596] : memref<6x6x10xf32, #tpu.memory_space<vmem>>, vector<1x4x10xf32>
    %803 = vector.shape_cast %802 : vector<1x4x10xf32> to vector<4x10xf32>
    %804 = vector.broadcast %769 : vector<1x10xf32> to vector<4x10xf32>
    %805 = arith.mulf %803, %804 : vector<4x10xf32>
    %806 = arith.addf %801, %805 : vector<4x10xf32>
    %c2_597 = arith.constant 2 : index
    %c0_598 = arith.constant 0 : index
    %c0_599 = arith.constant 0 : index
    %807 = vector.load %arg32[%c2_597, %c0_598, %c0_599] : memref<6x6x10xf32, #tpu.memory_space<vmem>>, vector<1x4x10xf32>
    %808 = vector.shape_cast %807 : vector<1x4x10xf32> to vector<4x10xf32>
    %809 = vector.broadcast %770 : vector<1x10xf32> to vector<4x10xf32>
    %810 = arith.mulf %808, %809 : vector<4x10xf32>
    %811 = arith.addf %806, %810 : vector<4x10xf32>
    %c2_600 = arith.constant 2 : index
    %c0_601 = arith.constant 0 : index
    %c0_602 = arith.constant 0 : index
    %812 = vector.load %arg33[%c2_600, %c0_601, %c0_602] : memref<6x6x10xf32, #tpu.memory_space<vmem>>, vector<1x4x10xf32>
    %813 = vector.shape_cast %812 : vector<1x4x10xf32> to vector<4x10xf32>
    %814 = vector.broadcast %771 : vector<1x10xf32> to vector<4x10xf32>
    %815 = arith.mulf %813, %814 : vector<4x10xf32>
    %816 = arith.addf %811, %815 : vector<4x10xf32>
    %c2_603 = arith.constant 2 : index
    %c2_604 = arith.constant 2 : index
    %c0_605 = arith.constant 0 : index
    %817 = vector.load %arg32[%c2_603, %c2_604, %c0_605] : memref<6x6x10xf32, #tpu.memory_space<vmem>>, vector<1x4x10xf32>
    %818 = vector.shape_cast %817 : vector<1x4x10xf32> to vector<4x10xf32>
    %819 = vector.broadcast %772 : vector<1x10xf32> to vector<4x10xf32>
    %820 = arith.mulf %818, %819 : vector<4x10xf32>
    %821 = arith.addf %816, %820 : vector<4x10xf32>
    %822 = vector.broadcast %773 : vector<1x10xf32> to vector<4x10xf32>
    %823 = arith.addf %821, %822 : vector<4x10xf32>
    %cst_606 = arith.constant 0.000000e+00 : f32
    %824 = vector.broadcast %cst_606 : f32 to vector<4x10xf32>
    %825 = arith.maximumf %823, %824 : vector<4x10xf32>
    %cst_607 = arith.constant dense<0.000000e+00> : vector<4x10xf32>
    %826 = tpu.matmul %825, %774, %cst_607 {dimension_numbers = #tpu.dot_dimension_numbers<[1], [0], [0], [1], [0, 0, 1, 1], [], []>, precision = #tpu.contract_precision<fp32>} : vector<4x10xf32>, vector<10x10xf32>, vector<4x10xf32> -> vector<4x10xf32>
    %827 = vector.broadcast %775 : vector<1x10xf32> to vector<4x10xf32>
    %828 = arith.addf %826, %827 : vector<4x10xf32>
    %cst_608 = arith.constant 0.000000e+00 : f32
    %829 = vector.broadcast %cst_608 : f32 to vector<4x10xf32>
    %830 = arith.maximumf %828, %829 : vector<4x10xf32>
    %cst_609 = arith.constant 0.000000e+00 : f32
    %831 = vector.broadcast %cst_609 : f32 to vector<4x10xf32>
    %c2_610 = arith.constant 2 : index
    %c0_611 = arith.constant 0 : index
    %c0_612 = arith.constant 0 : index
    %832 = vector.load %arg32[%c2_610, %c0_611, %c0_612] : memref<6x6x10xf32, #tpu.memory_space<vmem>>, vector<1x4x10xf32>
    %833 = vector.shape_cast %832 : vector<1x4x10xf32> to vector<4x10xf32>
    %834 = vector.broadcast %764 : vector<1x10xf32> to vector<4x10xf32>
    %835 = arith.mulf %833, %834 : vector<4x10xf32>
    %836 = arith.addf %831, %835 : vector<4x10xf32>
    %c2_613 = arith.constant 2 : index
    %c0_614 = arith.constant 0 : index
    %c0_615 = arith.constant 0 : index
    %837 = vector.load %arg33[%c2_613, %c0_614, %c0_615] : memref<6x6x10xf32, #tpu.memory_space<vmem>>, vector<1x4x10xf32>
    %838 = vector.shape_cast %837 : vector<1x4x10xf32> to vector<4x10xf32>
    %839 = vector.broadcast %765 : vector<1x10xf32> to vector<4x10xf32>
    %840 = arith.mulf %838, %839 : vector<4x10xf32>
    %841 = arith.addf %836, %840 : vector<4x10xf32>
    %c2_616 = arith.constant 2 : index
    %c2_617 = arith.constant 2 : index
    %c0_618 = arith.constant 0 : index
    %842 = vector.load %arg32[%c2_616, %c2_617, %c0_618] : memref<6x6x10xf32, #tpu.memory_space<vmem>>, vector<1x4x10xf32>
    %843 = vector.shape_cast %842 : vector<1x4x10xf32> to vector<4x10xf32>
    %844 = vector.broadcast %766 : vector<1x10xf32> to vector<4x10xf32>
    %845 = arith.mulf %843, %844 : vector<4x10xf32>
    %846 = arith.addf %841, %845 : vector<4x10xf32>
    %c3_619 = arith.constant 3 : index
    %c0_620 = arith.constant 0 : index
    %c0_621 = arith.constant 0 : index
    %847 = vector.load %arg32[%c3_619, %c0_620, %c0_621] : memref<6x6x10xf32, #tpu.memory_space<vmem>>, vector<1x4x10xf32>
    %848 = vector.shape_cast %847 : vector<1x4x10xf32> to vector<4x10xf32>
    %849 = vector.broadcast %767 : vector<1x10xf32> to vector<4x10xf32>
    %850 = arith.mulf %848, %849 : vector<4x10xf32>
    %851 = arith.addf %846, %850 : vector<4x10xf32>
    %c3_622 = arith.constant 3 : index
    %c0_623 = arith.constant 0 : index
    %c0_624 = arith.constant 0 : index
    %852 = vector.load %arg33[%c3_622, %c0_623, %c0_624] : memref<6x6x10xf32, #tpu.memory_space<vmem>>, vector<1x4x10xf32>
    %853 = vector.shape_cast %852 : vector<1x4x10xf32> to vector<4x10xf32>
    %854 = vector.broadcast %768 : vector<1x10xf32> to vector<4x10xf32>
    %855 = arith.mulf %853, %854 : vector<4x10xf32>
    %856 = arith.addf %851, %855 : vector<4x10xf32>
    %c3_625 = arith.constant 3 : index
    %c2_626 = arith.constant 2 : index
    %c0_627 = arith.constant 0 : index
    %857 = vector.load %arg32[%c3_625, %c2_626, %c0_627] : memref<6x6x10xf32, #tpu.memory_space<vmem>>, vector<1x4x10xf32>
    %858 = vector.shape_cast %857 : vector<1x4x10xf32> to vector<4x10xf32>
    %859 = vector.broadcast %769 : vector<1x10xf32> to vector<4x10xf32>
    %860 = arith.mulf %858, %859 : vector<4x10xf32>
    %861 = arith.addf %856, %860 : vector<4x10xf32>
    %c4_628 = arith.constant 4 : index
    %c0_629 = arith.constant 0 : index
    %c0_630 = arith.constant 0 : index
    %862 = vector.load %arg32[%c4_628, %c0_629, %c0_630] : memref<6x6x10xf32, #tpu.memory_space<vmem>>, vector<1x4x10xf32>
    %863 = vector.shape_cast %862 : vector<1x4x10xf32> to vector<4x10xf32>
    %864 = vector.broadcast %770 : vector<1x10xf32> to vector<4x10xf32>
    %865 = arith.mulf %863, %864 : vector<4x10xf32>
    %866 = arith.addf %861, %865 : vector<4x10xf32>
    %c4_631 = arith.constant 4 : index
    %c0_632 = arith.constant 0 : index
    %c0_633 = arith.constant 0 : index
    %867 = vector.load %arg33[%c4_631, %c0_632, %c0_633] : memref<6x6x10xf32, #tpu.memory_space<vmem>>, vector<1x4x10xf32>
    %868 = vector.shape_cast %867 : vector<1x4x10xf32> to vector<4x10xf32>
    %869 = vector.broadcast %771 : vector<1x10xf32> to vector<4x10xf32>
    %870 = arith.mulf %868, %869 : vector<4x10xf32>
    %871 = arith.addf %866, %870 : vector<4x10xf32>
    %c4_634 = arith.constant 4 : index
    %c2_635 = arith.constant 2 : index
    %c0_636 = arith.constant 0 : index
    %872 = vector.load %arg32[%c4_634, %c2_635, %c0_636] : memref<6x6x10xf32, #tpu.memory_space<vmem>>, vector<1x4x10xf32>
    %873 = vector.shape_cast %872 : vector<1x4x10xf32> to vector<4x10xf32>
    %874 = vector.broadcast %772 : vector<1x10xf32> to vector<4x10xf32>
    %875 = arith.mulf %873, %874 : vector<4x10xf32>
    %876 = arith.addf %871, %875 : vector<4x10xf32>
    %877 = vector.broadcast %773 : vector<1x10xf32> to vector<4x10xf32>
    %878 = arith.addf %876, %877 : vector<4x10xf32>
    %cst_637 = arith.constant 0.000000e+00 : f32
    %879 = vector.broadcast %cst_637 : f32 to vector<4x10xf32>
    %880 = arith.maximumf %878, %879 : vector<4x10xf32>
    %cst_638 = arith.constant dense<0.000000e+00> : vector<4x10xf32>
    %881 = tpu.matmul %880, %774, %cst_638 {dimension_numbers = #tpu.dot_dimension_numbers<[1], [0], [0], [1], [0, 0, 1, 1], [], []>, precision = #tpu.contract_precision<fp32>} : vector<4x10xf32>, vector<10x10xf32>, vector<4x10xf32> -> vector<4x10xf32>
    %882 = vector.broadcast %775 : vector<1x10xf32> to vector<4x10xf32>
    %883 = arith.addf %881, %882 : vector<4x10xf32>
    %cst_639 = arith.constant 0.000000e+00 : f32
    %884 = vector.broadcast %cst_639 : f32 to vector<4x10xf32>
    %885 = arith.maximumf %883, %884 : vector<4x10xf32>
    %c0_640 = arith.constant 0 : index
    %c0_641 = arith.constant 0 : index
    %c0_642 = arith.constant 0 : index
    %886 = vector.load %arg38[%c0_640, %c0_641, %c0_642] : memref<2x4x10xf32, #tpu.memory_space<vmem>>, vector<1x4x10xf32>
    %887 = vector.shape_cast %886 : vector<1x4x10xf32> to vector<4x10xf32>
    %888 = vector.shape_cast %830 : vector<4x10xf32> to vector<1x4x10xf32>
    tpu.vector_store %arg38[%c0_640, %c0_641, %c0_642], %888 {strides = array<i32>} : memref<2x4x10xf32, #tpu.memory_space<vmem>>, vector<1x4x10xf32>,
    %c1_643 = arith.constant 1 : index
    %c0_644 = arith.constant 0 : index
    %c0_645 = arith.constant 0 : index
    %889 = vector.load %arg38[%c1_643, %c0_644, %c0_645] : memref<2x4x10xf32, #tpu.memory_space<vmem>>, vector<1x4x10xf32>
    %890 = vector.shape_cast %889 : vector<1x4x10xf32> to vector<4x10xf32>
    %891 = vector.shape_cast %885 : vector<4x10xf32> to vector<1x4x10xf32>
    tpu.vector_store %arg38[%c1_643, %c0_644, %c0_645], %891 {strides = array<i32>} : memref<2x4x10xf32, #tpu.memory_space<vmem>>, vector<1x4x10xf32>,
    %c0_646 = arith.constant 0 : index
    %c0_647 = arith.constant 0 : index
    %c0_648 = arith.constant 0 : index
    %892 = vector.load %arg38[%c0_646, %c0_647, %c0_648] : memref<2x4x10xf32, #tpu.memory_space<vmem>>, vector<2x2x10xf32>
    %c1_649 = arith.constant 1 : index
    %c0_650 = arith.constant 0 : index
    %c0_651 = arith.constant 0 : index
    %893 = vector.load %arg35[%c1_649, %c0_650, %c0_651] : memref<4x4x10xf32, #tpu.memory_space<vmem>>, vector<2x2x10xf32>
    tpu.vector_store %arg35[%c1_649, %c0_650, %c0_651], %892 {strides = array<i32>} : memref<4x4x10xf32, #tpu.memory_space<vmem>>, vector<2x2x10xf32>,
    %c0_652 = arith.constant 0 : index
    %c2_653 = arith.constant 2 : index
    %c0_654 = arith.constant 0 : index
    %894 = vector.load %arg38[%c0_652, %c2_653, %c0_654] : memref<2x4x10xf32, #tpu.memory_space<vmem>>, vector<2x2x10xf32>
    %c1_655 = arith.constant 1 : index
    %c2_656 = arith.constant 2 : index
    %c0_657 = arith.constant 0 : index
    %895 = vector.load %arg34[%c1_655, %c2_656, %c0_657] : memref<4x4x10xf32, #tpu.memory_space<vmem>>, vector<2x2x10xf32>
    tpu.vector_store %arg34[%c1_655, %c2_656, %c0_657], %894 {strides = array<i32>} : memref<4x4x10xf32, #tpu.memory_space<vmem>>, vector<2x2x10xf32>,
    %c0_658 = arith.constant 0 : index
    %c0_659 = arith.constant 0 : index
    %896 = vector.load %arg14[%c0_658, %c0_659] : memref<9x10xf32, #tpu.memory_space<vmem>>, vector<1x10xf32>
    %c1_660 = arith.constant 1 : index
    %c0_661 = arith.constant 0 : index
    %897 = vector.load %arg14[%c1_660, %c0_661] : memref<9x10xf32, #tpu.memory_space<vmem>>, vector<1x10xf32>
    %c2_662 = arith.constant 2 : index
    %c0_663 = arith.constant 0 : index
    %898 = vector.load %arg14[%c2_662, %c0_663] : memref<9x10xf32, #tpu.memory_space<vmem>>, vector<1x10xf32>
    %c3_664 = arith.constant 3 : index
    %c0_665 = arith.constant 0 : index
    %899 = vector.load %arg14[%c3_664, %c0_665] : memref<9x10xf32, #tpu.memory_space<vmem>>, vector<1x10xf32>
    %c4_666 = arith.constant 4 : index
    %c0_667 = arith.constant 0 : index
    %900 = vector.load %arg14[%c4_666, %c0_667] : memref<9x10xf32, #tpu.memory_space<vmem>>, vector<1x10xf32>
    %c5_668 = arith.constant 5 : index
    %c0_669 = arith.constant 0 : index
    %901 = vector.load %arg14[%c5_668, %c0_669] : memref<9x10xf32, #tpu.memory_space<vmem>>, vector<1x10xf32>
    %c6_670 = arith.constant 6 : index
    %c0_671 = arith.constant 0 : index
    %902 = vector.load %arg14[%c6_670, %c0_671] : memref<9x10xf32, #tpu.memory_space<vmem>>, vector<1x10xf32>
    %c7_672 = arith.constant 7 : index
    %c0_673 = arith.constant 0 : index
    %903 = vector.load %arg14[%c7_672, %c0_673] : memref<9x10xf32, #tpu.memory_space<vmem>>, vector<1x10xf32>
    %c8_674 = arith.constant 8 : index
    %c0_675 = arith.constant 0 : index
    %904 = vector.load %arg14[%c8_674, %c0_675] : memref<9x10xf32, #tpu.memory_space<vmem>>, vector<1x10xf32>
    %c0_676 = arith.constant 0 : index
    %c0_677 = arith.constant 0 : index
    %905 = vector.load %arg15[%c0_676, %c0_677] : memref<1x10xf32, #tpu.memory_space<vmem>>, vector<1x10xf32>
    %c0_678 = arith.constant 0 : index
    %c0_679 = arith.constant 0 : index
    %906 = vector.load %arg16[%c0_678, %c0_679] : memref<10x10xf32, #tpu.memory_space<vmem>>, vector<10x10xf32>
    %c0_680 = arith.constant 0 : index
    %c0_681 = arith.constant 0 : index
    %907 = vector.load %arg17[%c0_680, %c0_681] : memref<1x10xf32, #tpu.memory_space<vmem>>, vector<1x10xf32>
    %cst_682 = arith.constant 0.000000e+00 : f32
    %908 = vector.broadcast %cst_682 : f32 to vector<2x10xf32>
    %c0_683 = arith.constant 0 : index
    %c0_684 = arith.constant 0 : index
    %c0_685 = arith.constant 0 : index
    %909 = vector.load %arg34[%c0_683, %c0_684, %c0_685] : memref<4x4x10xf32, #tpu.memory_space<vmem>>, vector<1x2x10xf32>
    %910 = vector.shape_cast %909 : vector<1x2x10xf32> to vector<2x10xf32>
    %911 = vector.broadcast %896 : vector<1x10xf32> to vector<2x10xf32>
    %912 = arith.mulf %910, %911 : vector<2x10xf32>
    %913 = arith.addf %908, %912 : vector<2x10xf32>
    %c0_686 = arith.constant 0 : index
    %c0_687 = arith.constant 0 : index
    %c0_688 = arith.constant 0 : index
    %914 = vector.load %arg35[%c0_686, %c0_687, %c0_688] : memref<4x4x10xf32, #tpu.memory_space<vmem>>, vector<1x2x10xf32>
    %915 = vector.shape_cast %914 : vector<1x2x10xf32> to vector<2x10xf32>
    %916 = vector.broadcast %897 : vector<1x10xf32> to vector<2x10xf32>
    %917 = arith.mulf %915, %916 : vector<2x10xf32>
    %918 = arith.addf %913, %917 : vector<2x10xf32>
    %c0_689 = arith.constant 0 : index
    %c2_690 = arith.constant 2 : index
    %c0_691 = arith.constant 0 : index
    %919 = vector.load %arg34[%c0_689, %c2_690, %c0_691] : memref<4x4x10xf32, #tpu.memory_space<vmem>>, vector<1x2x10xf32>
    %920 = vector.shape_cast %919 : vector<1x2x10xf32> to vector<2x10xf32>
    %921 = vector.broadcast %898 : vector<1x10xf32> to vector<2x10xf32>
    %922 = arith.mulf %920, %921 : vector<2x10xf32>
    %923 = arith.addf %918, %922 : vector<2x10xf32>
    %c1_692 = arith.constant 1 : index
    %c0_693 = arith.constant 0 : index
    %c0_694 = arith.constant 0 : index
    %924 = vector.load %arg34[%c1_692, %c0_693, %c0_694] : memref<4x4x10xf32, #tpu.memory_space<vmem>>, vector<1x2x10xf32>
    %925 = vector.shape_cast %924 : vector<1x2x10xf32> to vector<2x10xf32>
    %926 = vector.broadcast %899 : vector<1x10xf32> to vector<2x10xf32>
    %927 = arith.mulf %925, %926 : vector<2x10xf32>
    %928 = arith.addf %923, %927 : vector<2x10xf32>
    %c1_695 = arith.constant 1 : index
    %c0_696 = arith.constant 0 : index
    %c0_697 = arith.constant 0 : index
    %929 = vector.load %arg35[%c1_695, %c0_696, %c0_697] : memref<4x4x10xf32, #tpu.memory_space<vmem>>, vector<1x2x10xf32>
    %930 = vector.shape_cast %929 : vector<1x2x10xf32> to vector<2x10xf32>
    %931 = vector.broadcast %900 : vector<1x10xf32> to vector<2x10xf32>
    %932 = arith.mulf %930, %931 : vector<2x10xf32>
    %933 = arith.addf %928, %932 : vector<2x10xf32>
    %c1_698 = arith.constant 1 : index
    %c2_699 = arith.constant 2 : index
    %c0_700 = arith.constant 0 : index
    %934 = vector.load %arg34[%c1_698, %c2_699, %c0_700] : memref<4x4x10xf32, #tpu.memory_space<vmem>>, vector<1x2x10xf32>
    %935 = vector.shape_cast %934 : vector<1x2x10xf32> to vector<2x10xf32>
    %936 = vector.broadcast %901 : vector<1x10xf32> to vector<2x10xf32>
    %937 = arith.mulf %935, %936 : vector<2x10xf32>
    %938 = arith.addf %933, %937 : vector<2x10xf32>
    %c2_701 = arith.constant 2 : index
    %c0_702 = arith.constant 0 : index
    %c0_703 = arith.constant 0 : index
    %939 = vector.load %arg34[%c2_701, %c0_702, %c0_703] : memref<4x4x10xf32, #tpu.memory_space<vmem>>, vector<1x2x10xf32>
    %940 = vector.shape_cast %939 : vector<1x2x10xf32> to vector<2x10xf32>
    %941 = vector.broadcast %902 : vector<1x10xf32> to vector<2x10xf32>
    %942 = arith.mulf %940, %941 : vector<2x10xf32>
    %943 = arith.addf %938, %942 : vector<2x10xf32>
    %c2_704 = arith.constant 2 : index
    %c0_705 = arith.constant 0 : index
    %c0_706 = arith.constant 0 : index
    %944 = vector.load %arg35[%c2_704, %c0_705, %c0_706] : memref<4x4x10xf32, #tpu.memory_space<vmem>>, vector<1x2x10xf32>
    %945 = vector.shape_cast %944 : vector<1x2x10xf32> to vector<2x10xf32>
    %946 = vector.broadcast %903 : vector<1x10xf32> to vector<2x10xf32>
    %947 = arith.mulf %945, %946 : vector<2x10xf32>
    %948 = arith.addf %943, %947 : vector<2x10xf32>
    %c2_707 = arith.constant 2 : index
    %c2_708 = arith.constant 2 : index
    %c0_709 = arith.constant 0 : index
    %949 = vector.load %arg34[%c2_707, %c2_708, %c0_709] : memref<4x4x10xf32, #tpu.memory_space<vmem>>, vector<1x2x10xf32>
    %950 = vector.shape_cast %949 : vector<1x2x10xf32> to vector<2x10xf32>
    %951 = vector.broadcast %904 : vector<1x10xf32> to vector<2x10xf32>
    %952 = arith.mulf %950, %951 : vector<2x10xf32>
    %953 = arith.addf %948, %952 : vector<2x10xf32>
    %954 = vector.broadcast %905 : vector<1x10xf32> to vector<2x10xf32>
    %955 = arith.addf %953, %954 : vector<2x10xf32>
    %cst_710 = arith.constant 0.000000e+00 : f32
    %956 = vector.broadcast %cst_710 : f32 to vector<2x10xf32>
    %957 = arith.maximumf %955, %956 : vector<2x10xf32>
    %cst_711 = arith.constant dense<0.000000e+00> : vector<2x10xf32>
    %958 = tpu.matmul %957, %906, %cst_711 {dimension_numbers = #tpu.dot_dimension_numbers<[1], [0], [0], [1], [0, 0, 1, 1], [], []>, precision = #tpu.contract_precision<fp32>} : vector<2x10xf32>, vector<10x10xf32>, vector<2x10xf32> -> vector<2x10xf32>
    %959 = vector.broadcast %907 : vector<1x10xf32> to vector<2x10xf32>
    %960 = arith.addf %958, %959 : vector<2x10xf32>
    %cst_712 = arith.constant 0.000000e+00 : f32
    %961 = vector.broadcast %cst_712 : f32 to vector<2x10xf32>
    %962 = arith.maximumf %960, %961 : vector<2x10xf32>
    %cst_713 = arith.constant 0.000000e+00 : f32
    %963 = vector.broadcast %cst_713 : f32 to vector<2x10xf32>
    %964 = arith.addf %963, %962 : vector<2x10xf32>
    %cst_714 = arith.constant 1.000000e+00 : f32
    %965 = vector.broadcast %cst_714 : f32 to vector<2x10xf32>
    %966 = arith.mulf %964, %965 : vector<2x10xf32>
    %c0_715 = arith.constant 0 : index
    %c0_716 = arith.constant 0 : index
    %967 = vector.load %arg18[%c0_715, %c0_716] : memref<10x10xf32, #tpu.memory_space<vmem>>, vector<10x10xf32>
    %cst_717 = arith.constant dense<0.000000e+00> : vector<2x10xf32>
    %968 = tpu.matmul %966, %967, %cst_717 {dimension_numbers = #tpu.dot_dimension_numbers<[1], [0], [0], [1], [0, 0, 1, 1], [], []>, precision = #tpu.contract_precision<fp32>} : vector<2x10xf32>, vector<10x10xf32>, vector<2x10xf32> -> vector<2x10xf32>
    %c0_718 = arith.constant 0 : index
    %c0_719 = arith.constant 0 : index
    %969 = vector.load %arg19[%c0_718, %c0_719] : memref<1x10xf32, #tpu.memory_space<vmem>>, vector<1x10xf32>
    %970 = vector.broadcast %969 : vector<1x10xf32> to vector<2x10xf32>
    %971 = arith.addf %968, %970 : vector<2x10xf32>
    %cst_720 = arith.constant 0.000000e+00 : f32
    %972 = vector.broadcast %cst_720 : f32 to vector<2x10xf32>
    %973 = arith.maximumf %971, %972 : vector<2x10xf32>
    %c0_721 = arith.constant 0 : index
    %c0_722 = arith.constant 0 : index
    %c0_723 = arith.constant 0 : index
    %974 = vector.load %arg20[%c0_721, %c0_722, %c0_723] : memref<4x10x19xf32, #tpu.memory_space<vmem>>, vector<1x10x19xf32>
    %975 = vector.shape_cast %974 : vector<1x10x19xf32> to vector<10x19xf32>
    %cst_724 = arith.constant dense<0.000000e+00> : vector<2x19xf32>
    %976 = tpu.matmul %973, %975, %cst_724 {dimension_numbers = #tpu.dot_dimension_numbers<[1], [0], [0], [1], [0, 0, 1, 1], [], []>, precision = #tpu.contract_precision<fp32>} : vector<2x10xf32>, vector<10x19xf32>, vector<2x19xf32> -> vector<2x19xf32>
    %c0_725 = arith.constant 0 : index
    %c0_726 = arith.constant 0 : index
    %c0_727 = arith.constant 0 : index
    %977 = vector.load %arg21[%c0_725, %c0_726, %c0_727] : memref<4x1x19xf32, #tpu.memory_space<vmem>>, vector<1x1x19xf32>
    %978 = vector.shape_cast %977 : vector<1x1x19xf32> to vector<1x19xf32>
    %979 = vector.broadcast %978 : vector<1x19xf32> to vector<2x19xf32>
    %980 = arith.addf %976, %979 : vector<2x19xf32>
    %cst_728 = arith.constant 1.000000e+00 : f32
    %981 = vector.broadcast %cst_728 : f32 to vector<2x19xf32>
    %982 = arith.addf %980, %981 : vector<2x19xf32>
    %cst_729 = arith.constant 0.000000e+00 : f32
    %983 = vector.broadcast %cst_729 : f32 to vector<2x19xf32>
    %984 = arith.maximumf %982, %983 : vector<2x19xf32>
    %c1_730 = arith.constant 1 : index
    %c0_731 = arith.constant 0 : index
    %c0_732 = arith.constant 0 : index
    %985 = vector.load %arg20[%c1_730, %c0_731, %c0_732] : memref<4x10x19xf32, #tpu.memory_space<vmem>>, vector<1x10x19xf32>
    %986 = vector.shape_cast %985 : vector<1x10x19xf32> to vector<10x19xf32>
    %cst_733 = arith.constant dense<0.000000e+00> : vector<2x19xf32>
    %987 = tpu.matmul %973, %986, %cst_733 {dimension_numbers = #tpu.dot_dimension_numbers<[1], [0], [0], [1], [0, 0, 1, 1], [], []>, precision = #tpu.contract_precision<fp32>} : vector<2x10xf32>, vector<10x19xf32>, vector<2x19xf32> -> vector<2x19xf32>
    %c1_734 = arith.constant 1 : index
    %c0_735 = arith.constant 0 : index
    %c0_736 = arith.constant 0 : index
    %988 = vector.load %arg21[%c1_734, %c0_735, %c0_736] : memref<4x1x19xf32, #tpu.memory_space<vmem>>, vector<1x1x19xf32>
    %989 = vector.shape_cast %988 : vector<1x1x19xf32> to vector<1x19xf32>
    %990 = vector.broadcast %989 : vector<1x19xf32> to vector<2x19xf32>
    %991 = arith.addf %987, %990 : vector<2x19xf32>
    %cst_737 = arith.constant 1.000000e+00 : f32
    %992 = vector.broadcast %cst_737 : f32 to vector<2x19xf32>
    %993 = arith.addf %991, %992 : vector<2x19xf32>
    %cst_738 = arith.constant 0.000000e+00 : f32
    %994 = vector.broadcast %cst_738 : f32 to vector<2x19xf32>
    %995 = arith.maximumf %993, %994 : vector<2x19xf32>
    %c2_739 = arith.constant 2 : index
    %c0_740 = arith.constant 0 : index
    %c0_741 = arith.constant 0 : index
    %996 = vector.load %arg20[%c2_739, %c0_740, %c0_741] : memref<4x10x19xf32, #tpu.memory_space<vmem>>, vector<1x10x19xf32>
    %997 = vector.shape_cast %996 : vector<1x10x19xf32> to vector<10x19xf32>
    %cst_742 = arith.constant dense<0.000000e+00> : vector<2x19xf32>
    %998 = tpu.matmul %973, %997, %cst_742 {dimension_numbers = #tpu.dot_dimension_numbers<[1], [0], [0], [1], [0, 0, 1, 1], [], []>, precision = #tpu.contract_precision<fp32>} : vector<2x10xf32>, vector<10x19xf32>, vector<2x19xf32> -> vector<2x19xf32>
    %c2_743 = arith.constant 2 : index
    %c0_744 = arith.constant 0 : index
    %c0_745 = arith.constant 0 : index
    %999 = vector.load %arg21[%c2_743, %c0_744, %c0_745] : memref<4x1x19xf32, #tpu.memory_space<vmem>>, vector<1x1x19xf32>
    %1000 = vector.shape_cast %999 : vector<1x1x19xf32> to vector<1x19xf32>
    %1001 = vector.broadcast %1000 : vector<1x19xf32> to vector<2x19xf32>
    %1002 = arith.addf %998, %1001 : vector<2x19xf32>
    %cst_746 = arith.constant 0.000000e+00 : f32
    %1003 = vector.broadcast %cst_746 : f32 to vector<2x19xf32>
    %1004 = arith.maximumf %1002, %1003 : vector<2x19xf32>
    %1005 = math.absf %1002 : vector<2x19xf32>
    %cst_747 = arith.constant 0.000000e+00 : f32
    %1006 = vector.broadcast %cst_747 : f32 to vector<2x19xf32>
    %1007 = arith.subf %1006, %1005 : vector<2x19xf32>
    %1008 = math.exp %1007 : vector<2x19xf32>
    %cst_748 = arith.constant 1.000000e+00 : f32
    %1009 = vector.broadcast %cst_748 : f32 to vector<2x19xf32>
    %1010 = arith.addf %1009, %1008 : vector<2x19xf32>
    %1011 = math.log %1010 : vector<2x19xf32>
    %1012 = arith.addf %1004, %1011 : vector<2x19xf32>
    %c3_749 = arith.constant 3 : index
    %c0_750 = arith.constant 0 : index
    %c0_751 = arith.constant 0 : index
    %1013 = vector.load %arg20[%c3_749, %c0_750, %c0_751] : memref<4x10x19xf32, #tpu.memory_space<vmem>>, vector<1x10x19xf32>
    %1014 = vector.shape_cast %1013 : vector<1x10x19xf32> to vector<10x19xf32>
    %cst_752 = arith.constant dense<0.000000e+00> : vector<2x19xf32>
    %1015 = tpu.matmul %973, %1014, %cst_752 {dimension_numbers = #tpu.dot_dimension_numbers<[1], [0], [0], [1], [0, 0, 1, 1], [], []>, precision = #tpu.contract_precision<fp32>} : vector<2x10xf32>, vector<10x19xf32>, vector<2x19xf32> -> vector<2x19xf32>
    %c3_753 = arith.constant 3 : index
    %c0_754 = arith.constant 0 : index
    %c0_755 = arith.constant 0 : index
    %1016 = vector.load %arg21[%c3_753, %c0_754, %c0_755] : memref<4x1x19xf32, #tpu.memory_space<vmem>>, vector<1x1x19xf32>
    %1017 = vector.shape_cast %1016 : vector<1x1x19xf32> to vector<1x19xf32>
    %1018 = vector.broadcast %1017 : vector<1x19xf32> to vector<2x19xf32>
    %1019 = arith.addf %1015, %1018 : vector<2x19xf32>
    %cst_756 = arith.constant 0.000000e+00 : f32
    %1020 = vector.broadcast %cst_756 : f32 to vector<2x19xf32>
    %1021 = arith.maximumf %1019, %1020 : vector<2x19xf32>
    %1022 = math.absf %1019 : vector<2x19xf32>
    %cst_757 = arith.constant 0.000000e+00 : f32
    %1023 = vector.broadcast %cst_757 : f32 to vector<2x19xf32>
    %1024 = arith.subf %1023, %1022 : vector<2x19xf32>
    %1025 = math.exp %1024 : vector<2x19xf32>
    %cst_758 = arith.constant 1.000000e+00 : f32
    %1026 = vector.broadcast %cst_758 : f32 to vector<2x19xf32>
    %1027 = arith.addf %1026, %1025 : vector<2x19xf32>
    %1028 = math.log %1027 : vector<2x19xf32>
    %1029 = arith.addf %1021, %1028 : vector<2x19xf32>
    %c0_759 = arith.constant 0 : index
    %c0_760 = arith.constant 0 : index
    %1030 = vector.load %arg22[%c0_759, %c0_760] : memref<2x19xf32, #tpu.memory_space<vmem>>, vector<2x19xf32>
    %1031 = math.sqrt %1012 : vector<2x19xf32>
    %1032 = arith.mulf %1031, %1030 : vector<2x19xf32>
    %1033 = arith.addf %984, %1032 : vector<2x19xf32>
    %1034 = arith.subf %1033, %984 : vector<2x19xf32>
    %1035 = arith.mulf %1034, %1034 : vector<2x19xf32>
    %cst_761 = arith.constant 0.000000e+00 : f32
    %1036 = vector.broadcast %cst_761 : f32 to vector<2x19xf32>
    %1037 = arith.subf %1036, %1035 : vector<2x19xf32>
    %cst_762 = arith.constant 2.000000e+00 : f32
    %1038 = vector.broadcast %cst_762 : f32 to vector<2x19xf32>
    %1039 = arith.mulf %1038, %1012 : vector<2x19xf32>
    %1040 = arith.divf %1037, %1039 : vector<2x19xf32>
    %1041 = math.exp %1040 : vector<2x19xf32>
    %cst_763 = arith.constant 2.000000e+00 : f32
    %1042 = vector.broadcast %cst_763 : f32 to vector<2x19xf32>
    %1043 = arith.mulf %1042, %1012 : vector<2x19xf32>
    %cst_764 = arith.constant 3.14159274 : f32
    %1044 = vector.broadcast %cst_764 : f32 to vector<2x19xf32>
    %1045 = arith.mulf %1043, %1044 : vector<2x19xf32>
    %1046 = math.sqrt %1045 : vector<2x19xf32>
    %1047 = arith.divf %1041, %1046 : vector<2x19xf32>
    %1048 = math.log %1047 : vector<2x19xf32>
    %c0_765 = arith.constant 0 : index
    %c0_766 = arith.constant 0 : index
    %1049 = vector.load %arg26[%c0_765, %c0_766] : memref<2x19xf32, #tpu.memory_space<vmem>>, vector<2x19xf32>
    tpu.vector_store %arg26[%c0_765, %c0_766], %1048 {strides = array<i32>} : memref<2x19xf32, #tpu.memory_space<vmem>>, vector<2x19xf32>,
    %cst_767 = arith.constant 0.000000e+00 : f32
    %cst_768 = arith.constant 7.000000e+00 : f32
    %1050 = vector.broadcast %cst_767 : f32 to vector<2x19xf32>
    %1051 = arith.maximumf %1050, %1033 : vector<2x19xf32>
    %1052 = vector.broadcast %cst_768 : f32 to vector<2x19xf32>
    %1053 = arith.minimumf %1052, %1051 : vector<2x19xf32>
    %1054 = arith.fptosi %1053 : vector<2x19xf32> to vector<2x19xi32>
    %c2_i32 = arith.constant 2 : i32
    %1055 = vector.broadcast %c2_i32 : i32 to vector<2x19xi32>
    %1056 = arith.addi %1054, %1055 : vector<2x19xi32>
    %c0_769 = arith.constant 0 : index
    %c0_770 = arith.constant 0 : index
    %1057 = vector.load %arg24[%c0_769, %c0_770] : memref<2x19xi32, #tpu.memory_space<vmem>>, vector<2x19xi32>
    tpu.vector_store %arg24[%c0_769, %c0_770], %1056 {strides = array<i32>} : memref<2x19xi32, #tpu.memory_space<vmem>>, vector<2x19xi32>,
    %c0_771 = arith.constant 0 : index
    %c0_772 = arith.constant 0 : index
    %1058 = vector.load %arg23[%c0_771, %c0_772] : memref<2x19xf32, #tpu.memory_space<vmem>>, vector<2x19xf32>
    %1059 = math.sqrt %1029 : vector<2x19xf32>
    %1060 = arith.mulf %1059, %1058 : vector<2x19xf32>
    %1061 = arith.addf %995, %1060 : vector<2x19xf32>
    %1062 = arith.subf %1061, %995 : vector<2x19xf32>
    %1063 = arith.mulf %1062, %1062 : vector<2x19xf32>
    %cst_773 = arith.constant 0.000000e+00 : f32
    %1064 = vector.broadcast %cst_773 : f32 to vector<2x19xf32>
    %1065 = arith.subf %1064, %1063 : vector<2x19xf32>
    %cst_774 = arith.constant 2.000000e+00 : f32
    %1066 = vector.broadcast %cst_774 : f32 to vector<2x19xf32>
    %1067 = arith.mulf %1066, %1029 : vector<2x19xf32>
    %1068 = arith.divf %1065, %1067 : vector<2x19xf32>
    %1069 = math.exp %1068 : vector<2x19xf32>
    %cst_775 = arith.constant 2.000000e+00 : f32
    %1070 = vector.broadcast %cst_775 : f32 to vector<2x19xf32>
    %1071 = arith.mulf %1070, %1029 : vector<2x19xf32>
    %cst_776 = arith.constant 3.14159274 : f32
    %1072 = vector.broadcast %cst_776 : f32 to vector<2x19xf32>
    %1073 = arith.mulf %1071, %1072 : vector<2x19xf32>
    %1074 = math.sqrt %1073 : vector<2x19xf32>
    %1075 = arith.divf %1069, %1074 : vector<2x19xf32>
    %1076 = math.log %1075 : vector<2x19xf32>
    %c0_777 = arith.constant 0 : index
    %c0_778 = arith.constant 0 : index
    %1077 = vector.load %arg27[%c0_777, %c0_778] : memref<2x19xf32, #tpu.memory_space<vmem>>, vector<2x19xf32>
    tpu.vector_store %arg27[%c0_777, %c0_778], %1076 {strides = array<i32>} : memref<2x19xf32, #tpu.memory_space<vmem>>, vector<2x19xf32>,
    %cst_779 = arith.constant 0.000000e+00 : f32
    %cst_780 = arith.constant 7.000000e+00 : f32
    %1078 = vector.broadcast %cst_779 : f32 to vector<2x19xf32>
    %1079 = arith.maximumf %1078, %1061 : vector<2x19xf32>
    %1080 = vector.broadcast %cst_780 : f32 to vector<2x19xf32>
    %1081 = arith.minimumf %1080, %1079 : vector<2x19xf32>
    %1082 = arith.fptosi %1081 : vector<2x19xf32> to vector<2x19xi32>
    %c2_i32_781 = arith.constant 2 : i32
    %1083 = vector.broadcast %c2_i32_781 : i32 to vector<2x19xi32>
    %1084 = arith.addi %1082, %1083 : vector<2x19xi32>
    %c0_782 = arith.constant 0 : index
    %c0_783 = arith.constant 0 : index
    %1085 = vector.load %arg25[%c0_782, %c0_783] : memref<2x19xi32, #tpu.memory_space<vmem>>, vector<2x19xi32>
    tpu.vector_store %arg25[%c0_782, %c0_783], %1084 {strides = array<i32>} : memref<2x19xi32, #tpu.memory_space<vmem>>, vector<2x19xi32>,
    return
  }
}

</mosaic_0001>

<bundles_post_ra>
// kernel: policy_forward_pallas.1
= control target key start
LH: loop header
LB: loop body
LE: loop exit
PB: predicated region body
PF: predicated region fallthrough
CT: control target
= control target key end

     0   :  { %s8500_s0 = inlined_call_operand.vmem [shape: f32[16,16,64], index: 0, kind: input, shape index: {}]   ;;  %s8501_s1 = inlined_call_operand.vmem [shape: f32[16,16,64], index: 1, kind: input, shape index: {}]   ;;  %s8502_s2 = inlined_call_operand.vmem [shape: f32[9,64], index: 2, kind: input, shape index: {}]   ;;  %s8503_s3 = inlined_call_operand.vmem [shape: f32[1,64], index: 3, kind: input, shape index: {}]   ;;  %s8504_s4 = inlined_call_operand.vmem [shape: f32[64,10], index: 4, kind: input, shape index: {}]   ;;  %s8505_s5 = inlined_call_operand.vmem [shape: f32[1,10], index: 5, kind: input, shape index: {}]   ;;  %s8506_s6 = inlined_call_operand.vmem [shape: f32[9,10], index: 6, kind: input, shape index: {}]   ;;  %s8507_s7 = inlined_call_operand.vmem [shape: f32[1,10], index: 7, kind: input, shape index: {}]   ;;  %s8508_s8 = inlined_call_operand.vmem [shape: f32[10,10], index: 8, kind: input, shape index: {}]   ;;  %s8509_s9 = inlined_call_operand.vmem [shape: f32[1,10], index: 9, kind: input, shape index: {}]   ;;  %s8510_s10 = inlined_call_operand.vmem [shape: f32[9,10], index: 10, kind: input, shape index: {}]   ;;  %s8511_s11 = inlined_call_operand.vmem [shape: f32[1,10], index: 11, kind: input, shape index: {}]   ;;  %s8512_s12 = inlined_call_operand.vmem [shape: f32[10,10], index: 12, kind: input, shape index: {}]   ;;  %s8513_s13 = inlined_call_operand.vmem [shape: f32[1,10], index: 13, kind: input, shape index: {}]   ;;  %s8514_s14 = inlined_call_operand.vmem [shape: f32[9,10], index: 14, kind: input, shape index: {}]   ;;  %s8515_s15 = inlined_call_operand.vmem [shape: f32[1,10], index: 15, kind: input, shape index: {}]   ;;  %s8516_s16 = inlined_call_operand.vmem [shape: f32[10,10], index: 16, kind: input, shape index: {}]   ;;  %s8517_s17 = inlined_call_operand.vmem [shape: f32[1,10], index: 17, kind: input, shape index: {}]   ;;  %s8518_s18 = inlined_call_operand.vmem [shape: f32[10,10], index: 18, kind: input, shape index: {}]   ;;  %s8519_s19 = inlined_call_operand.vmem [shape: f32[1,10], index: 19, kind: input, shape index: {}]   ;;  %s8520_s20 = inlined_call_operand.vmem [shape: f32[4,10,19], index: 20, kind: input, shape index: {}]   ;;  %s8521_s21 = inlined_call_operand.vmem [shape: f32[4,1,19], index: 21, kind: input, shape index: {}]   ;;  %s8522_s22 = inlined_call_operand.vmem [shape: f32[2,19], index: 22, kind: input, shape index: {}]   ;;  %s8523_s23 = inlined_call_operand.vmem [shape: f32[2,19], index: 23, kind: input, shape index: {}]   ;;  %s8524_s24 = inlined_call_operand.hbm [shape: s32[2,19], index: 24, kind: output, shape index: {0}]   ;;  %s8525_s25 = inlined_call_operand.hbm [shape: s32[2,19], index: 25, kind: output, shape index: {1}]   ;;  %s8526_s26 = inlined_call_operand.hbm [shape: f32[2,19], index: 26, kind: output, shape index: {2}]   ;;  %s8527_s27 = inlined_call_operand.hbm [shape: f32[2,19], index: 27, kind: output, shape index: {3}]  }
   0x1   :  { %8576 = sst [smem:[#allocation39_spill]] %s8500_s0 }
   0x2   :  { %8577 = sst [smem:[#allocation40_spill]] %s8501_s1 }
   0x3   :  { %8578 = sst [smem:[#allocation41_spill]] %s8502_s2 }
   0x4   :  { %8579 = sst [smem:[#allocation42_spill]] %s8503_s3 }
   0x5   :  { %8580 = sst [smem:[#allocation43_spill]] %s8504_s4 }
   0x6   :  { %8581 = sst [smem:[#allocation44_spill]] %s8505_s5 }
   0x7   :  { %8582 = sst [smem:[#allocation45_spill]] %s8506_s6 }
   0x8   :  { %8583 = sst [smem:[#allocation46_spill]] %s8507_s7 }
   0x9   :  { %8584 = sst [smem:[#allocation47_spill]] %s8508_s8 }
   0xa   :  { %8585 = sst [smem:[#allocation48_spill]] %s8509_s9 }
   0xb   :  { %8586 = sst [smem:[#allocation49_spill]] %s8510_s10 }
   0xc   :  { %8587 = sst [smem:[#allocation50_spill]] %s8511_s11 }
   0xd   :  { %33 = vsyncpa [#allocation14], 0 }
   0xe   :  { %34 = vsyncpa [#allocation16], 0  ;;  %s8588_s8 = sld [smem:[#allocation43_spill]]  ;;  %vm84_vm0 = vcmask 523264   ;;  %v8539_v12 = vmov 0.0  }
   0xf   :  { %85 = vst.msk [vmem:[#allocation2] sm:$0xff] %vm84_vm0, %v8539_v12  ;;  %s8597_s9 = sld [smem:[#allocation39_spill]] }
  0x10   :  { %86 = vst.msk [vmem:[#allocation2 + $0x8] sm:$0xff] %vm84_vm0, %v8539_v12  ;;  %s8599_s29 = sld [smem:[#allocation41_spill]] }
  0x11   :  { %89 = vst.msk [vmem:[#allocation2 + $0x18] sm:$0xff] %vm84_vm0, %v8539_v12  ;;  %s8602_s3 = sld [smem:[#allocation40_spill]] }
  0x12   :  { %90 = vst.msk [vmem:[#allocation2 + $0x20] sm:$0xff] %vm84_vm0, %v8539_v12  ;;  %s8604_s11 = sld [smem:[#allocation42_spill]] }
  0x13   :  { %92 = vst.msk [vmem:[#allocation2 + $0x30] sm:$0xff] %vm84_vm0, %v8539_v12 }
  0x14   :  { %v405_v0 = vld [vmem:[%s8588_s8 + $0x38] sm:$0xff]  ;;  %v404_v1 = vld [vmem:[%s8588_s8 + $0x30] sm:$0xff]  ;;  %v403_v2 = vld [vmem:[%s8588_s8 + $0x28] sm:$0xff]  ;;  %93 = vst.msk [vmem:[#allocation2 + $0x38] sm:$0xff] %vm84_vm0, %v8539_v12 }
  0x15   :  { %v6194_v3 = vand.u32 4294901760, %v405_v0  ;;  %v6196_v4 = vand.u32 4294901760, %v404_v1  ;;  %v6198_v5 = vand.u32 4294901760, %v403_v2  ;;  %v402_v6 = vld [vmem:[%s8588_s8 + $0x20] sm:$0xff]  ;;  %v401_v7 = vld [vmem:[%s8588_s8 + $0x18] sm:$0xff]  ;;  %v400_v8 = vld [vmem:[%s8588_s8 + $0x10] sm:$0xff] }
  0x16   :  { %v6209_v9 = vand.u32 4294901760, %v402_v6  ;;  %v6211_v10 = vand.u32 4294901760, %v401_v7  ;;  %v6213_v11 = vand.u32 4294901760, %v400_v8  ;;  %v399_v27 = vld [vmem:[%s8588_s8 + $0x8] sm:$0xff]  ;;  %95 = vst.msk [vmem:[#allocation2 + $0x48] sm:$0xff] %vm84_vm0, %v8539_v12  ;;  %v398_v33 = vld [vmem:[%s8588_s8] sm:$0xff] }
  0x17   :  { %v6218_v13 = vsub.f32 %v405_v0, %v6194_v3  ;;  %497 = vmatpush.msra.mxu0 %v6194_v3  ;;  %v6222_v14 = vsub.f32 %v404_v1, %v6196_v4  ;;  %646 = vmatpush.msra.mxu3 %v6194_v3  ;;  %v6226_v15 = vsub.f32 %v403_v2, %v6198_v5  ;;  %v6291_v32 = vand.u32 4294901760, %v399_v27  ;;  %v258_v37 = vld [vmem:[%s8597_s9] sm:$0xff]  ;;  %v260_v40 = vld [vmem:[%s8597_s9 + $0x10] sm:$0xff] }
  0x18   :  { %v6229_v16 = vsub.f32 %v402_v6, %v6209_v9  ;;  %v6232_v17 = vsub.f32 %v401_v7, %v6211_v10  ;;  %v6235_v18 = vsub.f32 %v400_v8, %v6213_v11  ;;  %96 = vst.msk [vmem:[#allocation2 + $0x50] sm:$0xff] %vm84_vm0, %v8539_v12  ;;  %v6319_v39 = vand.u32 4294901760, %v398_v33  ;;  %v6329_v41 = vld [vmem:[%s8599_s29] ss:$0 sm:$0xff]  ;;  %v6352_v47 = vld [vmem:[%s8599_s29 + $0x1] ss:$0 sm:$0xff] }
  0x19   :  { %604 = vmatpush.msra.mxu2 %v6218_v13  ;;  %499 = vmatpush.msra.mxu0 %v6196_v4  ;;  %v6242_v19 = vand.u32 4294901760, %v6218_v13  ;;  %v6245_v20 = vand.u32 4294901760, %v6222_v14  ;;  %v6248_v21 = vand.u32 4294901760, %v6226_v15  ;;  %140 = vst.msk [vmem:[#allocation3] sm:$0xff] %vm84_vm0, %v8539_v12  ;;  %v262_v42 = vld [vmem:[%s8597_s9 + $0x20] sm:$0xff]  ;;  %v6343_v45 = vsub.f32 %v399_v27, %v6291_v32  ;;  %v325_v49 = vld [vmem:[%s8602_s3 + $0x10] sm:$0xff] }
  0x1a   :  { %8589 = vst [vmem:[#allocation23_spill] sm:$0xff] %v6235_v18  ;;  %648 = vmatpush.msra.mxu3 %v6196_v4  ;;  %v6254_v22 = vand.u32 4294901760, %v6229_v16  ;;  %v6257_v23 = vand.u32 4294901760, %v6232_v17  ;;  %v6276_v28 = vand.u32 4294901760, %v6235_v18  ;;  %v407_v43 = vld [vmem:[#allocation2] sm:$0xff]  ;;  %v6373_v52 = vsub.f32 %v398_v33, %v6319_v39 }
  0x1b   :  { %8590 = vst [vmem:[#allocation24_spill] sm:$0xff] %v6242_v19  ;;  %607 = vmatpush.msra.mxu2 %v6222_v14  ;;  %v540_v24 = vsub.f32 %v6218_v13, %v6242_v19  ;;  %501 = vmatpush.msra.mxu0 %v6198_v5  ;;  %v546_v25 = vsub.f32 %v6222_v14, %v6245_v20  ;;  %v323_v46 = vld [vmem:[%s8602_s3] sm:$0xff] }
  0x1c   :  { %8591 = vst [vmem:[#allocation25_spill] sm:$0xff] %v6245_v20  ;;  %v552_v26 = vsub.f32 %v6226_v15, %v6248_v21  ;;  %650 = vmatpush.msra.mxu3 %v6198_v5  ;;  %v558_v31 = vsub.f32 %v6229_v16, %v6254_v22  ;;  %v564_v35 = vsub.f32 %v6232_v17, %v6257_v23  ;;  %v327_v50 = vld [vmem:[%s8602_s3 + $0x20] sm:$0xff] }
  0x1d   :  { %8592 = vst [vmem:[#allocation26_spill] sm:$0xff] %v6248_v21  ;;  %v6280_v29 = vand.u32 4294901760, %v540_v24  ;;  %610 = vmatpush.msra.mxu2 %v6226_v15  ;;  %v6283_v30 = vand.u32 4294901760, %v546_v25  ;;  %503 = vmatpush.msra.mxu0 %v6209_v9  ;;  %v570_v36 = vsub.f32 %v6235_v18, %v6276_v28  ;;  %v6368_v51 = vld [vmem:[%s8599_s29 + $0x2] ss:$0 sm:$0xff]  ;;  %v410_v53 = vmul.f32 %v6329_v41, %v407_v43 }
  0x1e   :  { %8593 = vst [vmem:[#allocation27_spill] sm:$0xff] %v6254_v22  ;;  %652 = vmatpush.msra.mxu3 %v6209_v9  ;;  %v6300_v34 = vand.u32 4294901760, %v552_v26  ;;  %v6317_v38 = vand.u32 4294901760, %v558_v31  ;;  %v6340_v44 = vand.u32 4294901760, %v564_v35  ;;  %v421_v54 = vld [vmem:[#allocation2 + $0x2] sm:$0xff] }
  0x1f   :  { %8594 = vst [vmem:[#allocation28_spill] sm:$0xff] %v6257_v23  ;;  %542 = vmatpush.msra.mxu1 %v6280_v29  ;;  %613 = vmatpush.msra.mxu2 %v6229_v16  ;;  %v6355_v48 = vand.u32 4294901760, %v570_v36  ;;  %v424_v57 = vmul.f32 %v6368_v51, %v421_v54  ;;  %v6389_v58 = vld [vmem:[%s8599_s29 + $0x3] ss:$0 sm:$0xff]  ;;  %v6394_v59 = vld [vmem:[%s8599_s29 + $0x4] ss:$0 sm:$0xff] }
  0x20   :  { %8595 = vst [vmem:[#allocation29_spill] sm:$0xff] %v6276_v28  ;;  %505 = vmatpush.msra.mxu0 %v6211_v10  ;;  %654 = vmatpush.msra.mxu3 %v6211_v10  ;;  %v414_v55 = vld [vmem:[#allocation3] sm:$0xff]  ;;  %v6405_v61 = vld [vmem:[%s8599_s29 + $0x5] ss:$0 sm:$0xff]  ;;  %v6417_v0 = vld [vmem:[%s8599_s29 + $0x6] ss:$0 sm:$0xff] }
  0x21   :  { %8596 = vst [vmem:[#allocation30_spill] sm:$0xff] %v6300_v34  ;;  %548 = vmatpush.msra.mxu1 %v6283_v30  ;;  %616 = vmatpush.msra.mxu2 %v6232_v17  ;;  %v417_v56 = vmul.f32 %v6352_v47, %v414_v55  ;;  %v6432_v26 = vld [vmem:[%s8599_s29 + $0x7] ss:$0 sm:$0xff]  ;;  %v6476_v55 = vld [vmem:[%s8604_s11] ss:$0 sm:$0xff] }
  0x22   :  { %143 = vst.msk [vmem:[#allocation3 + $0x18] sm:$0xff] %vm84_vm0, %v8539_v12  ;;  %507 = vmatpush.msra.mxu0 %v6213_v11  ;;  %656 = vmatpush.msra.mxu3 %v6213_v11 }
  0x23   :  { %8598 = vst [vmem:[#allocation31_spill] sm:$0xff] %v6317_v38  ;;  %554 = vmatpush.msra.mxu1 %v6300_v34  ;;  %619 = vmatpush.msra.mxu2 %v6235_v18  ;;  %v419_v60 = vadd.f32 %v417_v56, %v410_v53 }
  0x24   :  { %146 = vst.msk [vmem:[#allocation3 + $0x30] sm:$0xff] %vm84_vm0, %v8539_v12  ;;  %509 = vmatpush.msra.mxu0 %v6291_v32  ;;  %658 = vmatpush.msra.mxu3 %v6291_v32 }
  0x25   :  { %149 = vst.msk [vmem:[#allocation3 + $0x48] sm:$0xff] %vm84_vm0, %v8539_v12  ;;  %560 = vmatpush.msra.mxu1 %v6317_v38  ;;  %622 = vmatpush.msra.mxu2 %v6343_v45  ;;  %v426_v63 = vadd.f32 %v424_v57, %v419_v60 }
  0x26   :  { %8600 = vst [vmem:[#allocation32_spill] sm:$0xff] %v6340_v44  ;;  %511 = vmatpush.msra.mxu0 %v6319_v39  ;;  %660 = vmatpush.msra.mxu3 %v6319_v39 }
  0x27   :  { %8601 = vst [vmem:[#allocation33_spill] sm:$0xff] %v6343_v45  ;;  %566 = vmatpush.msra.mxu1 %v6340_v44  ;;  %625 = vmatpush.msra.mxu2 %v6373_v52 }
  0x28   :  { %291 = vst.msk [vmem:[#allocation3 + $0x18] sm:$0xff] %vm84_vm0, %v258_v37  ;;  %685 = vmatpush.msrb.mxu0 %v6242_v19  ;;  %874 = vmatpush.msrb.mxu3 %v6280_v29  ;;  %v6446_v37 = vld [vmem:[%s8599_s29 + $0x8] ss:$0 sm:$0xff] }
  0x29   :  { %293 = vst.msk [vmem:[#allocation3 + $0x30] sm:$0xff] %vm84_vm0, %v260_v40  ;;  %829 = vmatpush.msrb.mxu2 %v6194_v3  ;;  %572 = vmatpush.msra.mxu1 %v6355_v48 }
  0x2a   :  { %8603 = vst [vmem:[#allocation34_spill] sm:$0xff] %v6373_v52  ;;  %689 = vmatpush.msrb.mxu0 %v6245_v20  ;;  %880 = vmatpush.msrb.mxu3 %v6283_v30 }
  0x2b   :  { %295 = vst.msk [vmem:[#allocation3 + $0x48] sm:$0xff] %vm84_vm0, %v262_v42  ;;  %831 = vmatpush.msrb.mxu2 %v6196_v4 }
  0x2c   :  { %356 = vst.msk [vmem:[#allocation2 + $0x1a] sm:$0xff] %vm84_vm0, %v323_v46  ;;  %693 = vmatpush.msrb.mxu0 %v6248_v21  ;;  %886 = vmatpush.msrb.mxu3 %v6300_v34 }
  0x2d   :  { %358 = vst.msk [vmem:[#allocation2 + $0x32] sm:$0xff] %vm84_vm0, %v325_v49  ;;  %833 = vmatpush.msrb.mxu2 %v6198_v5 }
  0x2e   :  { %360 = vst.msk [vmem:[#allocation2 + $0x4a] sm:$0xff] %vm84_vm0, %v327_v50  ;;  %697 = vmatpush.msrb.mxu0 %v6254_v22  ;;  %892 = vmatpush.msrb.mxu3 %v6317_v38 }
  0x2f   :  { %98 = vst.msk [vmem:[#allocation2 + $0x60] sm:$0xff] %vm84_vm0, %v8539_v12  ;;  %v435_v62 = vld [vmem:[#allocation3 + $0x18] sm:$0xff]  ;;  %835 = vmatpush.msrb.mxu2 %v6209_v9 }
  0x30   :  { %99 = vst.msk [vmem:[#allocation2 + $0x68] sm:$0xff] %vm84_vm0, %v8539_v12  ;;  %v458_v1 = vld [vmem:[#allocation3 + $0x30] sm:$0xff]  ;;  %v438_v24 = vmul.f32 %v6394_v59, %v435_v62  ;;  %701 = vmatpush.msrb.mxu0 %v6257_v23  ;;  %898 = vmatpush.msrb.mxu3 %v6340_v44 }
  0x31   :  { %101 = vst.msk [vmem:[#allocation2 + $0x78] sm:$0xff] %vm84_vm0, %v8539_v12  ;;  %v762_v7 = vmul.f32 %v6352_v47, %v458_v1  ;;  %837 = vmatpush.msrb.mxu2 %v6211_v10  ;;  %v461_v50 = vmul.f32 %v6432_v26, %v458_v1 }
  0x32   :  { %102 = vst.msk [vmem:[#allocation2 + $0x80] sm:$0xff] %vm84_vm0, %v8539_v12  ;;  %705 = vmatpush.msrb.mxu0 %v6276_v28  ;;  %904 = vmatpush.msrb.mxu3 %v6355_v48 }
  0x33   :  { %v428_v2 = vld [vmem:[#allocation2 + $0x18] sm:$0xff]  ;;  %104 = vst.msk [vmem:[#allocation2 + $0x90] sm:$0xff] %vm84_vm0, %v8539_v12  ;;  %839 = vmatpush.msrb.mxu2 %v6213_v11 }
  0x34   :  { %v442_v6 = vld [vmem:[#allocation2 + $0x1a] sm:$0xff]  ;;  %v431_v8 = vmul.f32 %v6389_v58, %v428_v2  ;;  %v450_v25 = vld [vmem:[#allocation2 + $0x30] sm:$0xff]  ;;  %105 = vst.msk [vmem:[#allocation2 + $0x98] sm:$0xff] %vm84_vm0, %v8539_v12 }
  0x35   :  { %v465_v27 = vld [vmem:[#allocation2 + $0x32] sm:$0xff]  ;;  %v758_v31 = vmul.f32 %v6329_v41, %v450_v25  ;;  %107 = vst.msk [vmem:[#allocation2 + $0xa8] sm:$0xff] %vm84_vm0, %v8539_v12  ;;  %v445_v36 = vmul.f32 %v6405_v61, %v442_v6  ;;  %v453_v43 = vmul.f32 %v6417_v0, %v450_v25  ;;  %841 = vmatpush.msrb.mxu2 %v6291_v32 }
  0x36   :  { %v766_v33 = vmul.f32 %v6368_v51, %v465_v27  ;;  %v433_v35 = vadd.f32 %v431_v8, %v426_v63  ;;  %108 = vst.msk [vmem:[#allocation2 + $0xb0] sm:$0xff] %vm84_vm0, %v8539_v12  ;;  %v468_v54 = vmul.f32 %v6446_v37, %v465_v27 }
  0x37   :  { %v764_v40 = vadd.f32 %v762_v7, %v758_v31  ;;  %110 = vst.msk [vmem:[#allocation2 + $0xc0] sm:$0xff] %vm84_vm0, %v8539_v12  ;;  %843 = vmatpush.msrb.mxu2 %v6319_v39 }
  0x38   :  { %v440_v42 = vadd.f32 %v438_v24, %v433_v35  ;;  %111 = vst.msk [vmem:[#allocation2 + $0xc8] sm:$0xff] %vm84_vm0, %v8539_v12 }
  0x39   :  { %v6460_v46 = vadd.f32 %v766_v33, %v764_v40  ;;  %113 = vst.msk [vmem:[#allocation2 + $0xd8] sm:$0xff] %vm84_vm0, %v8539_v12 }
  0x3a   :  { %v447_v49 = vadd.f32 %v445_v36, %v440_v42  ;;  %114 = vst.msk [vmem:[#allocation2 + $0xe0] sm:$0xff] %vm84_vm0, %v8539_v12 }
  0x3b   :  { %116 = vst.msk [vmem:[#allocation2 + $0xf0] sm:$0xff] %vm84_vm0, %v8539_v12 }
  0x3c   :  { %v455_v53 = vadd.f32 %v453_v43, %v447_v49  ;;  %117 = vst.msk [vmem:[#allocation2 + $0xf8] sm:$0xff] %vm84_vm0, %v8539_v12 }
  0x3d   :  { %119 = vst.msk [vmem:[#allocation2 + $0x108] sm:$0xff] %vm84_vm0, %v8539_v12 }
  0x3e   :  { %v463_v56 = vadd.f32 %v461_v50, %v455_v53  ;;  %120 = vst.msk [vmem:[#allocation2 + $0x110] sm:$0xff] %vm84_vm0, %v8539_v12 }
  0x3f   :  { %122 = vst.msk [vmem:[#allocation2 + $0x120] sm:$0xff] %vm84_vm0, %v8539_v12 }
  0x40   :  { %v470_v57 = vadd.f32 %v468_v54, %v463_v56  ;;  %123 = vst.msk [vmem:[#allocation2 + $0x128] sm:$0xff] %vm84_vm0, %v8539_v12 }
  0x41   :  { %35 = vsyncpa [#allocation19], 0  ;;  %125 = vst.msk [vmem:[#allocation2 + $0x138] sm:$0xff] %vm84_vm0, %v8539_v12  ;;  %v6501_v63 = vand.u32 4294901760, %v6343_v45  ;;  %v6513_v7 = vand.u32 4294901760, %v6373_v52  ;;  %vm87_vm1 = vcmask 517120  }
  0x42   :  { %v475_v60 = vadd.f32 %v6476_v55, %v470_v57  ;;  %126 = vst.msk [vmem:[#allocation2 + $0x140] sm:$0xff] %vm84_vm0, %v8539_v12  ;;  %v259_v36 = vld [vmem:[%s8597_s9 + $0x8] sm:$0xff]  ;;  %v261_v40 = vld [vmem:[%s8597_s9 + $0x18] sm:$0xff]  ;;  %vm194_vm2 = vcmask 80896   ;;  %vm196_vm3 = vcmask 74752   ;;  %s8636_s2 = sld [smem:[#allocation45_spill]] }
  0x43   :  { %128 = vst.msk [vmem:[#allocation2 + $0x150] sm:$0xff] %vm84_vm0, %v8539_v12  ;;  %v576_v6 = vsub.f32 %v6343_v45, %v6501_v63  ;;  %709 = vmatpush.msrb.mxu0 %v6501_v63  ;;  %v582_v25 = vsub.f32 %v6373_v52, %v6513_v7  ;;  %v408_v42 = vld [vmem:[#allocation2 + $0x8] sm:$0xff]  ;;  %v326_v53 = vld [vmem:[%s8602_s3 + $0x18] sm:$0xff]  ;;  %s8637_s28 = sld [smem:[#allocation47_spill]]  ;;  %vm3297_vm4 = vcmask 1041408   ;;  %vm236_vm5 = vcmask 78848  }
  0x44   :  { %v477_v62 = vmax.f32 %v475_v60, 0.0  ;;  %129 = vst.msk [vmem:[#allocation2 + $0x158] sm:$0xff] %vm84_vm0, %v8539_v12  ;;  %v263_v49 = vld [vmem:[%s8597_s9 + $0x28] sm:$0xff]  ;;  %v411_v54 = vmul.f32 %v6329_v41, %v408_v42  ;;  %s8638_s1 = sld [smem:[#allocation46_spill]]  ;;  %vm249_vm6 = vcmask 76800   ;;  %vm5679_vm14 = vcmask 148480  }
  0x45   :  { %131 = vst.msk [vmem:[#allocation2 + $0x168] sm:$0xff] %vm84_vm0, %v8539_v12  ;;  %v6519_v24 = vand.u32 4294901760, %v576_v6  ;;  %713 = vmatpush.msrb.mxu0 %v6513_v7  ;;  %v6527_v31 = vand.u32 4294901760, %v582_v25  ;;  %v324_v50 = vld [vmem:[%s8602_s3 + $0x8] sm:$0xff]  ;;  %s8640_s5 = sld [smem:[#allocation49_spill]]  ;;  %s5776_s4 = sshll.u32 %s8525_s25, 4  ;;  %s5777_s4 = int_to_ptr.hbm [resolvable:$true] %s5776_s4 }
  0x46   :  { %8605 = vst [vmem:[#allocation35_spill] sm:$0xff] %v6501_v63  ;;  %v483_v1 = vsel %vm84_vm0, %v477_v62, 0  ;;  %v328_v57 = vld [vmem:[%s8602_s3 + $0x28] sm:$0xff]  ;;  %s8641_s6 = sld [smem:[#allocation50_spill]]  ;;  %s6043_s8 = smov [#allocation17]  }
  0x47   :  { %132 = vst.msk [vmem:[#allocation2 + $0x170] sm:$0xff] %vm84_vm0, %v8539_v12  ;;  %v6506_v2 = vand.u32 4294901760, %v483_v1  ;;  %578 = vmatpush.msra.mxu1 %v6519_v24  ;;  %910 = vmatpush.msrb.mxu3 %v6519_v24  ;;  %s5787_s25 = sshll.u32 %s8526_s26, 4  ;;  %s6044_s26 = smov [#allocation18]   ;;  %s5788_s25 = int_to_ptr.hbm [resolvable:$true] %s5787_s25 }
  0x48   :  { %134 = vst.msk [vmem:[#allocation2 + $0x180] sm:$0xff] %vm84_vm0, %v8539_v12 }
  0x49   :  { %8606 = vst [vmem:[#allocation36_spill] sm:$0xff] %v6513_v7  ;;  %v513_v8 = vsub.f32 %v483_v1, %v6506_v2  ;;  %584 = vmatpush.msra.mxu1 %v6527_v31  ;;  %916 = vmatpush.msrb.mxu3 %v6527_v31 }
  0x4a   :  { %135 = vst.msk [vmem:[#allocation2 + $0x188] sm:$0xff] %vm84_vm0, %v8539_v12  ;;  %586 = vmatmul.f32.vlgmr.msra.gmra.mxu1 %v6506_v2 }
  0x4b   :  { %8607 = vst [vmem:[#allocation37_spill] sm:$0xff] %v6519_v24  ;;  %628 = vmatmul.f32.vlgmr.msra.gmra.mxu2 %v513_v8  ;;  %v514_v27 = vand.u32 4294901760, %v513_v8  ;;  %732 = vmatpush.msrb.mxu1 %v6194_v3 }
  0x4c   :  { %141 = vst.msk [vmem:[#allocation3 + $0x8] sm:$0xff] %vm84_vm0, %v8539_v12  ;;  %1017 = vmatpush.msra.mxu2 %v6242_v19 }
  0x4d   :  { %8608 = vst [vmem:[#allocation38_spill] sm:$0xff] %v6527_v31  ;;  %v515_v33 = vsub.f32 %v513_v8, %v514_v27  ;;  %664 = vmatmul.f32.vlgmr.msra.gmra.mxu3 %v514_v27  ;;  %734 = vmatpush.msrb.mxu1 %v6196_v4 }
  0x4e   :  { %144 = vst.msk [vmem:[#allocation3 + $0x20] sm:$0xff] %vm84_vm0, %v8539_v12  ;;  %1021 = vmatpush.msra.mxu2 %v6245_v20  ;;  %1064 = vmatpush.msra.mxu3 %v6194_v3 }
  0x4f   :  { %147 = vst.msk [vmem:[#allocation3 + $0x38] sm:$0xff] %vm84_vm0, %v8539_v12  ;;  %v516_v35 = vand.u32 4294901760, %v515_v33  ;;  %736 = vmatpush.msrb.mxu1 %v6198_v5 }
  0x50   :  { %150 = vst.msk [vmem:[#allocation3 + $0x50] sm:$0xff] %vm84_vm0, %v8539_v12  ;;  %1025 = vmatpush.msra.mxu2 %v6248_v21  ;;  %1066 = vmatpush.msra.mxu3 %v6196_v4 }
  0x51   :  { %152 = vst.msk [vmem:[#allocation3 + $0x60] sm:$0xff] %vm84_vm0, %v8539_v12  ;;  %517 = vmatmul.f32.vlgmr.msra.gmra.mxu0 %v516_v35  ;;  %738 = vmatpush.msrb.mxu1 %v6209_v9 }
  0x52   :  { %153 = vst.msk [vmem:[#allocation3 + $0x68] sm:$0xff] %vm84_vm0, %v8539_v12  ;;  %936 = vmatpush.msra.mxu0 %v6218_v13  ;;  %1029 = vmatpush.msra.mxu2 %v6254_v22 }
  0x53   :  { %155 = vst.msk [vmem:[#allocation3 + $0x78] sm:$0xff] %vm84_vm0, %v8539_v12  ;;  %1068 = vmatpush.msra.mxu3 %v6198_v5  ;;  %740 = vmatpush.msrb.mxu1 %v6211_v10  ;;  %v415_v43 = vld [vmem:[#allocation3 + $0x8] sm:$0xff] }
  0x54   :  { %156 = vst.msk [vmem:[#allocation3 + $0x80] sm:$0xff] %vm84_vm0, %v8539_v12  ;;  %939 = vmatpush.msra.mxu0 %v6222_v14  ;;  %1033 = vmatpush.msra.mxu2 %v6257_v23  ;;  %v418_v56 = vmul.f32 %v6352_v47, %v415_v43  ;;  %v270_v23 = vld [vmem:[%s8597_s9 + $0x60] sm:$0xff] }
  0x55   :  { %158 = vst.msk [vmem:[#allocation3 + $0x90] sm:$0xff] %vm84_vm0, %v8539_v12  ;;  %1070 = vmatpush.msra.mxu3 %v6209_v9  ;;  %742 = vmatpush.msrb.mxu1 %v6213_v11 }
  0x56   :  { %159 = vst.msk [vmem:[#allocation3 + $0x98] sm:$0xff] %vm84_vm0, %v8539_v12  ;;  %942 = vmatpush.msra.mxu0 %v6226_v15  ;;  %1037 = vmatpush.msra.mxu2 %v6276_v28  ;;  %v420_v62 = vadd.f32 %v418_v56, %v411_v54 }
  0x57   :  { %161 = vst.msk [vmem:[#allocation3 + $0xa8] sm:$0xff] %vm84_vm0, %v8539_v12  ;;  %1072 = vmatpush.msra.mxu3 %v6211_v10  ;;  %744 = vmatpush.msrb.mxu1 %v6291_v32 }
  0x58   :  { %162 = vst.msk [vmem:[#allocation3 + $0xb0] sm:$0xff] %vm84_vm0, %v8539_v12  ;;  %945 = vmatpush.msra.mxu0 %v6229_v16  ;;  %1041 = vmatpush.msra.mxu2 %v6501_v63 }
  0x59   :  { %164 = vst.msk [vmem:[#allocation3 + $0xc0] sm:$0xff] %vm84_vm0, %v8539_v12  ;;  %1074 = vmatpush.msra.mxu3 %v6213_v11  ;;  %746 = vmatpush.msrb.mxu1 %v6319_v39 }
  0x5a   :  { %165 = vst.msk [vmem:[#allocation3 + $0xc8] sm:$0xff] %vm84_vm0, %v8539_v12  ;;  %948 = vmatpush.msra.mxu0 %v6232_v17  ;;  %1045 = vmatpush.msra.mxu2 %v6513_v7 }
  0x5b   :  { %167 = vst.msk [vmem:[#allocation3 + $0xd8] sm:$0xff] %vm84_vm0, %v8539_v12  ;;  %1076 = vmatpush.msra.mxu3 %v6291_v32  ;;  %978 = vmatpush.msra.mxu1 %v6194_v3 }
  0x5c   :  { %168 = vst.msk [vmem:[#allocation3 + $0xe0] sm:$0xff] %vm84_vm0, %v8539_v12  ;;  %951 = vmatpush.msra.mxu0 %v6235_v18 }
  0x5d   :  { %170 = vst.msk [vmem:[#allocation3 + $0xf0] sm:$0xff] %vm84_vm0, %v8539_v12  ;;  %1078 = vmatpush.msra.mxu3 %v6319_v39  ;;  %980 = vmatpush.msra.mxu1 %v6196_v4 }
  0x5e   :  { %171 = vst.msk [vmem:[#allocation3 + $0xf8] sm:$0xff] %vm84_vm0, %v8539_v12  ;;  %954 = vmatpush.msra.mxu0 %v6343_v45 }
  0x5f   :  { %173 = vst.msk [vmem:[#allocation3 + $0x108] sm:$0xff] %vm84_vm0, %v8539_v12  ;;  %982 = vmatpush.msra.mxu1 %v6198_v5 }
  0x60   :  { %174 = vst.msk [vmem:[#allocation3 + $0x110] sm:$0xff] %vm84_vm0, %v8539_v12  ;;  %957 = vmatpush.msra.mxu0 %v6373_v52 }
  0x61   :  { %176 = vst.msk [vmem:[#allocation3 + $0x120] sm:$0xff] %vm84_vm0, %v8539_v12  ;;  %984 = vmatpush.msra.mxu1 %v6209_v9 }
  0x62   :  { %177 = vst.msk [vmem:[#allocation3 + $0x128] sm:$0xff] %vm84_vm0, %v8539_v12 }
  0x63   :  { %179 = vst.msk [vmem:[#allocation3 + $0x138] sm:$0xff] %vm84_vm0, %v8539_v12  ;;  %986 = vmatpush.msra.mxu1 %v6211_v10 }
  0x64   :  { %180 = vst.msk [vmem:[#allocation3 + $0x140] sm:$0xff] %vm84_vm0, %v8539_v12 }
  0x65   :  { %182 = vst.msk [vmem:[#allocation3 + $0x150] sm:$0xff] %vm84_vm0, %v8539_v12  ;;  %988 = vmatpush.msra.mxu1 %v6213_v11 }
  0x66   :  { %183 = vst.msk [vmem:[#allocation3 + $0x158] sm:$0xff] %vm84_vm0, %v8539_v12 }
  0x67   :  { %185 = vst.msk [vmem:[#allocation3 + $0x168] sm:$0xff] %vm84_vm0, %v8539_v12  ;;  %990 = vmatpush.msra.mxu1 %v6291_v32 }
  0x68   :  { %186 = vst.msk [vmem:[#allocation3 + $0x170] sm:$0xff] %vm84_vm0, %v8539_v12 }
  0x69   :  { %188 = vst.msk [vmem:[#allocation3 + $0x180] sm:$0xff] %vm84_vm0, %v8539_v12  ;;  %992 = vmatpush.msra.mxu1 %v6319_v39 }
  0x6a   :  { %189 = vst.msk [vmem:[#allocation3 + $0x188] sm:$0xff] %vm84_vm0, %v8539_v12 }
  0x6b   :  { %88 = vst.msk [vmem:[#allocation2 + $0x10] sm:$0x3] %vm87_vm1, %v8539_v12 }
  0x6c   :  { %91 = vst.msk [vmem:[#allocation2 + $0x28] sm:$0x3] %vm87_vm1, %v8539_v12 }
  0x6d   :  { %94 = vst.msk [vmem:[#allocation2 + $0x40] sm:$0x3] %vm87_vm1, %v8539_v12 }
  0x6e   :  { %97 = vst.msk [vmem:[#allocation2 + $0x58] sm:$0x3] %vm87_vm1, %v8539_v12 }
  0x6f   :  { %292 = vst.msk [vmem:[#allocation3 + $0x20] sm:$0xff] %vm84_vm0, %v259_v36  ;;  %v771_v36 = vld [vmem:[#allocation2 + $0x48] sm:$0xff] }
  0x70   :  { %294 = vst.msk [vmem:[#allocation3 + $0x38] sm:$0xff] %vm84_vm0, %v261_v40 }
  0x71   :  { %296 = vst.msk [vmem:[#allocation3 + $0x50] sm:$0xff] %vm84_vm0, %v263_v49 }
  0x72   :  { %v422_v60 = vld [vmem:[#allocation2 + $0xa] sm:$0xff]  ;;  %357 = vst.msk [vmem:[#allocation2 + $0x22] sm:$0xff] %vm84_vm0, %v324_v50 }
  0x73   :  { %359 = vst.msk [vmem:[#allocation2 + $0x3a] sm:$0xff] %vm84_vm0, %v326_v53  ;;  %v425_v1 = vmul.f32 %v6368_v51, %v422_v60  ;;  %v773_v60 = vmul.f32 %v6389_v58, %v771_v36 }
  0x74   :  { %361 = vst.msk [vmem:[#allocation2 + $0x52] sm:$0xff] %vm84_vm0, %v328_v57 }
  0x75   :  { %100 = vst.msk [vmem:[#allocation2 + $0x70] sm:$0x3] %vm87_vm1, %v8539_v12  ;;  %v427_v8 = vadd.f32 %v425_v1, %v420_v62  ;;  %v778_v1 = vld [vmem:[#allocation3 + $0x48] sm:$0xff] }
  0x76   :  { %103 = vst.msk [vmem:[#allocation2 + $0x88] sm:$0x3] %vm87_vm1, %v8539_v12  ;;  %v436_v6 = vld [vmem:[#allocation3 + $0x20] sm:$0xff] }
  0x77   :  { %106 = vst.msk [vmem:[#allocation2 + $0xa0] sm:$0x3] %vm87_vm1, %v8539_v12  ;;  %v459_v25 = vld [vmem:[#allocation3 + $0x38] sm:$0xff]  ;;  %v439_v42 = vmul.f32 %v6394_v59, %v436_v6 }
  0x78   :  { %109 = vst.msk [vmem:[#allocation2 + $0xb8] sm:$0x3] %vm87_vm1, %v8539_v12  ;;  %v763_v35 = vmul.f32 %v6352_v47, %v459_v25 }
  0x79   :  { %v429_v27 = vld [vmem:[#allocation2 + $0x20] sm:$0xff]  ;;  %112 = vst.msk [vmem:[#allocation2 + $0xd0] sm:$0x3] %vm87_vm1, %v8539_v12 }
  0x7a   :  { %v443_v33 = vld [vmem:[#allocation2 + $0x22] sm:$0xff]  ;;  %v432_v40 = vmul.f32 %v6389_v58, %v429_v27  ;;  %v451_v43 = vld [vmem:[#allocation2 + $0x38] sm:$0xff]  ;;  %115 = vst.msk [vmem:[#allocation2 + $0xe8] sm:$0x3] %vm87_vm1, %v8539_v12 }
  0x7b   :  { %v466_v49 = vld [vmem:[#allocation2 + $0x3a] sm:$0xff]  ;;  %v759_v50 = vmul.f32 %v6329_v41, %v451_v43  ;;  %v772_v54 = vld [vmem:[#allocation2 + $0x50] sm:$0xff]  ;;  %118 = vst.msk [vmem:[#allocation2 + $0x100] sm:$0x3] %vm87_vm1, %v8539_v12  ;;  %v446_v57 = vmul.f32 %v6405_v61, %v443_v33  ;;  %v454_v27 = vmul.f32 %v6417_v0, %v451_v43  ;;  %v775_v43 = vadd.f32 %v773_v60, %v6460_v46 }
  0x7c   :  { %v767_v53 = vmul.f32 %v6368_v51, %v466_v49  ;;  %v434_v56 = vadd.f32 %v432_v40, %v427_v8  ;;  %121 = vst.msk [vmem:[#allocation2 + $0x118] sm:$0x3] %vm87_vm1, %v8539_v12  ;;  %v774_v7 = vmul.f32 %v6389_v58, %v772_v54  ;;  %v779_v33 = vld [vmem:[#allocation3 + $0x50] sm:$0xff]  ;;  %v462_v40 = vmul.f32 %v6432_v26, %v459_v25  ;;  %v265_v46 = vld [vmem:[%s8597_s9 + $0x38] sm:$0xff] }
  0x7d   :  { %v765_v62 = vadd.f32 %v763_v35, %v759_v50  ;;  %124 = vst.msk [vmem:[#allocation2 + $0x130] sm:$0x3] %vm87_vm1, %v8539_v12  ;;  %v264_v35 = vld [vmem:[%s8597_s9 + $0x30] sm:$0xff]  ;;  %v780_v50 = vmul.f32 %v6394_v59, %v778_v1  ;;  %v469_v25 = vmul.f32 %v6446_v37, %v466_v49  ;;  %v330_v60 = vld [vmem:[%s8602_s3 + $0x38] sm:$0xff] }
  0x7e   :  { %v441_v6 = vadd.f32 %v439_v42, %v434_v56  ;;  %127 = vst.msk [vmem:[#allocation2 + $0x148] sm:$0x3] %vm87_vm1, %v8539_v12  ;;  %v329_v42 = vld [vmem:[%s8602_s3 + $0x30] sm:$0xff] }
  0x7f   :  { %v769_v8 = vadd.f32 %v767_v53, %v765_v62  ;;  %130 = vst.msk [vmem:[#allocation2 + $0x160] sm:$0x3] %vm87_vm1, %v8539_v12  ;;  %v331_v53 = vld [vmem:[%s8602_s3 + $0x40] sm:$0xff]  ;;  %v784_v62 = vld [vmem:[#allocation2 + $0x4a] sm:$0xff]  ;;  %v785_v1 = vld [vmem:[#allocation2 + $0x52] sm:$0xff]  ;;  %v782_v49 = vadd.f32 %v780_v50, %v775_v43 }
  0x80   :  { %v448_v36 = vadd.f32 %v446_v57, %v441_v6  ;;  %133 = vst.msk [vmem:[#allocation2 + $0x178] sm:$0x3] %vm87_vm1, %v8539_v12  ;;  %v781_v57 = vmul.f32 %v6394_v59, %v779_v33  ;;  %v267_v43 = vld [vmem:[%s8597_s9 + $0x48] sm:$0xff] }
  0x81   :  { %136 = vst.msk [vmem:[#allocation2 + $0x190] sm:$0x3] %vm87_vm1, %v8539_v12  ;;  %v776_v56 = vadd.f32 %v774_v7, %v769_v8  ;;  %v266_v7 = vld [vmem:[%s8597_s9 + $0x40] sm:$0xff]  ;;  %v332_v50 = vld [vmem:[%s8602_s3 + $0x48] sm:$0xff] }
  0x82   :  { %v456_v54 = vadd.f32 %v454_v27, %v448_v36  ;;  %297 = vst.msk [vmem:[#allocation3 + $0x60] sm:$0xff] %vm84_vm0, %v264_v35  ;;  %v786_v27 = vmul.f32 %v6405_v61, %v784_v62  ;;  %v787_v35 = vmul.f32 %v6405_v61, %v785_v1  ;;  %v268_v36 = vld [vmem:[%s8597_s9 + $0x50] sm:$0xff] }
  0x83   :  { %362 = vst.msk [vmem:[#allocation2 + $0x62] sm:$0xff] %vm84_vm0, %v329_v42  ;;  %v783_v33 = vadd.f32 %v781_v57, %v776_v56 }
  0x84   :  { %v464_v6 = vadd.f32 %v462_v40, %v456_v54  ;;  %364 = vst.msk [vmem:[#allocation2 + $0x7a] sm:$0xff] %vm84_vm0, %v331_v53  ;;  %v333_v40 = vld [vmem:[%s8602_s3 + $0x50] sm:$0xff]  ;;  %v788_v53 = vadd.f32 %v786_v27, %v782_v49 }
  0x85   :  { %298 = vst.msk [vmem:[#allocation3 + $0x68] sm:$0xff] %vm84_vm0, %v265_v46  ;;  %v789_v46 = vadd.f32 %v787_v35, %v783_v33 }
  0x86   :  { %v471_v8 = vadd.f32 %v469_v25, %v464_v6  ;;  %363 = vst.msk [vmem:[#allocation2 + $0x6a] sm:$0xff] %vm84_vm0, %v330_v60 }
  0x87   :  { %299 = vst.msk [vmem:[#allocation3 + $0x78] sm:$0xff] %vm84_vm0, %v266_v7 }
  0x88   :  { %v476_v42 = vadd.f32 %v6476_v55, %v471_v8  ;;  %301 = vst.msk [vmem:[#allocation3 + $0x90] sm:$0xff] %vm84_vm0, %v268_v36 }
  0x89   :  { %v798_v54 = vld [vmem:[#allocation3 + $0x60] sm:$0xff]  ;;  %366 = vst.msk [vmem:[#allocation2 + $0x92] sm:$0xff] %vm84_vm0, %v333_v40  ;;  %v335_v40 = vld [vmem:[%s8602_s3 + $0x60] sm:$0xff] }
  0x8a   :  { %v478_v25 = vmax.f32 %v476_v42, 0.0  ;;  %v791_v56 = vld [vmem:[#allocation2 + $0x60] sm:$0xff]  ;;  %v1094_v62 = vmul.f32 %v6352_v47, %v798_v54  ;;  %300 = vst.msk [vmem:[#allocation3 + $0x80] sm:$0xff] %vm84_vm0, %v267_v43  ;;  %v800_v1 = vmul.f32 %v6432_v26, %v798_v54  ;;  %v334_v43 = vld [vmem:[%s8602_s3 + $0x58] sm:$0xff] }
  0x8b   :  { %v804_v57 = vld [vmem:[#allocation2 + $0x62] sm:$0xff]  ;;  %v793_v60 = vmul.f32 %v6417_v0, %v791_v56  ;;  %v1090_v6 = vmul.f32 %v6329_v41, %v791_v56  ;;  %v1103_v49 = vld [vmem:[#allocation2 + $0x78] sm:$0xff]  ;;  %365 = vst.msk [vmem:[#allocation2 + $0x82] sm:$0xff] %vm84_vm0, %v332_v50 }
  0x8c   :  { %v1098_v7 = vmul.f32 %v6368_v51, %v804_v57  ;;  %v1116_v27 = vld [vmem:[#allocation2 + $0x7a] sm:$0xff]  ;;  %v486_v8 = vsel %vm84_vm0, %v478_v25, 0  ;;  %v806_v36 = vmul.f32 %v6446_v37, %v804_v57  ;;  %v1105_v33 = vmul.f32 %v6389_v58, %v1103_v49  ;;  %368 = vst.msk [vmem:[#allocation2 + $0xaa] sm:$0xff] %vm84_vm0, %v335_v40 }
  0x8d   :  { %v799_v35 = vld [vmem:[#allocation3 + $0x68] sm:$0xff]  ;;  %v1118_v42 = vmul.f32 %v6405_v61, %v1116_v27  ;;  %v6764_v54 = vand.u32 4294901760, %v486_v8  ;;  %v795_v50 = vadd.f32 %v793_v60, %v788_v53  ;;  %v1096_v56 = vadd.f32 %v1094_v62, %v1090_v6  ;;  %v792_v25 = vld [vmem:[#allocation2 + $0x68] sm:$0xff]  ;;  %367 = vst.msk [vmem:[#allocation2 + $0x9a] sm:$0xff] %vm84_vm0, %v334_v43 }
  0x8e   :  { %v801_v57 = vmul.f32 %v6432_v26, %v799_v35  ;;  %v805_v12 = vld [vmem:[#allocation2 + $0x6a] sm:$0xff]  ;;  %v794_v49 = vmul.f32 %v6417_v0, %v792_v25  ;;  %v1091_v27 = vmul.f32 %v6329_v41, %v792_v25  ;;  %v1095_v28 = vmul.f32 %v6352_v47, %v799_v35  ;;  %v269_v62 = vld [vmem:[%s8597_s9 + $0x58] sm:$0xff]  ;;  %303 = vst.msk [vmem:[#allocation3 + $0xa8] sm:$0xff] %vm84_vm0, %v270_v23 }
  0x8f   :  { %v807_v63 = vmul.f32 %v6446_v37, %v805_v12  ;;  %v1110_v53 = vld [vmem:[#allocation3 + $0x78] sm:$0xff]  ;;  %v521_v60 = vsub.f32 %v486_v8, %v6764_v54  ;;  %590 = vmatmul.f32.gmra.mxu1 %v6764_v54  ;;  %v802_v6 = vadd.f32 %v800_v1, %v795_v50  ;;  %v1100_v40 = vadd.f32 %v1098_v7, %v1096_v56  ;;  %v1130_v35 = vld [vmem:[#allocation3 + $0x90] sm:$0xff]  ;;  %v337_v56 = vld [vmem:[%s8602_s3 + $0x70] sm:$0xff] }
  0x90   :  { %v1099_v25 = vmul.f32 %v6368_v51, %v805_v12  ;;  %v796_v22 = vadd.f32 %v794_v49, %v789_v46  ;;  %v1097_v21 = vadd.f32 %v1095_v28, %v1091_v27  ;;  %v1112_v52 = vmul.f32 %v6394_v59, %v1110_v53  ;;  %v1123_v20 = vld [vmem:[#allocation2 + $0x90] sm:$0xff]  ;;  %302 = vst.msk [vmem:[#allocation3 + $0x98] sm:$0xff] %vm84_vm0, %v269_v62 }
  0x91   :  { %v1132_v45 = vmul.f32 %v6432_v26, %v1130_v35  ;;  %v1136_v19 = vld [vmem:[#allocation2 + $0x92] sm:$0xff]  ;;  %633 = vmatmul.f32.gmra.mxu2 %v521_v60  ;;  %v522_v43 = vand.u32 4294901760, %v521_v60  ;;  %v808_v8 = vadd.f32 %v806_v36, %v802_v6  ;;  %v1107_v18 = vadd.f32 %v1105_v33, %v1100_v40  ;;  %370 = vst.msk [vmem:[#allocation2 + $0xc2] sm:$0xff] %vm84_vm0, %v337_v56 }
  0x92   :  { %v1125_v1 = vmul.f32 %v6417_v0, %v1123_v20  ;;  %v1111_v12 = vld [vmem:[#allocation3 + $0x80] sm:$0xff]  ;;  %v803_v7 = vadd.f32 %v801_v57, %v796_v22  ;;  %v1101_v46 = vadd.f32 %v1099_v25, %v1097_v21  ;;  %v1138_v28 = vmul.f32 %v6446_v37, %v1136_v19  ;;  %v1104_v50 = vld [vmem:[#allocation2 + $0x80] sm:$0xff] }
  0x93   :  { %v1422_v23 = vmul.f32 %v6329_v41, %v1123_v20  ;;  %v523_v49 = vsub.f32 %v521_v60, %v522_v43  ;;  %670 = vmatmul.f32.gmra.mxu3 %v522_v43  ;;  %v810_v36 = vadd.f32 %v6476_v55, %v808_v8  ;;  %v1114_v33 = vadd.f32 %v1112_v52, %v1107_v18  ;;  %v1117_v53 = vld [vmem:[#allocation2 + $0x82] sm:$0xff]  ;;  %v272_v60 = vld [vmem:[%s8597_s9 + $0x70] sm:$0xff] }
  0x94   :  { %v1426_v27 = vmul.f32 %v6352_v47, %v1130_v35  ;;  %v809_v62 = vadd.f32 %v807_v63, %v803_v7  ;;  %v1430_v21 = vmul.f32 %v6368_v51, %v1136_v19  ;;  %v1435_v22 = vld [vmem:[#allocation2 + $0xa8] sm:$0xff]  ;;  %v1106_v57 = vmul.f32 %v6389_v58, %v1104_v50  ;;  %305 = vst.msk [vmem:[#allocation3 + $0xc0] sm:$0xff] %vm84_vm0, %v272_v60 }
  0x95   :  { %v336_v20 = vld [vmem:[%s8602_s3 + $0x68] sm:$0xff]  ;;  %v1113_v6 = vmul.f32 %v6394_v59, %v1111_v12  ;;  %v524_v18 = vand.u32 4294901760, %v523_v49  ;;  %v812_v52 = vmax.f32 %v810_v36, 0.0  ;;  %v1120_v63 = vadd.f32 %v1118_v42, %v1114_v33  ;;  %v1124_v12 = vld [vmem:[#allocation2 + $0x98] sm:$0xff] }
  0x96   :  { %v1428_v40 = vadd.f32 %v1426_v27, %v1422_v23  ;;  %369 = vst.msk [vmem:[#allocation2 + $0xb2] sm:$0xff] %vm84_vm0, %v336_v20  ;;  %v811_v19 = vadd.f32 %v6476_v55, %v809_v62  ;;  %v1437_v25 = vmul.f32 %v6389_v58, %v1435_v22  ;;  %v271_v35 = vld [vmem:[%s8597_s9 + $0x68] sm:$0xff]  ;;  %v1108_v43 = vadd.f32 %v1106_v57, %v1101_v46  ;;  %v1442_v50 = vld [vmem:[#allocation3 + $0xa8] sm:$0xff] }
  0x97   :  { %v1119_v8 = vmul.f32 %v6405_v61, %v1117_v53  ;;  %525 = vmatmul.f32.gmra.mxu0 %v524_v18  ;;  %v815_v42 = vsel %vm84_vm0, %v812_v52, 0  ;;  %748 = vmatmul.f32.vlgmr.msrb.gmra.mxu1 %v6506_v2  ;;  %v1127_v7 = vadd.f32 %v1125_v1, %v1120_v63  ;;  %304 = vst.msk [vmem:[#allocation3 + $0xb0] sm:$0xff] %vm84_vm0, %v271_v35  ;;  %v1131_v33 = vld [vmem:[#allocation3 + $0x98] sm:$0xff]  ;;  %v1137_v52 = vld [vmem:[#allocation2 + $0x9a] sm:$0xff] }
  0x98   :  { %v1432_v23 = vadd.f32 %v1430_v21, %v1428_v40  ;;  %v6815_v56 = vand.u32 4294901760, %v815_v42  ;;  %v813_v49 = vmax.f32 %v811_v19, 0.0  ;;  %1206 = vmatpush.msrb.mxu1 %v6280_v29  ;;  %v1444_v46 = vmul.f32 %v6394_v59, %v1442_v50  ;;  %v1448_v57 = vld [vmem:[#allocation2 + $0xaa] sm:$0xff] }
  0x99   :  { %v1115_v36 = vadd.f32 %v1113_v6, %v1108_v43  ;;  %v1134_v27 = vadd.f32 %v1132_v45, %v1127_v7  ;;  %v1126_v62 = vmul.f32 %v6417_v0, %v1124_v12  ;;  %v1133_v20 = vmul.f32 %v6432_v26, %v1131_v33  ;;  %v338_v6 = vld [vmem:[%s8602_s3 + $0x78] sm:$0xff] }
  0x9a   :  { %v1439_v53 = vadd.f32 %v1437_v25, %v1432_v23  ;;  %v6821_v22 = vsub.f32 %v815_v42, %v6815_v56  ;;  %v818_v1 = vsel %vm84_vm0, %v813_v49, 0  ;;  %1212 = vmatpush.msrb.mxu1 %v6283_v30  ;;  %v1423_v63 = vmul.f32 %v6329_v41, %v1124_v12  ;;  %371 = vst.msk [vmem:[#allocation2 + $0xca] sm:$0xff] %vm84_vm0, %v338_v6  ;;  %v6846_v12 = vld [vmem:[#allocation2 + $0xc0] sm:$0xff] }
  0x9b   :  { %v1121_v21 = vadd.f32 %v1119_v8, %v1115_v36  ;;  %918 = vmatmul.f32.vlgmr.msrb.gmra.mxu3 %v6815_v56  ;;  %v6830_v45 = vand.u32 4294901760, %v818_v1  ;;  %v1140_v60 = vadd.f32 %v1138_v28, %v1134_v27  ;;  %v1427_v25 = vmul.f32 %v6352_v47, %v1131_v33  ;;  %v273_v28 = vld [vmem:[%s8597_s9 + $0x78] sm:$0xff] }
  0x9c   :  { %v1446_v18 = vadd.f32 %v1444_v46, %v1439_v53  ;;  %v846_v40 = vand.u32 4294901760, %v6821_v22  ;;  %1310 = vmatpush.msrb.mxu3 %v6194_v3  ;;  %1218 = vmatpush.msrb.mxu1 %v6300_v34  ;;  %v1431_v35 = vmul.f32 %v6368_v51, %v1137_v52  ;;  %v1450_v8 = vmul.f32 %v6405_v61, %v1448_v57  ;;  %v6864_v53 = vld [vmem:[#allocation3 + $0xc0] sm:$0xff] }
  0x9d   :  { %v1128_v19 = vadd.f32 %v1126_v62, %v1121_v21  ;;  %v1436_v43 = vld [vmem:[#allocation2 + $0xb0] sm:$0xff]  ;;  %v6843_v41 = vsub.f32 %v818_v1, %v6830_v45  ;;  %306 = vst.msk [vmem:[#allocation3 + $0xc8] sm:$0xff] %vm84_vm0, %v273_v28  ;;  %v1429_v47 = vadd.f32 %v1427_v25, %v1423_v63  ;;  %v1142_v50 = vadd.f32 %v6476_v55, %v1140_v60 }
  0x9e   :  { %v847_v42 = vsub.f32 %v6821_v22, %v846_v40  ;;  %1312 = vmatpush.msrb.mxu3 %v6196_v4  ;;  %1224 = vmatpush.msrb.mxu1 %v6317_v38  ;;  %v1438_v51 = vmul.f32 %v6389_v58, %v1436_v43  ;;  %v1443_v7 = vld [vmem:[#allocation3 + $0xb0] sm:$0xff]  ;;  %v1139_v46 = vmul.f32 %v6446_v37, %v1137_v52  ;;  %v1449_v21 = vld [vmem:[#allocation2 + $0xb2] sm:$0xff] }
  0x9f   :  { %715 = vmatmul.f32.vlgmr.msrb.gmra.mxu0 %v6506_v2  ;;  %v854_v23 = vand.u32 4294901760, %v6843_v41  ;;  %752 = vmatmul.f32.gmra.mxu1 %v6764_v54  ;;  %v1135_v49 = vadd.f32 %v1133_v20, %v1128_v19  ;;  %v1433_v33 = vadd.f32 %v1431_v35, %v1429_v47  ;;  %v1452_v27 = vadd.f32 %v1450_v8, %v1446_v18  ;;  %v1468_v18 = vld [vmem:[#allocation2 + $0xc2] sm:$0xff] }
  0xa0   :  { %v848_v36 = vand.u32 4294901760, %v847_v42  ;;  %1161 = vmatpush.msrb.mxu0 %v6194_v3  ;;  %1314 = vmatpush.msrb.mxu3 %v6198_v5  ;;  %v1457_v58 = vmul.f32 %v6417_v0, %v6846_v12  ;;  %v1445_v2 = vmul.f32 %v6394_v59, %v1443_v7  ;;  %v1144_v59 = vmax.f32 %v1142_v50, 0.0  ;;  %v339_v50 = vld [vmem:[%s8602_s3 + $0x80] sm:$0xff] }
  0xa1   :  { %1230 = vmatpush.msrb.mxu1 %v6340_v44  ;;  %v855_v62 = vsub.f32 %v6843_v41, %v854_v23  ;;  %v1440_v1 = vadd.f32 %v1438_v51, %v1433_v33  ;;  %v1141_v20 = vadd.f32 %v1139_v46, %v1135_v49  ;;  %v1464_v6 = vmul.f32 %v6432_v26, %v6864_v53  ;;  %v6881_v19 = vld [vmem:[#allocation2 + $0xc8] sm:$0xff]  ;;  %v8609_v49 = vld [vmem:[#allocation23_spill] sm:$0xff] }
  0xa2   :  { %849 = vmatmul.f32.vlgmr.msrb.gmra.mxu2 %v848_v36  ;;  %1163 = vmatpush.msrb.mxu0 %v6196_v4  ;;  %v1459_v57 = vadd.f32 %v1457_v58, %v1452_v27  ;;  %v1451_v52 = vmul.f32 %v6405_v61, %v1449_v21  ;;  %v1147_v25 = vsel %vm84_vm0, %v1144_v59, 0  ;;  %v1470_v61 = vmul.f32 %v6446_v37, %v1468_v18  ;;  %v6908_v7 = vld [vmem:[#allocation2 + $0xca] sm:$0xff]  ;;  %v8611_v27 = vld [vmem:[#allocation33_spill] sm:$0xff] }
  0xa3   :  { %922 = vmatmul.f32.gmra.mxu3 %v6830_v45  ;;  %1268 = vmatpush.msrb.mxu2 %v6218_v13  ;;  %v1447_v60 = vadd.f32 %v1445_v2, %v1440_v1  ;;  %v856_v63 = vand.u32 4294901760, %v855_v62  ;;  %v1143_v35 = vadd.f32 %v6476_v55, %v1141_v20  ;;  %v6898_v8 = vand.u32 4294901760, %v1147_v25  ;;  %372 = vst.msk [vmem:[#allocation2 + $0xda] sm:$0xff] %vm84_vm0, %v339_v50  ;;  %v6937_v62 = vld [vmem:[%s8599_s29] ss:$0 sm:$0xff]  ;;  %v8613_v20 = vld [vmem:[#allocation34_spill] sm:$0xff] }
  0xa4   :  { %1165 = vmatpush.msrb.mxu0 %v6198_v5  ;;  %1316 = vmatpush.msrb.mxu3 %v6209_v9  ;;  %v1466_v43 = vadd.f32 %v1464_v6, %v1459_v57  ;;  %v1471_v2 = vmul.f32 %v6446_v37, %v6908_v7  ;;  %v1754_v1 = vmul.f32 %v6937_v62, %v6846_v12  ;;  %v6944_v21 = vld [vmem:[%s8599_s29 + $0x1] ss:$0 sm:$0xff] }
  0xa5   :  { %1271 = vmatpush.msrb.mxu2 %v6222_v14  ;;  %1236 = vmatpush.msrb.mxu1 %v6355_v48  ;;  %v1453_v28 = vadd.f32 %v1451_v52, %v1447_v60  ;;  %v1145_v42 = vmax.f32 %v1143_v35, 0.0  ;;  %v6916_v46 = vsub.f32 %v1147_v25, %v6898_v8  ;;  %v1758_v37 = vmul.f32 %v6944_v21, %v6864_v53  ;;  %v341_v60 = vld [vmem:[%s8602_s3 + $0x90] sm:$0xff] }
  0xa6   :  { %1167 = vmatpush.msrb.mxu0 %v6209_v9  ;;  %1318 = vmatpush.msrb.mxu3 %v6211_v10  ;;  %v1472_v47 = vadd.f32 %v1470_v61, %v1466_v43  ;;  %374 = vst.msk [vmem:[#allocation2 + $0xf2] sm:$0xff] %vm84_vm0, %v341_v60  ;;  %v276_v25 = vld [vmem:[%s8597_s9 + $0x90] sm:$0xff]  ;;  %v340_v43 = vld [vmem:[%s8602_s3 + $0x88] sm:$0xff] }
  0xa7   :  { %719 = vmatmul.f32.gmra.mxu0 %v6764_v54  ;;  %996 = vmatmul.f32.vlgmr.msra.gmra.mxu1 %v846_v40  ;;  %v1458_v54 = vmul.f32 %v6417_v0, %v6881_v19  ;;  %v6894_v40 = vld [vmem:[#allocation3 + $0xc8] sm:$0xff]  ;;  %v1150_v36 = vsel %vm84_vm0, %v1145_v42, 0  ;;  %v1178_v12 = vand.u32 4294901760, %v6916_v46  ;;  %v1760_v6 = vadd.f32 %v1758_v37, %v1754_v1  ;;  %309 = vst.msk [vmem:[#allocation3 + $0xf0] sm:$0xff] %vm84_vm0, %v276_v25  ;;  %v7037_v25 = vld [vmem:[%s8599_s29 + $0x6] ss:$0 sm:$0xff] }
  0xa8   :  { %1274 = vmatpush.msrb.mxu2 %v6226_v15  ;;  %1169 = vmatpush.msrb.mxu0 %v6211_v10  ;;  %v1465_v51 = vmul.f32 %v6432_v26, %v6894_v40  ;;  %v8610_v26 = vld [vmem:[#allocation24_spill] sm:$0xff]  ;;  %v1474_v33 = vadd.f32 %v6476_v55, %v1472_v47  ;;  %v6957_v57 = vand.u32 4294901760, %v1150_v36  ;;  %373 = vst.msk [vmem:[#allocation2 + $0xe2] sm:$0xff] %vm84_vm0, %v340_v43  ;;  %v8617_v43 = vld [vmem:[#allocation29_spill] sm:$0xff] }
  0xa9   :  { %1320 = vmatpush.msrb.mxu3 %v6213_v11  ;;  %1242 = vmatpush.msrb.mxu1 %v6519_v24  ;;  %v1460_v0 = vadd.f32 %v1458_v54, %v1453_v28  ;;  %v1179_v61 = vsub.f32 %v6916_v46, %v1178_v12  ;;  %v6985_v54 = vld [vmem:[%s8599_s29 + $0x3] ss:$0 sm:$0xff] }
  0xaa   :  { %857 = vmatmul.f32.gmra.mxu2 %v856_v63  ;;  %1171 = vmatpush.msrb.mxu0 %v6213_v11  ;;  %v1476_v53 = vmax.f32 %v1474_v33, 0.0  ;;  %v1767_v35 = vld [vmem:[#allocation2 + $0xd8] sm:$0xff]  ;;  %v6979_v28 = vsub.f32 %v1150_v36, %v6957_v57  ;;  %v7001_v33 = vld [vmem:[%s8599_s29 + $0x4] ss:$0 sm:$0xff] }
  0xab   :  { %1080 = vmatmul.f32.vlgmr.msra.gmra.mxu3 %v6815_v56  ;;  %1277 = vmatpush.msrb.mxu2 %v6229_v16  ;;  %v1467_v58 = vadd.f32 %v1465_v51, %v1460_v0  ;;  %v1769_v42 = vmul.f32 %v6985_v54, %v1767_v35  ;;  %v275_v0 = vld [vmem:[%s8597_s9 + $0x88] sm:$0xff]  ;;  %v8615_v51 = vld [vmem:[#allocation27_spill] sm:$0xff]  ;;  %v1780_v1 = vld [vmem:[#allocation2 + $0xda] sm:$0xff]  ;;  %v1180_v37 = vand.u32 4294901760, %v1179_v61 }
  0xac   :  { %1173 = vmatpush.msrb.mxu0 %v6291_v32  ;;  %1322 = vmatpush.msrb.mxu3 %v6291_v32  ;;  %308 = vst.msk [vmem:[#allocation3 + $0xe0] sm:$0xff] %vm84_vm0, %v275_v0 }
  0xad   :  { %1280 = vmatpush.msrb.mxu2 %v6232_v17  ;;  %1248 = vmatpush.msrb.mxu1 %v6527_v31  ;;  %v1473_v52 = vadd.f32 %v1471_v2, %v1467_v58  ;;  %v1755_v58 = vmul.f32 %v6937_v62, %v6881_v19  ;;  %v1787_v60 = vld [vmem:[#allocation2 + $0xf0] sm:$0xff] }
  0xae   :  { %1175 = vmatpush.msrb.mxu0 %v6319_v39  ;;  %1324 = vmatpush.msrb.mxu3 %v6319_v39  ;;  %v1789_v35 = vmul.f32 %v7037_v25, %v1787_v60  ;;  %v1794_v0 = vld [vmem:[#allocation3 + $0xf0] sm:$0xff] }
  0xaf   :  { %960 = vmatmul.f32.vlgmr.msra.gmra.mxu0 %v6821_v22  ;;  %1283 = vmatpush.msrb.mxu2 %v8609_v49  ;;  %v274_v22 = vld [vmem:[%s8597_s9 + $0x80] sm:$0xff]  ;;  %v1475_v50 = vadd.f32 %v6476_v55, %v1473_v52  ;;  %v1759_v55 = vmul.f32 %v6944_v21, %v6894_v40  ;;  %v342_v52 = vld [vmem:[%s8602_s3 + $0x98] sm:$0xff] }
  0xb0   :  { %1002 = vmatmul.f32.gmra.mxu1 %v854_v23  ;;  %1349 = vmatpush.msra.mxu0 %v8610_v26  ;;  %307 = vst.msk [vmem:[#allocation3 + $0xd8] sm:$0xff] %vm84_vm0, %v274_v22  ;;  %v8612_v23 = vld [vmem:[#allocation25_spill] sm:$0xff] }
  0xb1   :  { %1286 = vmatpush.msrb.mxu2 %v8611_v27  ;;  %1538 = vmatpush.msra.mxu3 %v6280_v29  ;;  %v1477_v61 = vmax.f32 %v1475_v50, 0.0  ;;  %375 = vst.msk [vmem:[#allocation2 + $0xfa] sm:$0xff] %vm84_vm0, %v342_v52  ;;  %v1768_v50 = vld [vmem:[#allocation2 + $0xe0] sm:$0xff]  ;;  %v2090_v52 = vmul.f32 %v6944_v21, %v1794_v0 }
  0xb2   :  { %1047 = vmatmul.f32.vlgmr.msra.gmra.mxu2 %v6815_v56  ;;  %1353 = vmatpush.msra.mxu0 %v8612_v23  ;;  %v6951_v56 = vld [vmem:[%s8599_s29 + $0x2] ss:$0 sm:$0xff] }
  0xb3   :  { %v1762_v59 = vmul.f32 %v6951_v56, %v1468_v18  ;;  %1084 = vmatmul.f32.gmra.mxu3 %v6830_v45  ;;  %1289 = vmatpush.msrb.mxu2 %v8613_v20  ;;  %v8614_v18 = vld [vmem:[#allocation26_spill] sm:$0xff]  ;;  %v1763_v2 = vmul.f32 %v6951_v56, %v6908_v7  ;;  %v1761_v7 = vadd.f32 %v1759_v55, %v1755_v58 }
  0xb4   :  { %1396 = vmatpush.msra.mxu1 %v6194_v3  ;;  %1544 = vmatpush.msra.mxu3 %v6283_v30  ;;  %v1770_v55 = vmul.f32 %v6985_v54, %v1768_v50 }
  0xb5   :  { %1493 = vmatpush.msra.mxu2 %v6194_v3  ;;  %1357 = vmatpush.msra.mxu0 %v8614_v18  ;;  %v1764_v63 = vadd.f32 %v1762_v59, %v1760_v6  ;;  %v1186_v59 = vand.u32 4294901760, %v6979_v28  ;;  %v8616_v6 = vld [vmem:[#allocation28_spill] sm:$0xff] }
  0xb6   :  { %1398 = vmatpush.msra.mxu1 %v6196_v4  ;;  %1550 = vmatpush.msra.mxu3 %v6300_v34 }
  0xb7   :  { %1495 = vmatpush.msra.mxu2 %v6196_v4  ;;  %965 = vmatmul.f32.gmra.mxu0 %v6843_v41  ;;  %v1479_v41 = vsel %vm84_vm0, %v1476_v53, 0  ;;  %v1774_v47 = vld [vmem:[#allocation3 + $0xd8] sm:$0xff]  ;;  %v1771_v36 = vadd.f32 %v1769_v42, %v1764_v63  ;;  %v1765_v42 = vadd.f32 %v1763_v2, %v1761_v7  ;;  %v1775_v2 = vld [vmem:[#allocation3 + $0xe0] sm:$0xff]  ;;  %v1482_v7 = vsel %vm84_vm0, %v1477_v61, 0  ;;  %v8619_v61 = vld [vmem:[#allocation36_spill] sm:$0xff] }
  0xb8   :  { %1250 = vmatmul.f32.vlgmr.msrb.gmra.mxu1 %v6898_v8  ;;  %1361 = vmatpush.msra.mxu0 %v8615_v51  ;;  %v1776_v22 = vmul.f32 %v7001_v33, %v1774_v47  ;;  %v7023_v40 = vand.u32 4294901760, %v1479_v41  ;;  %v278_v47 = vld [vmem:[%s8597_s9 + $0xa0] sm:$0xff] }
  0xb9   :  { %1497 = vmatpush.msra.mxu2 %v6198_v5  ;;  %1400 = vmatpush.msra.mxu1 %v6198_v5  ;;  %311 = vst.msk [vmem:[#allocation3 + $0x108] sm:$0xff] %vm84_vm0, %v278_v47  ;;  %v1772_v47 = vadd.f32 %v1770_v55, %v1765_v42  ;;  %v344_v55 = vld [vmem:[%s8602_s3 + $0xa8] sm:$0xff] }
  0xba   :  { %1051 = vmatmul.f32.gmra.mxu2 %v6830_v45  ;;  %1556 = vmatpush.msra.mxu3 %v6317_v38  ;;  %v1778_v53 = vadd.f32 %v1776_v22, %v1771_v36  ;;  %v7018_v45 = vld [vmem:[%s8599_s29 + $0x5] ss:$0 sm:$0xff]  ;;  %v277_v36 = vld [vmem:[%s8597_s9 + $0x98] sm:$0xff]  ;;  %v1187_v22 = vsub.f32 %v6979_v28, %v1186_v59  ;;  %v7055_v58 = vsub.f32 %v1479_v41, %v7023_v40 }
  0xbb   :  { %1328 = vmatmul.f32.vlgmr.msrb.gmra.mxu3 %v1178_v12  ;;  %1499 = vmatpush.msra.mxu2 %v6209_v9  ;;  %v1782_v19 = vmul.f32 %v7018_v45, %v1780_v1  ;;  %v343_v12 = vld [vmem:[%s8602_s3 + $0xa0] sm:$0xff]  ;;  %310 = vst.msk [vmem:[#allocation3 + $0xf8] sm:$0xff] %vm84_vm0, %v277_v36  ;;  %v8618_v1 = vld [vmem:[#allocation35_spill] sm:$0xff]  ;;  %v2086_v41 = vmul.f32 %v6937_v62, %v1787_v60 }
  0xbc   :  { %1365 = vmatpush.msra.mxu0 %v8616_v6  ;;  %1402 = vmatpush.msra.mxu1 %v6209_v9  ;;  %376 = vst.msk [vmem:[#allocation2 + $0x10a] sm:$0xff] %vm84_vm0, %v343_v12  ;;  %v1800_v12 = vld [vmem:[#allocation2 + $0xf2] sm:$0xff]  ;;  %v1188_v50 = vand.u32 4294901760, %v1187_v22 }
  0xbd   :  { %1501 = vmatpush.msra.mxu2 %v6211_v10  ;;  %1562 = vmatpush.msra.mxu3 %v6340_v44  ;;  %v1784_v63 = vadd.f32 %v1782_v19, %v1778_v53  ;;  %v7064_v53 = vld [vmem:[%s8599_s29 + $0x7] ss:$0 sm:$0xff]  ;;  %v345_v36 = vld [vmem:[%s8602_s3 + $0xb0] sm:$0xff]  ;;  %v2092_v42 = vadd.f32 %v2090_v52, %v2086_v41  ;;  %377 = vst.msk [vmem:[#allocation2 + $0x112] sm:$0xff] %vm84_vm0, %v344_v55  ;;  %v1788_v41 = vld [vmem:[#allocation2 + $0xf8] sm:$0xff] }
  0xbe   :  { %1369 = vmatpush.msra.mxu0 %v8617_v43  ;;  %1404 = vmatpush.msra.mxu1 %v6211_v10  ;;  %v1796_v19 = vmul.f32 %v7064_v53, %v1794_v0  ;;  %378 = vst.msk [vmem:[#allocation2 + $0x122] sm:$0xff] %vm84_vm0, %v345_v36  ;;  %v279_v36 = vld [vmem:[%s8597_s9 + $0xa8] sm:$0xff] }
  0xbf   :  { %1181 = vmatmul.f32.vlgmr.msrb.gmra.mxu0 %v1180_v37  ;;  %1503 = vmatpush.msra.mxu2 %v6213_v11  ;;  %v1791_v37 = vadd.f32 %v1789_v35, %v1784_v63  ;;  %v1777_v63 = vmul.f32 %v7001_v33, %v1775_v2  ;;  %v1781_v35 = vld [vmem:[#allocation2 + $0xe2] sm:$0xff]  ;;  %312 = vst.msk [vmem:[#allocation3 + $0x110] sm:$0xff] %vm84_vm0, %v279_v36 }
  0xc0   :  { %1254 = vmatmul.f32.gmra.mxu1 %v6957_v57  ;;  %1568 = vmatpush.msra.mxu3 %v6355_v48  ;;  %v1783_v60 = vmul.f32 %v7018_v45, %v1781_v35  ;;  %v7091_v35 = vand.u32 4294901760, %v1482_v7  ;;  %v7105_v55 = vld [vmem:[%s8599_s29 + $0x8] ss:$0 sm:$0xff]  ;;  %s8627_s29 = sld [smem:[#allocation44_spill]] }
  0xc1   :  { %1505 = vmatpush.msra.mxu2 %v6291_v32  ;;  %1373 = vmatpush.msra.mxu0 %v8618_v1  ;;  %v1779_v22 = vadd.f32 %v1777_v63, %v1772_v47  ;;  %v1798_v52 = vadd.f32 %v1796_v19, %v1791_v37  ;;  %v1802_v2 = vmul.f32 %v7105_v55, %v1800_v12  ;;  %v2106_v37 = vld [vmem:[#allocation3 + $0x108] sm:$0xff] }
  0xc2   :  { %1292 = vmatmul.f32.vlgmr.msrb.gmra.mxu2 %v6916_v46  ;;  %1406 = vmatpush.msra.mxu1 %v6213_v11  ;;  %v2094_v46 = vmul.f32 %v6951_v56, %v1800_v12  ;;  %v2087_v12 = vmul.f32 %v6937_v62, %v1788_v41  ;;  %v2108_v36 = vmul.f32 %v7001_v33, %v2106_v37 }
  0xc3   :  { %1334 = vmatmul.f32.gmra.mxu3 %v1186_v59  ;;  %1507 = vmatpush.msra.mxu2 %v6319_v39  ;;  %v2099_v0 = vld [vmem:[#allocation2 + $0x108] sm:$0xff]  ;;  %v280_v59 = vld [vmem:[%s8597_s9 + $0xb0] sm:$0xff]  ;;  %v1785_v19 = vadd.f32 %v1783_v60, %v1779_v22  ;;  %v7122_v60 = vsub.f32 %v1482_v7, %v7091_v35 }
  0xc4   :  { %1574 = vmatpush.msra.mxu3 %v6519_v24  ;;  %1377 = vmatpush.msra.mxu0 %v8619_v61  ;;  %v2096_v47 = vadd.f32 %v2094_v46, %v2092_v42  ;;  %v2101_v63 = vmul.f32 %v6985_v54, %v2099_v0  ;;  %313 = vst.msk [vmem:[#allocation3 + $0x120] sm:$0xff] %vm84_vm0, %v280_v59  ;;  %v8620_v42 = vand.u32 4294901760, %v7055_v58 }
  0xc5   :  { %1408 = vmatpush.msra.mxu1 %v6291_v32  ;;  %1681 = vmatpush.msrb.mxu2 %v8610_v26  ;;  %v1790_v46 = vmul.f32 %v7037_v25, %v1788_v41  ;;  %v1801_v26 = vld [vmem:[#allocation2 + $0xfa] sm:$0xff]  ;;  %v2112_v41 = vld [vmem:[#allocation2 + $0x10a] sm:$0xff] }
  0xc6   :  { %1580 = vmatpush.msra.mxu3 %v6527_v31  ;;  %1600 = vmatpush.msrb.mxu0 %v6218_v13  ;;  %v1511_v0 = vsub.f32 %v7055_v58, %v8620_v42  ;;  %v2103_v22 = vadd.f32 %v2101_v63, %v2096_v47  ;;  %v1804_v42 = vadd.f32 %v1802_v2, %v1798_v52  ;;  %v346_v47 = vld [vmem:[%s8602_s3 + $0xb8] sm:$0xff]  ;;  %v2100_v2 = vld [vmem:[#allocation2 + $0x110] sm:$0xff]  ;;  %v1518_v63 = vand.u32 4294901760, %v7122_v60 }
  0xc7   :  { %1189 = vmatmul.f32.gmra.mxu0 %v1188_v50  ;;  %1410 = vmatpush.msra.mxu1 %v6319_v39  ;;  %v1795_v50 = vld [vmem:[#allocation3 + $0xf8] sm:$0xff]  ;;  %v2095_v7 = vmul.f32 %v6951_v56, %v1801_v26  ;;  %379 = vst.msk [vmem:[#allocation2 + $0x12a] sm:$0xff] %vm84_vm0, %v346_v47 }
  0xc8   :  { %1685 = vmatpush.msrb.mxu2 %v8612_v23  ;;  %1728 = vmatpush.msrb.mxu3 %v6194_v3  ;;  %v2091_v59 = vmul.f32 %v6944_v21, %v1795_v50  ;;  %v1792_v23 = vadd.f32 %v1790_v46, %v1785_v19  ;;  %v1512_v52 = vand.u32 4294901760, %v1511_v0  ;;  %v2110_v37 = vadd.f32 %v2108_v36, %v2103_v22  ;;  %v281_v46 = vld [vmem:[%s8597_s9 + $0xb8] sm:$0xff] }
  0xc9   :  { %1412 = vmatmul.f32.vlgmr.msra.gmra.mxu1 %v6898_v8  ;;  %1603 = vmatpush.msrb.mxu0 %v6222_v14  ;;  %v2114_v19 = vmul.f32 %v7018_v45, %v2112_v41  ;;  %314 = vst.msk [vmem:[#allocation3 + $0x128] sm:$0xff] %vm84_vm0, %v281_v46  ;;  %v2102_v36 = vmul.f32 %v6985_v54, %v2100_v2  ;;  %v2107_v41 = vld [vmem:[#allocation3 + $0x110] sm:$0xff] }
  0xca   :  { %1297 = vmatmul.f32.gmra.mxu2 %v6979_v28  ;;  %1642 = vmatpush.msrb.mxu1 %v6194_v3  ;;  %v1797_v28 = vmul.f32 %v7064_v53, %v1795_v50  ;;  %v2093_v31 = vadd.f32 %v2091_v59, %v2087_v12  ;;  %v7149_v50 = vld [vmem:[%s8604_s11] ss:$0 sm:$0xff]  ;;  %v1803_v12 = vmul.f32 %v7105_v55, %v1801_v26  ;;  %s5798_s11 = sshll.u32 %s8527_s27, 4  ;;  %s5799_s11 = int_to_ptr.hbm [resolvable:$true] %s5798_s11 }
  0xcb   :  { %1582 = vmatmul.f32.vlgmr.msra.gmra.mxu3 %v7023_v40  ;;  %1689 = vmatpush.msrb.mxu2 %v8614_v18  ;;  %v1806_v0 = vadd.f32 %v7149_v50, %v1804_v42  ;;  %v7153_v59 = vld [vmem:[#allocation2 + $0x120] sm:$0xff]  ;;  %v1519_v26 = vsub.f32 %v7122_v60, %v1518_v63  ;;  %v2116_v42 = vadd.f32 %v2114_v19, %v2110_v37 }
  0xcc   :  { %1730 = vmatpush.msrb.mxu3 %v6196_v4  ;;  %1606 = vmatpush.msrb.mxu0 %v6226_v15  ;;  %v2097_v22 = vadd.f32 %v2095_v7, %v2093_v31  ;;  %v2121_v47 = vmul.f32 %v7037_v25, %v7153_v59  ;;  %v7169_v31 = vld [vmem:[#allocation3 + $0x120] sm:$0xff]  ;;  %v2109_v2 = vmul.f32 %v7001_v33, %v2107_v41 }
  0xcd   :  { %1644 = vmatpush.msrb.mxu1 %v6196_v4  ;;  %1693 = vmatpush.msrb.mxu2 %v8615_v51  ;;  %v1520_v37 = vand.u32 4294901760, %v1519_v26  ;;  %v2128_v46 = vmul.f32 %v7064_v53, %v7169_v31 }
  0xce   :  { %1732 = vmatpush.msrb.mxu3 %v6198_v5  ;;  %1609 = vmatpush.msrb.mxu0 %v6229_v16  ;;  %v2104_v7 = vadd.f32 %v2102_v36, %v2097_v22  ;;  %v2123_v19 = vadd.f32 %v2121_v47, %v2116_v42 }
  0xcf   :  { %1379 = vmatmul.f32.vlgmr.msra.gmra.mxu0 %v6898_v8  ;;  %1646 = vmatpush.msrb.mxu1 %v6198_v5  ;;  %v1799_v8 = vadd.f32 %v1797_v28, %v1792_v23  ;;  %v1808_v23 = vmax.f32 %v1806_v0, 0.0  ;;  %v7182_v0 = vld [vmem:[#allocation2 + $0x122] sm:$0xff] }
  0xd0   :  { %1697 = vmatpush.msrb.mxu2 %v8616_v6  ;;  %1734 = vmatpush.msrb.mxu3 %v6209_v9  ;;  %v2111_v22 = vadd.f32 %v2109_v2, %v2104_v7  ;;  %v2130_v41 = vadd.f32 %v2128_v46, %v2123_v19  ;;  %v2134_v26 = vmul.f32 %v7105_v55, %v7182_v0  ;;  %v7206_v7 = vld [vmem:[#allocation3 + $0x128] sm:$0xff]  ;;  %v8621_v2 = vand.u32 4294901760, %v7055_v58 }
  0xd1   :  { %1612 = vmatpush.msrb.mxu0 %v6232_v17  ;;  %1648 = vmatpush.msrb.mxu1 %v6209_v9  ;;  %v1805_v28 = vadd.f32 %v1803_v12, %v1799_v8  ;;  %v1811_v12 = vsel %vm84_vm0, %v1808_v23, 0 }
  0xd2   :  { %1513 = vmatmul.f32.vlgmr.msra.gmra.mxu2 %v1512_v52  ;;  %1736 = vmatpush.msrb.mxu3 %v6211_v10  ;;  %v2113_v52 = vld [vmem:[#allocation2 + $0x112] sm:$0xff]  ;;  %v7198_v42 = vand.u32 4294901760, %v1811_v12 }
  0xd3   :  { %1586 = vmatmul.f32.gmra.mxu3 %v7091_v35  ;;  %1701 = vmatpush.msrb.mxu2 %v8617_v43  ;;  %v1807_v8 = vadd.f32 %v7149_v50, %v1805_v28  ;;  %v2115_v36 = vmul.f32 %v7018_v45, %v2113_v52  ;;  %v2136_v52 = vadd.f32 %v2134_v26, %v2130_v41 }
  0xd4   :  { %1416 = vmatmul.f32.gmra.mxu1 %v6957_v57  ;;  %1615 = vmatpush.msrb.mxu0 %v8609_v49 }
  0xd5   :  { %1650 = vmatpush.msrb.mxu1 %v6211_v10  ;;  %1705 = vmatpush.msrb.mxu2 %v8618_v1  ;;  %v1809_v47 = vmax.f32 %v1807_v8, 0.0  ;;  %v2117_v23 = vadd.f32 %v2115_v36, %v2111_v22  ;;  %v2129_v8 = vmul.f32 %v7064_v53, %v7206_v7 }
  0xd6   :  { %1738 = vmatpush.msrb.mxu3 %v6213_v11  ;;  %1618 = vmatpush.msrb.mxu0 %v8611_v27 }
  0xd7   :  { %1383 = vmatmul.f32.gmra.mxu0 %v6957_v57  ;;  %1652 = vmatpush.msrb.mxu1 %v6213_v11  ;;  %v7191_v57 = vld [vmem:[#allocation2 + $0x128] sm:$0xff]  ;;  %v1814_v19 = vsel %vm84_vm0, %v1809_v47, 0  ;;  %v347_v47 = vld [vmem:[%s8602_s3 + $0xc0] sm:$0xff] }
  0xd8   :  { %1709 = vmatpush.msrb.mxu2 %v8619_v61  ;;  %1740 = vmatpush.msrb.mxu3 %v6291_v32  ;;  %v2122_v28 = vmul.f32 %v7037_v25, %v7191_v57  ;;  %v7231_v36 = vand.u32 4294901760, %v1814_v19  ;;  %380 = vst.msk [vmem:[#allocation2 + $0x13a] sm:$0xff] %vm84_vm0, %v347_v47 }
  0xd9   :  { %1621 = vmatpush.msrb.mxu0 %v8613_v20  ;;  %1654 = vmatpush.msrb.mxu1 %v6291_v32 }
  0xda   :  { %1521 = vmatmul.f32.gmra.mxu2 %v1520_v37  ;;  %1742 = vmatpush.msrb.mxu3 %v6319_v39  ;;  %v7214_v37 = vsub.f32 %v1811_v12, %v7198_v42  ;;  %v2124_v46 = vadd.f32 %v2122_v28, %v2117_v23  ;;  %v2138_v12 = vadd.f32 %v7149_v50, %v2136_v52 }
  0xdb   :  { %1932 = vmatpush.msra.mxu2 %v6218_v13  ;;  %1656 = vmatpush.msrb.mxu1 %v6319_v39  ;;  %v7248_v28 = vsub.f32 %v1814_v19, %v7231_v36  ;;  %v2422_v52 = vmul.f32 %v6944_v21, %v7169_v31  ;;  %v2426_v19 = vmul.f32 %v6951_v56, %v7182_v0  ;;  %v284_v0 = vld [vmem:[%s8597_s9 + $0xd0] sm:$0xff] }
  0xdc   :  { %1744 = vmatmul.f32.vlgmr.msrb.gmra.mxu3 %v7023_v40  ;;  %1825 = vmatpush.msra.mxu0 %v6194_v3  ;;  %v1842_v22 = vand.u32 4294901760, %v7214_v37  ;;  %v2131_v41 = vadd.f32 %v2129_v8, %v2124_v46  ;;  %v2140_v26 = vmax.f32 %v2138_v12, 0.0  ;;  %v282_v8 = vld [vmem:[%s8597_s9 + $0xc0] sm:$0xff]  ;;  %v349_v12 = vld [vmem:[%s8602_s3 + $0xd0] sm:$0xff]  ;;  %317 = vst.msk [vmem:[#allocation3 + $0x150] sm:$0xff] %vm84_vm0, %v284_v0 }
  0xdd   :  { %1935 = vmatpush.msra.mxu2 %v6222_v14  ;;  %1974 = vmatpush.msra.mxu3 %v6194_v3  ;;  %315 = vst.msk [vmem:[#allocation3 + $0x138] sm:$0xff] %vm84_vm0, %v282_v8  ;;  %v8623_v8 = vld [vmem:[#allocation24_spill] sm:$0xff] }
  0xde   :  { %1660 = vmatmul.f32.vlgmr.msrb.gmra.mxu1 %v8621_v2  ;;  %1827 = vmatpush.msra.mxu0 %v6196_v4  ;;  %v1843_v23 = vsub.f32 %v7214_v37, %v1842_v22  ;;  %v2418_v2 = vmul.f32 %v6937_v62, %v7153_v59  ;;  %v8565_v59 = vand.u32 4294901760, %v7248_v28  ;;  %382 = vst.msk [vmem:[#allocation2 + $0x152] sm:$0xff] %vm84_vm0, %v349_v12 }
  0xdf   :  { %1624 = vmatmul.f32.vlgmr.msrb.gmra.mxu0 %v7055_v58  ;;  %1870 = vmatpush.msra.mxu1 %v6280_v29  ;;  %v7223_v58 = vld [vmem:[#allocation2 + $0x12a] sm:$0xff] }
  0xe0   :  { %1938 = vmatpush.msra.mxu2 %v6226_v15  ;;  %1976 = vmatpush.msra.mxu3 %v6196_v4  ;;  %v2424_v31 = vadd.f32 %v2422_v52, %v2418_v2  ;;  %v1851_v47 = vsub.f32 %v7248_v28, %v8565_v59 }
  0xe1   :  { %1829 = vmatpush.msra.mxu0 %v6198_v5  ;;  %1876 = vmatpush.msra.mxu1 %v6283_v30 }
  0xe2   :  { %1711 = vmatmul.f32.vlgmr.msrb.gmra.mxu2 %v7023_v40  ;;  %1978 = vmatpush.msra.mxu3 %v6198_v5  ;;  %v2135_v40 = vmul.f32 %v7105_v55, %v7223_v58  ;;  %v1852_v0 = vand.u32 4294901760, %v1851_v47  ;;  %v350_v47 = vld [vmem:[%s8602_s3 + $0xd8] sm:$0xff] }
  0xe3   :  { %1941 = vmatpush.msra.mxu2 %v6229_v16  ;;  %1831 = vmatpush.msra.mxu0 %v6209_v9  ;;  %383 = vst.msk [vmem:[#allocation2 + $0x15a] sm:$0xff] %vm84_vm0, %v350_v47 }
  0xe4   :  { %1882 = vmatpush.msra.mxu1 %v6300_v34  ;;  %1980 = vmatpush.msra.mxu3 %v6209_v9  ;;  %v2137_v46 = vadd.f32 %v2135_v40, %v2131_v41  ;;  %v2431_v40 = vld [vmem:[#allocation2 + $0x138] sm:$0xff] }
  0xe5   :  { %1944 = vmatpush.msra.mxu2 %v6232_v17  ;;  %1748 = vmatmul.f32.gmra.mxu3 %v7091_v35  ;;  %v2433_v52 = vmul.f32 %v6985_v54, %v2431_v40  ;;  %v2451_v59 = vld [vmem:[#allocation2 + $0x150] sm:$0xff] }
  0xe6   :  { %1833 = vmatpush.msra.mxu0 %v6211_v10  ;;  %1888 = vmatpush.msra.mxu1 %v6317_v38  ;;  %v2453_v47 = vmul.f32 %v7037_v25, %v2451_v59 }
  0xe7   :  { %1629 = vmatmul.f32.gmra.mxu0 %v7122_v60  ;;  %1947 = vmatpush.msra.mxu2 %v8609_v49  ;;  %v2143_v60 = vsel %vm84_vm0, %v2140_v26, 0  ;;  %v8622_v26 = vld [vmem:[#allocation38_spill] sm:$0xff] }
  0xe8   :  { %1982 = vmatpush.msra.mxu3 %v6211_v10  ;;  %1666 = vmatmul.f32.gmra.mxu1 %v1518_v63  ;;  %v1844_v63 = vand.u32 4294901760, %v1843_v23  ;;  %v7280_v41 = vand.u32 4294901760, %v2143_v60  ;;  %v2428_v23 = vadd.f32 %v2426_v19, %v2424_v31  ;;  %v2423_v31 = vmul.f32 %v6944_v21, %v7206_v7  ;;  %v2438_v19 = vld [vmem:[#allocation3 + $0x138] sm:$0xff]  ;;  %v351_v7 = vld [vmem:[%s8602_s3 + $0xe0] sm:$0xff] }
  0xe9   :  { %1835 = vmatpush.msra.mxu0 %v6213_v11  ;;  %1894 = vmatpush.msra.mxu1 %v6340_v44  ;;  %v2440_v12 = vmul.f32 %v7001_v33, %v2438_v19  ;;  %384 = vst.msk [vmem:[#allocation2 + $0x16a] sm:$0xff] %vm84_vm0, %v351_v7 }
  0xea   :  { %1715 = vmatmul.f32.gmra.mxu2 %v7091_v35  ;;  %1984 = vmatpush.msra.mxu3 %v6213_v11  ;;  %v2139_v35 = vadd.f32 %v7149_v50, %v2137_v46  ;;  %v348_v46 = vld [vmem:[%s8602_s3 + $0xc8] sm:$0xff] }
  0xeb   :  { %1950 = vmatpush.msra.mxu2 %v8611_v27  ;;  %1837 = vmatpush.msra.mxu0 %v6291_v32  ;;  %381 = vst.msk [vmem:[#allocation2 + $0x142] sm:$0xff] %vm84_vm0, %v348_v46 }
  0xec   :  { %1900 = vmatpush.msra.mxu1 %v6355_v48  ;;  %1986 = vmatpush.msra.mxu3 %v6291_v32  ;;  %v2141_v2 = vmax.f32 %v2139_v35, 0.0  ;;  %v283_v35 = vld [vmem:[%s8597_s9 + $0xc8] sm:$0xff] }
  0xed   :  { %1953 = vmatpush.msra.mxu2 %v8613_v20  ;;  %1839 = vmatpush.msra.mxu0 %v6319_v39  ;;  %316 = vst.msk [vmem:[#allocation3 + $0x140] sm:$0xff] %vm84_vm0, %v283_v35  ;;  %v2427_v35 = vmul.f32 %v6951_v56, %v7223_v58 }
  0xee   :  { %1906 = vmatpush.msra.mxu1 %v6519_v24  ;;  %1988 = vmatpush.msra.mxu3 %v6319_v39 }
  0xef   :  { %2157 = vmatpush.msrb.mxu2 %v6194_v3  ;;  %1845 = vmatmul.f32.vlgmr.msra.gmra.mxu0 %v1844_v63  ;;  %v7301_v63 = vsub.f32 %v2143_v60, %v7280_v41  ;;  %v8624_v60 = vld [vmem:[#allocation25_spill] sm:$0xff] }
  0xf0   :  { %1912 = vmatpush.msra.mxu1 %v8622_v26  ;;  %1992 = vmatmul.f32.vlgmr.msra.gmra.mxu3 %v1842_v22  ;;  %v2419_v22 = vmul.f32 %v6937_v62, %v7191_v57  ;;  %v2146_v57 = vsel %vm84_vm0, %v2141_v2, 0  ;;  %v2444_v2 = vld [vmem:[#allocation2 + $0x13a] sm:$0xff] }
  0xf1   :  { %2013 = vmatpush.msrb.mxu0 %v8623_v8  ;;  %2159 = vmatpush.msrb.mxu2 %v6196_v4  ;;  %v8568_v40 = vand.u32 4294901760, %v7301_v63  ;;  %v7339_v58 = vand.u32 4294901760, %v2146_v57 }
  0xf2   :  { %1956 = vmatmul.f32.vlgmr.msra.gmra.mxu2 %v7214_v37  ;;  %2202 = vmatpush.msrb.mxu3 %v6280_v29  ;;  %v2435_v37 = vadd.f32 %v2433_v52, %v2428_v23  ;;  %v2425_v46 = vadd.f32 %v2423_v31, %v2419_v22  ;;  %v286_v23 = vld [vmem:[%s8597_s9 + $0xe0] sm:$0xff]  ;;  %v2446_v22 = vmul.f32 %v7018_v45, %v2444_v2  ;;  %v285_v31 = vld [vmem:[%s8597_s9 + $0xd8] sm:$0xff] }
  0xf3   :  { %1914 = vmatmul.f32.vlgmr.msra.gmra.mxu1 %v7198_v42  ;;  %2017 = vmatpush.msrb.mxu0 %v8624_v60  ;;  %319 = vst.msk [vmem:[#allocation3 + $0x168] sm:$0xff] %vm84_vm0, %v286_v23  ;;  %v2432_v19 = vld [vmem:[#allocation2 + $0x140] sm:$0xff]  ;;  %v2175_v7 = vsub.f32 %v7301_v63, %v8568_v40  ;;  %v2763_v40 = vld [vmem:[#allocation2 + $0x168] sm:$0xff] }
  0xf4   :  { %2060 = vmatpush.msrb.mxu1 %v6194_v3  ;;  %2161 = vmatpush.msrb.mxu2 %v6198_v5  ;;  %v2442_v52 = vadd.f32 %v2440_v12, %v2435_v37  ;;  %v2429_v23 = vadd.f32 %v2427_v35, %v2425_v46  ;;  %318 = vst.msk [vmem:[#allocation3 + $0x158] sm:$0xff] %vm84_vm0, %v285_v31  ;;  %v8625_v37 = vand.u32 4294901760, %v7248_v28  ;;  %v2439_v35 = vld [vmem:[#allocation3 + $0x140] sm:$0xff] }
  0xf5   :  { %2208 = vmatpush.msrb.mxu3 %v6283_v30  ;;  %2021 = vmatpush.msrb.mxu0 %v8614_v18  ;;  %v2750_v12 = vmul.f32 %v6937_v62, %v2451_v59  ;;  %v7363_v46 = vsub.f32 %v2146_v57, %v7339_v58  ;;  %v2464_v31 = vld [vmem:[#allocation2 + $0x152] sm:$0xff]  ;;  %v2176_v57 = vand.u32 4294901760, %v2175_v7  ;;  %v2441_v59 = vmul.f32 %v7001_v33, %v2439_v35 }
  0xf6   :  { %2062 = vmatpush.msrb.mxu1 %v6196_v4  ;;  %2163 = vmatpush.msrb.mxu2 %v6209_v9  ;;  %v353_v7 = vld [vmem:[%s8602_s3 + $0xf0] sm:$0xff] }
  0xf7   :  { %2214 = vmatpush.msrb.mxu3 %v6300_v34  ;;  %2025 = vmatpush.msrb.mxu0 %v8615_v51  ;;  %v2458_v34 = vld [vmem:[#allocation3 + $0x150] sm:$0xff]  ;;  %386 = vst.msk [vmem:[#allocation2 + $0x182] sm:$0xff] %vm84_vm0, %v353_v7  ;;  %v288_v35 = vld [vmem:[%s8597_s9 + $0xf0] sm:$0xff] }
  0xf8   :  { %2064 = vmatpush.msrb.mxu1 %v6198_v5  ;;  %2165 = vmatpush.msrb.mxu2 %v6211_v10  ;;  %v2754_v2 = vmul.f32 %v6944_v21, %v2458_v34  ;;  %321 = vst.msk [vmem:[#allocation3 + $0x180] sm:$0xff] %vm84_vm0, %v288_v35 }
  0xf9   :  { %2220 = vmatpush.msrb.mxu3 %v6317_v38  ;;  %1853 = vmatmul.f32.gmra.mxu0 %v1852_v0  ;;  %v2434_v0 = vmul.f32 %v6985_v54, %v2432_v19  ;;  %v2758_v19 = vmul.f32 %v6951_v56, %v2464_v31  ;;  %v2445_v38 = vld [vmem:[#allocation2 + $0x142] sm:$0xff] }
  0xfa   :  { %1961 = vmatmul.f32.gmra.mxu2 %v7248_v28  ;;  %1998 = vmatmul.f32.gmra.mxu3 %v8625_v37  ;;  %v2448_v28 = vadd.f32 %v2446_v22, %v2442_v52  ;;  %v2756_v37 = vadd.f32 %v2754_v2, %v2750_v12  ;;  %v352_v52 = vld [vmem:[%s8602_s3 + $0xe8] sm:$0xff]  ;;  %v2460_v12 = vmul.f32 %v7064_v53, %v2458_v34  ;;  %v7399_v34 = vpop.f32.mrf.mxu1 }
  0xfb   :  { %2029 = vmatpush.msrb.mxu0 %v8616_v6  ;;  %2066 = vmatpush.msrb.mxu1 %v6209_v9  ;;  %v2436_v22 = vadd.f32 %v2434_v0, %v2429_v23  ;;  %385 = vst.msk [vmem:[#allocation2 + $0x172] sm:$0xff] %vm84_vm0, %v352_v52  ;;  %v287_v2 = vld [vmem:[%s8597_s9 + $0xe8] sm:$0xff]  ;;  %v2765_v0 = vmul.f32 %v6985_v54, %v2763_v40  ;;  %v8626_v40 = vand.u32 4294901760, %v7363_v46 }
  0xfc   :  { %2167 = vmatpush.msrb.mxu2 %v6213_v11  ;;  %2226 = vmatpush.msrb.mxu3 %v6340_v44  ;;  %v2455_v23 = vadd.f32 %v2453_v47, %v2448_v28  ;;  %320 = vst.msk [vmem:[#allocation3 + $0x170] sm:$0xff] %vm84_vm0, %v287_v2  ;;  %v2760_v28 = vadd.f32 %v2758_v19, %v2756_v37  ;;  %v2770_v47 = vld [vmem:[#allocation3 + $0x168] sm:$0xff] }
  0xfd   :  { %1918 = vmatmul.f32.gmra.mxu1 %v7231_v36  ;;  %2033 = vmatpush.msrb.mxu0 %v8617_v43  ;;  %v2443_v52 = vadd.f32 %v2441_v59, %v2436_v22  ;;  %v2447_v7 = vmul.f32 %v7018_v45, %v2445_v38  ;;  %v2452_v44 = vld [vmem:[#allocation2 + $0x158] sm:$0xff]  ;;  %v2183_v2 = vsub.f32 %v7363_v46, %v8626_v40 }
  0xfe   :  { %2068 = vmatpush.msrb.mxu1 %v6211_v10  ;;  %2169 = vmatpush.msrb.mxu2 %v6291_v32  ;;  %v2462_v38 = vadd.f32 %v2460_v12, %v2455_v23  ;;  %v2466_v37 = vmul.f32 %v7105_v55, %v2464_v31  ;;  %v2465_v22 = vld [vmem:[#allocation2 + $0x15a] sm:$0xff]  ;;  %v2772_v59 = vmul.f32 %v7001_v33, %v2770_v47 }
  0xff   :  { %2232 = vmatpush.msrb.mxu3 %v6355_v48  ;;  %2037 = vmatpush.msrb.mxu0 %v8618_v1  ;;  %v2759_v40 = vmul.f32 %v6951_v56, %v2465_v22  ;;  %v2454_v23 = vmul.f32 %v7037_v25, %v2452_v44  ;;  %v2184_v31 = vand.u32 4294901760, %v2183_v2  ;;  %v354_v47 = vld [vmem:[%s8602_s3 + $0xf8] sm:$0xff] }
 0x100   :  { %2070 = vmatpush.msrb.mxu1 %v6213_v11  ;;  %2171 = vmatpush.msrb.mxu2 %v6319_v39  ;;  %v2468_v56 = vadd.f32 %v2466_v37, %v2462_v38  ;;  %387 = vst.msk [vmem:[#allocation2 + $0x18a] sm:$0xff] %vm84_vm0, %v354_v47 }
 0x101   :  { %2238 = vmatpush.msrb.mxu3 %v6519_v24  ;;  %2041 = vmatpush.msrb.mxu0 %v8619_v61  ;;  %v2459_v24 = vld [vmem:[#allocation3 + $0x158] sm:$0xff] }
 0x102   :  { %2072 = vmatpush.msrb.mxu1 %v6291_v32  ;;  %2177 = vmatmul.f32.vlgmr.msrb.gmra.mxu2 %v2176_v57  ;;  %v2751_v57 = vmul.f32 %v6937_v62, %v2452_v44  ;;  %v2755_v19 = vmul.f32 %v6944_v21, %v2459_v24  ;;  %v2767_v62 = vadd.f32 %v2765_v0, %v2760_v28  ;;  %v2764_v12 = vld [vmem:[#allocation2 + $0x170] sm:$0xff]  ;;  %v518_v28 = vpop.f32.mrf.mxu0 }
 0x103   :  { %2244 = vmatpush.msrb.mxu3 %v8622_v26  ;;  %2345 = vmatpush.msra.mxu2 %v8623_v8  ;;  %v2449_v21 = vadd.f32 %v2447_v7, %v2443_v52  ;;  %v2776_v8 = vld [vmem:[#allocation2 + $0x16a] sm:$0xff]  ;;  %v2461_v44 = vmul.f32 %v7064_v53, %v2459_v24  ;;  %v2766_v0 = vmul.f32 %v6985_v54, %v2764_v12  ;;  %v2771_v2 = vld [vmem:[#allocation3 + $0x170] sm:$0xff] }
 0x104   :  { %2043 = vmatmul.f32.vlgmr.msrb.gmra.mxu0 %v7198_v42  ;;  %2074 = vmatpush.msrb.mxu1 %v6319_v39  ;;  %v2757_v35 = vadd.f32 %v2755_v19, %v2751_v57  ;;  %v2774_v52 = vadd.f32 %v2772_v59, %v2767_v62  ;;  %v2778_v57 = vmul.f32 %v7018_v45, %v2776_v8  ;;  %v289_v19 = vld [vmem:[%s8597_s9 + $0xf8] sm:$0xff]  ;;  %v7442_v24 = vld [vmem:[%s8627_s29] ss:$0 sm:$0xff]  ;;  %v7447_v8 = vpop.f32.mrf.mxu3  ;;  %v8628_v59 = vmov 0.0  }
 0x105   :  { %2246 = vmatmul.f32.vlgmr.msrb.gmra.mxu3 %v7280_v41  ;;  %2264 = vmatpush.msra.mxu0 %v6218_v13  ;;  %v2456_v7 = vadd.f32 %v2454_v23, %v2449_v21  ;;  %v2783_v54 = vld [vmem:[#allocation2 + $0x180] sm:$0xff]  ;;  %322 = vst.msk [vmem:[#allocation3 + $0x188] sm:$0xff] %vm84_vm0, %v289_v19  ;;  %v2470_v37 = vadd.f32 %v7149_v50, %v2468_v56  ;;  %v629_v56 = vpop.f32.mrf.mxu2 }
 0x106   :  { %2349 = vmatpush.msra.mxu2 %v8624_v60  ;;  %2392 = vmatpush.msra.mxu3 %v6194_v3  ;;  %198 = vst.msk [vmem:[#allocation4 + $0x10] sm:$0xff] %vm194_vm2, %v8628_v59  ;;  %v2773_v62 = vmul.f32 %v7001_v33, %v2771_v2  ;;  %v2780_v23 = vadd.f32 %v2778_v57, %v2774_v52  ;;  %v2790_v33 = vld [vmem:[#allocation3 + $0x180] sm:$0xff] }
 0x107   :  { %2076 = vmatmul.f32.vlgmr.msrb.gmra.mxu1 %v7198_v42  ;;  %2267 = vmatpush.msra.mxu0 %v6222_v14  ;;  %v2761_v42 = vadd.f32 %v2759_v40, %v2757_v35  ;;  %218 = vst.msk [vmem:[#allocation5 + $0x10] sm:$0xff] %vm194_vm2, %v8628_v59  ;;  %v2467_v35 = vmul.f32 %v7105_v55, %v2465_v22  ;;  %v2472_v47 = vmax.f32 %v2470_v37, 0.0  ;;  %v2784_v52 = vld [vmem:[#allocation2 + $0x188] sm:$0xff] }
 0x108   :  { %2306 = vmatpush.msra.mxu1 %v6194_v3  ;;  %2353 = vmatpush.msra.mxu2 %v8614_v18  ;;  %195 = vst.msk [vmem:[#allocation4] sm:$0xff] %vm194_vm2, %v8628_v59  ;;  %v2463_v21 = vadd.f32 %v2461_v44, %v2456_v7  ;;  %v2785_v12 = vmul.f32 %v7037_v25, %v2783_v54 }
 0x109   :  { %2394 = vmatpush.msra.mxu3 %v6196_v4  ;;  %2270 = vmatpush.msra.mxu0 %v6226_v15  ;;  %v2768_v40 = vadd.f32 %v2766_v0, %v2761_v42  ;;  %v519_v22 = vadd.f32 %v7442_v24, %v518_v28  ;;  %197 = vst.msk [vmem:[#allocation4 + $0x8] sm:$0x3] %vm196_vm3, %v8628_v59  ;;  %v2475_v57 = vsel %vm84_vm0, %v2472_v47, 0 }
 0x10a   :  { %2308 = vmatpush.msra.mxu1 %v6196_v4  ;;  %2357 = vmatpush.msra.mxu2 %v8615_v51  ;;  %199 = vst.msk [vmem:[#allocation4 + $0x18] sm:$0x3] %vm196_vm3, %v8628_v59  ;;  %v2469_v0 = vadd.f32 %v2467_v35, %v2463_v21  ;;  %v2787_v28 = vadd.f32 %v2785_v12, %v2780_v23  ;;  %v7513_v23 = vand.u32 4294901760, %v2475_v57 }
 0x10b   :  { %2396 = vmatpush.msra.mxu3 %v6198_v5  ;;  %2185 = vmatmul.f32.gmra.mxu2 %v2184_v31  ;;  %v2777_v31 = vld [vmem:[#allocation2 + $0x172] sm:$0xff]  ;;  %200 = vst.msk [vmem:[#allocation4 + $0x20] sm:$0xff] %vm194_vm2, %v8628_v59  ;;  %v2775_v44 = vadd.f32 %v2773_v62, %v2768_v40  ;;  %v588_v7 = vadd.f32 %v7399_v34, %v519_v22 }
 0x10c   :  { %2273 = vmatpush.msra.mxu0 %v6229_v16  ;;  %2310 = vmatpush.msra.mxu1 %v6198_v5  ;;  %v7449_v38 = vpop.f32.mrf.mxu1  ;;  %v2779_v42 = vmul.f32 %v7018_v45, %v2777_v31  ;;  %201 = vst.msk [vmem:[#allocation4 + $0x28] sm:$0x3] %vm196_vm3, %v8628_v59  ;;  %v2796_v45 = vld [vmem:[#allocation2 + $0x182] sm:$0xff]  ;;  %v2786_v54 = vmul.f32 %v7037_v25, %v2784_v52  ;;  %v2791_v21 = vld [vmem:[#allocation3 + $0x188] sm:$0xff] }
 0x10d   :  { %2361 = vmatpush.msra.mxu2 %v8616_v6  ;;  %2398 = vmatpush.msra.mxu3 %v6209_v9  ;;  %202 = vst.msk [vmem:[#allocation4 + $0x30] sm:$0xff] %vm194_vm2, %v8628_v59  ;;  %v2471_v35 = vadd.f32 %v7149_v50, %v2469_v0  ;;  %v2798_v62 = vmul.f32 %v7105_v55, %v2796_v45 }
 0x10e   :  { %2047 = vmatmul.f32.gmra.mxu0 %v7231_v36  ;;  %2250 = vmatmul.f32.gmra.mxu3 %v7339_v58  ;;  %203 = vst.msk [vmem:[#allocation4 + $0x38] sm:$0x3] %vm196_vm3, %v8628_v59  ;;  %v2781_v34 = vadd.f32 %v2779_v42, %v2775_v44  ;;  %v630_v25 = vadd.f32 %v629_v56, %v588_v7  ;;  %v2797_v56 = vld [vmem:[#allocation2 + $0x18a] sm:$0xff] }
 0x10f   :  { %2276 = vmatpush.msra.mxu0 %v6232_v17  ;;  %2312 = vmatpush.msra.mxu1 %v6209_v9  ;;  %204 = vst.msk [vmem:[#allocation4 + $0x40] sm:$0xff] %vm194_vm2, %v8628_v59  ;;  %v2793_v31 = vmul.f32 %v7064_v53, %v2791_v21  ;;  %v2473_v22 = vmax.f32 %v2471_v35, 0.0  ;;  %v7535_v42 = vsub.f32 %v2475_v57, %v7513_v23  ;;  %v8630_v57 = vld [vmem:[#allocation30_spill] sm:$0xff] }
 0x110   :  { %2365 = vmatpush.msra.mxu2 %v8617_v43  ;;  %2400 = vmatpush.msra.mxu3 %v6211_v10  ;;  %205 = vst.msk [vmem:[#allocation4 + $0x48] sm:$0x3] %vm196_vm3, %v8628_v59  ;;  %v2788_v12 = vadd.f32 %v2786_v54, %v2781_v34  ;;  %v666_v47 = vadd.f32 %v7447_v8, %v630_v25 }
 0x111   :  { %2080 = vmatmul.f32.gmra.mxu1 %v7231_v36  ;;  %2279 = vmatpush.msra.mxu0 %v8609_v49  ;;  %v2792_v36 = vmul.f32 %v7064_v53, %v2790_v33  ;;  %206 = vst.msk [vmem:[#allocation4 + $0x50] sm:$0xff] %vm194_vm2, %v8628_v59  ;;  %v2478_v52 = vsel %vm84_vm0, %v2473_v22, 0  ;;  %v2506_v34 = vand.u32 4294901760, %v7535_v42 }
 0x112   :  { %2314 = vmatpush.msra.mxu1 %v6211_v10  ;;  %2369 = vmatpush.msra.mxu2 %v8618_v1  ;;  %207 = vst.msk [vmem:[#allocation4 + $0x58] sm:$0x3] %vm196_vm3, %v8628_v59  ;;  %v2795_v0 = vadd.f32 %v2793_v31, %v2788_v12  ;;  %v7564_v35 = vand.u32 4294901760, %v2478_v52  ;;  %v8632_v12 = vand.u32 4294901760, %v7363_v46 }
 0x113   :  { %2402 = vmatpush.msra.mxu3 %v6213_v11  ;;  %2282 = vmatpush.msra.mxu0 %v8611_v27  ;;  %v2794_v40 = vadd.f32 %v2792_v36, %v2787_v28  ;;  %208 = vst.msk [vmem:[#allocation4 + $0x60] sm:$0xff] %vm194_vm2, %v8628_v59  ;;  %v2799_v28 = vmul.f32 %v7105_v55, %v2797_v56 }
 0x114   :  { %2316 = vmatpush.msra.mxu1 %v6213_v11  ;;  %2373 = vmatpush.msra.mxu2 %v8619_v61  ;;  %v526_v2 = vpop.f32.mrf.mxu0  ;;  %v749_v19 = vpop.f32.mrf.mxu1  ;;  %209 = vst.msk [vmem:[#allocation4 + $0x68] sm:$0x3] %vm196_vm3, %v8628_v59  ;;  %v2507_v21 = vsub.f32 %v7535_v42, %v2506_v34  ;;  %v7581_v31 = vsub.f32 %v2478_v52, %v7564_v35 }
 0x115   :  { %2404 = vmatpush.msra.mxu3 %v6291_v32  ;;  %2285 = vmatpush.msra.mxu0 %v8613_v20  ;;  %v2800_v33 = vadd.f32 %v2798_v62, %v2794_v40  ;;  %v634_v44 = vpop.f32.mrf.mxu2  ;;  %210 = vst.msk [vmem:[#allocation4 + $0x70] sm:$0xff] %vm194_vm2, %v8628_v59  ;;  %v527_v55 = vadd.f32 %v7442_v24, %v526_v2 }
 0x116   :  { %2318 = vmatpush.msra.mxu1 %v6291_v32  ;;  %2375 = vmatmul.f32.vlgmr.msra.gmra.mxu2 %v7280_v41  ;;  %v7501_v37 = vpop.f32.mrf.mxu3  ;;  %211 = vst.msk [vmem:[#allocation4 + $0x78] sm:$0x3] %vm196_vm3, %v8628_v59  ;;  %v2801_v40 = vadd.f32 %v2799_v28, %v2795_v0 }
 0x117   :  { %2406 = vmatpush.msra.mxu3 %v6319_v39  ;;  %2596 = vmatpush.msrb.mxu2 %v6218_v13  ;;  %212 = vst.msk [vmem:[#allocation4 + $0x80] sm:$0xff] %vm194_vm2, %v8628_v59  ;;  %v2802_v7 = vadd.f32 %v7149_v50, %v2800_v33  ;;  %v592_v62 = vadd.f32 %v7449_v38, %v527_v55  ;;  %v8633_v33 = vld [vmem:[#allocation32_spill] sm:$0xff] }
 0x118   :  { %2288 = vmatmul.f32.vlgmr.msra.gmra.mxu0 %v7301_v63  ;;  %2320 = vmatpush.msra.mxu1 %v6319_v39  ;;  %213 = vst.msk [vmem:[#allocation4 + $0x88] sm:$0x3] %vm196_vm3, %v8628_v59  ;;  %v2803_v22 = vadd.f32 %v7149_v50, %v2801_v40  ;;  %v2508_v50 = vand.u32 4294901760, %v2507_v21  ;;  %v8635_v40 = vld [vmem:[#allocation24_spill] sm:$0xff] }
 0x119   :  { %2408 = vmatmul.f32.vlgmr.msra.gmra.mxu3 %v7280_v41  ;;  %2489 = vmatpush.msrb.mxu0 %v6194_v3  ;;  %v8629_v41 = vand.u32 4294901760, %v7301_v63  ;;  %216 = vst.msk [vmem:[#allocation5] sm:$0xff] %vm194_vm2, %v8628_v59  ;;  %v2804_v2 = vmax.f32 %v2802_v7, 0.0 }
 0x11a   :  { %2599 = vmatpush.msrb.mxu2 %v6222_v14  ;;  %2638 = vmatpush.msrb.mxu3 %v6194_v3  ;;  %220 = vst.msk [vmem:[#allocation5 + $0x20] sm:$0xff] %vm194_vm2, %v8628_v59  ;;  %v2805_v0 = vmax.f32 %v2803_v22, 0.0 }
 0x11b   :  { %2324 = vmatmul.f32.vlgmr.msra.gmra.mxu1 %v8629_v41  ;;  %2491 = vmatpush.msrb.mxu0 %v6196_v4  ;;  %222 = vst.msk [vmem:[#allocation5 + $0x30] sm:$0xff] %vm194_vm2, %v8628_v59  ;;  %v635_v41 = vadd.f32 %v634_v44, %v592_v62  ;;  %v8634_v44 = vld [vmem:[#allocation37_spill] sm:$0xff] }
 0x11c   :  { %2534 = vmatpush.msrb.mxu1 %v6280_v29  ;;  %2602 = vmatpush.msrb.mxu2 %v6226_v15  ;;  %v716_v53 = vpop.f32.mrf.mxu0  ;;  %v7543_v8 = vpop.f32.mrf.mxu1  ;;  %224 = vst.msk [vmem:[#allocation5 + $0x40] sm:$0xff] %vm194_vm2, %v8628_v59  ;;  %v2810_v21 = vsel %vm84_vm0, %v2805_v0, 0 }
 0x11d   :  { %2640 = vmatpush.msrb.mxu3 %v6196_v4  ;;  %2493 = vmatpush.msrb.mxu0 %v6198_v5  ;;  %v717_v63 = vadd.f32 %v716_v53, %v666_v47  ;;  %v2514_v53 = vand.u32 4294901760, %v7581_v31  ;;  %v672_v55 = vadd.f32 %v7501_v37, %v635_v41  ;;  %226 = vst.msk [vmem:[#allocation5 + $0x50] sm:$0xff] %vm194_vm2, %v8628_v59 }
 0x11e   :  { %2540 = vmatpush.msrb.mxu1 %v6283_v30  ;;  %2605 = vmatpush.msrb.mxu2 %v6229_v16  ;;  %v7550_v36 = vpop.f32.mrf.mxu3  ;;  %228 = vst.msk [vmem:[#allocation5 + $0x60] sm:$0xff] %vm194_vm2, %v8628_v59 }
 0x11f   :  { %2642 = vmatpush.msrb.mxu3 %v6198_v5  ;;  %2379 = vmatmul.f32.gmra.mxu2 %v7339_v58  ;;  %v750_v45 = vadd.f32 %v749_v19, %v717_v63  ;;  %v8631_v19 = vld [vmem:[#allocation31_spill] sm:$0xff]  ;;  %230 = vst.msk [vmem:[#allocation5 + $0x70] sm:$0xff] %vm194_vm2, %v8628_v59 }
 0x120   :  { %2495 = vmatpush.msrb.mxu0 %v6209_v9  ;;  %2546 = vmatpush.msrb.mxu1 %v8630_v57  ;;  %232 = vst.msk [vmem:[#allocation5 + $0x80] sm:$0xff] %vm194_vm2, %v8628_v59 }
 0x121   :  { %2608 = vmatpush.msrb.mxu2 %v6232_v17  ;;  %2644 = vmatpush.msrb.mxu3 %v6209_v9  ;;  %v756_v54 = vmax.f32 %v750_v45, 0.0  ;;  %238 = vst.msk [vmem:[#allocation6 + $0x8] sm:$0x3f] %vm236_vm5, %v8628_v59 }
 0x122   :  { %2293 = vmatmul.f32.gmra.mxu0 %v7363_v46  ;;  %2412 = vmatmul.f32.gmra.mxu3 %v7339_v58  ;;  %v2807_v46 = vsel %vm84_vm0, %v2804_v2, 0  ;;  %244 = vst.msk [vmem:[#allocation7 + $0x8] sm:$0x3f] %vm236_vm5, %v8628_v59 }
 0x123   :  { %2497 = vmatpush.msrb.mxu0 %v6211_v10  ;;  %2552 = vmatpush.msrb.mxu1 %v8631_v19  ;;  %3082 = vst.msk [vmem:[#allocation10] sm:$0xff] %vm194_vm2, %v756_v54  ;;  %v7603_v63 = vand.u32 4294901760, %v2807_v46 }
 0x124   :  { %2611 = vmatpush.msrb.mxu2 %v8609_v49  ;;  %2646 = vmatpush.msrb.mxu3 %v6211_v10  ;;  %v720_v25 = vpop.f32.mrf.mxu0  ;;  %v7583_v38 = vpop.f32.mrf.mxu1  ;;  %237 = vst.msk [vmem:[#allocation6] sm:$0x3f] %vm236_vm5, %v8628_v59 }
 0x125   :  { %2330 = vmatmul.f32.gmra.mxu1 %v8632_v12  ;;  %2499 = vmatpush.msrb.mxu0 %v6213_v11  ;;  %v850_v58 = vpop.f32.mrf.mxu2  ;;  %v7617_v62 = vsub.f32 %v2807_v46, %v7603_v63  ;;  %239 = vst.msk [vmem:[#allocation6 + $0x10] sm:$0x3f] %vm236_vm5, %v8628_v59 }
 0x126   :  { %2558 = vmatpush.msrb.mxu1 %v8633_v33  ;;  %2614 = vmatpush.msrb.mxu2 %v8611_v27  ;;  %v7588_v56 = vpop.f32.mrf.mxu3  ;;  %v851_v47 = vadd.f32 %v7442_v24, %v850_v58  ;;  %240 = vst.msk [vmem:[#allocation6 + $0x18] sm:$0x3f] %vm236_vm5, %v8628_v59 }
 0x127   :  { %2648 = vmatpush.msrb.mxu3 %v6213_v11  ;;  %2501 = vmatpush.msrb.mxu0 %v6291_v32  ;;  %v2838_v22 = vand.u32 4294901760, %v7617_v62  ;;  %241 = vst.msk [vmem:[#allocation6 + $0x20] sm:$0x3f] %vm236_vm5, %v8628_v59 }
 0x128   :  { %2564 = vmatpush.msrb.mxu1 %v6355_v48  ;;  %2617 = vmatpush.msrb.mxu2 %v8613_v20  ;;  %v920_v54 = vadd.f32 %v7550_v36, %v851_v47  ;;  %v721_v36 = vadd.f32 %v720_v25, %v672_v55  ;;  %v7633_v25 = vand.u32 4294901760, %v2810_v21  ;;  %243 = vst.msk [vmem:[#allocation7] sm:$0x3f] %vm236_vm5, %v8628_v59 }
 0x129   :  { %2650 = vmatpush.msrb.mxu3 %v6291_v32  ;;  %2503 = vmatpush.msrb.mxu0 %v6319_v39  ;;  %245 = vst.msk [vmem:[#allocation7 + $0x10] sm:$0x3f] %vm236_vm5, %v8628_v59 }
 0x12a   :  { %2570 = vmatpush.msrb.mxu1 %v8634_v44  ;;  %2620 = vmatmul.f32.vlgmr.msrb.gmra.mxu2 %v7535_v42  ;;  %v3105_v28 = vld [vmem:[#allocation10] sm:$0x3]  ;;  %v3122_v52 = vld [vmem:[#allocation10 + $0x2] sm:$0x3]  ;;  %v3139_v7 = vld [vmem:[#allocation10 + $0x4] sm:$0x3]  ;;  %v754_v46 = vadd.f32 %v7543_v8, %v721_v36  ;;  %v7652_v0 = vsub.f32 %v2810_v21, %v7633_v25  ;;  %v2839_v8 = vsub.f32 %v7617_v62, %v2838_v22 }
 0x12b   :  { %2652 = vmatpush.msrb.mxu3 %v6319_v39  ;;  %2821 = vmatpush.msra.mxu2 %v6194_v3  ;;  %3114 = vst.msk [vmem:[#allocation5 + $0x10] sm:$0x3] %vm196_vm3, %v3105_v28  ;;  %v3155_v45 = vld [vmem:[#allocation10 + $0x6] sm:$0x3]  ;;  %v7696_v36 = vld [vmem:[%s8636_s2] ss:$0 sm:$0xff] }
 0x12c   :  { %3131 = vst.msk [vmem:[#allocation4 + $0x12] sm:$0x3] %vm196_vm3, %v3122_v52  ;;  %2509 = vmatmul.f32.vlgmr.msrb.gmra.mxu0 %v2508_v50  ;;  %2576 = vmatpush.msrb.mxu1 %v8622_v26  ;;  %v961_v42 = vpop.f32.mrf.mxu0  ;;  %v757_v28 = vmax.f32 %v754_v46, 0.0 }
 0x12d   :  { %3147 = vst.msk [vmem:[#allocation5 + $0x12] sm:$0x3] %vm196_vm3, %v3139_v7  ;;  %2656 = vmatmul.f32.vlgmr.msrb.gmra.mxu3 %v2506_v34  ;;  %2677 = vmatpush.msra.mxu0 %v8635_v40  ;;  %v858_v2 = vpop.f32.mrf.mxu2  ;;  %v1003_v37 = vpop.f32.mrf.mxu1  ;;  %v2515_v34 = vsub.f32 %v7581_v31, %v2514_v53  ;;  %v962_v12 = vadd.f32 %v961_v42, %v920_v54 }
 0x12e   :  { %3163 = vst.msk [vmem:[#allocation4 + $0x14] sm:$0x3] %vm196_vm3, %v3155_v45  ;;  %2823 = vmatpush.msra.mxu2 %v6196_v4  ;;  %2866 = vmatpush.msra.mxu3 %v6280_v29  ;;  %v1081_v58 = vpop.f32.mrf.mxu3  ;;  %v859_v29 = vadd.f32 %v7442_v24, %v858_v2  ;;  %v2846_v45 = vand.u32 4294901760, %v7652_v0 }
 0x12f   :  { %2578 = vmatmul.f32.vlgmr.msrb.gmra.mxu1 %v7513_v23  ;;  %2681 = vmatpush.msra.mxu0 %v8624_v60  ;;  %v2516_v41 = vand.u32 4294901760, %v2515_v34  ;;  %v998_v50 = vadd.f32 %v7583_v38, %v962_v12  ;;  %3083 = vst.msk [vmem:[#allocation10 + $0x8] sm:$0xff] %vm194_vm2, %v757_v28 }
 0x130   :  { %2724 = vmatpush.msra.mxu1 %v6194_v3  ;;  %2825 = vmatpush.msra.mxu2 %v6198_v5  ;;  %246 = vst.msk [vmem:[#allocation7 + $0x18] sm:$0x3f] %vm236_vm5, %v8628_v59 }
 0x131   :  { %2872 = vmatpush.msra.mxu3 %v6283_v30  ;;  %2685 = vmatpush.msra.mxu0 %v8614_v18  ;;  %v924_v30 = vadd.f32 %v7588_v56, %v859_v29  ;;  %v7706_v29 = vld [vmem:[%s8636_s2 + $0x1] ss:$0 sm:$0xff]  ;;  %247 = vst.msk [vmem:[#allocation7 + $0x20] sm:$0x3f] %vm236_vm5, %v8628_v59 }
 0x132   :  { %2726 = vmatpush.msra.mxu1 %v6196_v4  ;;  %2827 = vmatpush.msra.mxu2 %v6209_v9  ;;  %250 = vst.msk [vmem:[#allocation8] sm:$0xf] %vm249_vm6, %v8628_v59 }
 0x133   :  { %2878 = vmatpush.msra.mxu3 %v8630_v57  ;;  %2625 = vmatmul.f32.gmra.mxu2 %v7581_v31  ;;  %v2840_v31 = vand.u32 4294901760, %v2839_v8  ;;  %v7717_v8 = vld [vmem:[%s8636_s2 + $0x2] ss:$0 sm:$0xff]  ;;  %251 = vst.msk [vmem:[#allocation8 + $0x4] sm:$0xf] %vm249_vm6, %v8628_v59 }
 0x134   :  { %2689 = vmatpush.msra.mxu0 %v8615_v51  ;;  %2728 = vmatpush.msra.mxu1 %v6198_v5  ;;  %v966_v47 = vpop.f32.mrf.mxu0  ;;  %254 = vst.msk [vmem:[#allocation9] sm:$0xf] %vm249_vm6, %v8628_v59 }
 0x135   :  { %2829 = vmatpush.msra.mxu2 %v6211_v10  ;;  %2884 = vmatpush.msra.mxu3 %v8631_v19  ;;  %v1048_v57 = vpop.f32.mrf.mxu2  ;;  %v1251_v38 = vpop.f32.mrf.mxu1  ;;  %v967_v52 = vadd.f32 %v966_v47, %v924_v30  ;;  %255 = vst.msk [vmem:[#allocation9 + $0x4] sm:$0xf] %vm249_vm6, %v8628_v59 }
 0x136   :  { %2517 = vmatmul.f32.gmra.mxu0 %v2516_v41  ;;  %2662 = vmatmul.f32.gmra.mxu3 %v2514_v53  ;;  %v1049_v56 = vadd.f32 %v1048_v57, %v998_v50  ;;  %v1085_v7 = vpop.f32.mrf.mxu3  ;;  %v3171_v34 = vld [vmem:[#allocation10 + $0x8] sm:$0x3]  ;;  %v3187_v12 = vld [vmem:[#allocation10 + $0xa] sm:$0x3]  ;;  %v3248_v41 = vld [vmem:[#allocation4] sm:$0xff] }
 0x137   :  { %2693 = vmatpush.msra.mxu0 %v8616_v6  ;;  %2730 = vmatpush.msra.mxu1 %v6209_v9  ;;  %v1004_v55 = vadd.f32 %v1003_v37, %v967_v52  ;;  %3179 = vst.msk [vmem:[#allocation5 + $0x14] sm:$0x3] %vm196_vm3, %v3171_v34  ;;  %v3252_v50 = vld [vmem:[#allocation5] sm:$0xff]  ;;  %v3250_v28 = vmul.f32 %v7696_v36, %v3248_v41 }
 0x138   :  { %2831 = vmatpush.msra.mxu2 %v6213_v11  ;;  %2890 = vmatpush.msra.mxu3 %v8633_v33  ;;  %v1082_v19 = vadd.f32 %v1081_v58, %v1049_v56  ;;  %v2847_v33 = vsub.f32 %v7652_v0, %v2846_v45  ;;  %v3203_v58 = vld [vmem:[#allocation10 + $0xc] sm:$0x3]  ;;  %3195 = vst.msk [vmem:[#allocation4 + $0x16] sm:$0x3] %vm196_vm3, %v3187_v12  ;;  %v7794_v12 = vld [vmem:[%s8636_s2 + $0x4] ss:$0 sm:$0xff] }
 0x139   :  { %2582 = vmatmul.f32.gmra.mxu1 %v7564_v35  ;;  %2697 = vmatpush.msra.mxu0 %v8617_v43  ;;  %3211 = vst.msk [vmem:[#allocation5 + $0x16] sm:$0x3] %vm196_vm3, %v3203_v58  ;;  %v3254_v56 = vmul.f32 %v7706_v29, %v3252_v50 }
 0x13a   :  { %2732 = vmatpush.msra.mxu1 %v6211_v10  ;;  %2833 = vmatpush.msra.mxu2 %v6291_v32  ;;  %v1088_v53 = vmax.f32 %v1082_v19, 0.0  ;;  %v3256_v19 = vld [vmem:[#allocation4 + $0x2] sm:$0xff]  ;;  %252 = vst.msk [vmem:[#allocation8 + $0x8] sm:$0xf] %vm249_vm6, %v8628_v59 }
 0x13b   :  { %2896 = vmatpush.msra.mxu3 %v6355_v48  ;;  %2701 = vmatpush.msra.mxu0 %v8618_v1  ;;  %256 = vst.msk [vmem:[#allocation9 + $0x8] sm:$0xf] %vm249_vm6, %v8628_v59 }
 0x13c   :  { %2734 = vmatpush.msra.mxu1 %v6213_v11  ;;  %2835 = vmatpush.msra.mxu2 %v6319_v39  ;;  %3085 = vst.msk [vmem:[#allocation10 + $0x10] sm:$0xff] %vm194_vm2, %v1088_v53  ;;  %v1182_v54 = vpop.f32.mrf.mxu0 }
 0x13d   :  { %2902 = vmatpush.msra.mxu3 %v8634_v44  ;;  %2705 = vmatpush.msra.mxu0 %v8619_v61  ;;  %v1052_v42 = vpop.f32.mrf.mxu2  ;;  %v7686_v21 = vpop.f32.mrf.mxu1  ;;  %v1183_v37 = vadd.f32 %v7442_v24, %v1182_v54  ;;  %v2848_v44 = vand.u32 4294901760, %v2847_v33 }
 0x13e   :  { %2736 = vmatpush.msra.mxu1 %v6291_v32  ;;  %2841 = vmatmul.f32.vlgmr.msra.gmra.mxu2 %v2840_v31  ;;  %v1053_v48 = vadd.f32 %v1052_v42, %v1004_v55  ;;  %v7684_v2 = vpop.f32.mrf.mxu3  ;;  %v7769_v42 = vld [vmem:[%s8636_s2 + $0x3] ss:$0 sm:$0xff] }
 0x13f   :  { %2908 = vmatpush.msra.mxu3 %v8622_v26  ;;  %3009 = vmatpush.msrb.mxu2 %v8635_v40  ;;  %v3219_v40 = vld [vmem:[#allocation10 + $0xe] sm:$0x3]  ;;  %v1252_v46 = vadd.f32 %v1251_v38, %v1183_v37 }
 0x140   :  { %2707 = vmatmul.f32.vlgmr.msra.gmra.mxu0 %v7513_v23  ;;  %2738 = vmatpush.msra.mxu1 %v6319_v39  ;;  %v1086_v26 = vadd.f32 %v1085_v7, %v1053_v48  ;;  %3227 = vst.msk [vmem:[#allocation4 + $0x18] sm:$0x3] %vm196_vm3, %v3219_v40 }
 0x141   :  { %2910 = vmatmul.f32.vlgmr.msra.gmra.mxu3 %v7603_v63  ;;  %2928 = vmatpush.msrb.mxu0 %v6218_v13 }
 0x142   :  { %3013 = vmatpush.msrb.mxu2 %v8624_v60  ;;  %3056 = vmatpush.msrb.mxu3 %v6194_v3 }
 0x143   :  { %2740 = vmatmul.f32.vlgmr.msra.gmra.mxu1 %v7513_v23  ;;  %2931 = vmatpush.msrb.mxu0 %v6222_v14  ;;  %v3106_v13 = vld [vmem:[#allocation10 + $0x10] sm:$0x3]  ;;  %v3123_v60 = vld [vmem:[#allocation10 + $0x12] sm:$0x3]  ;;  %v3140_v30 = vld [vmem:[#allocation10 + $0x14] sm:$0x3] }
 0x144   :  { %2970 = vmatpush.msrb.mxu1 %v6194_v3  ;;  %3017 = vmatpush.msrb.mxu2 %v8614_v18  ;;  %v1190_v47 = vpop.f32.mrf.mxu0  ;;  %v1089_v14 = vmax.f32 %v1086_v26, 0.0  ;;  %v3246_v3 = vld [vmem:[%s8637_s28 + $0x8] sm:$0x3]  ;;  %3115 = vst.msk [vmem:[#allocation5 + $0x20] sm:$0x3] %vm196_vm3, %v3106_v13 }
 0x145   :  { %3058 = vmatpush.msrb.mxu3 %v6196_v4  ;;  %2934 = vmatpush.msrb.mxu0 %v6226_v15  ;;  %v1293_v23 = vpop.f32.mrf.mxu2  ;;  %v3156_v18 = vld [vmem:[#allocation10 + $0x16] sm:$0x3]  ;;  %v3299_v38 = vsel %vm3297_vm4, %v3246_v3, 0  ;;  %v3245_v15 = vld [vmem:[%s8637_s28] sm:$0xff]  ;;  %3132 = vst.msk [vmem:[#allocation4 + $0x22] sm:$0x3] %vm196_vm3, %v3123_v60 }
 0x146   :  { %2972 = vmatpush.msrb.mxu1 %v6196_v4  ;;  %3021 = vmatpush.msrb.mxu2 %v8615_v51  ;;  %v7728_v57 = vpop.f32.mrf.mxu3  ;;  %v1294_v4 = vadd.f32 %v1293_v23, %v1252_v46  ;;  %v1191_v51 = vadd.f32 %v7442_v24, %v1190_v47  ;;  %v7739_v52 = vand.u32 4294901760, %v3299_v38  ;;  %v7741_v7 = vand.u32 4294901760, %v3245_v15  ;;  %3148 = vst.msk [vmem:[#allocation5 + $0x22] sm:$0x3] %vm196_vm3, %v3140_v30  ;;  %v1413_v31 = vpop.f32.mrf.mxu1 }
 0x147   :  { %3060 = vmatpush.msrb.mxu3 %v6198_v5  ;;  %2849 = vmatmul.f32.gmra.mxu2 %v2848_v44  ;;  %3164 = vst.msk [vmem:[#allocation4 + $0x24] sm:$0x3] %vm196_vm3, %v3156_v18  ;;  %v3268_v47 = vld [vmem:[#allocation4 + $0x12] sm:$0xff] }
 0x148   :  { %2937 = vmatpush.msrb.mxu0 %v6229_v16  ;;  %2974 = vmatpush.msrb.mxu1 %v6198_v5  ;;  %v7750_v53 = vsub.f32 %v3299_v38, %v7739_v52  ;;  %v7753_v55 = vsub.f32 %v3245_v15, %v7741_v7  ;;  %3086 = vst.msk [vmem:[#allocation10 + $0x18] sm:$0xff] %vm194_vm2, %v1089_v14  ;;  %v7830_v14 = vld [vmem:[%s8636_s2 + $0x6] ss:$0 sm:$0xff] }
 0x149   :  { %3025 = vmatpush.msrb.mxu2 %v8616_v6  ;;  %3062 = vmatpush.msrb.mxu3 %v6209_v9  ;;  %v3255_v5 = vadd.f32 %v3254_v56, %v3250_v28  ;;  %v3258_v16 = vmul.f32 %v7717_v8, %v3256_v19  ;;  %v1330_v6 = vadd.f32 %v7684_v2, %v1294_v4  ;;  %v7858_v4 = vld [vmem:[%s8636_s2 + $0x8] ss:$0 sm:$0xff] }
 0x14a   :  { %2711 = vmatmul.f32.gmra.mxu0 %v7564_v35  ;;  %2914 = vmatmul.f32.gmra.mxu3 %v7633_v25  ;;  %v1256_v33 = vadd.f32 %v7686_v21, %v1191_v51  ;;  %v7764_v54 = vand.u32 4294901760, %v7750_v53 }
 0x14b   :  { %2940 = vmatpush.msrb.mxu0 %v6232_v17  ;;  %2976 = vmatpush.msrb.mxu1 %v6209_v9  ;;  %v7774_v17 = vand.u32 4294901760, %v7753_v55  ;;  %v3260_v9 = vld [vmem:[#allocation4 + $0x10] sm:$0xff]  ;;  %v3259_v44 = vadd.f32 %v3258_v16, %v3255_v5 }
 0x14c   :  { %3029 = vmatpush.msrb.mxu2 %v8617_v43  ;;  %3064 = vmatpush.msrb.mxu3 %v6211_v10  ;;  %v1380_v48 = vpop.f32.mrf.mxu0  ;;  %v3345_v43 = vsub.f32 %v7750_v53, %v7764_v54 }
 0x14d   :  { %2744 = vmatmul.f32.gmra.mxu1 %v7564_v35  ;;  %2943 = vmatpush.msrb.mxu0 %v8609_v49  ;;  %v1298_v2 = vpop.f32.mrf.mxu2  ;;  %v1381_v21 = vadd.f32 %v1380_v48, %v1330_v6  ;;  %v3262_v49 = vmul.f32 %v7769_v42, %v3260_v9 }
 0x14e   :  { %2978 = vmatpush.msrb.mxu1 %v6211_v10  ;;  %3033 = vmatpush.msrb.mxu2 %v8618_v1  ;;  %v7780_v37 = vpop.f32.mrf.mxu3  ;;  %v1299_v34 = vadd.f32 %v1298_v2, %v1256_v33  ;;  %v3351_v10 = vsub.f32 %v7753_v55, %v7774_v17  ;;  %v3264_v1 = vld [vmem:[#allocation5 + $0x10] sm:$0xff]  ;;  %v7801_v13 = vand.u32 4294901760, %v3345_v43 }
 0x14f   :  { %3066 = vmatpush.msrb.mxu3 %v6213_v11  ;;  %2946 = vmatpush.msrb.mxu0 %v8611_v27  ;;  %v1414_v35 = vadd.f32 %v1413_v31, %v1381_v21  ;;  %v3172_v58 = vld [vmem:[#allocation10 + $0x18] sm:$0x3]  ;;  %v3188_v26 = vld [vmem:[#allocation10 + $0x1a] sm:$0x3]  ;;  %v3204_v27 = vld [vmem:[#allocation10 + $0x1c] sm:$0x3]  ;;  %v3266_v30 = vmul.f32 %v7794_v12, %v3264_v1 }
 0x150   :  { %2980 = vmatpush.msrb.mxu1 %v6213_v11  ;;  %3037 = vmatpush.msrb.mxu2 %v8619_v61  ;;  %3180 = vst.msk [vmem:[#allocation5 + $0x24] sm:$0x3] %vm196_vm3, %v3172_v58  ;;  %v3220_v11 = vld [vmem:[#allocation10 + $0x1e] sm:$0x3]  ;;  %v1336_v46 = vadd.f32 %v7728_v57, %v1299_v34  ;;  %v7810_v41 = vand.u32 4294901760, %v3351_v10 }
 0x151   :  { %3068 = vmatpush.msrb.mxu3 %v6291_v32  ;;  %2949 = vmatpush.msrb.mxu0 %v8613_v20  ;;  %v1420_v61 = vmax.f32 %v1414_v35, 0.0  ;;  %v1417_v40 = vpop.f32.mrf.mxu1  ;;  %3196 = vst.msk [vmem:[#allocation4 + $0x26] sm:$0x3] %vm196_vm3, %v3188_v26  ;;  %v3263_v20 = vadd.f32 %v3262_v49, %v3259_v44  ;;  %v7841_v57 = vld [vmem:[%s8636_s2 + $0x7] ss:$0 sm:$0xff] }
 0x152   :  { %2982 = vmatpush.msrb.mxu1 %v6291_v32  ;;  %3039 = vmatmul.f32.vlgmr.msrb.gmra.mxu2 %v7603_v63  ;;  %3212 = vst.msk [vmem:[#allocation5 + $0x26] sm:$0x3] %vm196_vm3, %v3204_v27 }
 0x153   :  { %3070 = vmatpush.msrb.mxu3 %v6319_v39  ;;  %2952 = vmatmul.f32.vlgmr.msrb.gmra.mxu0 %v7617_v62  ;;  %3228 = vst.msk [vmem:[#allocation4 + $0x28] sm:$0x3] %vm196_vm3, %v3220_v11 }
 0x154   :  { %2984 = vmatpush.msrb.mxu1 %v6319_v39  ;;  %3072 = vmatmul.f32.vlgmr.msrb.gmra.mxu3 %v7603_v63  ;;  %v1384_v32 = vpop.f32.mrf.mxu0  ;;  %v7820_v39 = vld [vmem:[%s8636_s2 + $0x5] ss:$0 sm:$0xff]  ;;  %3088 = vst.msk [vmem:[#allocation10 + $0x20] sm:$0xff] %vm194_vm2, %v1420_v61 }
 0x155   :  { %2988 = vmatmul.f32.vlgmr.msrb.gmra.mxu1 %v2838_v22  ;;  %v1514_v50 = vpop.f32.mrf.mxu2  ;;  %v1385_v60 = vadd.f32 %v1384_v32, %v1336_v46  ;;  %3375 = vmatpush.msra.mxu2 %v7750_v53  ;;  %v3267_v22 = vadd.f32 %v3266_v30, %v3263_v20  ;;  %v3270_v18 = vmul.f32 %v7820_v39, %v3268_v47 }
 0x156   :  { %v7823_v63 = vpop.f32.mrf.mxu3  ;;  %3347 = vmatpush.msra.mxu1 %v7801_v13  ;;  %3400 = vmatpush.msra.mxu3 %v7739_v52  ;;  %v1515_v23 = vadd.f32 %v7442_v24, %v1514_v50 }
 0x157   :  { %v1418_v62 = vadd.f32 %v1417_v40, %v1385_v60  ;;  %3378 = vmatpush.msra.mxu2 %v7753_v55  ;;  %3316 = vmatpush.msra.mxu0 %v7739_v52  ;;  %v3271_v15 = vadd.f32 %v3270_v18, %v3267_v22 }
 0x158   :  { %3353 = vmatpush.msra.mxu1 %v7810_v41  ;;  %3402 = vmatpush.msra.mxu3 %v7741_v7  ;;  %v7846_v38 = vld [vmem:[#allocation4 + $0x20] sm:$0xff]  ;;  %v1584_v51 = vadd.f32 %v7780_v37, %v1515_v23 }
 0x159   :  { %v1421_v3 = vmax.f32 %v1418_v62, 0.0  ;;  %3318 = vmatpush.msra.mxu0 %v7741_v7  ;;  %v3275_v28 = vmul.f32 %v7830_v14, %v7846_v38  ;;  %v7853_v56 = vld [vmem:[#allocation5 + $0x20] sm:$0xff]  ;;  %3509 = vmatpush.msrb.mxu2 %v7739_v52 }
 0x15a   :  { %3452 = vmatpush.msrb.mxu1 %v7739_v52  ;;  %3043 = vmatmul.f32.gmra.mxu2 %v7633_v25  ;;  %v7863_v5 = vld [vmem:[#allocation4 + $0x22] sm:$0xff]  ;;  %v3280_v2 = vmul.f32 %v7841_v57, %v7853_v56  ;;  %v7879_v37 = vld [vmem:[%s8638_s1] ss:$0 sm:$0xff]  ;;  %s6041_s1 = smov [#allocation13]  }
 0x15b   :  { %3427 = vmatpush.msrb.mxu0 %v7764_v54  ;;  %3089 = vst.msk [vmem:[#allocation10 + $0x28] sm:$0xff] %vm194_vm2, %v1421_v3  ;;  %v1661_v31 = vpop.f32.mrf.mxu1  ;;  %v3107_v16 = vld [vmem:[#allocation10 + $0x20] sm:$0x3]  ;;  %v3124_v6 = vld [vmem:[#allocation10 + $0x22] sm:$0x3]  ;;  %v3276_v9 = vadd.f32 %v3275_v28, %v3271_v15  ;;  %3540 = vmatpush.msrb.mxu3 %v7801_v13 }
 0x15c   :  { %2957 = vmatmul.f32.gmra.mxu0 %v7652_v0  ;;  %3454 = vmatpush.msrb.mxu1 %v7741_v7  ;;  %v1625_v19 = vpop.f32.mrf.mxu0  ;;  %v3141_v33 = vld [vmem:[#allocation10 + $0x24] sm:$0x3]  ;;  %3116 = vst.msk [vmem:[#allocation5 + $0x30] sm:$0x3] %vm196_vm3, %v3107_v16 }
 0x15d   :  { %3076 = vmatmul.f32.gmra.mxu3 %v7633_v25  ;;  %3431 = vmatpush.msrb.mxu0 %v7774_v17  ;;  %v1522_v48 = vpop.f32.mrf.mxu2  ;;  %v3157_v25 = vld [vmem:[#allocation10 + $0x26] sm:$0x3]  ;;  %v1626_v21 = vadd.f32 %v1625_v19, %v1584_v51  ;;  %3133 = vst.msk [vmem:[#allocation4 + $0x32] sm:$0x3] %vm196_vm3, %v3124_v6  ;;  %v3281_v0 = vadd.f32 %v3280_v2, %v3276_v9 }
 0x15e   :  { %2994 = vmatmul.f32.gmra.mxu1 %v2846_v45  ;;  %v3284_v45 = vmul.f32 %v7858_v4, %v7863_v5  ;;  %3149 = vst.msk [vmem:[#allocation5 + $0x32] sm:$0x3] %vm196_vm3, %v3141_v33  ;;  %v1523_v43 = vadd.f32 %v7442_v24, %v1522_v48  ;;  %3546 = vmatpush.msrb.mxu3 %v7810_v41 }
 0x15f   :  { %v1745_v44 = vpop.f32.mrf.mxu3  ;;  %3511 = vmatpush.msrb.mxu2 %v7741_v7  ;;  %3165 = vst.msk [vmem:[#allocation4 + $0x34] sm:$0x3] %vm196_vm3, %v3157_v25  ;;  %v1662_v1 = vadd.f32 %v1661_v31, %v1626_v21 }
 0x160   :  { %v3285_v34 = vadd.f32 %v3284_v45, %v3281_v0  ;;  %v1588_v27 = vadd.f32 %v7823_v63, %v1523_v43  ;;  %v3461_v0 = vmul.f32 %v7696_v36, %v7846_v38  ;;  %v3463_v45 = vmul.f32 %v7706_v29, %v7853_v56  ;;  %v7922_v56 = vld [vmem:[%s8627_s29] ss:$0 sm:$0xff] }
 0x162   :  { %v3173_v35 = vld [vmem:[#allocation10 + $0x28] sm:$0x3]  ;;  %v3189_v49 = vld [vmem:[#allocation10 + $0x2a] sm:$0x3]  ;;  %v3205_v10 = vld [vmem:[#allocation10 + $0x2c] sm:$0x3]  ;;  %v3289_v26 = vadd.f32 %v7879_v37, %v3285_v34 }
 0x163   :  { %3181 = vst.msk [vmem:[#allocation5 + $0x34] sm:$0x3] %vm196_vm3, %v3173_v35  ;;  %v3221_v58 = vld [vmem:[#allocation10 + $0x2e] sm:$0x3]  ;;  %v3464_v35 = vadd.f32 %v3463_v45, %v3461_v0 }
 0x164   :  { %3197 = vst.msk [vmem:[#allocation4 + $0x36] sm:$0x3] %vm196_vm3, %v3189_v49  ;;  %v1630_v11 = vpop.f32.mrf.mxu0  ;;  %v3290_v61 = vmax.f32 %v3289_v26, 0.0 }
 0x165   :  { %3213 = vst.msk [vmem:[#allocation5 + $0x36] sm:$0x3] %vm196_vm3, %v3205_v10  ;;  %v1712_v40 = vpop.f32.mrf.mxu2  ;;  %v1631_v20 = vadd.f32 %v1630_v11, %v1588_v27  ;;  %v1667_v32 = vpop.f32.mrf.mxu1  ;;  %v3465_v10 = vmul.f32 %v7717_v8, %v7863_v5 }
 0x166   :  { %3229 = vst.msk [vmem:[#allocation4 + $0x38] sm:$0x3] %vm196_vm3, %v3221_v58  ;;  %v1713_v46 = vadd.f32 %v1712_v40, %v1662_v1  ;;  %v3295_v50 = vsel %vm194_vm2, %v3290_v61, 0 }
 0x167   :  { %v3319_v60 = vand.u32 4294901760, %v3295_v50  ;;  %v1668_v22 = vadd.f32 %v1667_v32, %v1631_v20  ;;  %v3466_v27 = vadd.f32 %v3465_v10, %v3464_v35 }
 0x168   :  { %v1746_v30 = vadd.f32 %v1745_v44, %v1713_v46  ;;  %v1749_v23 = vpop.f32.mrf.mxu3 }
 0x169   :  { %3355 = vmatmul.f32.vlgmr.msra.gmra.mxu1 %v3319_v60  ;;  %v3320_v47 = vsub.f32 %v3295_v50, %v3319_v60 }
 0x16a   :  { %v1752_v62 = vmax.f32 %v1746_v30, 0.0  ;;  %3593 = vmatpush.msra.mxu1 %v7739_v52 }
 0x16b   :  { %3381 = vmatmul.f32.vlgmr.msra.gmra.mxu2 %v3320_v47  ;;  %v3321_v63 = vand.u32 4294901760, %v3320_v47  ;;  %v3468_v44 = vld [vmem:[#allocation4 + $0x30] sm:$0xff] }
 0x16c   :  { %3091 = vst.msk [vmem:[#allocation10 + $0x30] sm:$0xff] %vm194_vm2, %v1752_v62  ;;  %v1846_v18 = vpop.f32.mrf.mxu0  ;;  %3595 = vmatpush.msra.mxu1 %v7741_v7  ;;  %3620 = vmatpush.msra.mxu2 %v7764_v54  ;;  %v3469_v38 = vmul.f32 %v7769_v42, %v3468_v44  ;;  %v3472_v20 = vld [vmem:[#allocation5 + $0x30] sm:$0xff] }
 0x16d   :  { %v1716_v3 = vpop.f32.mrf.mxu2  ;;  %3406 = vmatmul.f32.vlgmr.msra.gmra.mxu3 %v3321_v63  ;;  %v3322_v15 = vsub.f32 %v3320_v47, %v3321_v63  ;;  %v1847_v2 = vadd.f32 %v7442_v24, %v1846_v18  ;;  %v3473_v47 = vmul.f32 %v7794_v12, %v3472_v20 }
 0x16e   :  { %v1717_v28 = vadd.f32 %v1716_v3, %v1668_v22  ;;  %3645 = vmatpush.msra.mxu3 %v7739_v52  ;;  %3624 = vmatpush.msra.mxu2 %v7774_v17  ;;  %v3470_v32 = vadd.f32 %v3469_v38, %v3466_v27  ;;  %v3475_v22 = vld [vmem:[#allocation4 + $0x32] sm:$0xff] }
 0x16f   :  { %v3323_v51 = vand.u32 4294901760, %v3322_v15 }
 0x170   :  { %v1750_v19 = vadd.f32 %v1749_v23, %v1717_v28  ;;  %v1915_v31 = vpop.f32.mrf.mxu1  ;;  %3647 = vmatpush.msra.mxu3 %v7741_v7  ;;  %v3474_v3 = vadd.f32 %v3473_v47, %v3470_v32  ;;  %v3476_v28 = vmul.f32 %v7820_v39, %v3475_v22 }
 0x171   :  { %3324 = vmatmul.f32.vlgmr.msra.gmra.mxu0 %v3323_v51  ;;  %3456 = vmatmul.f32.vlgmr.msrb.gmra.mxu1 %v3319_v60  ;;  %v1916_v24 = vadd.f32 %v1915_v31, %v1847_v2 }
 0x172   :  { %3568 = vmatpush.msra.mxu0 %v7750_v53  ;;  %3733 = vmatpush.msrb.mxu1 %v7801_v13  ;;  %v1753_v9 = vmax.f32 %v1750_v19, 0.0  ;;  %v3477_v31 = vadd.f32 %v3476_v28, %v3474_v3 }
 0x173   :  { %v3108_v16 = vld [vmem:[#allocation10 + $0x30] sm:$0x3]  ;;  %v3125_v6 = vld [vmem:[#allocation10 + $0x32] sm:$0x3]  ;;  %v3142_v33 = vld [vmem:[#allocation10 + $0x34] sm:$0x3]  ;;  %v1993_v25 = vpop.f32.mrf.mxu3 }
 0x174   :  { %3117 = vst.msk [vmem:[#allocation5 + $0x40] sm:$0x3] %vm196_vm3, %v3108_v16  ;;  %v3158_v48 = vld [vmem:[#allocation10 + $0x36] sm:$0x3]  ;;  %3571 = vmatpush.msra.mxu0 %v7753_v55  ;;  %3739 = vmatpush.msrb.mxu1 %v7810_v41 }
 0x175   :  { %3134 = vst.msk [vmem:[#allocation4 + $0x42] sm:$0x3] %vm196_vm3, %v3125_v6  ;;  %v1957_v21 = vpop.f32.mrf.mxu2 }
 0x176   :  { %3150 = vst.msk [vmem:[#allocation5 + $0x42] sm:$0x3] %vm196_vm3, %v3142_v33  ;;  %v1854_v43 = vpop.f32.mrf.mxu0  ;;  %v1958_v49 = vadd.f32 %v1957_v21, %v1916_v24 }
 0x177   :  { %3166 = vst.msk [vmem:[#allocation4 + $0x44] sm:$0x3] %vm196_vm3, %v3158_v48  ;;  %v1855_v58 = vadd.f32 %v7922_v56, %v1854_v43 }
 0x178   :  { %3092 = vst.msk [vmem:[#allocation10 + $0x38] sm:$0xff] %vm194_vm2, %v1753_v9  ;;  %v1994_v46 = vadd.f32 %v1993_v25, %v1958_v49 }
 0x179   :  { %3433 = vmatmul.f32.vlgmr.msrb.gmra.mxu0 %v3319_v60 }
 0x17a   :  { %v1919_v34 = vpop.f32.mrf.mxu1  ;;  %3702 = vmatpush.msrb.mxu0 %v7739_v52 }
 0x17b   :  { %v1920_v60 = vadd.f32 %v1919_v34, %v1855_v58 }
 0x17c   :  { %3704 = vmatpush.msrb.mxu0 %v7741_v7 }
 0x17d   :  { %v1962_v1 = vpop.f32.mrf.mxu2  ;;  %v1999_v26 = vpop.f32.mrf.mxu3 }
 0x17e   :  { %v1963_v18 = vadd.f32 %v1962_v1, %v1920_v60 }
 0x17f   :  { %v3174_v11 = vld [vmem:[#allocation10 + $0x38] sm:$0x3]  ;;  %v3190_v61 = vld [vmem:[#allocation10 + $0x3a] sm:$0x3]  ;;  %v3206_v40 = vld [vmem:[#allocation10 + $0x3c] sm:$0x3] }
 0x180   :  { %3182 = vst.msk [vmem:[#allocation5 + $0x44] sm:$0x3] %vm196_vm3, %v3174_v11  ;;  %v3222_v5 = vld [vmem:[#allocation10 + $0x3e] sm:$0x3]  ;;  %v2000_v33 = vadd.f32 %v1999_v26, %v1963_v18 }
 0x181   :  { %3198 = vst.msk [vmem:[#allocation4 + $0x46] sm:$0x3] %vm196_vm3, %v3190_v61  ;;  %v2044_v50 = vpop.f32.mrf.mxu0 }
 0x182   :  { %3214 = vst.msk [vmem:[#allocation5 + $0x46] sm:$0x3] %vm196_vm3, %v3206_v40  ;;  %v2045_v30 = vadd.f32 %v2044_v50, %v1994_v46 }
 0x183   :  { %3230 = vst.msk [vmem:[#allocation4 + $0x48] sm:$0x3] %vm196_vm3, %v3222_v5 }
 0x184   :  { %v2077_v62 = vpop.f32.mrf.mxu1 }
 0x185   :  { %v2078_v23 = vadd.f32 %v2077_v62, %v2045_v30  ;;  %v2178_v63 = vpop.f32.mrf.mxu2 }
 0x186   :  { %v2179_v38 = vadd.f32 %v7922_v56, %v2178_v63 }
 0x187   :  { %v2084_v15 = vmax.f32 %v2078_v23, 0.0 }
 0x188   :  { %v2247_v51 = vpop.f32.mrf.mxu3  ;;  %v7931_v19 = vld [vmem:[#allocation4 + $0x40] sm:$0xff] }
 0x189   :  { %3094 = vst.msk [vmem:[#allocation10 + $0x40] sm:$0xff] %vm194_vm2, %v2084_v15  ;;  %v3480_v16 = vmul.f32 %v7830_v14, %v7931_v19  ;;  %v7936_v6 = vld [vmem:[#allocation5 + $0x40] sm:$0xff]  ;;  %v2248_v61 = vadd.f32 %v2247_v51, %v2179_v38 }
 0x18a   :  { %v7938_v48 = vld [vmem:[#allocation4 + $0x42] sm:$0xff]  ;;  %v3484_v25 = vmul.f32 %v7841_v57, %v7936_v6 }
 0x18b   :  { %v2048_v9 = vpop.f32.mrf.mxu0  ;;  %v3481_v2 = vadd.f32 %v3480_v16, %v3477_v31  ;;  %v3487_v45 = vmul.f32 %v7858_v4, %v7938_v48 }
 0x18c   :  { %v2049_v21 = vadd.f32 %v2048_v9, %v2000_v33 }
 0x18d   :  { %v3485_v0 = vadd.f32 %v3484_v25, %v3481_v2 }
 0x18e   :  { %v2081_v43 = vpop.f32.mrf.mxu1  ;;  %v2186_v44 = vpop.f32.mrf.mxu2 }
 0x18f   :  { %v2082_v24 = vadd.f32 %v2081_v43, %v2049_v21  ;;  %v3488_v34 = vadd.f32 %v3487_v45, %v3485_v0  ;;  %v2187_v47 = vadd.f32 %v7922_v56, %v2186_v44 }
 0x190   :  { %v3109_v35 = vld [vmem:[#allocation10 + $0x40] sm:$0x3]  ;;  %v3126_v49 = vld [vmem:[#allocation10 + $0x42] sm:$0x3]  ;;  %v3143_v10 = vld [vmem:[#allocation10 + $0x44] sm:$0x3] }
 0x191   :  { %3118 = vst.msk [vmem:[#allocation5 + $0x50] sm:$0x3] %vm196_vm3, %v3109_v35  ;;  %v3159_v1 = vld [vmem:[#allocation10 + $0x46] sm:$0x3]  ;;  %v2085_v58 = vmax.f32 %v2082_v24, 0.0  ;;  %v3489_v26 = vadd.f32 %v7879_v37, %v3488_v34  ;;  %v2251_v27 = vpop.f32.mrf.mxu3 }
 0x192   :  { %3135 = vst.msk [vmem:[#allocation4 + $0x52] sm:$0x3] %vm196_vm3, %v3126_v49  ;;  %v2252_v31 = vadd.f32 %v2251_v27, %v2187_v47 }
 0x193   :  { %3151 = vst.msk [vmem:[#allocation5 + $0x52] sm:$0x3] %vm196_vm3, %v3143_v10  ;;  %v3490_v11 = vmax.f32 %v3489_v26, 0.0 }
 0x194   :  { %3167 = vst.msk [vmem:[#allocation4 + $0x54] sm:$0x3] %vm196_vm3, %v3159_v1 }
 0x195   :  { %3095 = vst.msk [vmem:[#allocation10 + $0x48] sm:$0xff] %vm194_vm2, %v2085_v58  ;;  %v2289_v40 = vpop.f32.mrf.mxu0  ;;  %v3492_v5 = vsel %vm194_vm2, %v3490_v11, 0 }
 0x196   :  { %v2290_v46 = vadd.f32 %v2289_v40, %v2248_v61  ;;  %v3512_v20 = vand.u32 4294901760, %v3492_v5  ;;  %v3658_v40 = vmul.f32 %v7717_v8, %v7938_v48 }
 0x198   :  { %v2325_v32 = vpop.f32.mrf.mxu1  ;;  %3548 = vmatmul.f32.vlgmr.msrb.gmra.mxu3 %v3512_v20  ;;  %v3513_v50 = vsub.f32 %v3492_v5, %v3512_v20 }
 0x199   :  { %v2326_v60 = vadd.f32 %v2325_v32, %v2290_v46  ;;  %v2376_v30 = vpop.f32.mrf.mxu2  ;;  %3786 = vmatpush.msrb.mxu3 %v7739_v52 }
 0x19a   :  { %3574 = vmatmul.f32.vlgmr.msra.gmra.mxu0 %v3513_v50  ;;  %v3514_v62 = vand.u32 4294901760, %v3513_v50 }
 0x19b   :  { %v2377_v22 = vadd.f32 %v2376_v30, %v2326_v60  ;;  %3788 = vmatpush.msrb.mxu3 %v7741_v7  ;;  %3813 = vmatpush.msra.mxu0 %v7764_v54 }
 0x19c   :  { %v3175_v23 = vld [vmem:[#allocation10 + $0x48] sm:$0x3]  ;;  %v3191_v63 = vld [vmem:[#allocation10 + $0x4a] sm:$0x3]  ;;  %v3207_v3 = vld [vmem:[#allocation10 + $0x4c] sm:$0x3]  ;;  %v2409_v18 = vpop.f32.mrf.mxu3  ;;  %3599 = vmatmul.f32.vlgmr.msra.gmra.mxu1 %v3514_v62  ;;  %v3515_v15 = vsub.f32 %v3513_v50, %v3514_v62 }
 0x19d   :  { %3183 = vst.msk [vmem:[#allocation5 + $0x54] sm:$0x3] %vm196_vm3, %v3175_v23  ;;  %v3223_v28 = vld [vmem:[#allocation10 + $0x4e] sm:$0x3]  ;;  %v2410_v51 = vadd.f32 %v2409_v18, %v2377_v22  ;;  %3838 = vmatpush.msra.mxu1 %v7739_v52  ;;  %3817 = vmatpush.msra.mxu0 %v7774_v17 }
 0x19e   :  { %3199 = vst.msk [vmem:[#allocation4 + $0x56] sm:$0x3] %vm196_vm3, %v3191_v63  ;;  %v3516_v16 = vand.u32 4294901760, %v3515_v15 }
 0x19f   :  { %3215 = vst.msk [vmem:[#allocation5 + $0x56] sm:$0x3] %vm196_vm3, %v3207_v3  ;;  %v2416_v33 = vmax.f32 %v2410_v51, 0.0  ;;  %v2294_v9 = vpop.f32.mrf.mxu0  ;;  %3840 = vmatpush.msra.mxu1 %v7741_v7 }
 0x1a0   :  { %3231 = vst.msk [vmem:[#allocation4 + $0x58] sm:$0x3] %vm196_vm3, %v3223_v28  ;;  %v2295_v2 = vadd.f32 %v2294_v9, %v2252_v31  ;;  %3517 = vmatmul.f32.vlgmr.msrb.gmra.mxu2 %v3516_v16  ;;  %3649 = vmatmul.f32.vlgmr.msra.gmra.mxu3 %v3512_v20 }
 0x1a1   :  { %3097 = vst.msk [vmem:[#allocation10 + $0x50] sm:$0xff] %vm194_vm2, %v2416_v33  ;;  %3761 = vmatpush.msrb.mxu2 %v7750_v53  ;;  %3926 = vmatpush.msra.mxu3 %v7801_v13  ;;  %v3654_v13 = vmul.f32 %v7696_v36, %v7931_v19 }
 0x1a2   :  { %v2331_v25 = vpop.f32.mrf.mxu1  ;;  %v2380_v21 = vpop.f32.mrf.mxu2 }
 0x1a3   :  { %v2332_v0 = vadd.f32 %v2331_v25, %v2295_v2  ;;  %3764 = vmatpush.msrb.mxu2 %v7753_v55  ;;  %3932 = vmatpush.msra.mxu3 %v7810_v41  ;;  %v3656_v41 = vmul.f32 %v7706_v29, %v7936_v6 }
 0x1a5   :  { %v2381_v45 = vadd.f32 %v2380_v21, %v2332_v0  ;;  %v2413_v43 = vpop.f32.mrf.mxu3  ;;  %v3661_v26 = vld [vmem:[#allocation4 + $0x50] sm:$0xff]  ;;  %v3657_v27 = vadd.f32 %v3656_v41, %v3654_v13 }
 0x1a6   :  { %v3662_v5 = vmul.f32 %v7769_v42, %v3661_v26  ;;  %v3665_v60 = vld [vmem:[#allocation5 + $0x50] sm:$0xff] }
 0x1a7   :  { %v2414_v24 = vadd.f32 %v2413_v43, %v2381_v45  ;;  %v3659_v19 = vadd.f32 %v3658_v40, %v3657_v27  ;;  %v3666_v22 = vmul.f32 %v7794_v12, %v3665_v60  ;;  %v3668_v23 = vld [vmem:[#allocation4 + $0x52] sm:$0xff] }
 0x1a8   :  { %v3110_v44 = vld [vmem:[#allocation10 + $0x50] sm:$0x3]  ;;  %v3127_v34 = vld [vmem:[#allocation10 + $0x52] sm:$0x3]  ;;  %v3144_v35 = vld [vmem:[#allocation10 + $0x54] sm:$0x3]  ;;  %3626 = vmatmul.f32.vlgmr.msra.gmra.mxu2 %v3512_v20  ;;  %v3669_v28 = vmul.f32 %v7820_v39, %v3668_v23 }
 0x1a9   :  { %3119 = vst.msk [vmem:[#allocation5 + $0x60] sm:$0x3] %vm196_vm3, %v3110_v44  ;;  %v3160_v49 = vld [vmem:[#allocation10 + $0x56] sm:$0x3]  ;;  %v2417_v10 = vmax.f32 %v2414_v24, 0.0  ;;  %v2510_v38 = vpop.f32.mrf.mxu0  ;;  %3895 = vmatpush.msra.mxu2 %v7739_v52  ;;  %v3663_v30 = vadd.f32 %v3662_v5, %v3659_v19 }
 0x1aa   :  { %3136 = vst.msk [vmem:[#allocation4 + $0x62] sm:$0x3] %vm196_vm3, %v3127_v34  ;;  %v2511_v11 = vadd.f32 %v7922_v56, %v2510_v38 }
 0x1ab   :  { %3152 = vst.msk [vmem:[#allocation5 + $0x62] sm:$0x3] %vm196_vm3, %v3144_v35  ;;  %3897 = vmatpush.msra.mxu2 %v7741_v7  ;;  %v3667_v18 = vadd.f32 %v3666_v22, %v3663_v30 }
 0x1ac   :  { %3168 = vst.msk [vmem:[#allocation4 + $0x64] sm:$0x3] %vm196_vm3, %v3160_v49  ;;  %v2579_v1 = vpop.f32.mrf.mxu1 }
 0x1ad   :  { %3098 = vst.msk [vmem:[#allocation10 + $0x58] sm:$0xff] %vm194_vm2, %v2417_v10  ;;  %v2621_v58 = vpop.f32.mrf.mxu2  ;;  %v2580_v32 = vadd.f32 %v2579_v1, %v2511_v11  ;;  %v3670_v9 = vadd.f32 %v3669_v28, %v3667_v18 }
 0x1af   :  { %v2622_v48 = vadd.f32 %v2621_v58, %v2580_v32 }
 0x1b0   :  { %v2657_v61 = vpop.f32.mrf.mxu3 }
 0x1b1   :  { %v2658_v15 = vadd.f32 %v2657_v61, %v2622_v48 }
 0x1b3   :  { %v2518_v36 = vpop.f32.mrf.mxu0 }
 0x1b4   :  { %v3176_v46 = vld [vmem:[#allocation10 + $0x58] sm:$0x3]  ;;  %v3192_v6 = vld [vmem:[#allocation10 + $0x5a] sm:$0x3]  ;;  %v3208_v20 = vld [vmem:[#allocation10 + $0x5c] sm:$0x3]  ;;  %v2519_v63 = vadd.f32 %v7922_v56, %v2518_v36 }
 0x1b5   :  { %3184 = vst.msk [vmem:[#allocation5 + $0x64] sm:$0x3] %vm196_vm3, %v3176_v46  ;;  %v3224_v50 = vld [vmem:[#allocation10 + $0x5e] sm:$0x3] }
 0x1b6   :  { %3200 = vst.msk [vmem:[#allocation4 + $0x66] sm:$0x3] %vm196_vm3, %v3192_v6  ;;  %v2583_v47 = vpop.f32.mrf.mxu1  ;;  %v2626_v62 = vpop.f32.mrf.mxu2 }
 0x1b7   :  { %3216 = vst.msk [vmem:[#allocation5 + $0x66] sm:$0x3] %vm196_vm3, %v3208_v20  ;;  %v2584_v16 = vadd.f32 %v2583_v47, %v2519_v63 }
 0x1b8   :  { %3232 = vst.msk [vmem:[#allocation4 + $0x68] sm:$0x3] %vm196_vm3, %v3224_v50 }
 0x1b9   :  { %v2663_v3 = vpop.f32.mrf.mxu3  ;;  %v2627_v34 = vadd.f32 %v2626_v62, %v2584_v16 }
 0x1bb   :  { %v2664_v41 = vadd.f32 %v2663_v3, %v2627_v34 }
 0x1bd   :  { %v2708_v51 = vpop.f32.mrf.mxu0  ;;  %v7990_v31 = vld [vmem:[#allocation4 + $0x60] sm:$0xff] }
 0x1be   :  { %v2709_v33 = vadd.f32 %v2708_v51, %v2658_v15  ;;  %v3673_v2 = vmul.f32 %v7830_v14, %v7990_v31  ;;  %v7994_v25 = vld [vmem:[#allocation5 + $0x60] sm:$0xff] }
 0x1bf   :  { %v7996_v21 = vld [vmem:[#allocation4 + $0x62] sm:$0xff]  ;;  %v3677_v43 = vmul.f32 %v7841_v57, %v7994_v25 }
 0x1c0   :  { %v2741_v0 = vpop.f32.mrf.mxu1  ;;  %v3674_v45 = vadd.f32 %v3673_v2, %v3670_v9  ;;  %v3680_v49 = vmul.f32 %v7858_v4, %v7996_v21 }
 0x1c1   :  { %v2742_v24 = vadd.f32 %v2741_v0, %v2709_v33  ;;  %v2842_v44 = vpop.f32.mrf.mxu2 }
 0x1c2   :  { %v3678_v35 = vadd.f32 %v3677_v43, %v3674_v45  ;;  %v2843_v40 = vadd.f32 %v7922_v56, %v2842_v44 }
 0x1c3   :  { %v2748_v10 = vmax.f32 %v2742_v24, 0.0 }
 0x1c4   :  { %v2911_v38 = vpop.f32.mrf.mxu3  ;;  %v3681_v13 = vadd.f32 %v3680_v49, %v3678_v35 }
 0x1c5   :  { %3100 = vst.msk [vmem:[#allocation10 + $0x60] sm:$0xff] %vm194_vm2, %v2748_v10  ;;  %v2912_v47 = vadd.f32 %v2911_v38, %v2843_v40 }
 0x1c6   :  { %v3682_v1 = vadd.f32 %v7879_v37, %v3681_v13  ;;  %v5937_v13 = vld [vmem:[%s8636_s2] ss:$0 sm:$0xff]  ;;  %s8639_s2 = sld [smem:[#allocation48_spill]] }
 0x1c7   :  { %v2712_v58 = vpop.f32.mrf.mxu0 }
 0x1c8   :  { %v2713_v26 = vadd.f32 %v2712_v58, %v2664_v41  ;;  %v3683_v27 = vmax.f32 %v3682_v1, 0.0  ;;  %v3847_v41 = vmul.f32 %v5937_v13, %v7990_v31  ;;  %v3849_v1 = vmul.f32 %v7706_v29, %v7994_v25  ;;  %v8085_v13 = vld [vmem:[%s8640_s5] ss:$0 sm:$0xff] }
 0x1c9   :  { %v3851_v29 = vmul.f32 %v7717_v8, %v7996_v21 }
 0x1ca   :  { %v2745_v11 = vpop.f32.mrf.mxu1  ;;  %v3685_v61 = vsel %vm194_vm2, %v3683_v27, 0  ;;  %v2850_v36 = vpop.f32.mrf.mxu2 }
 0x1cb   :  { %v2746_v5 = vadd.f32 %v2745_v11, %v2713_v26  ;;  %v3705_v19 = vand.u32 4294901760, %v3685_v61  ;;  %v2851_v3 = vadd.f32 %v7922_v56, %v2850_v36  ;;  %v3850_v26 = vadd.f32 %v3849_v1, %v3847_v41  ;;  %v8090_v41 = vld [vmem:[%s8640_s5 + $0x1] ss:$0 sm:$0xff] }
 0x1cc   :  { %v3111_v46 = vld [vmem:[#allocation10 + $0x60] sm:$0x3]  ;;  %v3128_v6 = vld [vmem:[#allocation10 + $0x62] sm:$0x3]  ;;  %v3145_v20 = vld [vmem:[#allocation10 + $0x64] sm:$0x3] }
 0x1cd   :  { %3120 = vst.msk [vmem:[#allocation5 + $0x70] sm:$0x3] %vm196_vm3, %v3111_v46  ;;  %v3161_v32 = vld [vmem:[#allocation10 + $0x66] sm:$0x3]  ;;  %v2749_v50 = vmax.f32 %v2746_v5, 0.0  ;;  %v2915_v60 = vpop.f32.mrf.mxu3  ;;  %3741 = vmatmul.f32.vlgmr.msrb.gmra.mxu1 %v3705_v19  ;;  %v3706_v30 = vsub.f32 %v3685_v61, %v3705_v19  ;;  %v3852_v61 = vadd.f32 %v3851_v29, %v3850_v26 }
 0x1ce   :  { %3137 = vst.msk [vmem:[#allocation4 + $0x72] sm:$0x3] %vm196_vm3, %v3128_v6  ;;  %3979 = vmatpush.msrb.mxu1 %v7739_v52  ;;  %v2916_v51 = vadd.f32 %v2915_v60, %v2851_v3  ;;  %v8053_v27 = vld [vmem:[%s8639_s2] ss:$0 sm:$0xff]  ;;  %v4098_v26 = vld [vmem:[#allocation7] sm:$0xf] }
 0x1cf   :  { %3153 = vst.msk [vmem:[#allocation5 + $0x72] sm:$0x3] %vm196_vm3, %v3145_v20  ;;  %3767 = vmatmul.f32.vlgmr.msrb.gmra.mxu2 %v3706_v30  ;;  %v3707_v62 = vand.u32 4294901760, %v3706_v30 }
 0x1d0   :  { %3169 = vst.msk [vmem:[#allocation4 + $0x74] sm:$0x3] %vm196_vm3, %v3161_v32  ;;  %v2953_v48 = vpop.f32.mrf.mxu0  ;;  %3981 = vmatpush.msrb.mxu1 %v7741_v7  ;;  %4006 = vmatpush.msrb.mxu2 %v7764_v54 }
 0x1d1   :  { %3101 = vst.msk [vmem:[#allocation10 + $0x68] sm:$0xff] %vm194_vm2, %v2749_v50  ;;  %v2954_v22 = vadd.f32 %v2953_v48, %v2912_v47  ;;  %3792 = vmatmul.f32.vlgmr.msrb.gmra.mxu3 %v3707_v62  ;;  %v3708_v23 = vsub.f32 %v3706_v30, %v3707_v62 }
 0x1d2   :  { %v2989_v63 = vpop.f32.mrf.mxu1  ;;  %4031 = vmatpush.msrb.mxu3 %v7739_v52  ;;  %4010 = vmatpush.msrb.mxu2 %v7774_v17 }
 0x1d3   :  { %v2990_v18 = vadd.f32 %v2989_v63, %v2954_v22  ;;  %v3709_v15 = vand.u32 4294901760, %v3708_v23 }
 0x1d4   :  { %4033 = vmatpush.msrb.mxu3 %v7741_v7 }
 0x1d5   :  { %v3040_v28 = vpop.f32.mrf.mxu2  ;;  %3710 = vmatmul.f32.vlgmr.msrb.gmra.mxu0 %v3709_v15  ;;  %3842 = vmatmul.f32.vlgmr.msra.gmra.mxu1 %v3705_v19 }
 0x1d6   :  { %v3041_v54 = vadd.f32 %v3040_v28, %v2990_v18  ;;  %3954 = vmatpush.msrb.mxu0 %v7750_v53 }
 0x1d7   :  { %v3073_v16 = vpop.f32.mrf.mxu3 }
 0x1d8   :  { %v3177_v52 = vld [vmem:[#allocation10 + $0x68] sm:$0x3]  ;;  %v3193_v17 = vld [vmem:[#allocation10 + $0x6a] sm:$0x3]  ;;  %v3209_v33 = vld [vmem:[#allocation10 + $0x6c] sm:$0x3]  ;;  %v3074_v56 = vadd.f32 %v3073_v16, %v3041_v54  ;;  %3957 = vmatpush.msrb.mxu0 %v7753_v55 }
 0x1d9   :  { %v2958_v9 = vpop.f32.mrf.mxu0  ;;  %3185 = vst.msk [vmem:[#allocation5 + $0x74] sm:$0x3] %vm196_vm3, %v3177_v52  ;;  %v3225_v7 = vld [vmem:[#allocation10 + $0x6e] sm:$0x3] }
 0x1da   :  { %v2959_v2 = vadd.f32 %v2958_v9, %v2916_v51  ;;  %3201 = vst.msk [vmem:[#allocation4 + $0x76] sm:$0x3] %vm196_vm3, %v3193_v17  ;;  %v3080_v0 = vmax.f32 %v3074_v56, 0.0 }
 0x1db   :  { %v2995_v53 = vpop.f32.mrf.mxu1  ;;  %3217 = vst.msk [vmem:[#allocation5 + $0x76] sm:$0x3] %vm196_vm3, %v3209_v33 }
 0x1dc   :  { %v2996_v45 = vadd.f32 %v2995_v53, %v2959_v2  ;;  %3233 = vst.msk [vmem:[#allocation4 + $0x78] sm:$0x3] %vm196_vm3, %v3225_v7 }
 0x1dd   :  { %3103 = vst.msk [vmem:[#allocation10 + $0x70] sm:$0xff] %vm194_vm2, %v3080_v0  ;;  %v3044_v43 = vpop.f32.mrf.mxu2  ;;  %3819 = vmatmul.f32.vlgmr.msra.gmra.mxu0 %v3705_v19 }
 0x1de   :  { %v3045_v24 = vadd.f32 %v3044_v43, %v2996_v45 }
 0x1e0   :  { %v3077_v44 = vpop.f32.mrf.mxu3 }
 0x1e1   :  { %v3078_v55 = vadd.f32 %v3077_v44, %v3045_v24  ;;  %v3854_v58 = vld [vmem:[#allocation4 + $0x70] sm:$0xff] }
 0x1e2   :  { %v3855_v31 = vmul.f32 %v7769_v42, %v3854_v58  ;;  %v3858_v6 = vld [vmem:[#allocation5 + $0x70] sm:$0xff]  ;;  %v4094_v58 = vld [vmem:[#allocation6] sm:$0xf] }
 0x1e3   :  { %v3081_v38 = vmax.f32 %v3078_v55, 0.0  ;;  %v3859_v32 = vmul.f32 %v7794_v12, %v3858_v6  ;;  %v3861_v60 = vld [vmem:[#allocation4 + $0x72] sm:$0xff] }
 0x1e4   :  { %v3112_v34 = vld [vmem:[#allocation10 + $0x70] sm:$0x3]  ;;  %v3129_v35 = vld [vmem:[#allocation10 + $0x72] sm:$0x3]  ;;  %v3146_v49 = vld [vmem:[#allocation10 + $0x74] sm:$0x3]  ;;  %v3856_v20 = vadd.f32 %v3855_v31, %v3852_v61  ;;  %v3862_v22 = vmul.f32 %v7820_v39, %v3861_v60 }
 0x1e5   :  { %3121 = vst.msk [vmem:[#allocation5 + $0x80] sm:$0x3] %vm196_vm3, %v3112_v34  ;;  %v3162_v10 = vld [vmem:[#allocation10 + $0x76] sm:$0x3]  ;;  %v8097_v61 = vld [vmem:[%s8640_s5 + $0x2] ss:$0 sm:$0xff] }
 0x1e6   :  { %3138 = vst.msk [vmem:[#allocation4 + $0x82] sm:$0x3] %vm196_vm3, %v3129_v35  ;;  %v3356_v25 = vpop.f32.mrf.mxu1  ;;  %v3860_v47 = vadd.f32 %v3859_v32, %v3856_v20  ;;  %v4092_v20 = vld [vmem:[%s8512_s12 + $0x8] sm:$0x3] }
 0x1e7   :  { %3154 = vst.msk [vmem:[#allocation5 + $0x82] sm:$0x3] %vm196_vm3, %v3146_v49 }
 0x1e8   :  { %3170 = vst.msk [vmem:[#allocation4 + $0x84] sm:$0x3] %vm196_vm3, %v3162_v10  ;;  %v3863_v18 = vadd.f32 %v3862_v22, %v3860_v47 }
 0x1e9   :  { %3104 = vst.msk [vmem:[#allocation10 + $0x78] sm:$0xff] %vm194_vm2, %v3081_v38 }
 0x1ee   :  { %v3325_v11 = vpop.f32.mrf.mxu0  ;;  %v3382_v42 = vpop.f32.mrf.mxu2 }
 0x1ef   :  { %v3326_v19 = vadd.f32 %v8053_v27, %v3325_v11  ;;  %v3457_v23 = vpop.f32.mrf.mxu1  ;;  %v4100_v11 = vmul.f32 %v8090_v41, %v4098_v26 }
 0x1f0   :  { %v3178_v40 = vld [vmem:[#allocation10 + $0x78] sm:$0x3]  ;;  %v3194_v5 = vld [vmem:[#allocation10 + $0x7a] sm:$0x3]  ;;  %v3210_v36 = vld [vmem:[#allocation10 + $0x7c] sm:$0x3]  ;;  %v3407_v50 = vpop.f32.mrf.mxu3 }
 0x1f1   :  { %3186 = vst.msk [vmem:[#allocation5 + $0x84] sm:$0x3] %vm196_vm3, %v3178_v40  ;;  %v3226_v46 = vld [vmem:[#allocation10 + $0x7e] sm:$0x3]  ;;  %v3357_v8 = vadd.f32 %v3356_v25, %v3326_v19  ;;  %v4096_v25 = vmul.f32 %v8085_v13, %v4094_v58 }
 0x1f2   :  { %3202 = vst.msk [vmem:[#allocation4 + $0x86] sm:$0x3] %vm196_vm3, %v3194_v5  ;;  %v4102_v5 = vld [vmem:[#allocation6 + $0x2] sm:$0xf] }
 0x1f3   :  { %3218 = vst.msk [vmem:[#allocation5 + $0x86] sm:$0x3] %vm196_vm3, %v3210_v36  ;;  %v3383_v21 = vadd.f32 %v3382_v42, %v3357_v8  ;;  %v4101_v36 = vadd.f32 %v4100_v11, %v4096_v25  ;;  %v4104_v19 = vmul.f32 %v8097_v61, %v4102_v5  ;;  %v4144_v8 = vsel %vm3297_vm4, %v4092_v20, 0 }
 0x1f4   :  { %3234 = vst.msk [vmem:[#allocation4 + $0x88] sm:$0x3] %vm196_vm3, %v3226_v46  ;;  %v8104_v46 = vld [vmem:[%s8640_s5 + $0x3] ss:$0 sm:$0xff]  ;;  %v8110_v42 = vand.u32 4294901760, %v4144_v8 }
 0x1f5   :  { %v3408_v30 = vadd.f32 %v3407_v50, %v3383_v21  ;;  %v4105_v21 = vadd.f32 %v4104_v19, %v4101_v36  ;;  %v4091_v50 = vld [vmem:[%s8512_s12] sm:$0xff]  ;;  %s5796_s12 = sshll.u32 %s6044_s26, 4  ;;  %s5797_s12 = int_to_ptr.vmem [resolvable:$true] %s5796_s12 }
 0x1f6   :  { %v3434_v62 = vpop.f32.mrf.mxu0  ;;  %v8122_v22 = vsub.f32 %v4144_v8, %v8110_v42  ;;  %4161 = vmatpush.msra.mxu0 %v8110_v42 }
 0x1f7   :  { %v3435_v48 = vadd.f32 %v3434_v62, %v3408_v30  ;;  %v8119_v30 = vld [vmem:[%s8640_s5 + $0x4] ss:$0 sm:$0xff] }
 0x1f9   :  { %v3865_v63 = vld [vmem:[#allocation4 + $0x80] sm:$0xff]  ;;  %v3458_v3 = vadd.f32 %v3457_v23, %v3435_v48 }
 0x1fa   :  { %v3866_v15 = vmul.f32 %v7830_v14, %v3865_v63  ;;  %v3869_v28 = vld [vmem:[#allocation5 + $0x80] sm:$0xff]  ;;  %v8127_v63 = vand.u32 4294901760, %v4091_v50 }
 0x1fb   :  { %v3872_v54 = vld [vmem:[#allocation4 + $0x82] sm:$0xff]  ;;  %v3460_v51 = vmax.f32 %v3458_v3, 0.0  ;;  %v3870_v12 = vmul.f32 %v7841_v57, %v3869_v28  ;;  %v4189_v3 = vand.u32 4294901760, %v8122_v22 }
 0x1fc   :  { %v3867_v16 = vadd.f32 %v3866_v15, %v3863_v18  ;;  %v3873_v17 = vmul.f32 %v7858_v4, %v3872_v54  ;;  %v8134_v15 = vsub.f32 %v4091_v50, %v8127_v63  ;;  %4163 = vmatpush.msra.mxu0 %v8127_v63 }
 0x1fd   :  { %4040 = vst.msk [vmem:[#allocation11] sm:$0xff] %vm194_vm2, %v3460_v51  ;;  %v4190_v28 = vsub.f32 %v8122_v22, %v4189_v3  ;;  %v8144_v51 = vld [vmem:[%s8640_s5 + $0x5] ss:$0 sm:$0xff] }
 0x1fe   :  { %v3871_v52 = vadd.f32 %v3870_v12, %v3867_v16  ;;  %v4195_v16 = vand.u32 4294901760, %v8134_v15 }
 0x200   :  { %v3874_v33 = vadd.f32 %v3873_v17, %v3871_v52  ;;  %v4191_v52 = vand.u32 4294901760, %v4190_v28 }
 0x202   :  { %v3875_v39 = vadd.f32 %v7879_v37, %v3874_v33  ;;  %v8151_v33 = vld [vmem:[%s8640_s5 + $0x6] ss:$0 sm:$0xff]  ;;  %4192 = vmatpush.msra.mxu1 %v4191_v52 }
 0x204   :  { %v3876_v56 = vmax.f32 %v3875_v39, 0.0  ;;  %v4047_v9 = vld [vmem:[#allocation11] sm:$0x3]  ;;  %v4056_v7 = vld [vmem:[#allocation11 + $0x2] sm:$0x3]  ;;  %v4196_v39 = vsub.f32 %v8134_v15, %v4195_v16 }
 0x205   :  { %v4065_v2 = vld [vmem:[#allocation11 + $0x4] sm:$0x3]  ;;  %4052 = vst.msk [vmem:[#allocation7 + $0x8] sm:$0x3] %vm196_vm3, %v4047_v9  ;;  %v4073_v14 = vld [vmem:[#allocation11 + $0x6] sm:$0x3] }
 0x206   :  { %v3878_v0 = vsel %vm194_vm2, %v3876_v56, 0  ;;  %4061 = vst.msk [vmem:[#allocation6 + $0xa] sm:$0x3] %vm196_vm3, %v4056_v7  ;;  %v8159_v9 = vld [vmem:[%s8640_s5 + $0x7] ss:$0 sm:$0xff]  ;;  %v4197_v7 = vand.u32 4294901760, %v4196_v39 }
 0x207   :  { %v3898_v57 = vand.u32 4294901760, %v3878_v0  ;;  %4069 = vst.msk [vmem:[#allocation7 + $0xa] sm:$0x3] %vm196_vm3, %v4065_v2 }
 0x208   :  { %4077 = vst.msk [vmem:[#allocation6 + $0xc] sm:$0x3] %vm196_vm3, %v4073_v14  ;;  %4198 = vmatpush.msra.mxu1 %v4197_v7 }
 0x209   :  { %3934 = vmatmul.f32.vlgmr.msra.gmra.mxu3 %v3898_v57  ;;  %v3899_v4 = vsub.f32 %v3878_v0, %v3898_v57 }
 0x20a   :  { %4245 = vmatpush.msra.mxu3 %v8110_v42 }
 0x20b   :  { %3960 = vmatmul.f32.vlgmr.msrb.gmra.mxu0 %v3899_v4  ;;  %v3900_v37 = vand.u32 4294901760, %v3899_v4 }
 0x20c   :  { %4247 = vmatpush.msra.mxu3 %v8127_v63  ;;  %4272 = vmatpush.msrb.mxu0 %v4189_v3 }
 0x20d   :  { %3985 = vmatmul.f32.vlgmr.msrb.gmra.mxu1 %v3900_v37  ;;  %v3901_v53 = vsub.f32 %v3899_v4, %v3900_v37  ;;  %v4106_v6 = vld [vmem:[#allocation6 + $0x8] sm:$0xf] }
 0x20e   :  { %v4108_v32 = vmul.f32 %v8104_v46, %v4106_v6  ;;  %v4110_v60 = vld [vmem:[#allocation7 + $0x8] sm:$0xf]  ;;  %4276 = vmatpush.msrb.mxu0 %v4195_v16  ;;  %v8166_v4 = vld [vmem:[%s8640_s5 + $0x8] ss:$0 sm:$0xff]  ;;  %4297 = vmatpush.msrb.mxu1 %v8110_v42  ;;  %s8446_s5 = sshll.u32 %s6041_s1, 4  ;;  %s5764_s5 = int_to_ptr.vmem [resolvable:$true] %s8446_s5 }
 0x20f   :  { %v3902_v45 = vand.u32 4294901760, %v3901_v53  ;;  %v4112_v54 = vmul.f32 %v8119_v30, %v4110_v60  ;;  %v4114_v12 = vld [vmem:[#allocation6 + $0xa] sm:$0xf] }
 0x210   :  { %v4109_v18 = vadd.f32 %v4108_v32, %v4105_v21  ;;  %v4116_v56 = vmul.f32 %v8144_v51, %v4114_v12  ;;  %4299 = vmatpush.msrb.mxu1 %v8127_v63 }
 0x211   :  { %3903 = vmatmul.f32.vlgmr.msra.gmra.mxu2 %v3902_v45  ;;  %4035 = vmatmul.f32.vlgmr.msrb.gmra.mxu3 %v3898_v57 }
 0x212   :  { %4220 = vmatpush.msra.mxu2 %v8122_v22  ;;  %v4113_v17 = vadd.f32 %v4112_v54, %v4109_v18  ;;  %4385 = vmatpush.msrb.mxu3 %v4191_v52 }
 0x214   :  { %4223 = vmatpush.msra.mxu2 %v8134_v15  ;;  %v4117_v14 = vadd.f32 %v4116_v56, %v4113_v17  ;;  %4391 = vmatpush.msrb.mxu3 %v4197_v7 }
 0x217   :  { %v3575_v34 = vpop.f32.mrf.mxu0 }
 0x219   :  { %4012 = vmatmul.f32.vlgmr.msrb.gmra.mxu2 %v3898_v57  ;;  %v3600_v49 = vpop.f32.mrf.mxu1 }
 0x21a   :  { %4354 = vmatpush.msrb.mxu2 %v8110_v42 }
 0x21b   :  { %v3549_v43 = vpop.f32.mrf.mxu3 }
 0x21c   :  { %4356 = vmatpush.msrb.mxu2 %v8127_v63 }
 0x223   :  { %v3518_v24 = vpop.f32.mrf.mxu2  ;;  %v3650_v29 = vpop.f32.mrf.mxu3 }
 0x224   :  { %v3519_v44 = vadd.f32 %v8053_v27, %v3518_v24 }
 0x226   :  { %v3550_v55 = vadd.f32 %v3549_v43, %v3519_v44 }
 0x228   :  { %v3576_v35 = vadd.f32 %v3575_v34, %v3550_v55 }
 0x22a   :  { %v3601_v10 = vadd.f32 %v3600_v49, %v3576_v35  ;;  %v8177_v49 = vld [vmem:[%s8641_s6] ss:$0 sm:$0xff] }
 0x22b   :  { %v3627_v38 = vpop.f32.mrf.mxu2 }
 0x22c   :  { %v3628_v1 = vadd.f32 %v3627_v38, %v3601_v10 }
 0x22e   :  { %v3651_v31 = vadd.f32 %v3650_v29, %v3628_v1 }
 0x230   :  { %v3653_v40 = vmax.f32 %v3651_v31, 0.0 }
 0x232   :  { %4042 = vst.msk [vmem:[#allocation11 + $0x8] sm:$0xff] %vm194_vm2, %v3653_v40 }
 0x239   :  { %v4048_v47 = vld [vmem:[#allocation11 + $0x8] sm:$0x3]  ;;  %v4057_v62 = vld [vmem:[#allocation11 + $0xa] sm:$0x3]  ;;  %v4066_v48 = vld [vmem:[#allocation11 + $0xc] sm:$0x3] }
 0x23a   :  { %4053 = vst.msk [vmem:[#allocation7 + $0x10] sm:$0x3] %vm196_vm3, %v4048_v47  ;;  %v4074_v23 = vld [vmem:[#allocation11 + $0xe] sm:$0x3] }
 0x23b   :  { %4062 = vst.msk [vmem:[#allocation6 + $0x12] sm:$0x3] %vm196_vm3, %v4057_v62 }
 0x23c   :  { %4070 = vst.msk [vmem:[#allocation7 + $0x12] sm:$0x3] %vm196_vm3, %v4066_v48 }
 0x23d   :  { %4078 = vst.msk [vmem:[#allocation6 + $0x14] sm:$0x3] %vm196_vm3, %v4074_v23 }
 0x242   :  { %v4119_v2 = vld [vmem:[#allocation6 + $0x10] sm:$0xf] }
 0x243   :  { %v4121_v0 = vmul.f32 %v8151_v33, %v4119_v2  ;;  %v4124_v57 = vld [vmem:[#allocation7 + $0x10] sm:$0xf]  ;;  %v4306_v37 = vmul.f32 %v8085_v13, %v4119_v2 }
 0x244   :  { %v4128_v53 = vld [vmem:[#allocation6 + $0x12] sm:$0xf]  ;;  %v4308_v45 = vmul.f32 %v8090_v41, %v4124_v57  ;;  %v4126_v24 = vmul.f32 %v8159_v9, %v4124_v57 }
 0x245   :  { %v4122_v43 = vadd.f32 %v4121_v0, %v4117_v14  ;;  %v4310_v55 = vmul.f32 %v8097_v61, %v4128_v53  ;;  %v4130_v35 = vmul.f32 %v8166_v4, %v4128_v53 }
 0x246   :  { %v4309_v44 = vadd.f32 %v4308_v45, %v4306_v37 }
 0x247   :  { %v4127_v34 = vadd.f32 %v4126_v24, %v4122_v43 }
 0x248   :  { %v8180_v10 = vadd.f32 %v4310_v55, %v4309_v44 }
 0x249   :  { %v4131_v38 = vadd.f32 %v4130_v35, %v4127_v34 }
 0x24a   :  { %v3742_v26 = vpop.f32.mrf.mxu1 }
 0x24b   :  { %v4135_v13 = vadd.f32 %v8177_v49, %v4131_v38 }
 0x24d   :  { %v4136_v41 = vmax.f32 %v4135_v13, 0.0 }
 0x24f   :  { %v4141_v1 = vsel %vm194_vm2, %v4136_v41, 0 }
 0x250   :  { %v4164_v58 = vand.u32 4294901760, %v4141_v1 }
 0x252   :  { %v3711_v29 = vpop.f32.mrf.mxu0  ;;  %4200 = vmatmul.f32.vlgmr.msra.gmra.mxu1 %v4164_v58  ;;  %v4165_v31 = vsub.f32 %v4141_v1, %v4164_v58  ;;  %v3768_v40 = vpop.f32.mrf.mxu2 }
 0x253   :  { %v3712_v25 = vadd.f32 %v8053_v27, %v3711_v29  ;;  %4438 = vmatpush.msra.mxu1 %v8110_v42  ;;  %v3843_v32 = vpop.f32.mrf.mxu1  ;;  %v5877_v29 = vld [vmem:[%s8513_s13] ss:$0 sm:$0xff] }
 0x254   :  { %4226 = vmatmul.f32.vlgmr.msra.gmra.mxu2 %v4165_v31  ;;  %v4166_v11 = vand.u32 4294901760, %v4165_v31  ;;  %v3793_v19 = vpop.f32.mrf.mxu3 }
 0x255   :  { %v3743_v61 = vadd.f32 %v3742_v26, %v3712_v25  ;;  %4440 = vmatpush.msra.mxu1 %v8127_v63  ;;  %4465 = vmatpush.msra.mxu2 %v4189_v3 }
 0x256   :  { %4251 = vmatmul.f32.vlgmr.msra.gmra.mxu3 %v4166_v11  ;;  %v4167_v5 = vsub.f32 %v4165_v31, %v4166_v11 }
 0x257   :  { %v3769_v36 = vadd.f32 %v3768_v40, %v3743_v61  ;;  %4490 = vmatpush.msra.mxu3 %v8110_v42  ;;  %4469 = vmatpush.msra.mxu2 %v4195_v16 }
 0x258   :  { %v4168_v6 = vand.u32 4294901760, %v4167_v5 }
 0x259   :  { %v3794_v20 = vadd.f32 %v3793_v19, %v3769_v36  ;;  %4492 = vmatpush.msra.mxu3 %v8127_v63 }
 0x25a   :  { %v3820_v8 = vpop.f32.mrf.mxu0  ;;  %4169 = vmatmul.f32.vlgmr.msra.gmra.mxu0 %v4168_v6  ;;  %4301 = vmatmul.f32.vlgmr.msrb.gmra.mxu1 %v4164_v58 }
 0x25b   :  { %v3821_v21 = vadd.f32 %v3820_v8, %v3794_v20  ;;  %4413 = vmatpush.msra.mxu0 %v8122_v22 }
 0x25d   :  { %v3844_v50 = vadd.f32 %v3843_v32, %v3821_v21  ;;  %4416 = vmatpush.msra.mxu0 %v8134_v15 }
 0x25f   :  { %v3846_v60 = vmax.f32 %v3844_v50, 0.0 }
 0x261   :  { %4044 = vst.msk [vmem:[#allocation11 + $0x10] sm:$0xff] %vm194_vm2, %v3846_v60  ;;  %v4523_v60 = vld [vmem:[%s8516_s16 + $0x8] sm:$0x3] }
 0x262   :  { %4278 = vmatmul.f32.vlgmr.msrb.gmra.mxu0 %v4164_v58 }
 0x268   :  { %v4049_v42 = vld [vmem:[#allocation11 + $0x10] sm:$0x3]  ;;  %v4058_v47 = vld [vmem:[#allocation11 + $0x12] sm:$0x3]  ;;  %v4067_v62 = vld [vmem:[#allocation11 + $0x14] sm:$0x3] }
 0x269   :  { %4054 = vst.msk [vmem:[#allocation7 + $0x18] sm:$0x3] %vm196_vm3, %v4049_v42  ;;  %v4075_v48 = vld [vmem:[#allocation11 + $0x16] sm:$0x3]  ;;  %v4522_v42 = vld [vmem:[%s8516_s16] sm:$0xff] }
 0x26a   :  { %4063 = vst.msk [vmem:[#allocation6 + $0x1a] sm:$0x3] %vm196_vm3, %v4058_v47  ;;  %v4575_v47 = vsel %vm3297_vm4, %v4523_v60, 0 }
 0x26b   :  { %4071 = vst.msk [vmem:[#allocation7 + $0x1a] sm:$0x3] %vm196_vm3, %v4067_v62  ;;  %v4593_v62 = vand.u32 4294901760, %v4522_v42 }
 0x26c   :  { %4079 = vst.msk [vmem:[#allocation6 + $0x1c] sm:$0x3] %vm196_vm3, %v4075_v48  ;;  %v4591_v48 = vand.u32 4294901760, %v4575_v47 }
 0x26e   :  { %4592 = vmatpush.msrb.mxu0 %v4591_v48 }
 0x270   :  { %4594 = vmatpush.msrb.mxu0 %v4593_v62 }
 0x271   :  { %v4313_v56 = vld [vmem:[#allocation6 + $0x18] sm:$0xf] }
 0x272   :  { %v4314_v7 = vmul.f32 %v8104_v46, %v4313_v56  ;;  %v4317_v57 = vld [vmem:[#allocation7 + $0x18] sm:$0xf]  ;;  %v5879_v56 = vld [vmem:[%s8514_s14 + $0x1] ss:$0 sm:$0xff] }
 0x273   :  { %v4318_v53 = vmul.f32 %v8119_v30, %v4317_v57  ;;  %v4320_v45 = vld [vmem:[#allocation6 + $0x1a] sm:$0xf] }
 0x274   :  { %v4315_v37 = vadd.f32 %v4314_v7, %v8180_v10  ;;  %v4321_v46 = vmul.f32 %v8144_v51, %v4320_v45  ;;  %v5880_v45 = vld [vmem:[%s8514_s14 + $0x2] ss:$0 sm:$0xff] }
 0x276   :  { %v4319_v43 = vadd.f32 %v4318_v53, %v4315_v37 }
 0x278   :  { %v4322_v44 = vadd.f32 %v4321_v46, %v4319_v43  ;;  %v4533_v46 = vld [vmem:[#allocation8 + $0x2] sm:$0x3] }
 0x288   :  { %v3961_v18 = vpop.f32.mrf.mxu0 }
 0x28a   :  { %v3986_v28 = vpop.f32.mrf.mxu1 }
 0x28c   :  { %v3935_v22 = vpop.f32.mrf.mxu3 }
 0x294   :  { %v3904_v23 = vpop.f32.mrf.mxu2  ;;  %v4036_v52 = vpop.f32.mrf.mxu3 }
 0x295   :  { %v3905_v63 = vadd.f32 %v8053_v27, %v3904_v23  ;;  %v4619_v23 = vsub.f32 %v4575_v47, %v4591_v48 }
 0x297   :  { %v3936_v3 = vadd.f32 %v3935_v22, %v3905_v63  ;;  %v4625_v22 = vsub.f32 %v4522_v42, %v4593_v62 }
 0x299   :  { %v3962_v15 = vadd.f32 %v3961_v18, %v3936_v3  ;;  %v4626_v63 = vand.u32 4294901760, %v4625_v22  ;;  %v4620_v3 = vand.u32 4294901760, %v4619_v23 }
 0x29b   :  { %v3987_v54 = vadd.f32 %v3986_v28, %v3962_v15  ;;  %v4627_v18 = vsub.f32 %v4625_v22, %v4626_v63 }
 0x29c   :  { %v4013_v16 = vpop.f32.mrf.mxu2 }
 0x29d   :  { %v4014_v12 = vadd.f32 %v4013_v16, %v3987_v54  ;;  %v4621_v54 = vsub.f32 %v4619_v23, %v4620_v3 }
 0x29f   :  { %v4037_v17 = vadd.f32 %v4036_v52, %v4014_v12  ;;  %v4622_v12 = vand.u32 4294901760, %v4621_v54  ;;  %v4628_v52 = vand.u32 4294901760, %v4627_v18 }
 0x2a1   :  { %v4039_v39 = vmax.f32 %v4037_v17, 0.0  ;;  %4623 = vmatpush.msrb.mxu1 %v4622_v12 }
 0x2a3   :  { %4046 = vst.msk [vmem:[#allocation11 + $0x18] sm:$0xff] %vm194_vm2, %v4039_v39  ;;  %v5878_v39 = vld [vmem:[%s8514_s14] ss:$0 sm:$0xff]  ;;  %4629 = vmatpush.msrb.mxu1 %v4628_v52 }
 0x2aa   :  { %v4050_v2 = vld [vmem:[#allocation11 + $0x18] sm:$0x3]  ;;  %v4059_v14 = vld [vmem:[#allocation11 + $0x1a] sm:$0x3]  ;;  %v4068_v0 = vld [vmem:[#allocation11 + $0x1c] sm:$0x3] }
 0x2ab   :  { %4055 = vst.msk [vmem:[#allocation7 + $0x20] sm:$0x3] %vm196_vm3, %v4050_v2  ;;  %v4076_v27 = vld [vmem:[#allocation11 + $0x1e] sm:$0x3]  ;;  %v4525_v2 = vld [vmem:[#allocation8] sm:$0x3] }
 0x2ac   :  { %4064 = vst.msk [vmem:[#allocation6 + $0x22] sm:$0x3] %vm196_vm3, %v4059_v14  ;;  %v4529_v14 = vld [vmem:[#allocation9] sm:$0x3]  ;;  %v4527_v37 = vmul.f32 %v5878_v39, %v4525_v2 }
 0x2ad   :  { %4072 = vst.msk [vmem:[#allocation7 + $0x22] sm:$0x3] %vm196_vm3, %v4068_v0  ;;  %v4531_v53 = vmul.f32 %v5879_v56, %v4529_v14  ;;  %v5888_v14 = vld [vmem:[%s8517_s17] ss:$0 sm:$0xff] }
 0x2ae   :  { %4080 = vst.msk [vmem:[#allocation6 + $0x24] sm:$0x3] %vm196_vm3, %v4076_v27 }
 0x2b3   :  { %v4324_v24 = vld [vmem:[#allocation6 + $0x20] sm:$0xf] }
 0x2b4   :  { %v4325_v55 = vmul.f32 %v8151_v33, %v4324_v24  ;;  %v4328_v34 = vld [vmem:[#allocation7 + $0x20] sm:$0xf] }
 0x2b5   :  { %v4331_v35 = vld [vmem:[#allocation6 + $0x22] sm:$0xf]  ;;  %v4329_v13 = vmul.f32 %v8159_v9, %v4328_v34  ;;  %v4532_v34 = vadd.f32 %v4531_v53, %v4527_v37 }
 0x2b6   :  { %v4326_v38 = vadd.f32 %v4325_v55, %v4322_v44  ;;  %v4332_v41 = vmul.f32 %v8166_v4, %v4331_v35  ;;  %v4535_v35 = vmul.f32 %v5880_v45, %v4533_v46 }
 0x2b8   :  { %v4330_v10 = vadd.f32 %v4329_v13, %v4326_v38  ;;  %v5881_v38 = vld [vmem:[%s8514_s14 + $0x3] ss:$0 sm:$0xff]  ;;  %v4537_v13 = vld [vmem:[#allocation8 + $0x4] sm:$0x3] }
 0x2ba   :  { %v4333_v1 = vadd.f32 %v4332_v41, %v4330_v10  ;;  %v4536_v41 = vadd.f32 %v4535_v35, %v4532_v34 }
 0x2bc   :  { %v4334_v58 = vadd.f32 %v8177_v49, %v4333_v1  ;;  %v4539_v1 = vmul.f32 %v5881_v38, %v4537_v13 }
 0x2be   :  { %v4335_v30 = vmax.f32 %v4334_v58, 0.0  ;;  %v5882_v58 = vld [vmem:[%s8514_s14 + $0x4] ss:$0 sm:$0xff] }
 0x2c0   :  { %v4337_v51 = vsel %vm194_vm2, %v4335_v30, 0 }
 0x2c1   :  { %v4357_v33 = vand.u32 4294901760, %v4337_v51 }
 0x2c3   :  { %4393 = vmatmul.f32.vlgmr.msrb.gmra.mxu3 %v4357_v33  ;;  %v4358_v9 = vsub.f32 %v4337_v51, %v4357_v33  ;;  %v4540_v51 = vadd.f32 %v4539_v1, %v4536_v41 }
 0x2c4   :  { %4676 = vmatpush.msrb.mxu3 %v4591_v48 }
 0x2c5   :  { %4419 = vmatmul.f32.vlgmr.msra.gmra.mxu0 %v4358_v9  ;;  %v4359_v4 = vand.u32 4294901760, %v4358_v9 }
 0x2c6   :  { %4678 = vmatpush.msrb.mxu3 %v4593_v62  ;;  %4703 = vmatpush.msra.mxu0 %v4620_v3  ;;  %v4739_v3 = vld [vmem:[%s8518_s18 + $0x8] sm:$0x3] }
 0x2c7   :  { %4444 = vmatmul.f32.vlgmr.msra.gmra.mxu1 %v4359_v4  ;;  %v4360_v49 = vsub.f32 %v4358_v9, %v4359_v4  ;;  %v5883_v9 = vld [vmem:[%s8514_s14 + $0x5] ss:$0 sm:$0xff]  ;;  %v4748_v18 = vsel %vm3297_vm4, %v4739_v3, 0 }
 0x2c8   :  { %4707 = vmatpush.msra.mxu0 %v4626_v63  ;;  %4728 = vmatpush.msra.mxu1 %v4591_v48 }
 0x2c9   :  { %v4361_v26 = vand.u32 4294901760, %v4360_v49 }
 0x2ca   :  { %4730 = vmatpush.msra.mxu1 %v4593_v62 }
 0x2cb   :  { %4362 = vmatmul.f32.vlgmr.msrb.gmra.mxu2 %v4361_v26  ;;  %4494 = vmatmul.f32.vlgmr.msra.gmra.mxu3 %v4357_v33 }
 0x2cc   :  { %4651 = vmatpush.msrb.mxu2 %v4619_v23 }
 0x2ce   :  { %4654 = vmatpush.msrb.mxu2 %v4625_v22 }
 0x2cf   :  { %v4201_v31 = vpop.f32.mrf.mxu1 }
 0x2d3   :  { %4471 = vmatmul.f32.vlgmr.msra.gmra.mxu2 %v4357_v33 }
 0x2d7   :  { %v4170_v25 = vpop.f32.mrf.mxu0  ;;  %v4227_v40 = vpop.f32.mrf.mxu2 }
 0x2d8   :  { %v4171_v11 = vadd.f32 %v5877_v29, %v4170_v25  ;;  %v4302_v20 = vpop.f32.mrf.mxu1  ;;  %v4550_v25 = vld [vmem:[#allocation8 + $0x8] sm:$0x3] }
 0x2d9   :  { %v4252_v36 = vpop.f32.mrf.mxu3 }
 0x2da   :  { %v4202_v61 = vadd.f32 %v4201_v31, %v4171_v11  ;;  %v5884_v31 = vld [vmem:[%s8514_s14 + $0x6] ss:$0 sm:$0xff] }
 0x2dc   :  { %v4228_v5 = vadd.f32 %v4227_v40, %v4202_v61  ;;  %v4552_v40 = vmul.f32 %v5884_v31, %v4550_v25 }
 0x2de   :  { %v4253_v19 = vadd.f32 %v4252_v36, %v4228_v5  ;;  %v5885_v5 = vld [vmem:[%s8514_s14 + $0x7] ss:$0 sm:$0xff]  ;;  %v5886_v36 = vld [vmem:[%s8514_s14 + $0x8] ss:$0 sm:$0xff] }
 0x2df   :  { %v4279_v6 = vpop.f32.mrf.mxu0 }
 0x2e0   :  { %v4280_v59 = vadd.f32 %v4279_v6, %v4253_v19 }
 0x2e2   :  { %v4303_v8 = vadd.f32 %v4302_v20, %v4280_v59 }
 0x2e4   :  { %v4305_v21 = vmax.f32 %v4303_v8, 0.0 }
 0x2e6   :  { %4499 = vst.msk [vmem:[#allocation12] sm:$0xf] %vm249_vm6, %v4305_v21 }
 0x2ed   :  { %v4502_v32 = vld [vmem:[#allocation12] sm:$0x3]  ;;  %v4507_v50 = vld [vmem:[#allocation12 + $0x2] sm:$0x3] }
 0x2ee   :  { %4505 = vst.msk [vmem:[#allocation9 + $0x4] sm:$0x3] %vm196_vm3, %v4502_v32  ;;  %v5887_v32 = vld [vmem:[%s8515_s15] ss:$0 sm:$0xff] }
 0x2ef   :  { %4510 = vst.msk [vmem:[#allocation8 + $0x6] sm:$0x3] %vm196_vm3, %v4507_v50 }
 0x2f5   :  { %v4541_v30 = vld [vmem:[#allocation9 + $0x4] sm:$0x3] }
 0x2f6   :  { %v4543_v33 = vmul.f32 %v5882_v58, %v4541_v30  ;;  %v4545_v26 = vld [vmem:[#allocation8 + $0x6] sm:$0x3]  ;;  %v4911_v30 = vld [vmem:[%s8520_s20 + $0x8] sm:$0x3] }
 0x2f7   :  { %v4547_v11 = vmul.f32 %v5883_v9, %v4545_v26  ;;  %v4910_v9 = vld [vmem:[%s8520_s20] sm:$0xff] }
 0x342   :  { %v4420_v7 = vpop.f32.mrf.mxu0 }
 0x344   :  { %v4445_v27 = vpop.f32.mrf.mxu1 }
 0x346   :  { %v4394_v15 = vpop.f32.mrf.mxu3 }
 0x34e   :  { %v4363_v28 = vpop.f32.mrf.mxu2  ;;  %v4495_v44 = vpop.f32.mrf.mxu3 }
 0x34f   :  { %v4364_v16 = vadd.f32 %v5877_v29, %v4363_v28  ;;  %v4544_v29 = vadd.f32 %v4543_v33, %v4540_v51  ;;  %v4738_v28 = vld [vmem:[%s8518_s18] sm:$0xff]  ;;  %v4920_v51 = vsel %vm3297_vm4, %v4911_v30, 0 }
 0x350   :  { %v4936_v33 = vand.u32 4294901760, %v4920_v51 }
 0x351   :  { %v4395_v17 = vadd.f32 %v4394_v15, %v4364_v16  ;;  %v4548_v61 = vadd.f32 %v4547_v11, %v4544_v29  ;;  %v4764_v15 = vand.u32 4294901760, %v4748_v18  ;;  %v4766_v16 = vand.u32 4294901760, %v4738_v28 }
 0x353   :  { %v4421_v0 = vadd.f32 %v4420_v7, %v4395_v17  ;;  %v4553_v6 = vadd.f32 %v4552_v40, %v4548_v61  ;;  %v4792_v54 = vsub.f32 %v4748_v18, %v4764_v15  ;;  %4765 = vmatpush.msra.mxu2 %v4764_v15  ;;  %v4798_v52 = vsub.f32 %v4738_v28, %v4766_v16 }
 0x355   :  { %v4446_v57 = vadd.f32 %v4445_v27, %v4421_v0  ;;  %v4793_v12 = vand.u32 4294901760, %v4792_v54  ;;  %4767 = vmatpush.msra.mxu2 %v4766_v16  ;;  %v4799_v39 = vand.u32 4294901760, %v4798_v52 }
 0x356   :  { %v4472_v43 = vpop.f32.mrf.mxu2 }
 0x357   :  { %v4473_v24 = vadd.f32 %v4472_v43, %v4446_v57  ;;  %v4794_v17 = vsub.f32 %v4792_v54, %v4793_v12  ;;  %v4800_v7 = vsub.f32 %v4798_v52, %v4799_v39 }
 0x359   :  { %v4496_v55 = vadd.f32 %v4495_v44, %v4473_v24  ;;  %v4795_v56 = vand.u32 4294901760, %v4794_v17  ;;  %v4801_v2 = vand.u32 4294901760, %v4800_v7 }
 0x35b   :  { %v4498_v10 = vmax.f32 %v4496_v55, 0.0  ;;  %4796 = vmatpush.msra.mxu3 %v4795_v56 }
 0x35d   :  { %4501 = vst.msk [vmem:[#allocation12 + $0x4] sm:$0xf] %vm249_vm6, %v4498_v10  ;;  %4802 = vmatpush.msra.mxu3 %v4801_v2 }
 0x364   :  { %v4503_v4 = vld [vmem:[#allocation12 + $0x4] sm:$0x3]  ;;  %v4508_v49 = vld [vmem:[#allocation12 + $0x6] sm:$0x3] }
 0x365   :  { %4506 = vst.msk [vmem:[#allocation9 + $0x8] sm:$0x3] %vm196_vm3, %v4503_v4  ;;  %v4964_v4 = vsub.f32 %v4920_v51, %v4936_v33 }
 0x366   :  { %4511 = vst.msk [vmem:[#allocation8 + $0xa] sm:$0x3] %vm196_vm3, %v4508_v49  ;;  %v4938_v49 = vand.u32 4294901760, %v4910_v9 }
 0x367   :  { %v4965_v26 = vand.u32 4294901760, %v4964_v4 }
 0x368   :  { %v4970_v29 = vsub.f32 %v4910_v9, %v4938_v49 }
 0x369   :  { %v4966_v31 = vsub.f32 %v4964_v4, %v4965_v26 }
 0x36a   :  { %v4971_v25 = vand.u32 4294901760, %v4970_v29 }
 0x36b   :  { %v4967_v11 = vand.u32 4294901760, %v4966_v31 }
 0x36c   :  { %v4555_v19 = vld [vmem:[#allocation9 + $0x8] sm:$0x3]  ;;  %v4972_v61 = vsub.f32 %v4970_v29, %v4971_v25 }
 0x36d   :  { %v4557_v59 = vmul.f32 %v5885_v5, %v4555_v19  ;;  %v4559_v20 = vld [vmem:[#allocation8 + $0xa] sm:$0x3]  ;;  %v5822_v5 = vld [vmem:[%s8520_s20 + $0x18] sm:$0x3] }
 0x36e   :  { %v4561_v21 = vmul.f32 %v5886_v36, %v4559_v20  ;;  %v4973_v40 = vand.u32 4294901760, %v4972_v61  ;;  %v5092_v36 = vsel %vm3297_vm4, %v5822_v5, 0 }
 0x36f   :  { %v4558_v8 = vadd.f32 %v4557_v59, %v4553_v6  ;;  %v5108_v19 = vand.u32 4294901760, %v5092_v36  ;;  %v5821_v6 = vld [vmem:[%s8520_s20 + $0x10] sm:$0xff] }
 0x370   :  { %v5110_v20 = vand.u32 4294901760, %v5821_v6 }
 0x371   :  { %v4562_v50 = vadd.f32 %v4561_v21, %v4558_v8  ;;  %v8295_v59 = vsub.f32 %v5092_v36, %v5108_v19 }
 0x372   :  { %v5142_v21 = vsub.f32 %v5821_v6, %v5110_v20 }
 0x373   :  { %v4566_v60 = vadd.f32 %v5887_v32, %v4562_v50  ;;  %v5137_v8 = vand.u32 4294901760, %v8295_v59 }
 0x374   :  { %v5143_v50 = vand.u32 4294901760, %v5142_v21 }
 0x375   :  { %v4567_v42 = vmax.f32 %v4566_v60, 0.0  ;;  %v5138_v32 = vsub.f32 %v8295_v59, %v5137_v8 }
 0x377   :  { %v4572_v47 = vsel %vm194_vm2, %v4567_v42, 0  ;;  %v5139_v60 = vand.u32 4294901760, %v5138_v32  ;;  %v5144_v42 = vsub.f32 %v5142_v21, %v5143_v50 }
 0x378   :  { %v4595_v62 = vand.u32 4294901760, %v4572_v47 }
 0x37a   :  { %4631 = vmatmul.f32.vlgmr.msrb.gmra.mxu1 %v4595_v62  ;;  %v4596_v48 = vsub.f32 %v4572_v47, %v4595_v62  ;;  %v5889_v47 = vld [vmem:[%s8519_s19] ss:$0 sm:$0xff]  ;;  %s5785_s19 = sshll.u32 %s6043_s8, 4  ;;  %s5786_s19 = int_to_ptr.vmem [resolvable:$true] %s5785_s19 }
 0x37b   :  { %4849 = vmatpush.msrb.mxu1 %v4764_v15 }
 0x37c   :  { %4657 = vmatmul.f32.vlgmr.msrb.gmra.mxu2 %v4596_v48  ;;  %v4597_v22 = vand.u32 4294901760, %v4596_v48 }
 0x37d   :  { %4851 = vmatpush.msrb.mxu1 %v4766_v16  ;;  %4876 = vmatpush.msrb.mxu2 %v4793_v12 }
 0x37e   :  { %4682 = vmatmul.f32.vlgmr.msrb.gmra.mxu3 %v4597_v22  ;;  %v4598_v23 = vsub.f32 %v4596_v48, %v4597_v22 }
 0x37f   :  { %4880 = vmatpush.msrb.mxu2 %v4799_v39  ;;  %4901 = vmatpush.msrb.mxu3 %v4764_v15 }
 0x380   :  { %v4599_v63 = vand.u32 4294901760, %v4598_v23 }
 0x381   :  { %4903 = vmatpush.msrb.mxu3 %v4766_v16 }
 0x382   :  { %4600 = vmatmul.f32.vlgmr.msrb.gmra.mxu0 %v4599_v63  ;;  %4732 = vmatmul.f32.vlgmr.msra.gmra.mxu1 %v4595_v62  ;;  %v5825_v63 = vld [vmem:[%s8520_s20 + $0x28] sm:$0x3] }
 0x383   :  { %4824 = vmatpush.msrb.mxu0 %v4792_v54  ;;  %4968 = vmatpush.msra.mxu1 %v4967_v11  ;;  %v5264_v15 = vsel %vm3297_vm4, %v5825_v63, 0 }
 0x384   :  { %v5280_v12 = vand.u32 4294901760, %v5264_v15 }
 0x385   :  { %4827 = vmatpush.msrb.mxu0 %v4798_v52  ;;  %4974 = vmatpush.msra.mxu1 %v4973_v40  ;;  %v5824_v52 = vld [vmem:[%s8520_s20 + $0x20] sm:$0xff] }
 0x386   :  { %v5282_v7 = vand.u32 4294901760, %v5824_v52 }
 0x38a   :  { %4709 = vmatmul.f32.vlgmr.msra.gmra.mxu0 %v4595_v62  ;;  %v5145_v62 = vand.u32 4294901760, %v5144_v42 }
 0x38b   :  { %4937 = vmatpush.msra.mxu0 %v4936_v33 }
 0x38d   :  { %4939 = vmatpush.msra.mxu0 %v4938_v49 }
 0x3f7   :  { %v4632_v0 = vpop.f32.mrf.mxu1 }
 0x3ff   :  { %v4601_v27 = vpop.f32.mrf.mxu0  ;;  %v4658_v53 = vpop.f32.mrf.mxu2 }
 0x400   :  { %v4602_v57 = vadd.f32 %v5888_v14, %v4601_v27  ;;  %v4733_v55 = vpop.f32.mrf.mxu1  ;;  %v8309_v14 = vsub.f32 %v5264_v15, %v5280_v12  ;;  %v5828_v27 = vld [vmem:[%s8520_s20 + $0x38] sm:$0x3] }
 0x401   :  { %v4683_v43 = vpop.f32.mrf.mxu3 }
 0x402   :  { %v4633_v37 = vadd.f32 %v4632_v0, %v4602_v57  ;;  %v8314_v57 = vsub.f32 %v5824_v52, %v5282_v7 }
 0x404   :  { %v4659_v45 = vadd.f32 %v4658_v53, %v4633_v37  ;;  %v5309_v53 = vand.u32 4294901760, %v8309_v14 }
 0x406   :  { %v4684_v46 = vadd.f32 %v4683_v43, %v4659_v45  ;;  %v5443_v43 = vsel %vm3297_vm4, %v5828_v27, 0 }
 0x407   :  { %v4710_v24 = vpop.f32.mrf.mxu0 }
 0x408   :  { %v4711_v44 = vadd.f32 %v4710_v24, %v4684_v46  ;;  %v5315_v24 = vand.u32 4294901760, %v8314_v57 }
 0x40a   :  { %v4734_v34 = vadd.f32 %v4733_v55, %v4711_v44  ;;  %v5827_v44 = vld [vmem:[%s8520_s20 + $0x30] sm:$0xff]  ;;  %v5310_v55 = vsub.f32 %v8309_v14, %v5309_v53 }
 0x40c   :  { %v4736_v35 = vmax.f32 %v4734_v34, 0.0  ;;  %v5459_v34 = vand.u32 4294901760, %v5443_v43 }
 0x40e   :  { %v4745_v38 = vsel %vm194_vm2, %v4736_v35, 0 }
 0x40f   :  { %v4768_v13 = vand.u32 4294901760, %v4745_v38 }
 0x411   :  { %v4769_v10 = vsub.f32 %v4745_v38, %v4768_v13  ;;  %4804 = vmatmul.f32.vlgmr.msra.gmra.mxu3 %v4768_v13  ;;  %v5461_v38 = vand.u32 4294901760, %v5827_v44 }
 0x412   :  { %5021 = vmatpush.msra.mxu3 %v4936_v33 }
 0x413   :  { %v4770_v41 = vand.u32 4294901760, %v4769_v10  ;;  %4830 = vmatmul.f32.vlgmr.msrb.gmra.mxu0 %v4769_v10  ;;  %v5493_v30 = vsub.f32 %v5827_v44, %v5461_v38 }
 0x414   :  { %5023 = vmatpush.msra.mxu3 %v4938_v49  ;;  %5048 = vmatpush.msrb.mxu0 %v4965_v26 }
 0x415   :  { %v4771_v1 = vsub.f32 %v4769_v10, %v4770_v41  ;;  %4855 = vmatmul.f32.vlgmr.msrb.gmra.mxu1 %v4770_v41  ;;  %v5316_v10 = vsub.f32 %v8314_v57, %v5315_v24  ;;  %v5311_v41 = vand.u32 4294901760, %v5310_v55  ;;  %v5494_v9 = vand.u32 4294901760, %v5493_v30 }
 0x416   :  { %5052 = vmatpush.msrb.mxu0 %v4971_v25  ;;  %5073 = vmatpush.msrb.mxu1 %v4936_v33  ;;  %v5890_v25 = vld [vmem:[%s8521_s21] ss:$0 sm:$0xff] }
 0x417   :  { %v4772_v58 = vand.u32 4294901760, %v4771_v1  ;;  %v5487_v1 = vsub.f32 %v5443_v43, %v5459_v34  ;;  %v5317_v51 = vand.u32 4294901760, %v5316_v10 }
 0x418   :  { %5075 = vmatpush.msrb.mxu1 %v4938_v49  ;;  %v5495_v49 = vsub.f32 %v5493_v30, %v5494_v9 }
 0x419   :  { %4773 = vmatmul.f32.vlgmr.msra.gmra.mxu2 %v4772_v58  ;;  %4905 = vmatmul.f32.vlgmr.msrb.gmra.mxu3 %v4768_v13  ;;  %v5488_v33 = vand.u32 4294901760, %v5487_v1 }
 0x41a   :  { %4996 = vmatpush.msra.mxu2 %v4964_v4  ;;  %5140 = vmatpush.msrb.mxu3 %v5139_v60 }
 0x41b   :  { %v5489_v4 = vsub.f32 %v5487_v1, %v5488_v33 }
 0x41c   :  { %4999 = vmatpush.msra.mxu2 %v4970_v29  ;;  %5146 = vmatpush.msrb.mxu3 %v5145_v62  ;;  %v5496_v29 = vand.u32 4294901760, %v5495_v49 }
 0x41d   :  { %v5490_v26 = vand.u32 4294901760, %v5489_v4 }
 0x421   :  { %4882 = vmatmul.f32.vlgmr.msrb.gmra.mxu2 %v4768_v13 }
 0x422   :  { %5109 = vmatpush.msrb.mxu2 %v5108_v19 }
 0x424   :  { %5111 = vmatpush.msrb.mxu2 %v5110_v20 }
 0x490   :  { %v4831_v18 = vpop.f32.mrf.mxu0 }
 0x492   :  { %v4856_v54 = vpop.f32.mrf.mxu1 }
 0x494   :  { %v4805_v48 = vpop.f32.mrf.mxu3 }
 0x49c   :  { %v4774_v22 = vpop.f32.mrf.mxu2  ;;  %v4906_v56 = vpop.f32.mrf.mxu3 }
 0x49d   :  { %v4775_v23 = vadd.f32 %v5889_v47, %v4774_v22 }
 0x49f   :  { %v4806_v3 = vadd.f32 %v4805_v48, %v4775_v23 }
 0x4a1   :  { %v4832_v28 = vadd.f32 %v4831_v18, %v4806_v3 }
 0x4a3   :  { %v4857_v16 = vadd.f32 %v4856_v54, %v4832_v28  ;;  %v5892_v28 = vld [vmem:[%s8521_s21 + $0x2] ss:$0 sm:$0xff] }
 0x4a4   :  { %v4883_v17 = vpop.f32.mrf.mxu2 }
 0x4a5   :  { %v4884_v39 = vadd.f32 %v4883_v17, %v4857_v16 }
 0x4a7   :  { %v4907_v2 = vadd.f32 %v4906_v56, %v4884_v39 }
 0x4a9   :  { %v4909_v0 = vmax.f32 %v4907_v2, 0.0 }
 0x4ab   :  { %v4917_v37 = vsel %vm194_vm2, %v4909_v0, 0 }
 0x4ac   :  { %v8318_v45 = vand.u32 4294901760, %v4917_v37 }
 0x4ae   :  { %v8322_v46 = vsub.f32 %v4917_v37, %v8318_v45  ;;  %4976 = vmatmul.f32.vlgmr.msra.gmra.mxu1 %v8318_v45 }
 0x4af   :  { %5193 = vmatpush.msra.mxu1 %v5108_v19 }
 0x4b0   :  { %5002 = vmatmul.f32.vlgmr.msra.gmra.mxu2 %v8322_v46  ;;  %v8332_v35 = vand.u32 4294901760, %v8322_v46 }
 0x4b1   :  { %5220 = vmatpush.msra.mxu2 %v5137_v8  ;;  %5195 = vmatpush.msra.mxu1 %v5110_v20 }
 0x4b2   :  { %5027 = vmatmul.f32.vlgmr.msra.gmra.mxu3 %v8332_v35  ;;  %v4943_v13 = vsub.f32 %v8322_v46, %v8332_v35 }
 0x4b3   :  { %5245 = vmatpush.msra.mxu3 %v5108_v19  ;;  %5224 = vmatpush.msra.mxu2 %v5143_v50 }
 0x4b4   :  { %v4944_v58 = vand.u32 4294901760, %v4943_v13 }
 0x4b5   :  { %5247 = vmatpush.msra.mxu3 %v5110_v20 }
 0x4b6   :  { %4945 = vmatmul.f32.vlgmr.msra.gmra.mxu0 %v4944_v58  ;;  %5077 = vmatmul.f32.vlgmr.msrb.gmra.mxu1 %v8318_v45 }
 0x4b7   :  { %5168 = vmatpush.msra.mxu0 %v8295_v59  ;;  %5312 = vmatpush.msrb.mxu1 %v5311_v41  ;;  %v5891_v59 = vld [vmem:[%s8521_s21 + $0x1] ss:$0 sm:$0xff] }
 0x4b8   :  { %5117 = vmatmul.f32.vlgmr.msrb.gmra.mxu2 %v4944_v58 }
 0x4b9   :  { %5171 = vmatpush.msra.mxu0 %v5142_v21  ;;  %5340 = vmatpush.msrb.mxu2 %v8309_v14  ;;  %v5893_v14 = vld [vmem:[%s8521_s21 + $0x3] ss:$0 sm:$0xff] }
 0x4ba   :  { %5148 = vmatmul.f32.vlgmr.msrb.gmra.mxu3 %v8318_v45  ;;  %5318 = vmatpush.msrb.mxu1 %v5317_v51 }
 0x4bb   :  { %5365 = vmatpush.msrb.mxu3 %v5280_v12  ;;  %5343 = vmatpush.msrb.mxu2 %v8314_v57 }
 0x4bd   :  { %5367 = vmatpush.msrb.mxu3 %v5282_v7 }
 0x4be   :  { %5054 = vmatmul.f32.vlgmr.msrb.gmra.mxu0 %v8318_v45  ;;  %5199 = vmatmul.f32.vlgmr.msra.gmra.mxu1 %v8332_v35 }
 0x4bf   :  { %5281 = vmatpush.msrb.mxu0 %v5280_v12  ;;  %5417 = vmatpush.msra.mxu1 %v5280_v12 }
 0x4c0   :  { %5226 = vmatmul.f32.vlgmr.msra.gmra.mxu2 %v8318_v45 }
 0x4c1   :  { %5283 = vmatpush.msrb.mxu0 %v5282_v7  ;;  %5460 = vmatpush.msra.mxu2 %v5459_v34 }
 0x4c2   :  { %5249 = vmatmul.f32.vlgmr.msra.gmra.mxu3 %v8318_v45  ;;  %5419 = vmatpush.msra.mxu1 %v5282_v7 }
 0x4c3   :  { %5491 = vmatpush.msra.mxu3 %v5490_v26  ;;  %5462 = vmatpush.msra.mxu2 %v5461_v38 }
 0x4c5   :  { %5497 = vmatpush.msra.mxu3 %v5496_v29 }
 0x4c6   :  { %5174 = vmatmul.f32.vlgmr.msra.gmra.mxu0 %v8322_v46  ;;  %5320 = vmatmul.f32.vlgmr.msrb.gmra.mxu1 %v8318_v45 }
 0x4c7   :  { %5392 = vmatpush.msra.mxu0 %v5309_v53  ;;  %5544 = vmatpush.msrb.mxu1 %v5459_v34 }
 0x4c8   :  { %5346 = vmatmul.f32.vlgmr.msrb.gmra.mxu2 %v8322_v46 }
 0x4c9   :  { %5396 = vmatpush.msra.mxu0 %v5315_v24  ;;  %5571 = vmatpush.msrb.mxu2 %v5488_v33 }
 0x4ca   :  { %5371 = vmatmul.f32.vlgmr.msrb.gmra.mxu3 %v8332_v35  ;;  %5546 = vmatpush.msrb.mxu1 %v5461_v38 }
 0x4cb   :  { %5596 = vmatpush.msrb.mxu3 %v5459_v34  ;;  %5575 = vmatpush.msrb.mxu2 %v5494_v9 }
 0x4cd   :  { %5598 = vmatpush.msrb.mxu3 %v5461_v38 }
 0x4ce   :  { %5289 = vmatmul.f32.vlgmr.msrb.gmra.mxu0 %v4944_v58  ;;  %5421 = vmatmul.f32.vlgmr.msra.gmra.mxu1 %v8318_v45 }
 0x4cf   :  { %5519 = vmatpush.msrb.mxu0 %v5487_v1 }
 0x4d0   :  { %5468 = vmatmul.f32.vlgmr.msra.gmra.mxu2 %v4944_v58 }
 0x4d1   :  { %5522 = vmatpush.msrb.mxu0 %v5493_v30 }
 0x4d2   :  { %5499 = vmatmul.f32.vlgmr.msra.gmra.mxu3 %v8318_v45 }
 0x4d6   :  { %5398 = vmatmul.f32.vlgmr.msra.gmra.mxu0 %v8318_v45  ;;  %5550 = vmatmul.f32.vlgmr.msrb.gmra.mxu1 %v8332_v35 }
 0x4d8   :  { %5577 = vmatmul.f32.vlgmr.msrb.gmra.mxu2 %v8318_v45 }
 0x4da   :  { %5600 = vmatmul.f32.vlgmr.msrb.gmra.mxu3 %v8318_v45 }
 0x4de   :  { %5525 = vmatmul.f32.vlgmr.msrb.gmra.mxu0 %v8322_v46 }
 0x52b   :  { %v4977_v31 = vpop.f32.mrf.mxu1 }
 0x533   :  { %v4946_v11 = vpop.f32.mrf.mxu0  ;;  %v5003_v61 = vpop.f32.mrf.mxu2 }
 0x534   :  { %v4947_v40 = vadd.f32 %v5890_v25, %v4946_v11  ;;  %v5078_v5 = vpop.f32.mrf.mxu1 }
 0x535   :  { %v5028_v36 = vpop.f32.mrf.mxu3 }
 0x536   :  { %v4978_v19 = vadd.f32 %v4977_v31, %v4947_v40 }
 0x538   :  { %v5004_v6 = vadd.f32 %v5003_v61, %v4978_v19 }
 0x53a   :  { %v5029_v20 = vadd.f32 %v5028_v36, %v5004_v6 }
 0x53b   :  { %v5055_v8 = vpop.f32.mrf.mxu0  ;;  %v5118_v21 = vpop.f32.mrf.mxu2 }
 0x53c   :  { %v5056_v32 = vadd.f32 %v5055_v8, %v5029_v20  ;;  %v5119_v50 = vadd.f32 %v5891_v59, %v5118_v21  ;;  %v5200_v47 = vpop.f32.mrf.mxu1 }
 0x53d   :  { %v5149_v60 = vpop.f32.mrf.mxu3 }
 0x53e   :  { %v8364_v42 = vadd.f32 %v5078_v5, %v5056_v32  ;;  %v5150_v62 = vadd.f32 %v5149_v60, %v5119_v50 }
 0x543   :  { %v5175_v48 = vpop.f32.mrf.mxu0  ;;  %v5227_v22 = vpop.f32.mrf.mxu2 }
 0x544   :  { %v5176_v23 = vadd.f32 %v5175_v48, %v5150_v62  ;;  %v5321_v15 = vpop.f32.mrf.mxu1 }
 0x545   :  { %v5250_v63 = vpop.f32.mrf.mxu3 }
 0x546   :  { %v5201_v3 = vadd.f32 %v5200_v47, %v5176_v23 }
 0x548   :  { %v5228_v18 = vadd.f32 %v5227_v22, %v5201_v3  ;;  %v5081_v3 = vadd.f32 1.0, %v8364_v42 }
 0x54a   :  { %v8369_v54 = vadd.f32 %v5250_v63, %v5228_v18 }
 0x54b   :  { %v5290_v16 = vpop.f32.mrf.mxu0  ;;  %v5347_v12 = vpop.f32.mrf.mxu2 }
 0x54c   :  { %v5291_v52 = vadd.f32 %v5892_v28, %v5290_v16  ;;  %v5422_v7 = vpop.f32.mrf.mxu1  ;;  %v8398_v18 = vadd.f32 1.0, %v8369_v54 }
 0x54d   :  { %v5372_v17 = vpop.f32.mrf.mxu3 }
 0x54e   :  { %v5322_v39 = vadd.f32 %v5321_v15, %v5291_v52 }
 0x550   :  { %v5348_v56 = vadd.f32 %v5347_v12, %v5322_v39  ;;  %v5613_v12 = vld [vmem:[%s8522_s22] sm:$0x3] }
 0x552   :  { %v5373_v2 = vadd.f32 %v5372_v17, %v5348_v56 }
 0x553   :  { %v5399_v0 = vpop.f32.mrf.mxu0  ;;  %v5469_v27 = vpop.f32.mrf.mxu2 }
 0x554   :  { %v5400_v57 = vadd.f32 %v5399_v0, %v5373_v2  ;;  %v5470_v53 = vadd.f32 %v5893_v14, %v5469_v27  ;;  %v5551_v35 = vpop.f32.mrf.mxu1  ;;  %v5254_v2 = vmax.f32 %v8398_v18, 0.0 }
 0x555   :  { %v5500_v45 = vpop.f32.mrf.mxu3 }
 0x556   :  { %v5423_v37 = vadd.f32 %v5422_v7, %v5400_v57  ;;  %v5501_v24 = vadd.f32 %v5500_v45, %v5470_v53  ;;  %v5082_v7 = vmax.f32 %v5081_v3, 0.0 }
 0x558   :  { %v5426_v43 = vand.u32 2147483647, %v5423_v37  ;;  %v5425_v49 = vmax.f32 %v5423_v37, 0.0 }
 0x55a   :  { %v5427_v46 = vsub.f32 0.0, %v5426_v43 }
 0x55b   :  { %v5526_v44 = vpop.f32.mrf.mxu0  ;;  %v5578_v13 = vpop.f32.mrf.mxu2 }
 0x55c   :  { %v5428_v55 = vmul.f32 1.442695, %v5427_v46  ;;  %v5527_v34 = vadd.f32 %v5526_v44, %v5501_v24 }
 0x55d   :  { %v5601_v41 = vpop.f32.mrf.mxu3 }
 0x55e   :  { %5894 = vpow2.f32 %v5428_v55  ;;  %v5552_v38 = vadd.f32 %v5551_v35, %v5527_v34 }
 0x560   :  { %v5579_v10 = vadd.f32 %v5578_v13, %v5552_v38 }
 0x562   :  { %v5602_v1 = vadd.f32 %v5601_v41, %v5579_v10 }
 0x564   :  { %v5895_v58 = vpop.eup %5894  ;;  %v5605_v30 = vand.u32 2147483647, %v5602_v1  ;;  %v5604_v19 = vmax.f32 %v5602_v1, 0.0 }
 0x565   :  { %v5430_v51 = vadd.f32 1.0, %v5895_v58 }
 0x566   :  { %v5606_v33 = vsub.f32 0.0, %v5605_v30 }
 0x567   :  { %5896 = vlog2.f32 %v5430_v51 }
 0x568   :  { %v5607_v9 = vmul.f32 1.442695, %v5606_v33 }
 0x56a   :  { %5898 = vpow2.f32 %v5607_v9 }
 0x56d   :  { %v5897_v4 = vpop.eup %5896 }
 0x56e   :  { %v5432_v26 = vmul.f32 0.6931472, %v5897_v4 }
 0x570   :  { %v5899_v29 = vpop.eup %5898  ;;  %v5433_v31 = vadd.f32 %v5432_v26, %v5425_v49 }
 0x571   :  { %v5609_v25 = vadd.f32 1.0, %v5899_v29 }
 0x572   :  { %5900 = vrsqrt.f32 %v5433_v31  ;;  %v8374_v11 = vmul.f32 2.0, %v5433_v31  ;;  %vm5621_vm7 = vcmp.eq.f32.partialorder %v5433_v31, inf  ;;  %v5624_v52 = vand.u32 2147483648, %v5433_v31 }
 0x573   :  { %5902 = vlog2.f32 %v5609_v25  ;;  %vm5623_vm8 = vcmp.eq.f32.partialorder %v5433_v31, 0.0 }
 0x574   :  { %5904 = vrcp.f32 %v8374_v11  ;;  %v8378_v61 = vmul.f32 3.1415927, %v8374_v11  ;;  %vm5637_vm9 = vweird.f32 %v8374_v11  ;;  %v5641_v53 = vand.u32 2147483647, %v8374_v11 }
 0x575   :  { %v5643_v44 = vand.u32 2147483648, %v8374_v11 }
 0x576   :  { %5906 = vrsqrt.f32 %v8378_v61  ;;  %vm5657_vm11 = vcmp.eq.f32.partialorder %v8378_v61, inf  ;;  %vm5659_vm12 = vcmp.eq.f32.partialorder %v8378_v61, 0.0  ;;  %v5660_v34 = vand.u32 2147483648, %v8378_v61 }
 0x577   :  { %vm5642_vm0 = vcmp.eq.f32.partialorder %v5641_v53, 8.507059e+37  ;;  %v5644_v29 = vor.u32 1.1754944e-38, %v5643_v44 }
 0x578   :  { %v5901_v40 = vpop.eup %5900 }
 0x579   :  { %v5903_v5 = vpop.eup %5902  ;;  %v5615_v36 = vmul.f32 %v5901_v40, %v5433_v31 }
 0x57a   :  { %v5611_v6 = vmul.f32 0.6931472, %v5903_v5  ;;  %v8381_v59 = vpop.eup %5904 }
 0x57b   :  { %v5616_v20 = vmul.f32 %v5901_v40, %v5615_v36  ;;  %v5633_v21 = vmul.f32 %v8381_v59, %v8374_v11  ;;  %vm5638_vm10 = vweird.f32 %v8381_v59 }
 0x57c   :  { %v8383_v8 = vadd.f32 %v5611_v6, %v5604_v19  ;;  %v5907_v50 = vpop.eup %5906  ;;  %vm8425_vm13 = vmor %vm5637_vm9, %vm5638_vm10 }
 0x57d   :  { %v5617_v32 = vmul.f32 0.5, %v5616_v20  ;;  %v5651_v62 = vmul.f32 %v5907_v50, %v8378_v61  ;;  %v5634_v48 = vsub.f32 1.0, %v5633_v21 }
 0x57e   :  { %5908 = vrsqrt.f32 %v8383_v8  ;;  %v8389_v60 = vmul.f32 2.0, %v8383_v8  ;;  %vm5694_vm15 = vcmp.eq.f32.partialorder %v8383_v8, inf  ;;  %v5697_v26 = vand.u32 2147483648, %v8383_v8 }
 0x57f   :  { %v5618_v47 = vsub.f32 1.5, %v5617_v32  ;;  %v5652_v23 = vmul.f32 %v5907_v50, %v5651_v62  ;;  %v5635_v17 = vmul.f32 %v8381_v59, %v5634_v48  ;;  %vm5696_vm2 = vcmp.eq.f32.partialorder %v8383_v8, 0.0 }
 0x580   :  { %5910 = vrcp.f32 %v8389_v60  ;;  %v8394_v63 = vmul.f32 3.1415927, %v8389_v60  ;;  %v5714_v19 = vand.u32 2147483647, %v8389_v60  ;;  %vm5710_vm3 = vweird.f32 %v8389_v60 }
 0x581   :  { %v5619_v22 = vmul.f32 %v5901_v40, %v5618_v47  ;;  %v5653_v28 = vmul.f32 0.5, %v5652_v23  ;;  %v5636_v37 = vadd.f32 %v8381_v59, %v5635_v17 }
 0x582   :  { %5912 = vrsqrt.f32 %v8394_v63  ;;  %vm8456_vm5 = vcmp.eq.f32.partialorder %v5714_v19, 8.507059e+37  ;;  %vm5730_vm6 = vcmp.eq.f32.partialorder %v8394_v63, inf  ;;  %v5733_v18 = vand.u32 2147483648, %v8394_v63 }
 0x583   :  { %v5620_v15 = vmul.f32 %v5619_v22, %v5433_v31  ;;  %v5654_v42 = vsub.f32 1.5, %v5653_v28  ;;  %v5640_v58 = vsel %vm8425_vm13, %v8381_v59, %v5636_v37 }
 0x584   :  { %v5909_v16 = vpop.eup %5908  ;;  %v5645_v5 = vsel %vm5642_vm0, %v5644_v29, %v5640_v58 }
 0x585   :  { %v5688_v39 = vmul.f32 %v5909_v16, %v8383_v8  ;;  %v5622_v56 = vsel %vm5621_vm7, %v5433_v31, %v5620_v15  ;;  %v5655_v57 = vmul.f32 %v5907_v50, %v5654_v42  ;;  %v5716_v50 = vand.u32 2147483648, %v8389_v60 }
 0x586   :  { %v8406_v54 = vpop.eup %5910  ;;  %v5625_v14 = vsel %vm5623_vm8, %v5624_v52, %v5622_v56  ;;  %vm5732_vm7 = vcmp.eq.f32.partialorder %v8394_v63, 0.0 }
 0x587   :  { %v5689_v0 = vmul.f32 %v5909_v16, %v5688_v39  ;;  %v5626_v27 = vmul.f32 %v5625_v14, %v5613_v12  ;;  %v5706_v45 = vmul.f32 %v8406_v54, %v8389_v60  ;;  %v5656_v55 = vmul.f32 %v5655_v57, %v8378_v61 }
 0x588   :  { %v5913_v43 = vpop.eup %5912  ;;  %vm5711_vm4 = vweird.f32 %v8406_v54  ;;  %v5717_v39 = vor.u32 1.1754944e-38, %v5716_v50 }
 0x589   :  { %v5690_v46 = vmul.f32 0.5, %v5689_v0  ;;  %v5627_v24 = vadd.f32 %v5626_v27, %v5082_v7  ;;  %v5724_v35 = vmul.f32 %v5913_v43, %v8394_v63  ;;  %v5658_v1 = vsel %vm5657_vm11, %v8378_v61, %v5656_v55  ;;  %v5686_v61 = vld [vmem:[%s8523_s23] sm:$0x3]  ;;  %s5765_s23 = sshll.u32 %s8524_s24, 4  ;;  %vm8475_vm9 = vmor %vm5710_vm3, %vm5711_vm4  ;;  %s6042_s24 = smov [#allocation15]   ;;  %s5766_s23 = int_to_ptr.hbm [resolvable:$true] %s5765_s23 }
 0x58a   :  { %v8433_v30 = vsel %vm5659_vm12, %v5660_v34, %v5658_v1  ;;  %v5707_v51 = vsub.f32 1.0, %v5706_v45  ;;  %s5774_s29 = sshll.u32 %s6042_s24, 4  ;;  %s5775_s29 = int_to_ptr.vmem [resolvable:$true] %s5774_s29 }
 0x58b   :  { %v5691_v38 = vsub.f32 1.5, %v5690_v46  ;;  %v5628_v13 = vsub.f32 %v5627_v24, %v5082_v7  ;;  %v5681_v10 = vmax.f32 %v5627_v24, 0.0  ;;  %v5725_v33 = vmul.f32 %v5913_v43, %v5724_v35 }
 0x58c   :  { %5914 = vrcp.f32 %v8433_v30  ;;  %v5708_v36 = vmul.f32 %v8406_v54, %v5707_v51  ;;  %v5673_v17 = vand.u32 2147483648, %v8433_v30  ;;  %v5671_v0 = vand.u32 2147483647, %v8433_v30 }
 0x58d   :  { %v5692_v9 = vmul.f32 %v5909_v16, %v5691_v38  ;;  %v5629_v4 = vmul.f32 %v5628_v13, %v5628_v13  ;;  %v5682_v49 = vmin.f32 %v5681_v10, 7.0  ;;  %v5726_v20 = vmul.f32 0.5, %v5725_v33 }
 0x58e   :  { %v5709_v3 = vadd.f32 %v8406_v54, %v5708_v36  ;;  %vm5667_vm10 = vweird.f32 %v8433_v30  ;;  %vm5672_vm13 = vcmp.eq.f32.partialorder %v5671_v0, 8.507059e+37 }
 0x58f   :  { %v5693_v31 = vmul.f32 %v5692_v9, %v8383_v8  ;;  %v5630_v25 = vsub.f32 0.0, %v5629_v4  ;;  %vm5830_vm1 = vcmp.lt.s32.totalorder %v5682_v49, 0  ;;  %v5831_v11 = vceil.f32 %v5682_v49 }
 0x590   :  { %v5832_v40 = vfloor.f32 %v5682_v49  ;;  %v5727_v22 = vsub.f32 1.5, %v5726_v20  ;;  %v5713_v37 = vsel %vm8475_vm9, %v8406_v54, %v5709_v3 }
 0x591   :  { %v5695_v6 = vsel %vm5694_vm15, %v8383_v8, %v5693_v31  ;;  %v5646_v59 = vmul.f32 %v5645_v5, %v5630_v25  ;;  %v5718_v35 = vsel %vm8456_vm5, %v5717_v39, %v5713_v37 }
 0x592   :  { %v5698_v21 = vsel %vm5696_vm2, %v5697_v26, %v5695_v6  ;;  %v5833_v32 = vsel %vm5830_vm1, %v5831_v11, %v5832_v40  ;;  %v5915_v47 = vpop.eup %5914  ;;  %v5728_v12 = vmul.f32 %v5913_v43, %v5727_v22  ;;  %v5674_v43 = vor.u32 1.1754944e-38, %v5673_v17 }
 0x593   :  { %v5699_v62 = vmul.f32 %v5698_v21, %v5686_v61  ;;  %v5834_v48 = vcvt.f32.s32 %v5833_v32  ;;  %v5647_v8 = vmul.f32 1.442695, %v5646_v59  ;;  %v5663_v23 = vmul.f32 %v5915_v47, %v8433_v30 }
 0x594   :  { %v5729_v7 = vmul.f32 %v5728_v12, %v8394_v63  ;;  %vm5668_vm8 = vweird.f32 %v5915_v47 }
 0x595   :  { %v5700_v28 = vadd.f32 %v5699_v62, %v5254_v2  ;;  %v5684_v16 = vadd.s32 2, %v5834_v48  ;;  %5916 = vpow2.f32 %v5647_v8  ;;  %v5664_v52 = vsub.f32 1.0, %v5663_v23  ;;  %vm5669_vm12 = vmor %vm5667_vm10, %vm5668_vm8 }
 0x596   :  { %v5731_v53 = vsel %vm5730_vm6, %v8394_v63, %v5729_v7 }
 0x597   :  { %v5701_v56 = vsub.f32 %v5700_v28, %v5254_v2  ;;  %v5753_v42 = vmax.f32 %v5700_v28, 0.0  ;;  %5685 = vst.msk [vmem:[#allocation13] sm:$0x3] %vm5679_vm14, %v5684_v16  ;;  %v5665_v14 = vmul.f32 %v5915_v47, %v5664_v52  ;;  %v5734_v46 = vsel %vm5732_vm7, %v5733_v18, %v5731_v53 }
 0x598   :  { %5768 = dma.vmem_to_hbm [thread:$0]  %s5764_s5, 32, %s5766_s23, [#allocation14]   ;;  %5918 = vrcp.f32 %v5734_v46  ;;  %v5746_v9 = vand.u32 2147483648, %v5734_v46  ;;  %v5744_v26 = vand.u32 2147483647, %v5734_v46  ;;  %vm5740_vm0 = vweird.f32 %v5734_v46 }
 0x599   :  { %v5702_v2 = vmul.f32 %v5701_v56, %v5701_v56  ;;  %v5754_v57 = vmin.f32 %v5753_v42, 7.0  ;;  %v5666_v45 = vadd.f32 %v5915_v47, %v5665_v14 }
 0x59a   :  { %v5747_v25 = vor.u32 1.1754944e-38, %v5746_v9  ;;  %vm5745_vm2 = vcmp.eq.f32.partialorder %v5744_v26, 8.507059e+37 }
 0x59b   :  { %v5917_v60 = vpop.eup %5916  ;;  %v5703_v24 = vsub.f32 0.0, %v5702_v2  ;;  %vm5835_vm11 = vcmp.lt.s32.totalorder %v5754_v57, 0  ;;  %v5836_v44 = vceil.f32 %v5754_v57  ;;  %v5837_v55 = vfloor.f32 %v5754_v57 }
 0x59c   :  { %v5670_v34 = vsel %vm5669_vm12, %v5915_v47, %v5666_v45 }
 0x59d   :  { %v5838_v54 = vsel %vm5835_vm11, %v5836_v44, %v5837_v55  ;;  %v5675_v63 = vsel %vm5672_vm13, %v5674_v43, %v5670_v34  ;;  %v5719_v38 = vmul.f32 %v5718_v35, %v5703_v24 }
 0x59e   :  { %v5839_v13 = vcvt.f32.s32 %v5838_v54  ;;  %v5676_v10 = vmul.f32 %v5917_v60, %v5675_v63  ;;  %v5919_v58 = vpop.eup %5918 }
 0x59f   :  { %v5720_v1 = vmul.f32 1.442695, %v5719_v38  ;;  %v5736_v30 = vmul.f32 %v5919_v58, %v5734_v46  ;;  %vm5741_vm15 = vweird.f32 %v5919_v58 }
 0x5a0   :  { %v5756_v41 = vadd.s32 2, %v5839_v13  ;;  %5920 = vlog2.f32 %v5676_v10  ;;  %vm5742_vm1 = vmor %vm5740_vm0, %vm5741_vm15 }
 0x5a1   :  { %5922 = vpow2.f32 %v5720_v1  ;;  %v5737_v51 = vsub.f32 1.0, %v5736_v30 }
 0x5a2   :  { %5757 = vst.msk [vmem:[#allocation15] sm:$0x3] %vm5679_vm14, %v5756_v41 }
 0x5a3   :  { %5779 = dma.vmem_to_hbm [thread:$0]  %s5775_s29, 32, %s5777_s4, [#allocation16]   ;;  %v5738_v49 = vmul.f32 %v5919_v58, %v5737_v51 }
 0x5a5   :  { %v5739_v29 = vadd.f32 %v5919_v58, %v5738_v49 }
 0x5a6   :  { %v5921_v33 = vpop.eup %5920 }
 0x5a7   :  { %v5678_v4 = vmul.f32 0.6931472, %v5921_v33  ;;  %v5923_v31 = vpop.eup %5922  ;;  %v5743_v11 = vsel %vm5742_vm1, %v5919_v58, %v5739_v29 }
 0x5a8   :  { %v5748_v61 = vsel %vm5745_vm2, %v5747_v25, %v5743_v11 }
 0x5a9   :  { %5680 = vst.msk [vmem:[#allocation17] sm:$0x3] %vm5679_vm14, %v5678_v4  ;;  %v5749_v40 = vmul.f32 %v5923_v31, %v5748_v61 }
 0x5aa   :  { %5790 = dma.vmem_to_hbm [thread:$0]  %s5786_s19, 32, %s5788_s25, [#allocation16]  }
 0x5ab   :  { %5924 = vlog2.f32 %v5749_v40 }
 0x5b1   :  { %v5925_v5 = vpop.eup %5924 }
 0x5b2   :  { %v5751_v36 = vmul.f32 0.6931472, %v5925_v5 }
 0x5b4   :  { %5752 = vst.msk [vmem:[#allocation18] sm:$0x3] %vm5679_vm14, %v5751_v36 }
 0x5b5   :  { %5801 = dma.vmem_to_hbm [thread:$0]  %s5797_s12, 32, %s5799_s11, [#allocation19]  }
 0x5b6   :  { %6034 = dma.done.wait [#allocation14], 32  }
 0x5b7   :  { %6035 = vsyncadd [#allocation14], 4294967264 }
 0x5b8   :  { %6036 = dma.done.wait [#allocation16], 64  }
 0x5b9   :  { %6037 = vsyncadd [#allocation16], 4294967232 }
 0x5ba   :  { %6038 = dma.done.wait [#allocation19], 32  }
 0x5bb   :  { %6039 = vsyncadd [#allocation19], 4294967264 }
 0x5bc   :  { %5818 = vsyncpa [#allocation14], 1 }
 0x5bd   :  { %5819 = vsyncpa [#allocation16], 1 }
 0x5be   :  { %5820 = vsyncpa [#allocation19], 1 }

</bundles_post_ra>
